<compile_context>
chip_gen: v7x
topology: tpu7x:2x2x1
jax: 0.10.0
libtpu: 0.0.40
codegen_flags: <defaults>
</compile_context>

<pallas_src>
import functools

import jax
import jax.numpy as jnp
from jax import lax
from jax.experimental import pallas as pl
from jax.experimental.pallas import tpu as pltpu

_BN_EPS = 1e-5
_LANE = 128


def _round_up(a, b):
    return (a + b - 1) // b * b


_VMEM_LIMIT = None


def _vmem_limit_bytes():
    """Per-generation scoped-VMEM budget (v7x has only 64 MiB per TensorCore)."""
    global _VMEM_LIMIT
    if _VMEM_LIMIT is None:
        try:
            cap = int(pltpu.get_tpu_info().vmem_capacity_bytes)
        except Exception:
            cap = 64 * 1024 * 1024  # conservative fallback
        _VMEM_LIMIT = min(max(cap // 2, 16 * 1024 * 1024), 64 * 1024 * 1024)
    return _VMEM_LIMIT


# ---------------------------------------------------------------------------
# Pallas kernel: MXU matmul (bf16 in, f32 acc) + per-channel affine + tanh
# ---------------------------------------------------------------------------
def _mm_kernel(p_ref, w_ref, scale_ref, shift_ref, o_ref, *, post_act):
    acc = jnp.dot(p_ref[0], w_ref[0], preferred_element_type=jnp.float32)
    y = acc * scale_ref[...] + shift_ref[...]
    if post_act == "tanh":
        y = jnp.tanh(y)
    o_ref[0] = y


def _fused_matmul(patches, w_packed, scale, shift, post_act):
    """patches: (G, M, K) bf16; w_packed: (G, Kp, CN) bf16; scale/shift: (1, CN) f32.

    Returns (G, Mp, CN) float32; caller slices valid M rows / Cout columns."""
    G, M, K = patches.shape
    _, Kp, CN = w_packed.shape

    # Tile M so one (TM, Kp) bf16 block is ~4 MiB: big enough to approach the
    # HBM roofline, small enough that double-buffered inputs + resident weight
    # + output stay well inside every generation's VMEM budget.
    M16 = _round_up(M, 16)
    tm_cap = max(256, min(1024, ((4 << 20) // (Kp * 2)) // 16 * 16))
    TM = min(M16, tm_cap)
    Mp = _round_up(M, TM)

    p = jnp.pad(patches, ((0, 0), (0, Mp - M), (0, Kp - K)))

    kern = functools.partial(_mm_kernel, post_act=post_act)
    return pl.pallas_call(
        kern,
        out_shape=jax.ShapeDtypeStruct((G, Mp, CN), jnp.float32),
        grid=(G, Mp // TM),
        in_specs=[
            pl.BlockSpec((1, TM, Kp), lambda g, i: (g, i, 0)),
            pl.BlockSpec((1, Kp, CN), lambda g, i: (g, 0, 0)),
            pl.BlockSpec((1, CN), lambda g, i: (0, 0)),
            pl.BlockSpec((1, CN), lambda g, i: (0, 0)),
        ],
        out_specs=pl.BlockSpec((1, TM, CN), lambda g, i: (g, i, 0)),
        compiler_params=pltpu.CompilerParams(
            dimension_semantics=("parallel", "parallel"),
            vmem_limit_bytes=_vmem_limit_bytes(),
        ),
    )(p, w_packed, scale, shift)


# ---------------------------------------------------------------------------
# Activations (applied once on the producer tensor, NOT in patch space)
# ---------------------------------------------------------------------------
def _act(x, kind):
    if kind == "leaky":
        return jnp.where(x > 0, x, 0.2 * x)
    if kind == "relu":
        return jnp.maximum(x, 0.0)
    if kind == "tanh":
        return jnp.tanh(x)
    return x


# ---------------------------------------------------------------------------
# Conv3d(k=4, s=2, p=1) via im2col + fused Pallas matmul
# ---------------------------------------------------------------------------
def pallas_conv3d(x, layer, pre_act):
    x = _act(x, pre_act).astype(jnp.bfloat16)  # 1x activation + bf16 patch stream
    N, D, H, W, C = x.shape
    Do, Ho, Wo = D // 2, H // 2, W // 2
    xp = jnp.pad(x, ((0, 0), (1, 1), (1, 1), (1, 1), (0, 0)))
    cols = []
    for kd in range(4):
        for kh in range(4):
            for kw in range(4):
                cols.append(xp[:, kd:kd + 2 * Do:2,
                                  kh:kh + 2 * Ho:2,
                                  kw:kw + 2 * Wo:2, :])
    M = N * Do * Ho * Wo
    patches = jnp.stack(cols, axis=4).reshape(1, M, 64 * C)
    out = _fused_matmul(patches, layer["w"], layer["scale"], layer["shift"], "none")
    Cout = layer["cout"]
    return out[0, :M, :Cout].reshape(N, Do, Ho, Wo, Cout)


# ---------------------------------------------------------------------------
# ConvTranspose3d(k=4, s=2, p=1) via sub-pixel (parity) decomposition
#   out[n, 2d+rd, 2h+rh, 2w+rw] = sum_{a in {0,1}^3}
#       xp[n, d+rd+ad, h+rh+ah, w+rw+aw] . W[:, :, 3-rd-2ad, 3-rh-2ah, 3-rw-2aw]
#   with xp = x zero-padded by 1  (8 independent 2x2x2 stride-1 convs).
# ---------------------------------------------------------------------------
def pallas_convtranspose3d(x, layer, pre_act, post_act):
    x = _act(x, pre_act).astype(jnp.bfloat16)
    N, D, H, W, C = x.shape
    xp = jnp.pad(x, ((0, 0), (1, 1), (1, 1), (1, 1), (0, 0)))
    M = N * D * H * W
    pats = []
    for rd in range(2):
        for rh in range(2):
            for rw in range(2):
                cols = []
                for ad in range(2):
                    for ah in range(2):
                        for aw in range(2):
                            cols.append(xp[:, rd + ad:rd + ad + D,
                                              rh + ah:rh + ah + H,
                                              rw + aw:rw + aw + W, :])
                pats.append(jnp.stack(cols, axis=4).reshape(M, 8 * C))
    patches = jnp.stack(pats, axis=0)                       # (8, M, 8*C)
    out = _fused_matmul(patches, layer["w"], layer["scale"], layer["shift"], post_act)
    Cout = layer["cout"]
    out = out[:, :M, :Cout].reshape(2, 2, 2, N, D, H, W, Cout)
    out = jnp.transpose(out, (3, 4, 0, 5, 1, 6, 2, 7))      # (N, D, 2, H, 2, W, 2, C)
    return out.reshape(N, 2 * D, 2 * H, 2 * W, Cout)


# ---------------------------------------------------------------------------
# One-time weight packing (done OUTSIDE the jitted forward)
# ---------------------------------------------------------------------------
_DOWN = ["d5", "d4", "d3", "d2", "d1"]
_UP = ["u1", "u2", "u3", "u4", "u5"]


def prepare_pallas_params(P):
    PP = {}
    for name in _DOWN:
        w_pt = P[name + "_w"]                         # (Cout, Cin, 4, 4, 4)
        Cout, Cin = int(w_pt.shape[0]), int(w_pt.shape[1])
        K = 64 * Cin
        Kp, CN = _round_up(K, _LANE), _round_up(Cout, _LANE)
        w = jnp.transpose(w_pt, (2, 3, 4, 1, 0)).reshape(K, Cout)
        w = jnp.pad(w, ((0, Kp - K), (0, CN - Cout))).astype(jnp.bfloat16)[None]
        PP[name] = dict(
            w=w,
            scale=jnp.pad(P[name + "_scale"].reshape(1, -1), ((0, 0), (0, CN - Cout))),
            shift=jnp.pad(P[name + "_shift"].reshape(1, -1), ((0, 0), (0, CN - Cout))),
            cout=Cout)
    for name in _UP:
        w_pt = P[name + "_w"]                         # (Cin, Cout, 4, 4, 4)
        Cin, Cout = int(w_pt.shape[0]), int(w_pt.shape[1])
        K = 8 * Cin
        Kp, CN = _round_up(K, _LANE), _round_up(Cout, _LANE)
        mats = []
        for rd in range(2):
            for rh in range(2):
                for rw in range(2):
                    taps = [w_pt[:, :, 3 - rd - 2 * ad, 3 - rh - 2 * ah, 3 - rw - 2 * aw]
                            for ad in range(2) for ah in range(2) for aw in range(2)]
                    m = jnp.stack(taps, axis=0).reshape(K, Cout)   # K order (a, cin)
                    mats.append(jnp.pad(m, ((0, Kp - K), (0, CN - Cout))))
        w = jnp.stack(mats, axis=0).astype(jnp.bfloat16)           # (8, Kp, CN)
        PP[name] = dict(
            w=w,
            scale=jnp.pad(P[name + "_scale"].reshape(1, -1), ((0, 0), (0, CN - Cout))),
            shift=jnp.pad(P[name + "_shift"].reshape(1, -1), ((0, 0), (0, CN - Cout))),
            cout=Cout)
    return PP


# ---------------------------------------------------------------------------
# U-Net forward (num_downs = 5).  Sequential order per block matches PyTorch:
#   down = [(LeakyReLU), Conv3d, (BN)] ; up = [ReLU, ConvTranspose3d, (BN/Tanh)]
#   non-outermost blocks return cat([x, model(x)], channel).
# ---------------------------------------------------------------------------
def unet_forward_pallas(x, PP):
    d5 = pallas_conv3d(x,  PP["d5"], "none")     # outermost down: conv only
    d4 = pallas_conv3d(d5, PP["d4"], "leaky")
    d3 = pallas_conv3d(d4, PP["d3"], "leaky")
    d2 = pallas_conv3d(d3, PP["d2"], "leaky")
    d1 = pallas_conv3d(d2, PP["d1"], "leaky")    # innermost down
    u1 = pallas_convtranspose3d(d1, PP["u1"], "relu", "none")
    c1 = jnp.concatenate([d2, u1], axis=-1)
    u2 = pallas_convtranspose3d(c1, PP["u2"], "relu", "none")
    c2 = jnp.concatenate([d3, u2], axis=-1)
    u3 = pallas_convtranspose3d(c2, PP["u3"], "relu", "none")
    c3 = jnp.concatenate([d4, u3], axis=-1)
    u4 = pallas_convtranspose3d(c3, PP["u4"], "relu", "none")
    c4 = jnp.concatenate([d5, u4], axis=-1)
    return pallas_convtranspose3d(c4, PP["u5"], "relu", "tanh")


# ---------------------------------------------------------------------------
# Pure-JAX reference (same math via lax.conv, same bf16 operand rounding)
# ---------------------------------------------------------------------------
def ref_conv3d(x, w_pt, scale, shift, pre_act):
    x = _act(x, pre_act).astype(jnp.bfloat16)
    w = jnp.transpose(w_pt, (2, 3, 4, 1, 0)).astype(jnp.bfloat16)
    y = lax.conv_general_dilated(
        x, w, window_strides=(2, 2, 2), padding=[(1, 1)] * 3,
        dimension_numbers=("NDHWC", "DHWIO", "NDHWC"),
        preferred_element_type=jnp.float32)
    return y * scale + shift


def ref_convtranspose3d(x, w_pt, scale, shift, pre_act, post_act):
    x = _act(x, pre_act).astype(jnp.bfloat16)
    w = jnp.transpose(jnp.flip(w_pt, axis=(2, 3, 4)), (2, 3, 4, 0, 1)).astype(jnp.bfloat16)
    y = lax.conv_general_dilated(
        x, w, window_strides=(1, 1, 1), padding=[(2, 2)] * 3,
        lhs_dilation=(2, 2, 2),
        dimension_numbers=("NDHWC", "DHWIO", "NDHWC"),
        preferred_element_type=jnp.float32)
    y = y * scale + shift
    return _act(y, post_act)


def unet_forward_ref(x, P):
    d5 = ref_conv3d(x,  P["d5_w"], P["d5_scale"], P["d5_shift"], "none")
    d4 = ref_conv3d(d5, P["d4_w"], P["d4_scale"], P["d4_shift"], "leaky")
    d3 = ref_conv3d(d4, P["d3_w"], P["d3_scale"], P["d3_shift"], "leaky")
    d2 = ref_conv3d(d3, P["d2_w"], P["d2_scale"], P["d2_shift"], "leaky")
    d1 = ref_conv3d(d2, P["d1_w"], P["d1_scale"], P["d1_shift"], "leaky")
    u1 = ref_convtranspose3d(d1, P["u1_w"], P["u1_scale"], P["u1_shift"], "relu", "none")
    c1 = jnp.concatenate([d2, u1], axis=-1)
    u2 = ref_convtranspose3d(c1, P["u2_w"], P["u2_scale"], P["u2_shift"], "relu", "none")
    c2 = jnp.concatenate([d3, u2], axis=-1)
    u3 = ref_convtranspose3d(c2, P["u3_w"], P["u3_scale"], P["u3_shift"], "relu", "none")
    c3 = jnp.concatenate([d4, u3], axis=-1)
    u4 = ref_convtranspose3d(c3, P["u4_w"], P["u4_scale"], P["u4_shift"], "relu", "none")
    c4 = jnp.concatenate([d5, u4], axis=-1)
    return ref_convtranspose3d(c4, P["u5_w"], P["u5_scale"], P["u5_shift"], "relu", "tanh")


# ---------------------------------------------------------------------------
# Deterministic parameter initialization (shapes from the module __init__)
# ---------------------------------------------------------------------------
def init_params(key, input_nc, g):
    P = {}
    # (name, Cin, Cout, has_bn)       -- Conv3d, bias=False (BatchNorm -> use_bias=False)
    down = [("d5", input_nc, g, False),
            ("d4", g,      2 * g, True),
            ("d3", 2 * g,  4 * g, True),
            ("d2", 4 * g,  8 * g, True),
            ("d1", 8 * g,  8 * g, False)]
    # (name, Cin, Cout, has_bn, has_bias) -- ConvTranspose3d
    up = [("u1", 8 * g,  8 * g, True,  False),
          ("u2", 16 * g, 4 * g, True,  False),
          ("u3", 8 * g,  2 * g, True,  False),
          ("u4", 4 * g,  g,     True,  False),
          ("u5", 2 * g,  1,     False, True)]

    def bn_fold(k, c, bias):
        kg, kb, km, kv = jax.random.split(k, 4)
        gamma = 1.0 + 0.1 * jax.random.normal(kg, (c,), jnp.float32)
        beta = 0.1 * jax.random.normal(kb, (c,), jnp.float32)
        mean = 0.1 * jax.random.normal(km, (c,), jnp.float32)
        var = 1.0 + 0.2 * jax.random.uniform(kv, (c,), jnp.float32)
        scale = gamma / jnp.sqrt(var + _BN_EPS)
        shift = beta + (bias - mean) * scale
        return scale, shift

    for name, ci, co, has_bn in down:
        key, kw, kb = jax.random.split(key, 3)
        P[name + "_w"] = jax.random.normal(kw, (co, ci, 4, 4, 4), jnp.float32) * (2.0 / (ci * 64)) ** 0.5
        if has_bn:
            P[name + "_scale"], P[name + "_shift"] = bn_fold(kb, co, 0.0)
        else:
            P[name + "_scale"] = jnp.ones((co,), jnp.float32)
            P[name + "_shift"] = jnp.zeros((co,), jnp.float32)

    for name, ci, co, has_bn, has_bias in up:
        key, kw, kb, kbias = jax.random.split(key, 4)
        P[name + "_w"] = jax.random.normal(kw, (ci, co, 4, 4, 4), jnp.float32) * (2.0 / (ci * 64)) ** 0.5
        bias = (0.05 * jax.random.normal(kbias, (co,), jnp.float32)
                if has_bias else jnp.zeros((co,), jnp.float32))
        if has_bn:
            P[name + "_scale"], P[name + "_shift"] = bn_fold(kb, co, bias)
        else:
            P[name + "_scale"] = jnp.ones((co,), jnp.float32)
            P[name + "_shift"] = bias
    return P


if __name__ == "__main__":
    # num_downs=5 requires spatial divisible by 32.
    N, INPUT_NC, OUTPUT_NC, NGF, S = 1, 8, 1, 4, 32

    key = jax.random.PRNGKey(0)
    kx, kp = jax.random.split(key)
    params = init_params(kp, INPUT_NC, NGF)
    packed = prepare_pallas_params(params)     # one-time packing, outside jit

    x_ncdhw = jax.random.normal(kx, (N, INPUT_NC, S, S, S), jnp.float32)
    x = jnp.transpose(x_ncdhw, (0, 2, 3, 4, 1))  # -> NDHWC

    fwd_pallas = jax.jit(lambda xx: unet_forward_pallas(xx, packed))
    fwd_ref = jax.jit(lambda xx: unet_forward_ref(xx, params))

    out = fwd_pallas(x)
    out_ncdhw = jnp.transpose(out, (0, 4, 1, 2, 3))
    jax.block_until_ready(out_ncdhw)
    assert out_ncdhw.shape == (N, OUTPUT_NC, S, S, S), out_ncdhw.shape

    ref = jnp.transpose(fwd_ref(x), (0, 4, 1, 2, 3))
    # Both paths round matmul operands to bf16 with f32 accumulation, so the
    # residual difference is reduction-order / epilogue only; tolerance covers
    # occasional bf16 rounding-boundary divergence across the 10 layers.
    max_diff = float(jnp.max(jnp.abs(out_ncdhw - ref)))
    max_ref = float(jnp.max(jnp.abs(ref)))
    if max_diff > 3e-2 + 3e-2 * max_ref:
        raise SystemExit(f"Pallas/reference mismatch: max_diff={max_diff}, max_ref={max_ref}")

    print("KERNEL_OK")
</pallas_src>

<mosaic_0001>
module attributes {stable_mosaic.version = 11 : i64} {
  func.func @_mm_kernel(%arg0: i32, %arg1: i32, %arg2: memref<1x1024x512xbf16, #tpu.memory_space<vmem>>, %arg3: memref<1x512x128xbf16, #tpu.memory_space<vmem>>, %arg4: memref<1x128xf32, #tpu.memory_space<vmem>>, %arg5: memref<1x128xf32, #tpu.memory_space<vmem>>, %arg6: memref<1x1024x128xf32, #tpu.memory_space<vmem>>) attributes {dimension_semantics = [#tpu.dimension_semantics<parallel>, #tpu.dimension_semantics<parallel>], iteration_bounds = array<i64: 1, 4>, scalar_prefetch = 0 : i64, scratch_operands = 0 : i64, tpu.core_type = #tpu.core_type<tc>, window_params = [{transform_indices = @transform_0, window_bounds = array<i64: 1, 1024, 512>}, {transform_indices = @transform_1, window_bounds = array<i64: 1, 512, 128>}, {pipeline_mode = #tpu.pipeline_mode<synchronous>, transform_indices = @transform_2, window_bounds = array<i64: 1, 128>}, {pipeline_mode = #tpu.pipeline_mode<synchronous>, transform_indices = @transform_3, window_bounds = array<i64: 1, 128>}, {transform_indices = @transform_4, window_bounds = array<i64: 1, 1024, 128>}]} {
    %c0 = arith.constant 0 : index
    %c0_0 = arith.constant 0 : index
    %c0_1 = arith.constant 0 : index
    %0 = vector.load %arg2[%c0, %c0_0, %c0_1] : memref<1x1024x512xbf16, #tpu.memory_space<vmem>>, vector<1x1024x512xbf16>
    %1 = vector.shape_cast %0 : vector<1x1024x512xbf16> to vector<1024x512xbf16>
    %c0_2 = arith.constant 0 : index
    %c0_3 = arith.constant 0 : index
    %c0_4 = arith.constant 0 : index
    %2 = vector.load %arg3[%c0_2, %c0_3, %c0_4] : memref<1x512x128xbf16, #tpu.memory_space<vmem>>, vector<1x512x128xbf16>
    %3 = vector.shape_cast %2 : vector<1x512x128xbf16> to vector<512x128xbf16>
    %cst = arith.constant dense<0.000000e+00> : vector<1024x128xf32>
    %4 = tpu.matmul %1, %3, %cst {dimension_numbers = #tpu.dot_dimension_numbers<[1], [0], [0], [1], [0, 0, 1, 1], [], []>} : vector<1024x512xbf16>, vector<512x128xbf16>, vector<1024x128xf32> -> vector<1024x128xf32>
    %c0_5 = arith.constant 0 : index
    %c0_6 = arith.constant 0 : index
    %5 = vector.load %arg4[%c0_5, %c0_6] : memref<1x128xf32, #tpu.memory_space<vmem>>, vector<1x128xf32>
    %6 = vector.broadcast %5 : vector<1x128xf32> to vector<1024x128xf32>
    %7 = arith.mulf %4, %6 : vector<1024x128xf32>
    %c0_7 = arith.constant 0 : index
    %c0_8 = arith.constant 0 : index
    %8 = vector.load %arg5[%c0_7, %c0_8] : memref<1x128xf32, #tpu.memory_space<vmem>>, vector<1x128xf32>
    %9 = vector.broadcast %8 : vector<1x128xf32> to vector<1024x128xf32>
    %10 = arith.addf %7, %9 : vector<1024x128xf32>
    %c0_9 = arith.constant 0 : index
    %c0_10 = arith.constant 0 : index
    %c0_11 = arith.constant 0 : index
    %11 = vector.load %arg6[%c0_9, %c0_10, %c0_11] : memref<1x1024x128xf32, #tpu.memory_space<vmem>>, vector<1x1024x128xf32>
    %12 = vector.shape_cast %11 : vector<1x1024x128xf32> to vector<1024x128xf32>
    %13 = vector.shape_cast %10 : vector<1024x128xf32> to vector<1x1024x128xf32>
    tpu.vector_store %arg6[%c0_9, %c0_10, %c0_11], %13 {strides = array<i32>} : memref<1x1024x128xf32, #tpu.memory_space<vmem>>, vector<1x1024x128xf32>,
    return
  }
  func.func @transform_0(%arg0: i32, %arg1: i32) -> (i32, i32, i32) {
    %c0_i32 = arith.constant 0 : i32
    %c0_i32_0 = arith.constant 0 : i32
    return %arg0, %arg1, %c0_i32 : i32, i32, i32
  }
  func.func @transform_1(%arg0: i32, %arg1: i32) -> (i32, i32, i32) {
    %c0_i32 = arith.constant 0 : i32
    %c0_i32_0 = arith.constant 0 : i32
    %c0_i32_1 = arith.constant 0 : i32
    return %arg0, %c0_i32, %c0_i32_0 : i32, i32, i32
  }
  func.func @transform_2(%arg0: i32, %arg1: i32) -> (i32, i32) {
    %c0_i32 = arith.constant 0 : i32
    %c0_i32_0 = arith.constant 0 : i32
    %c0_i32_1 = arith.constant 0 : i32
    return %c0_i32, %c0_i32_0 : i32, i32
  }
  func.func @transform_3(%arg0: i32, %arg1: i32) -> (i32, i32) {
    %c0_i32 = arith.constant 0 : i32
    %c0_i32_0 = arith.constant 0 : i32
    %c0_i32_1 = arith.constant 0 : i32
    return %c0_i32, %c0_i32_0 : i32, i32
  }
  func.func @transform_4(%arg0: i32, %arg1: i32) -> (i32, i32, i32) {
    %c0_i32 = arith.constant 0 : i32
    %c0_i32_0 = arith.constant 0 : i32
    return %arg0, %arg1, %c0_i32 : i32, i32, i32
  }
}

module attributes {stable_mosaic.version = 11 : i64} {
  func.func @_mm_kernel(%arg0: i32, %arg1: i32, %arg2: memref<1x512x256xbf16, #tpu.memory_space<vmem>>, %arg3: memref<1x256x128xbf16, #tpu.memory_space<vmem>>, %arg4: memref<1x128xf32, #tpu.memory_space<vmem>>, %arg5: memref<1x128xf32, #tpu.memory_space<vmem>>, %arg6: memref<1x512x128xf32, #tpu.memory_space<vmem>>) attributes {dimension_semantics = [#tpu.dimension_semantics<parallel>, #tpu.dimension_semantics<parallel>], iteration_bounds = array<i64: 1, 1>, scalar_prefetch = 0 : i64, scratch_operands = 0 : i64, tpu.core_type = #tpu.core_type<tc>, window_params = [{transform_indices = @transform_0, window_bounds = array<i64: 1, 512, 256>}, {transform_indices = @transform_1, window_bounds = array<i64: 1, 256, 128>}, {pipeline_mode = #tpu.pipeline_mode<synchronous>, transform_indices = @transform_2, window_bounds = array<i64: 1, 128>}, {pipeline_mode = #tpu.pipeline_mode<synchronous>, transform_indices = @transform_3, window_bounds = array<i64: 1, 128>}, {transform_indices = @transform_4, window_bounds = array<i64: 1, 512, 128>}]} {
    %c0 = arith.constant 0 : index
    %c0_0 = arith.constant 0 : index
    %c0_1 = arith.constant 0 : index
    %0 = vector.load %arg2[%c0, %c0_0, %c0_1] : memref<1x512x256xbf16, #tpu.memory_space<vmem>>, vector<1x512x256xbf16>
    %1 = vector.shape_cast %0 : vector<1x512x256xbf16> to vector<512x256xbf16>
    %c0_2 = arith.constant 0 : index
    %c0_3 = arith.constant 0 : index
    %c0_4 = arith.constant 0 : index
    %2 = vector.load %arg3[%c0_2, %c0_3, %c0_4] : memref<1x256x128xbf16, #tpu.memory_space<vmem>>, vector<1x256x128xbf16>
    %3 = vector.shape_cast %2 : vector<1x256x128xbf16> to vector<256x128xbf16>
    %cst = arith.constant dense<0.000000e+00> : vector<512x128xf32>
    %4 = tpu.matmul %1, %3, %cst {dimension_numbers = #tpu.dot_dimension_numbers<[1], [0], [0], [1], [0, 0, 1, 1], [], []>} : vector<512x256xbf16>, vector<256x128xbf16>, vector<512x128xf32> -> vector<512x128xf32>
    %c0_5 = arith.constant 0 : index
    %c0_6 = arith.constant 0 : index
    %5 = vector.load %arg4[%c0_5, %c0_6] : memref<1x128xf32, #tpu.memory_space<vmem>>, vector<1x128xf32>
    %6 = vector.broadcast %5 : vector<1x128xf32> to vector<512x128xf32>
    %7 = arith.mulf %4, %6 : vector<512x128xf32>
    %c0_7 = arith.constant 0 : index
    %c0_8 = arith.constant 0 : index
    %8 = vector.load %arg5[%c0_7, %c0_8] : memref<1x128xf32, #tpu.memory_space<vmem>>, vector<1x128xf32>
    %9 = vector.broadcast %8 : vector<1x128xf32> to vector<512x128xf32>
    %10 = arith.addf %7, %9 : vector<512x128xf32>
    %c0_9 = arith.constant 0 : index
    %c0_10 = arith.constant 0 : index
    %c0_11 = arith.constant 0 : index
    %11 = vector.load %arg6[%c0_9, %c0_10, %c0_11] : memref<1x512x128xf32, #tpu.memory_space<vmem>>, vector<1x512x128xf32>
    %12 = vector.shape_cast %11 : vector<1x512x128xf32> to vector<512x128xf32>
    %13 = vector.shape_cast %10 : vector<512x128xf32> to vector<1x512x128xf32>
    tpu.vector_store %arg6[%c0_9, %c0_10, %c0_11], %13 {strides = array<i32>} : memref<1x512x128xf32, #tpu.memory_space<vmem>>, vector<1x512x128xf32>,
    return
  }
  func.func @transform_0(%arg0: i32, %arg1: i32) -> (i32, i32, i32) {
    %c0_i32 = arith.constant 0 : i32
    %c0_i32_0 = arith.constant 0 : i32
    return %arg0, %arg1, %c0_i32 : i32, i32, i32
  }
  func.func @transform_1(%arg0: i32, %arg1: i32) -> (i32, i32, i32) {
    %c0_i32 = arith.constant 0 : i32
    %c0_i32_0 = arith.constant 0 : i32
    %c0_i32_1 = arith.constant 0 : i32
    return %arg0, %c0_i32, %c0_i32_0 : i32, i32, i32
  }
  func.func @transform_2(%arg0: i32, %arg1: i32) -> (i32, i32) {
    %c0_i32 = arith.constant 0 : i32
    %c0_i32_0 = arith.constant 0 : i32
    %c0_i32_1 = arith.constant 0 : i32
    return %c0_i32, %c0_i32_0 : i32, i32
  }
  func.func @transform_3(%arg0: i32, %arg1: i32) -> (i32, i32) {
    %c0_i32 = arith.constant 0 : i32
    %c0_i32_0 = arith.constant 0 : i32
    %c0_i32_1 = arith.constant 0 : i32
    return %c0_i32, %c0_i32_0 : i32, i32
  }
  func.func @transform_4(%arg0: i32, %arg1: i32) -> (i32, i32, i32) {
    %c0_i32 = arith.constant 0 : i32
    %c0_i32_0 = arith.constant 0 : i32
    return %arg0, %arg1, %c0_i32 : i32, i32, i32
  }
}

module attributes {stable_mosaic.version = 11 : i64} {
  func.func @_mm_kernel(%arg0: i32, %arg1: i32, %arg2: memref<1x64x512xbf16, #tpu.memory_space<vmem>>, %arg3: memref<1x512x128xbf16, #tpu.memory_space<vmem>>, %arg4: memref<1x128xf32, #tpu.memory_space<vmem>>, %arg5: memref<1x128xf32, #tpu.memory_space<vmem>>, %arg6: memref<1x64x128xf32, #tpu.memory_space<vmem>>) attributes {dimension_semantics = [#tpu.dimension_semantics<parallel>, #tpu.dimension_semantics<parallel>], iteration_bounds = array<i64: 1, 1>, scalar_prefetch = 0 : i64, scratch_operands = 0 : i64, tpu.core_type = #tpu.core_type<tc>, window_params = [{transform_indices = @transform_0, window_bounds = array<i64: 1, 64, 512>}, {transform_indices = @transform_1, window_bounds = array<i64: 1, 512, 128>}, {pipeline_mode = #tpu.pipeline_mode<synchronous>, transform_indices = @transform_2, window_bounds = array<i64: 1, 128>}, {pipeline_mode = #tpu.pipeline_mode<synchronous>, transform_indices = @transform_3, window_bounds = array<i64: 1, 128>}, {transform_indices = @transform_4, window_bounds = array<i64: 1, 64, 128>}]} {
    %c0 = arith.constant 0 : index
    %c0_0 = arith.constant 0 : index
    %c0_1 = arith.constant 0 : index
    %0 = vector.load %arg2[%c0, %c0_0, %c0_1] : memref<1x64x512xbf16, #tpu.memory_space<vmem>>, vector<1x64x512xbf16>
    %1 = vector.shape_cast %0 : vector<1x64x512xbf16> to vector<64x512xbf16>
    %c0_2 = arith.constant 0 : index
    %c0_3 = arith.constant 0 : index
    %c0_4 = arith.constant 0 : index
    %2 = vector.load %arg3[%c0_2, %c0_3, %c0_4] : memref<1x512x128xbf16, #tpu.memory_space<vmem>>, vector<1x512x128xbf16>
    %3 = vector.shape_cast %2 : vector<1x512x128xbf16> to vector<512x128xbf16>
    %cst = arith.constant dense<0.000000e+00> : vector<64x128xf32>
    %4 = tpu.matmul %1, %3, %cst {dimension_numbers = #tpu.dot_dimension_numbers<[1], [0], [0], [1], [0, 0, 1, 1], [], []>} : vector<64x512xbf16>, vector<512x128xbf16>, vector<64x128xf32> -> vector<64x128xf32>
    %c0_5 = arith.constant 0 : index
    %c0_6 = arith.constant 0 : index
    %5 = vector.load %arg4[%c0_5, %c0_6] : memref<1x128xf32, #tpu.memory_space<vmem>>, vector<1x128xf32>
    %6 = vector.broadcast %5 : vector<1x128xf32> to vector<64x128xf32>
    %7 = arith.mulf %4, %6 : vector<64x128xf32>
    %c0_7 = arith.constant 0 : index
    %c0_8 = arith.constant 0 : index
    %8 = vector.load %arg5[%c0_7, %c0_8] : memref<1x128xf32, #tpu.memory_space<vmem>>, vector<1x128xf32>
    %9 = vector.broadcast %8 : vector<1x128xf32> to vector<64x128xf32>
    %10 = arith.addf %7, %9 : vector<64x128xf32>
    %c0_9 = arith.constant 0 : index
    %c0_10 = arith.constant 0 : index
    %c0_11 = arith.constant 0 : index
    %11 = vector.load %arg6[%c0_9, %c0_10, %c0_11] : memref<1x64x128xf32, #tpu.memory_space<vmem>>, vector<1x64x128xf32>
    %12 = vector.shape_cast %11 : vector<1x64x128xf32> to vector<64x128xf32>
    %13 = vector.shape_cast %10 : vector<64x128xf32> to vector<1x64x128xf32>
    tpu.vector_store %arg6[%c0_9, %c0_10, %c0_11], %13 {strides = array<i32>} : memref<1x64x128xf32, #tpu.memory_space<vmem>>, vector<1x64x128xf32>,
    return
  }
  func.func @transform_0(%arg0: i32, %arg1: i32) -> (i32, i32, i32) {
    %c0_i32 = arith.constant 0 : i32
    %c0_i32_0 = arith.constant 0 : i32
    return %arg0, %arg1, %c0_i32 : i32, i32, i32
  }
  func.func @transform_1(%arg0: i32, %arg1: i32) -> (i32, i32, i32) {
    %c0_i32 = arith.constant 0 : i32
    %c0_i32_0 = arith.constant 0 : i32
    %c0_i32_1 = arith.constant 0 : i32
    return %arg0, %c0_i32, %c0_i32_0 : i32, i32, i32
  }
  func.func @transform_2(%arg0: i32, %arg1: i32) -> (i32, i32) {
    %c0_i32 = arith.constant 0 : i32
    %c0_i32_0 = arith.constant 0 : i32
    %c0_i32_1 = arith.constant 0 : i32
    return %c0_i32, %c0_i32_0 : i32, i32
  }
  func.func @transform_3(%arg0: i32, %arg1: i32) -> (i32, i32) {
    %c0_i32 = arith.constant 0 : i32
    %c0_i32_0 = arith.constant 0 : i32
    %c0_i32_1 = arith.constant 0 : i32
    return %c0_i32, %c0_i32_0 : i32, i32
  }
  func.func @transform_4(%arg0: i32, %arg1: i32) -> (i32, i32, i32) {
    %c0_i32 = arith.constant 0 : i32
    %c0_i32_0 = arith.constant 0 : i32
    return %arg0, %arg1, %c0_i32 : i32, i32, i32
  }
}

module attributes {stable_mosaic.version = 11 : i64} {
  func.func @_mm_kernel(%arg0: i32, %arg1: i32, %arg2: memref<1x16x1024xbf16, #tpu.memory_space<vmem>>, %arg3: memref<1x1024x128xbf16, #tpu.memory_space<vmem>>, %arg4: memref<1x128xf32, #tpu.memory_space<vmem>>, %arg5: memref<1x128xf32, #tpu.memory_space<vmem>>, %arg6: memref<1x16x128xf32, #tpu.memory_space<vmem>>) attributes {dimension_semantics = [#tpu.dimension_semantics<parallel>, #tpu.dimension_semantics<parallel>], iteration_bounds = array<i64: 1, 1>, scalar_prefetch = 0 : i64, scratch_operands = 0 : i64, tpu.core_type = #tpu.core_type<tc>, window_params = [{transform_indices = @transform_0, window_bounds = array<i64: 1, 16, 1024>}, {transform_indices = @transform_1, window_bounds = array<i64: 1, 1024, 128>}, {pipeline_mode = #tpu.pipeline_mode<synchronous>, transform_indices = @transform_2, window_bounds = array<i64: 1, 128>}, {pipeline_mode = #tpu.pipeline_mode<synchronous>, transform_indices = @transform_3, window_bounds = array<i64: 1, 128>}, {transform_indices = @transform_4, window_bounds = array<i64: 1, 16, 128>}]} {
    %c0 = arith.constant 0 : index
    %c0_0 = arith.constant 0 : index
    %c0_1 = arith.constant 0 : index
    %0 = vector.load %arg2[%c0, %c0_0, %c0_1] : memref<1x16x1024xbf16, #tpu.memory_space<vmem>>, vector<1x16x1024xbf16>
    %1 = vector.shape_cast %0 : vector<1x16x1024xbf16> to vector<16x1024xbf16>
    %c0_2 = arith.constant 0 : index
    %c0_3 = arith.constant 0 : index
    %c0_4 = arith.constant 0 : index
    %2 = vector.load %arg3[%c0_2, %c0_3, %c0_4] : memref<1x1024x128xbf16, #tpu.memory_space<vmem>>, vector<1x1024x128xbf16>
    %3 = vector.shape_cast %2 : vector<1x1024x128xbf16> to vector<1024x128xbf16>
    %cst = arith.constant dense<0.000000e+00> : vector<16x128xf32>
    %4 = tpu.matmul %1, %3, %cst {dimension_numbers = #tpu.dot_dimension_numbers<[1], [0], [0], [1], [0, 0, 1, 1], [], []>} : vector<16x1024xbf16>, vector<1024x128xbf16>, vector<16x128xf32> -> vector<16x128xf32>
    %c0_5 = arith.constant 0 : index
    %c0_6 = arith.constant 0 : index
    %5 = vector.load %arg4[%c0_5, %c0_6] : memref<1x128xf32, #tpu.memory_space<vmem>>, vector<1x128xf32>
    %6 = vector.broadcast %5 : vector<1x128xf32> to vector<16x128xf32>
    %7 = arith.mulf %4, %6 : vector<16x128xf32>
    %c0_7 = arith.constant 0 : index
    %c0_8 = arith.constant 0 : index
    %8 = vector.load %arg5[%c0_7, %c0_8] : memref<1x128xf32, #tpu.memory_space<vmem>>, vector<1x128xf32>
    %9 = vector.broadcast %8 : vector<1x128xf32> to vector<16x128xf32>
    %10 = arith.addf %7, %9 : vector<16x128xf32>
    %c0_9 = arith.constant 0 : index
    %c0_10 = arith.constant 0 : index
    %c0_11 = arith.constant 0 : index
    %11 = vector.load %arg6[%c0_9, %c0_10, %c0_11] : memref<1x16x128xf32, #tpu.memory_space<vmem>>, vector<1x16x128xf32>
    %12 = vector.shape_cast %11 : vector<1x16x128xf32> to vector<16x128xf32>
    %13 = vector.shape_cast %10 : vector<16x128xf32> to vector<1x16x128xf32>
    tpu.vector_store %arg6[%c0_9, %c0_10, %c0_11], %13 {strides = array<i32>} : memref<1x16x128xf32, #tpu.memory_space<vmem>>, vector<1x16x128xf32>,
    return
  }
  func.func @transform_0(%arg0: i32, %arg1: i32) -> (i32, i32, i32) {
    %c0_i32 = arith.constant 0 : i32
    %c0_i32_0 = arith.constant 0 : i32
    return %arg0, %arg1, %c0_i32 : i32, i32, i32
  }
  func.func @transform_1(%arg0: i32, %arg1: i32) -> (i32, i32, i32) {
    %c0_i32 = arith.constant 0 : i32
    %c0_i32_0 = arith.constant 0 : i32
    %c0_i32_1 = arith.constant 0 : i32
    return %arg0, %c0_i32, %c0_i32_0 : i32, i32, i32
  }
  func.func @transform_2(%arg0: i32, %arg1: i32) -> (i32, i32) {
    %c0_i32 = arith.constant 0 : i32
    %c0_i32_0 = arith.constant 0 : i32
    %c0_i32_1 = arith.constant 0 : i32
    return %c0_i32, %c0_i32_0 : i32, i32
  }
  func.func @transform_3(%arg0: i32, %arg1: i32) -> (i32, i32) {
    %c0_i32 = arith.constant 0 : i32
    %c0_i32_0 = arith.constant 0 : i32
    %c0_i32_1 = arith.constant 0 : i32
    return %c0_i32, %c0_i32_0 : i32, i32
  }
  func.func @transform_4(%arg0: i32, %arg1: i32) -> (i32, i32, i32) {
    %c0_i32 = arith.constant 0 : i32
    %c0_i32_0 = arith.constant 0 : i32
    return %arg0, %arg1, %c0_i32 : i32, i32, i32
  }
}

module attributes {stable_mosaic.version = 11 : i64} {
  func.func @_mm_kernel(%arg0: i32, %arg1: i32, %arg2: memref<1x16x2048xbf16, #tpu.memory_space<vmem>>, %arg3: memref<1x2048x128xbf16, #tpu.memory_space<vmem>>, %arg4: memref<1x128xf32, #tpu.memory_space<vmem>>, %arg5: memref<1x128xf32, #tpu.memory_space<vmem>>, %arg6: memref<1x16x128xf32, #tpu.memory_space<vmem>>) attributes {dimension_semantics = [#tpu.dimension_semantics<parallel>, #tpu.dimension_semantics<parallel>], iteration_bounds = array<i64: 1, 1>, scalar_prefetch = 0 : i64, scratch_operands = 0 : i64, tpu.core_type = #tpu.core_type<tc>, window_params = [{transform_indices = @transform_0, window_bounds = array<i64: 1, 16, 2048>}, {transform_indices = @transform_1, window_bounds = array<i64: 1, 2048, 128>}, {pipeline_mode = #tpu.pipeline_mode<synchronous>, transform_indices = @transform_2, window_bounds = array<i64: 1, 128>}, {pipeline_mode = #tpu.pipeline_mode<synchronous>, transform_indices = @transform_3, window_bounds = array<i64: 1, 128>}, {transform_indices = @transform_4, window_bounds = array<i64: 1, 16, 128>}]} {
    %c0 = arith.constant 0 : index
    %c0_0 = arith.constant 0 : index
    %c0_1 = arith.constant 0 : index
    %0 = vector.load %arg2[%c0, %c0_0, %c0_1] : memref<1x16x2048xbf16, #tpu.memory_space<vmem>>, vector<1x16x2048xbf16>
    %1 = vector.shape_cast %0 : vector<1x16x2048xbf16> to vector<16x2048xbf16>
    %c0_2 = arith.constant 0 : index
    %c0_3 = arith.constant 0 : index
    %c0_4 = arith.constant 0 : index
    %2 = vector.load %arg3[%c0_2, %c0_3, %c0_4] : memref<1x2048x128xbf16, #tpu.memory_space<vmem>>, vector<1x2048x128xbf16>
    %3 = vector.shape_cast %2 : vector<1x2048x128xbf16> to vector<2048x128xbf16>
    %cst = arith.constant dense<0.000000e+00> : vector<16x128xf32>
    %4 = tpu.matmul %1, %3, %cst {dimension_numbers = #tpu.dot_dimension_numbers<[1], [0], [0], [1], [0, 0, 1, 1], [], []>} : vector<16x2048xbf16>, vector<2048x128xbf16>, vector<16x128xf32> -> vector<16x128xf32>
    %c0_5 = arith.constant 0 : index
    %c0_6 = arith.constant 0 : index
    %5 = vector.load %arg4[%c0_5, %c0_6] : memref<1x128xf32, #tpu.memory_space<vmem>>, vector<1x128xf32>
    %6 = vector.broadcast %5 : vector<1x128xf32> to vector<16x128xf32>
    %7 = arith.mulf %4, %6 : vector<16x128xf32>
    %c0_7 = arith.constant 0 : index
    %c0_8 = arith.constant 0 : index
    %8 = vector.load %arg5[%c0_7, %c0_8] : memref<1x128xf32, #tpu.memory_space<vmem>>, vector<1x128xf32>
    %9 = vector.broadcast %8 : vector<1x128xf32> to vector<16x128xf32>
    %10 = arith.addf %7, %9 : vector<16x128xf32>
    %c0_9 = arith.constant 0 : index
    %c0_10 = arith.constant 0 : index
    %c0_11 = arith.constant 0 : index
    %11 = vector.load %arg6[%c0_9, %c0_10, %c0_11] : memref<1x16x128xf32, #tpu.memory_space<vmem>>, vector<1x16x128xf32>
    %12 = vector.shape_cast %11 : vector<1x16x128xf32> to vector<16x128xf32>
    %13 = vector.shape_cast %10 : vector<16x128xf32> to vector<1x16x128xf32>
    tpu.vector_store %arg6[%c0_9, %c0_10, %c0_11], %13 {strides = array<i32>} : memref<1x16x128xf32, #tpu.memory_space<vmem>>, vector<1x16x128xf32>,
    return
  }
  func.func @transform_0(%arg0: i32, %arg1: i32) -> (i32, i32, i32) {
    %c0_i32 = arith.constant 0 : i32
    %c0_i32_0 = arith.constant 0 : i32
    return %arg0, %arg1, %c0_i32 : i32, i32, i32
  }
  func.func @transform_1(%arg0: i32, %arg1: i32) -> (i32, i32, i32) {
    %c0_i32 = arith.constant 0 : i32
    %c0_i32_0 = arith.constant 0 : i32
    %c0_i32_1 = arith.constant 0 : i32
    return %arg0, %c0_i32, %c0_i32_0 : i32, i32, i32
  }
  func.func @transform_2(%arg0: i32, %arg1: i32) -> (i32, i32) {
    %c0_i32 = arith.constant 0 : i32
    %c0_i32_0 = arith.constant 0 : i32
    %c0_i32_1 = arith.constant 0 : i32
    return %c0_i32, %c0_i32_0 : i32, i32
  }
  func.func @transform_3(%arg0: i32, %arg1: i32) -> (i32, i32) {
    %c0_i32 = arith.constant 0 : i32
    %c0_i32_0 = arith.constant 0 : i32
    %c0_i32_1 = arith.constant 0 : i32
    return %c0_i32, %c0_i32_0 : i32, i32
  }
  func.func @transform_4(%arg0: i32, %arg1: i32) -> (i32, i32, i32) {
    %c0_i32 = arith.constant 0 : i32
    %c0_i32_0 = arith.constant 0 : i32
    return %arg0, %arg1, %c0_i32 : i32, i32, i32
  }
}

module attributes {stable_mosaic.version = 11 : i64} {
  func.func @_mm_kernel(%arg0: i32, %arg1: i32, %arg2: memref<1x16x256xbf16, #tpu.memory_space<vmem>>, %arg3: memref<1x256x128xbf16, #tpu.memory_space<vmem>>, %arg4: memref<1x128xf32, #tpu.memory_space<vmem>>, %arg5: memref<1x128xf32, #tpu.memory_space<vmem>>, %arg6: memref<1x16x128xf32, #tpu.memory_space<vmem>>) attributes {dimension_semantics = [#tpu.dimension_semantics<parallel>, #tpu.dimension_semantics<parallel>], iteration_bounds = array<i64: 8, 1>, scalar_prefetch = 0 : i64, scratch_operands = 0 : i64, tpu.core_type = #tpu.core_type<tc>, window_params = [{transform_indices = @transform_0, window_bounds = array<i64: 1, 16, 256>}, {transform_indices = @transform_1, window_bounds = array<i64: 1, 256, 128>}, {pipeline_mode = #tpu.pipeline_mode<synchronous>, transform_indices = @transform_2, window_bounds = array<i64: 1, 128>}, {pipeline_mode = #tpu.pipeline_mode<synchronous>, transform_indices = @transform_3, window_bounds = array<i64: 1, 128>}, {transform_indices = @transform_4, window_bounds = array<i64: 1, 16, 128>}]} {
    %c0 = arith.constant 0 : index
    %c0_0 = arith.constant 0 : index
    %c0_1 = arith.constant 0 : index
    %0 = vector.load %arg2[%c0, %c0_0, %c0_1] : memref<1x16x256xbf16, #tpu.memory_space<vmem>>, vector<1x16x256xbf16>
    %1 = vector.shape_cast %0 : vector<1x16x256xbf16> to vector<16x256xbf16>
    %c0_2 = arith.constant 0 : index
    %c0_3 = arith.constant 0 : index
    %c0_4 = arith.constant 0 : index
    %2 = vector.load %arg3[%c0_2, %c0_3, %c0_4] : memref<1x256x128xbf16, #tpu.memory_space<vmem>>, vector<1x256x128xbf16>
    %3 = vector.shape_cast %2 : vector<1x256x128xbf16> to vector<256x128xbf16>
    %cst = arith.constant dense<0.000000e+00> : vector<16x128xf32>
    %4 = tpu.matmul %1, %3, %cst {dimension_numbers = #tpu.dot_dimension_numbers<[1], [0], [0], [1], [0, 0, 1, 1], [], []>} : vector<16x256xbf16>, vector<256x128xbf16>, vector<16x128xf32> -> vector<16x128xf32>
    %c0_5 = arith.constant 0 : index
    %c0_6 = arith.constant 0 : index
    %5 = vector.load %arg4[%c0_5, %c0_6] : memref<1x128xf32, #tpu.memory_space<vmem>>, vector<1x128xf32>
    %6 = vector.broadcast %5 : vector<1x128xf32> to vector<16x128xf32>
    %7 = arith.mulf %4, %6 : vector<16x128xf32>
    %c0_7 = arith.constant 0 : index
    %c0_8 = arith.constant 0 : index
    %8 = vector.load %arg5[%c0_7, %c0_8] : memref<1x128xf32, #tpu.memory_space<vmem>>, vector<1x128xf32>
    %9 = vector.broadcast %8 : vector<1x128xf32> to vector<16x128xf32>
    %10 = arith.addf %7, %9 : vector<16x128xf32>
    %c0_9 = arith.constant 0 : index
    %c0_10 = arith.constant 0 : index
    %c0_11 = arith.constant 0 : index
    %11 = vector.load %arg6[%c0_9, %c0_10, %c0_11] : memref<1x16x128xf32, #tpu.memory_space<vmem>>, vector<1x16x128xf32>
    %12 = vector.shape_cast %11 : vector<1x16x128xf32> to vector<16x128xf32>
    %13 = vector.shape_cast %10 : vector<16x128xf32> to vector<1x16x128xf32>
    tpu.vector_store %arg6[%c0_9, %c0_10, %c0_11], %13 {strides = array<i32>} : memref<1x16x128xf32, #tpu.memory_space<vmem>>, vector<1x16x128xf32>,
    return
  }
  func.func @transform_0(%arg0: i32, %arg1: i32) -> (i32, i32, i32) {
    %c0_i32 = arith.constant 0 : i32
    %c0_i32_0 = arith.constant 0 : i32
    return %arg0, %arg1, %c0_i32 : i32, i32, i32
  }
  func.func @transform_1(%arg0: i32, %arg1: i32) -> (i32, i32, i32) {
    %c0_i32 = arith.constant 0 : i32
    %c0_i32_0 = arith.constant 0 : i32
    %c0_i32_1 = arith.constant 0 : i32
    return %arg0, %c0_i32, %c0_i32_0 : i32, i32, i32
  }
  func.func @transform_2(%arg0: i32, %arg1: i32) -> (i32, i32) {
    %c0_i32 = arith.constant 0 : i32
    %c0_i32_0 = arith.constant 0 : i32
    %c0_i32_1 = arith.constant 0 : i32
    return %c0_i32, %c0_i32_0 : i32, i32
  }
  func.func @transform_3(%arg0: i32, %arg1: i32) -> (i32, i32) {
    %c0_i32 = arith.constant 0 : i32
    %c0_i32_0 = arith.constant 0 : i32
    %c0_i32_1 = arith.constant 0 : i32
    return %c0_i32, %c0_i32_0 : i32, i32
  }
  func.func @transform_4(%arg0: i32, %arg1: i32) -> (i32, i32, i32) {
    %c0_i32 = arith.constant 0 : i32
    %c0_i32_0 = arith.constant 0 : i32
    return %arg0, %arg1, %c0_i32 : i32, i32, i32
  }
}

module attributes {stable_mosaic.version = 11 : i64} {
  func.func @_mm_kernel(%arg0: i32, %arg1: i32, %arg2: memref<1x16x512xbf16, #tpu.memory_space<vmem>>, %arg3: memref<1x512x128xbf16, #tpu.memory_space<vmem>>, %arg4: memref<1x128xf32, #tpu.memory_space<vmem>>, %arg5: memref<1x128xf32, #tpu.memory_space<vmem>>, %arg6: memref<1x16x128xf32, #tpu.memory_space<vmem>>) attributes {dimension_semantics = [#tpu.dimension_semantics<parallel>, #tpu.dimension_semantics<parallel>], iteration_bounds = array<i64: 8, 1>, scalar_prefetch = 0 : i64, scratch_operands = 0 : i64, tpu.core_type = #tpu.core_type<tc>, window_params = [{transform_indices = @transform_0, window_bounds = array<i64: 1, 16, 512>}, {transform_indices = @transform_1, window_bounds = array<i64: 1, 512, 128>}, {pipeline_mode = #tpu.pipeline_mode<synchronous>, transform_indices = @transform_2, window_bounds = array<i64: 1, 128>}, {pipeline_mode = #tpu.pipeline_mode<synchronous>, transform_indices = @transform_3, window_bounds = array<i64: 1, 128>}, {transform_indices = @transform_4, window_bounds = array<i64: 1, 16, 128>}]} {
    %c0 = arith.constant 0 : index
    %c0_0 = arith.constant 0 : index
    %c0_1 = arith.constant 0 : index
    %0 = vector.load %arg2[%c0, %c0_0, %c0_1] : memref<1x16x512xbf16, #tpu.memory_space<vmem>>, vector<1x16x512xbf16>
    %1 = vector.shape_cast %0 : vector<1x16x512xbf16> to vector<16x512xbf16>
    %c0_2 = arith.constant 0 : index
    %c0_3 = arith.constant 0 : index
    %c0_4 = arith.constant 0 : index
    %2 = vector.load %arg3[%c0_2, %c0_3, %c0_4] : memref<1x512x128xbf16, #tpu.memory_space<vmem>>, vector<1x512x128xbf16>
    %3 = vector.shape_cast %2 : vector<1x512x128xbf16> to vector<512x128xbf16>
    %cst = arith.constant dense<0.000000e+00> : vector<16x128xf32>
    %4 = tpu.matmul %1, %3, %cst {dimension_numbers = #tpu.dot_dimension_numbers<[1], [0], [0], [1], [0, 0, 1, 1], [], []>} : vector<16x512xbf16>, vector<512x128xbf16>, vector<16x128xf32> -> vector<16x128xf32>
    %c0_5 = arith.constant 0 : index
    %c0_6 = arith.constant 0 : index
    %5 = vector.load %arg4[%c0_5, %c0_6] : memref<1x128xf32, #tpu.memory_space<vmem>>, vector<1x128xf32>
    %6 = vector.broadcast %5 : vector<1x128xf32> to vector<16x128xf32>
    %7 = arith.mulf %4, %6 : vector<16x128xf32>
    %c0_7 = arith.constant 0 : index
    %c0_8 = arith.constant 0 : index
    %8 = vector.load %arg5[%c0_7, %c0_8] : memref<1x128xf32, #tpu.memory_space<vmem>>, vector<1x128xf32>
    %9 = vector.broadcast %8 : vector<1x128xf32> to vector<16x128xf32>
    %10 = arith.addf %7, %9 : vector<16x128xf32>
    %c0_9 = arith.constant 0 : index
    %c0_10 = arith.constant 0 : index
    %c0_11 = arith.constant 0 : index
    %11 = vector.load %arg6[%c0_9, %c0_10, %c0_11] : memref<1x16x128xf32, #tpu.memory_space<vmem>>, vector<1x16x128xf32>
    %12 = vector.shape_cast %11 : vector<1x16x128xf32> to vector<16x128xf32>
    %13 = vector.shape_cast %10 : vector<16x128xf32> to vector<1x16x128xf32>
    tpu.vector_store %arg6[%c0_9, %c0_10, %c0_11], %13 {strides = array<i32>} : memref<1x16x128xf32, #tpu.memory_space<vmem>>, vector<1x16x128xf32>,
    return
  }
  func.func @transform_0(%arg0: i32, %arg1: i32) -> (i32, i32, i32) {
    %c0_i32 = arith.constant 0 : i32
    %c0_i32_0 = arith.constant 0 : i32
    return %arg0, %arg1, %c0_i32 : i32, i32, i32
  }
  func.func @transform_1(%arg0: i32, %arg1: i32) -> (i32, i32, i32) {
    %c0_i32 = arith.constant 0 : i32
    %c0_i32_0 = arith.constant 0 : i32
    %c0_i32_1 = arith.constant 0 : i32
    return %arg0, %c0_i32, %c0_i32_0 : i32, i32, i32
  }
  func.func @transform_2(%arg0: i32, %arg1: i32) -> (i32, i32) {
    %c0_i32 = arith.constant 0 : i32
    %c0_i32_0 = arith.constant 0 : i32
    %c0_i32_1 = arith.constant 0 : i32
    return %c0_i32, %c0_i32_0 : i32, i32
  }
  func.func @transform_3(%arg0: i32, %arg1: i32) -> (i32, i32) {
    %c0_i32 = arith.constant 0 : i32
    %c0_i32_0 = arith.constant 0 : i32
    %c0_i32_1 = arith.constant 0 : i32
    return %c0_i32, %c0_i32_0 : i32, i32
  }
  func.func @transform_4(%arg0: i32, %arg1: i32) -> (i32, i32, i32) {
    %c0_i32 = arith.constant 0 : i32
    %c0_i32_0 = arith.constant 0 : i32
    return %arg0, %arg1, %c0_i32 : i32, i32, i32
  }
}

module attributes {stable_mosaic.version = 11 : i64} {
  func.func @_mm_kernel(%arg0: i32, %arg1: i32, %arg2: memref<1x64x256xbf16, #tpu.memory_space<vmem>>, %arg3: memref<1x256x128xbf16, #tpu.memory_space<vmem>>, %arg4: memref<1x128xf32, #tpu.memory_space<vmem>>, %arg5: memref<1x128xf32, #tpu.memory_space<vmem>>, %arg6: memref<1x64x128xf32, #tpu.memory_space<vmem>>) attributes {dimension_semantics = [#tpu.dimension_semantics<parallel>, #tpu.dimension_semantics<parallel>], iteration_bounds = array<i64: 8, 1>, scalar_prefetch = 0 : i64, scratch_operands = 0 : i64, tpu.core_type = #tpu.core_type<tc>, window_params = [{transform_indices = @transform_0, window_bounds = array<i64: 1, 64, 256>}, {transform_indices = @transform_1, window_bounds = array<i64: 1, 256, 128>}, {pipeline_mode = #tpu.pipeline_mode<synchronous>, transform_indices = @transform_2, window_bounds = array<i64: 1, 128>}, {pipeline_mode = #tpu.pipeline_mode<synchronous>, transform_indices = @transform_3, window_bounds = array<i64: 1, 128>}, {transform_indices = @transform_4, window_bounds = array<i64: 1, 64, 128>}]} {
    %c0 = arith.constant 0 : index
    %c0_0 = arith.constant 0 : index
    %c0_1 = arith.constant 0 : index
    %0 = vector.load %arg2[%c0, %c0_0, %c0_1] : memref<1x64x256xbf16, #tpu.memory_space<vmem>>, vector<1x64x256xbf16>
    %1 = vector.shape_cast %0 : vector<1x64x256xbf16> to vector<64x256xbf16>
    %c0_2 = arith.constant 0 : index
    %c0_3 = arith.constant 0 : index
    %c0_4 = arith.constant 0 : index
    %2 = vector.load %arg3[%c0_2, %c0_3, %c0_4] : memref<1x256x128xbf16, #tpu.memory_space<vmem>>, vector<1x256x128xbf16>
    %3 = vector.shape_cast %2 : vector<1x256x128xbf16> to vector<256x128xbf16>
    %cst = arith.constant dense<0.000000e+00> : vector<64x128xf32>
    %4 = tpu.matmul %1, %3, %cst {dimension_numbers = #tpu.dot_dimension_numbers<[1], [0], [0], [1], [0, 0, 1, 1], [], []>} : vector<64x256xbf16>, vector<256x128xbf16>, vector<64x128xf32> -> vector<64x128xf32>
    %c0_5 = arith.constant 0 : index
    %c0_6 = arith.constant 0 : index
    %5 = vector.load %arg4[%c0_5, %c0_6] : memref<1x128xf32, #tpu.memory_space<vmem>>, vector<1x128xf32>
    %6 = vector.broadcast %5 : vector<1x128xf32> to vector<64x128xf32>
    %7 = arith.mulf %4, %6 : vector<64x128xf32>
    %c0_7 = arith.constant 0 : index
    %c0_8 = arith.constant 0 : index
    %8 = vector.load %arg5[%c0_7, %c0_8] : memref<1x128xf32, #tpu.memory_space<vmem>>, vector<1x128xf32>
    %9 = vector.broadcast %8 : vector<1x128xf32> to vector<64x128xf32>
    %10 = arith.addf %7, %9 : vector<64x128xf32>
    %c0_9 = arith.constant 0 : index
    %c0_10 = arith.constant 0 : index
    %c0_11 = arith.constant 0 : index
    %11 = vector.load %arg6[%c0_9, %c0_10, %c0_11] : memref<1x64x128xf32, #tpu.memory_space<vmem>>, vector<1x64x128xf32>
    %12 = vector.shape_cast %11 : vector<1x64x128xf32> to vector<64x128xf32>
    %13 = vector.shape_cast %10 : vector<64x128xf32> to vector<1x64x128xf32>
    tpu.vector_store %arg6[%c0_9, %c0_10, %c0_11], %13 {strides = array<i32>} : memref<1x64x128xf32, #tpu.memory_space<vmem>>, vector<1x64x128xf32>,
    return
  }
  func.func @transform_0(%arg0: i32, %arg1: i32) -> (i32, i32, i32) {
    %c0_i32 = arith.constant 0 : i32
    %c0_i32_0 = arith.constant 0 : i32
    return %arg0, %arg1, %c0_i32 : i32, i32, i32
  }
  func.func @transform_1(%arg0: i32, %arg1: i32) -> (i32, i32, i32) {
    %c0_i32 = arith.constant 0 : i32
    %c0_i32_0 = arith.constant 0 : i32
    %c0_i32_1 = arith.constant 0 : i32
    return %arg0, %c0_i32, %c0_i32_0 : i32, i32, i32
  }
  func.func @transform_2(%arg0: i32, %arg1: i32) -> (i32, i32) {
    %c0_i32 = arith.constant 0 : i32
    %c0_i32_0 = arith.constant 0 : i32
    %c0_i32_1 = arith.constant 0 : i32
    return %c0_i32, %c0_i32_0 : i32, i32
  }
  func.func @transform_3(%arg0: i32, %arg1: i32) -> (i32, i32) {
    %c0_i32 = arith.constant 0 : i32
    %c0_i32_0 = arith.constant 0 : i32
    %c0_i32_1 = arith.constant 0 : i32
    return %c0_i32, %c0_i32_0 : i32, i32
  }
  func.func @transform_4(%arg0: i32, %arg1: i32) -> (i32, i32, i32) {
    %c0_i32 = arith.constant 0 : i32
    %c0_i32_0 = arith.constant 0 : i32
    return %arg0, %arg1, %c0_i32 : i32, i32, i32
  }
}

module attributes {stable_mosaic.version = 11 : i64} {
  func.func @_mm_kernel(%arg0: i32, %arg1: i32, %arg2: memref<1x512x128xbf16, #tpu.memory_space<vmem>>, %arg3: memref<1x128x128xbf16, #tpu.memory_space<vmem>>, %arg4: memref<1x128xf32, #tpu.memory_space<vmem>>, %arg5: memref<1x128xf32, #tpu.memory_space<vmem>>, %arg6: memref<1x512x128xf32, #tpu.memory_space<vmem>>) attributes {dimension_semantics = [#tpu.dimension_semantics<parallel>, #tpu.dimension_semantics<parallel>], iteration_bounds = array<i64: 8, 1>, scalar_prefetch = 0 : i64, scratch_operands = 0 : i64, tpu.core_type = #tpu.core_type<tc>, window_params = [{transform_indices = @transform_0, window_bounds = array<i64: 1, 512, 128>}, {transform_indices = @transform_1, window_bounds = array<i64: 1, 128, 128>}, {pipeline_mode = #tpu.pipeline_mode<synchronous>, transform_indices = @transform_2, window_bounds = array<i64: 1, 128>}, {pipeline_mode = #tpu.pipeline_mode<synchronous>, transform_indices = @transform_3, window_bounds = array<i64: 1, 128>}, {transform_indices = @transform_4, window_bounds = array<i64: 1, 512, 128>}]} {
    %c0 = arith.constant 0 : index
    %c0_0 = arith.constant 0 : index
    %c0_1 = arith.constant 0 : index
    %0 = vector.load %arg2[%c0, %c0_0, %c0_1] : memref<1x512x128xbf16, #tpu.memory_space<vmem>>, vector<1x512x128xbf16>
    %1 = vector.shape_cast %0 : vector<1x512x128xbf16> to vector<512x128xbf16>
    %c0_2 = arith.constant 0 : index
    %c0_3 = arith.constant 0 : index
    %c0_4 = arith.constant 0 : index
    %2 = vector.load %arg3[%c0_2, %c0_3, %c0_4] : memref<1x128x128xbf16, #tpu.memory_space<vmem>>, vector<1x128x128xbf16>
    %3 = vector.shape_cast %2 : vector<1x128x128xbf16> to vector<128x128xbf16>
    %cst = arith.constant dense<0.000000e+00> : vector<512x128xf32>
    %4 = tpu.matmul %1, %3, %cst {dimension_numbers = #tpu.dot_dimension_numbers<[1], [0], [0], [1], [0, 0, 1, 1], [], []>} : vector<512x128xbf16>, vector<128x128xbf16>, vector<512x128xf32> -> vector<512x128xf32>
    %c0_5 = arith.constant 0 : index
    %c0_6 = arith.constant 0 : index
    %5 = vector.load %arg4[%c0_5, %c0_6] : memref<1x128xf32, #tpu.memory_space<vmem>>, vector<1x128xf32>
    %6 = vector.broadcast %5 : vector<1x128xf32> to vector<512x128xf32>
    %7 = arith.mulf %4, %6 : vector<512x128xf32>
    %c0_7 = arith.constant 0 : index
    %c0_8 = arith.constant 0 : index
    %8 = vector.load %arg5[%c0_7, %c0_8] : memref<1x128xf32, #tpu.memory_space<vmem>>, vector<1x128xf32>
    %9 = vector.broadcast %8 : vector<1x128xf32> to vector<512x128xf32>
    %10 = arith.addf %7, %9 : vector<512x128xf32>
    %c0_9 = arith.constant 0 : index
    %c0_10 = arith.constant 0 : index
    %c0_11 = arith.constant 0 : index
    %11 = vector.load %arg6[%c0_9, %c0_10, %c0_11] : memref<1x512x128xf32, #tpu.memory_space<vmem>>, vector<1x512x128xf32>
    %12 = vector.shape_cast %11 : vector<1x512x128xf32> to vector<512x128xf32>
    %13 = vector.shape_cast %10 : vector<512x128xf32> to vector<1x512x128xf32>
    tpu.vector_store %arg6[%c0_9, %c0_10, %c0_11], %13 {strides = array<i32>} : memref<1x512x128xf32, #tpu.memory_space<vmem>>, vector<1x512x128xf32>,
    return
  }
  func.func @transform_0(%arg0: i32, %arg1: i32) -> (i32, i32, i32) {
    %c0_i32 = arith.constant 0 : i32
    %c0_i32_0 = arith.constant 0 : i32
    return %arg0, %arg1, %c0_i32 : i32, i32, i32
  }
  func.func @transform_1(%arg0: i32, %arg1: i32) -> (i32, i32, i32) {
    %c0_i32 = arith.constant 0 : i32
    %c0_i32_0 = arith.constant 0 : i32
    %c0_i32_1 = arith.constant 0 : i32
    return %arg0, %c0_i32, %c0_i32_0 : i32, i32, i32
  }
  func.func @transform_2(%arg0: i32, %arg1: i32) -> (i32, i32) {
    %c0_i32 = arith.constant 0 : i32
    %c0_i32_0 = arith.constant 0 : i32
    %c0_i32_1 = arith.constant 0 : i32
    return %c0_i32, %c0_i32_0 : i32, i32
  }
  func.func @transform_3(%arg0: i32, %arg1: i32) -> (i32, i32) {
    %c0_i32 = arith.constant 0 : i32
    %c0_i32_0 = arith.constant 0 : i32
    %c0_i32_1 = arith.constant 0 : i32
    return %c0_i32, %c0_i32_0 : i32, i32
  }
  func.func @transform_4(%arg0: i32, %arg1: i32) -> (i32, i32, i32) {
    %c0_i32 = arith.constant 0 : i32
    %c0_i32_0 = arith.constant 0 : i32
    return %arg0, %arg1, %c0_i32 : i32, i32, i32
  }
}

module attributes {stable_mosaic.version = 11 : i64} {
  func.func @_mm_kernel(%arg0: i32, %arg1: i32, %arg2: memref<1x1024x128xbf16, #tpu.memory_space<vmem>>, %arg3: memref<1x128x128xbf16, #tpu.memory_space<vmem>>, %arg4: memref<1x128xf32, #tpu.memory_space<vmem>>, %arg5: memref<1x128xf32, #tpu.memory_space<vmem>>, %arg6: memref<1x1024x128xf32, #tpu.memory_space<vmem>>) attributes {dimension_semantics = [#tpu.dimension_semantics<parallel>, #tpu.dimension_semantics<parallel>], iteration_bounds = array<i64: 8, 4>, scalar_prefetch = 0 : i64, scratch_operands = 0 : i64, tpu.core_type = #tpu.core_type<tc>, window_params = [{transform_indices = @transform_0, window_bounds = array<i64: 1, 1024, 128>}, {transform_indices = @transform_1, window_bounds = array<i64: 1, 128, 128>}, {pipeline_mode = #tpu.pipeline_mode<synchronous>, transform_indices = @transform_2, window_bounds = array<i64: 1, 128>}, {pipeline_mode = #tpu.pipeline_mode<synchronous>, transform_indices = @transform_3, window_bounds = array<i64: 1, 128>}, {transform_indices = @transform_4, window_bounds = array<i64: 1, 1024, 128>}]} {
    %c0 = arith.constant 0 : index
    %c0_0 = arith.constant 0 : index
    %c0_1 = arith.constant 0 : index
    %0 = vector.load %arg2[%c0, %c0_0, %c0_1] : memref<1x1024x128xbf16, #tpu.memory_space<vmem>>, vector<1x1024x128xbf16>
    %1 = vector.shape_cast %0 : vector<1x1024x128xbf16> to vector<1024x128xbf16>
    %c0_2 = arith.constant 0 : index
    %c0_3 = arith.constant 0 : index
    %c0_4 = arith.constant 0 : index
    %2 = vector.load %arg3[%c0_2, %c0_3, %c0_4] : memref<1x128x128xbf16, #tpu.memory_space<vmem>>, vector<1x128x128xbf16>
    %3 = vector.shape_cast %2 : vector<1x128x128xbf16> to vector<128x128xbf16>
    %cst = arith.constant dense<0.000000e+00> : vector<1024x128xf32>
    %4 = tpu.matmul %1, %3, %cst {dimension_numbers = #tpu.dot_dimension_numbers<[1], [0], [0], [1], [0, 0, 1, 1], [], []>} : vector<1024x128xbf16>, vector<128x128xbf16>, vector<1024x128xf32> -> vector<1024x128xf32>
    %c0_5 = arith.constant 0 : index
    %c0_6 = arith.constant 0 : index
    %5 = vector.load %arg4[%c0_5, %c0_6] : memref<1x128xf32, #tpu.memory_space<vmem>>, vector<1x128xf32>
    %6 = vector.broadcast %5 : vector<1x128xf32> to vector<1024x128xf32>
    %7 = arith.mulf %4, %6 : vector<1024x128xf32>
    %c0_7 = arith.constant 0 : index
    %c0_8 = arith.constant 0 : index
    %8 = vector.load %arg5[%c0_7, %c0_8] : memref<1x128xf32, #tpu.memory_space<vmem>>, vector<1x128xf32>
    %9 = vector.broadcast %8 : vector<1x128xf32> to vector<1024x128xf32>
    %10 = arith.addf %7, %9 : vector<1024x128xf32>
    %11 = math.tanh %10 : vector<1024x128xf32>
    %c0_9 = arith.constant 0 : index
    %c0_10 = arith.constant 0 : index
    %c0_11 = arith.constant 0 : index
    %12 = vector.load %arg6[%c0_9, %c0_10, %c0_11] : memref<1x1024x128xf32, #tpu.memory_space<vmem>>, vector<1x1024x128xf32>
    %13 = vector.shape_cast %12 : vector<1x1024x128xf32> to vector<1024x128xf32>
    %14 = vector.shape_cast %11 : vector<1024x128xf32> to vector<1x1024x128xf32>
    tpu.vector_store %arg6[%c0_9, %c0_10, %c0_11], %14 {strides = array<i32>} : memref<1x1024x128xf32, #tpu.memory_space<vmem>>, vector<1x1024x128xf32>,
    return
  }
  func.func @transform_0(%arg0: i32, %arg1: i32) -> (i32, i32, i32) {
    %c0_i32 = arith.constant 0 : i32
    %c0_i32_0 = arith.constant 0 : i32
    return %arg0, %arg1, %c0_i32 : i32, i32, i32
  }
  func.func @transform_1(%arg0: i32, %arg1: i32) -> (i32, i32, i32) {
    %c0_i32 = arith.constant 0 : i32
    %c0_i32_0 = arith.constant 0 : i32
    %c0_i32_1 = arith.constant 0 : i32
    return %arg0, %c0_i32, %c0_i32_0 : i32, i32, i32
  }
  func.func @transform_2(%arg0: i32, %arg1: i32) -> (i32, i32) {
    %c0_i32 = arith.constant 0 : i32
    %c0_i32_0 = arith.constant 0 : i32
    %c0_i32_1 = arith.constant 0 : i32
    return %c0_i32, %c0_i32_0 : i32, i32
  }
  func.func @transform_3(%arg0: i32, %arg1: i32) -> (i32, i32) {
    %c0_i32 = arith.constant 0 : i32
    %c0_i32_0 = arith.constant 0 : i32
    %c0_i32_1 = arith.constant 0 : i32
    return %c0_i32, %c0_i32_0 : i32, i32
  }
  func.func @transform_4(%arg0: i32, %arg1: i32) -> (i32, i32, i32) {
    %c0_i32 = arith.constant 0 : i32
    %c0_i32_0 = arith.constant 0 : i32
    return %arg0, %arg1, %c0_i32 : i32, i32, i32
  }
}

</mosaic_0001>

<bundles_post_ra>
// kernel: _lambda_.10
= control target key start
LH: loop header
LB: loop body
LE: loop exit
PB: predicated region body
PF: predicated region fallthrough
CT: control target
= control target key end

     0   :  { %s4573_s15 = smov 0   ;;  %s4575_s16 = smov 0   ;;  %s5415_s0 = inlined_call_operand.vmem [shape: bf16[1,4096,512], index: 0, kind: input, shape index: {}]   ;;  %s5416_s1 = inlined_call_operand.vmem [shape: bf16[1,512,128], index: 1, kind: input, shape index: {}]   ;;  %s5417_s2 = inlined_call_operand.vmem [shape: f32[1,128], index: 2, kind: input, shape index: {}]   ;;  %s5418_s3 = inlined_call_operand.vmem [shape: f32[1,128], index: 3, kind: input, shape index: {}]   ;;  %s5419_s4 = inlined_call_operand.vmem [shape: f32[1,4096,128], index: 4, kind: output, shape index: {}]  }
   0x1   :  { %s4577_s17 = smov 0  }
   0x2 LB: > { %s23_s18 = sadd.s32 1, %s4541_s16  ;;  %p3651_p0 = scmp.ge.s32.totalorder %s4545_s17, 1  ;;  %s4545_s17 = sphi %s4577_s17, %s14_s17   ;;  %s4541_s16 = sphi %s4575_s16, %s5421_s16   ;;  %s4537_s15 = sphi %s4573_s15, %s5420_s15  }
   0x3   : > { %p24_p1 = scmp.ge.s32.totalorder %s23_s18, 4  ;;  %p194_p2 = scmp.lt.s32.totalorder %s4545_s17, 5 }
   0x5   : > { %s5423_s18 = smov (%p24_p1, %s23_s18), 0  ;;  %p195_p3 = pnand %p3651_p0, %p194_p2 }
   0x6   : > { %v4103_v0 = vld [vmem:[%s5416_s1] sm:$0xff] (!%p195_p3)   ;;  %v4547_v1 = vmov (!%p195_p3), 0   ;;  %v4105_v3 = vld [vmem:[%s5416_s1 + $0x8] sm:$0xff] (!%p195_p3)   ;;  %v4107_v5 = vld [vmem:[%s5416_s1 + $0x10] sm:$0xff] (!%p195_p3)   ;;  %s3652_s13 = sshll.u32 (!%p195_p3), %s4537_s15, 7 }
   0x7   : > { %198 = sbr.rel (%p195_p3) target bundleno = 796 (0x31c), region = 36  ;;  %2053 = vmatprep.subr.bf16.mxu1 (!%p195_p3), %v4547_v1  ;;  %2598 = vmatprep.subr.bf16.mxu0 (!%p195_p3), %v4547_v1  ;;  %v4104_v2 = vld [vmem:[%s5416_s1 + $0x80] sm:$0xff] (!%p195_p3)   ;;  %v4106_v4 = vld [vmem:[%s5416_s1 + $0x88] sm:$0xff] (!%p195_p3)   ;;  %v4108_v6 = vld [vmem:[%s5416_s1 + $0x90] sm:$0xff] (!%p195_p3)   ;;  %p237_p4 = scmp.lt.s32.totalorder (!%p195_p3), %s3652_s13, 511 }
   0x8   : > { %2054 = vmatpush1.bf16.msra.mxu1 (!%p195_p3), %v4103_v0  ;;  %2599 = vmatpush1.bf16.msra.mxu0 (!%p195_p3), %v4104_v2  ;;  %v4109_v7 = vld [vmem:[%s5416_s1 + $0x18] sm:$0xff] (!%p195_p3)   ;;  %v4111_v9 = vld [vmem:[%s5416_s1 + $0x20] sm:$0xff] (!%p195_p3)   ;;  %v4113_v11 = vld [vmem:[%s5416_s1 + $0x28] sm:$0xff] (!%p195_p3)  }
   0x9   : > { %2055 = vmatprep.subr.bf16.mxu1 (!%p195_p3), %v4547_v1  ;;  %2600 = vmatprep.subr.bf16.mxu0 (!%p195_p3), %v4547_v1  ;;  %v4110_v8 = vld [vmem:[%s5416_s1 + $0x98] sm:$0xff] (!%p195_p3)   ;;  %v4112_v10 = vld [vmem:[%s5416_s1 + $0xa0] sm:$0xff] (!%p195_p3)   ;;  %v4114_v12 = vld [vmem:[%s5416_s1 + $0xa8] sm:$0xff] (!%p195_p3)  }
   0xa   : > { %v4115_v13 = vld [vmem:[%s5416_s1 + $0x30] sm:$0xff] (!%p195_p3)   ;;  %v4117_v15 = vld [vmem:[%s5416_s1 + $0x38] sm:$0xff] (!%p195_p3)   ;;  %v4119_v17 = vld [vmem:[%s5416_s1 + $0x40] sm:$0xff] (!%p195_p3)  }
   0xb   : > { %v4116_v14 = vld [vmem:[%s5416_s1 + $0xb0] sm:$0xff] (!%p195_p3)   ;;  %v4118_v16 = vld [vmem:[%s5416_s1 + $0xb8] sm:$0xff] (!%p195_p3)   ;;  %v4120_v18 = vld [vmem:[%s5416_s1 + $0xc0] sm:$0xff] (!%p195_p3)  }
   0xc   : > { %2056 = vmatpush1.bf16.msra.mxu1 (!%p195_p3), %v4105_v3  ;;  %2601 = vmatpush1.bf16.msra.mxu0 (!%p195_p3), %v4106_v4  ;;  %v4121_v20 = vld [vmem:[%s5416_s1 + $0x48] sm:$0xff] (!%p195_p3)   ;;  %v4123_v23 = vld [vmem:[%s5416_s1 + $0x50] sm:$0xff] (!%p195_p3)   ;;  %v4125_v25 = vld [vmem:[%s5416_s1 + $0x58] sm:$0xff] (!%p195_p3)  }
   0xd   : > { %2057 = vmatprep.subr.bf16.mxu1 (!%p195_p3), %v4547_v1  ;;  %2602 = vmatprep.subr.bf16.mxu0 (!%p195_p3), %v4547_v1  ;;  %v4122_v22 = vld [vmem:[%s5416_s1 + $0xc8] sm:$0xff] (!%p195_p3)   ;;  %v4124_v24 = vld [vmem:[%s5416_s1 + $0xd0] sm:$0xff] (!%p195_p3)   ;;  %v4126_v26 = vld [vmem:[%s5416_s1 + $0xd8] sm:$0xff] (!%p195_p3)  }
   0xe   : > { %s5425_s13 = smov (!%p237_p4, %s3652_s13), 511  ;;  %v4127_v27 = vld [vmem:[%s5416_s1 + $0x60] sm:$0xff]   ;;  %v4129_v29 = vld [vmem:[%s5416_s1 + $0x68] sm:$0xff]   ;;  %v4131_v31 = vld [vmem:[%s5416_s1 + $0x70] sm:$0xff]  }
   0xf   : > { %s3949_s29 = sshll.u32 %s5425_s13, 4  ;;  %v4128_v28 = vld [vmem:[%s5416_s1 + $0xe0] sm:$0xff]   ;;  %v4130_v30 = vld [vmem:[%s5416_s1 + $0xe8] sm:$0xff]   ;;  %v4132_v32 = vld [vmem:[%s5416_s1 + $0xf0] sm:$0xff]   ;;  %s3656_s23 = sshll.u32 %s5425_s13, 3 }
  0x10   : > { %2058 = vmatpush1.bf16.msra.mxu1 %v4107_v5  ;;  %2603 = vmatpush1.bf16.msra.mxu0 %v4108_v6  ;;  %s4667_s8 = scalar_lea.vmem %s5415_s0, %s3949_s29  ;;  %v4133_v33 = vld [vmem:[%s5416_s1 + $0x78] sm:$0xff]   ;;  %s4859_s28 = scalar_lea.vmem %s5419_s4, %s3656_s23 }
  0x11   : > { %2059 = vmatprep.subr.bf16.mxu1 %v4547_v1  ;;  %2604 = vmatprep.subr.bf16.mxu0 %v4547_v1  ;;  %v4137_v19 = vld [vmem:[%s4667_s8 + $0x4] ss:$16 sps:$4 sm:$0xff]   ;;  %v4140_v21 = vld [vmem:[%s4667_s8 + $0xc] ss:$16 sps:$4 sm:$0xff]   ;;  %v4135_v35 = vld [vmem:[%s4667_s8] ss:$16 sps:$4 sm:$0xff]  }
  0x12   : > { %2085 = vmatprep.mubr.bf16.mxu1 %v4137_v19  ;;  %2630 = vmatprep.mubr.bf16.mxu0 %v4140_v21  ;;  %v4134_v34 = vld [vmem:[%s5416_s1 + $0xf8] sm:$0xff]   ;;  %v4141_v37 = vld [vmem:[%s4667_s8 + $0x24] ss:$16 sps:$4 sm:$0xff]   ;;  %v4145_v39 = vld [vmem:[%s4667_s8 + $0x20] ss:$16 sps:$4 sm:$0xff]  }
  0x13   : > { %v4138_v36 = vld [vmem:[%s4667_s8 + $0x8] ss:$16 sps:$4 sm:$0xff]   ;;  %v4143_v38 = vld [vmem:[%s4667_s8 + $0x2c] ss:$16 sps:$4 sm:$0xff]   ;;  %v4147_v41 = vld [vmem:[%s4667_s8 + $0x44] ss:$16 sps:$4 sm:$0xff]  }
  0x14   : > { %2060 = vmatpush1.bf16.msra.mxu1 %v4109_v7  ;;  %2605 = vmatpush1.bf16.msra.mxu0 %v4110_v8  ;;  %v4146_v40 = vld [vmem:[%s4667_s8 + $0x28] ss:$16 sps:$4 sm:$0xff]   ;;  %v4149_v42 = vld [vmem:[%s4667_s8 + $0x4c] ss:$16 sps:$4 sm:$0xff]   ;;  %v4151_v43 = vld [vmem:[%s4667_s8 + $0x40] ss:$16 sps:$4 sm:$0xff]  }
  0x15   : > { %2061 = vmatprep.subr.bf16.mxu1 %v4547_v1  ;;  %2606 = vmatprep.subr.bf16.mxu0 %v4547_v1  ;;  %v4152_v44 = vld [vmem:[%s4667_s8 + $0x48] ss:$16 sps:$4 sm:$0xff]   ;;  %v4153_v45 = vld [vmem:[%s4667_s8 + $0x64] ss:$16 sps:$4 sm:$0xff]   ;;  %v4155_v46 = vld [vmem:[%s4667_s8 + $0x6c] ss:$16 sps:$4 sm:$0xff]  }
  0x16   : > { %v4157_v47 = vld [vmem:[%s4667_s8 + $0x60] ss:$16 sps:$4 sm:$0xff]   ;;  %v4158_v48 = vld [vmem:[%s4667_s8 + $0x68] ss:$16 sps:$4 sm:$0xff]   ;;  %v4159_v49 = vld [vmem:[%s4667_s8 + $0x84] ss:$16 sps:$4 sm:$0xff]  }
  0x17   : > { %v4161_v50 = vld [vmem:[%s4667_s8 + $0x8c] ss:$16 sps:$4 sm:$0xff]   ;;  %v4163_v51 = vld [vmem:[%s4667_s8 + $0x80] ss:$16 sps:$4 sm:$0xff]   ;;  %v4164_v52 = vld [vmem:[%s4667_s8 + $0x88] ss:$16 sps:$4 sm:$0xff]  }
  0x18   : > { %2062 = vmatpush1.bf16.msra.mxu1 %v4111_v9  ;;  %2607 = vmatpush1.bf16.msra.mxu0 %v4112_v10  ;;  %v4165_v53 = vld [vmem:[%s4667_s8 + $0xa4] ss:$16 sps:$4 sm:$0xff]   ;;  %v4167_v54 = vld [vmem:[%s4667_s8 + $0xac] ss:$16 sps:$4 sm:$0xff]   ;;  %v4169_v55 = vld [vmem:[%s4667_s8 + $0xa0] ss:$16 sps:$4 sm:$0xff]  }
  0x19   : > { %2063 = vmatprep.subr.bf16.mxu1 %v4547_v1  ;;  %2608 = vmatprep.subr.bf16.mxu0 %v4547_v1  ;;  %v4170_v56 = vld [vmem:[%s4667_s8 + $0xa8] ss:$16 sps:$4 sm:$0xff]   ;;  %v4171_v57 = vld [vmem:[%s4667_s8 + $0xc4] ss:$16 sps:$4 sm:$0xff]   ;;  %v4173_v58 = vld [vmem:[%s4667_s8 + $0xcc] ss:$16 sps:$4 sm:$0xff]  }
  0x1a   : > { %v4175_v59 = vld [vmem:[%s4667_s8 + $0xc0] ss:$16 sps:$4 sm:$0xff]   ;;  %v4176_v60 = vld [vmem:[%s4667_s8 + $0xc8] ss:$16 sps:$4 sm:$0xff]   ;;  %v4177_v61 = vld [vmem:[%s4667_s8 + $0xe4] ss:$16 sps:$4 sm:$0xff]  }
  0x1b   : > { %v4179_v62 = vld [vmem:[%s4667_s8 + $0xec] ss:$16 sps:$4 sm:$0xff]   ;;  %v4181_v63 = vld [vmem:[%s4667_s8 + $0xe0] ss:$16 sps:$4 sm:$0xff]   ;;  %v4182_v0 = vld [vmem:[%s4667_s8 + $0xe8] ss:$16 sps:$4 sm:$0xff]  }
  0x1c   : > { %2064 = vmatpush1.bf16.msra.mxu1 %v4113_v11  ;;  %2609 = vmatpush1.bf16.msra.mxu0 %v4114_v12  ;;  %v4185_v2 = vld [vmem:[%s4667_s8 + $0x10c] ss:$16 sps:$4 sm:$0xff]   ;;  %v4187_v3 = vld [vmem:[%s4667_s8 + $0x100] ss:$16 sps:$4 sm:$0xff]   ;;  %v4188_v4 = vld [vmem:[%s4667_s8 + $0x108] ss:$16 sps:$4 sm:$0xff]  }
  0x1d   : > { %2065 = vmatprep.subr.bf16.mxu1 %v4547_v1  ;;  %2610 = vmatprep.subr.bf16.mxu0 %v4547_v1  ;;  %v4189_v5 = vld [vmem:[%s4667_s8 + $0x124] ss:$16 sps:$4 sm:$0xff]   ;;  %v4191_v6 = vld [vmem:[%s4667_s8 + $0x12c] ss:$16 sps:$4 sm:$0xff]   ;;  %v4193_v7 = vld [vmem:[%s4667_s8 + $0x120] ss:$16 sps:$4 sm:$0xff]  }
  0x1e   : > { %v4194_v8 = vld [vmem:[%s4667_s8 + $0x128] ss:$16 sps:$4 sm:$0xff]   ;;  %v4195_v9 = vld [vmem:[%s4667_s8 + $0x144] ss:$16 sps:$4 sm:$0xff]   ;;  %v4197_v10 = vld [vmem:[%s4667_s8 + $0x14c] ss:$16 sps:$4 sm:$0xff]  }
  0x1f   : > { %v4199_v11 = vld [vmem:[%s4667_s8 + $0x140] ss:$16 sps:$4 sm:$0xff]   ;;  %v4200_v12 = vld [vmem:[%s4667_s8 + $0x148] ss:$16 sps:$4 sm:$0xff]   ;;  %v4213_v21 = vld [vmem:[%s4667_s8 + $0x1a4] ss:$16 sps:$4 sm:$0xff]  }
  0x20   : > { %2066 = vmatpush1.bf16.msra.mxu1 %v4115_v13  ;;  %2611 = vmatpush1.bf16.msra.mxu0 %v4116_v14  ;;  %v4201_v13 = vld [vmem:[%s4667_s8 + $0x164] ss:$16 sps:$4 sm:$0xff]   ;;  %v4203_v14 = vld [vmem:[%s4667_s8 + $0x16c] ss:$16 sps:$4 sm:$0xff]   ;;  %v4211_v19 = vld [vmem:[%s4667_s8 + $0x180] ss:$16 sps:$4 sm:$0xff]  }
  0x21   : > { %2067 = vmatprep.subr.bf16.mxu1 %v4547_v1  ;;  %2612 = vmatprep.subr.bf16.mxu0 %v4547_v1 }
  0x24   : > { %2068 = vmatpush1.bf16.msra.mxu1 %v4117_v15  ;;  %2613 = vmatpush1.bf16.msra.mxu0 %v4118_v16  ;;  %v4205_v15 = vld [vmem:[%s4667_s8 + $0x160] ss:$16 sps:$4 sm:$0xff]   ;;  %v4206_v16 = vld [vmem:[%s4667_s8 + $0x168] ss:$16 sps:$4 sm:$0xff]  }
  0x25   : > { %2069 = vmatprep.subr.bf16.mxu1 %v4547_v1  ;;  %2614 = vmatprep.subr.bf16.mxu0 %v4547_v1 }
  0x28   : > { %2070 = vmatpush1.bf16.msra.mxu1 %v4119_v17  ;;  %2615 = vmatpush1.bf16.msra.mxu0 %v4120_v18  ;;  %v4207_v17 = vld [vmem:[%s4667_s8 + $0x184] ss:$16 sps:$4 sm:$0xff]   ;;  %v4209_v18 = vld [vmem:[%s4667_s8 + $0x18c] ss:$16 sps:$4 sm:$0xff]  }
  0x29   : > { %2071 = vmatprep.subr.bf16.mxu1 %v4547_v1  ;;  %2616 = vmatprep.subr.bf16.mxu0 %v4547_v1 }
  0x2c   : > { %2072 = vmatpush1.bf16.msra.mxu1 %v4121_v20  ;;  %2617 = vmatpush1.bf16.msra.mxu0 %v4122_v22  ;;  %v4212_v20 = vld [vmem:[%s4667_s8 + $0x188] ss:$16 sps:$4 sm:$0xff]   ;;  %v4215_v22 = vld [vmem:[%s4667_s8 + $0x1ac] ss:$16 sps:$4 sm:$0xff]  }
  0x2d   : > { %2073 = vmatprep.subr.bf16.mxu1 %v4547_v1  ;;  %2618 = vmatprep.subr.bf16.mxu0 %v4547_v1 }
  0x30   : > { %2074 = vmatpush1.bf16.msra.mxu1 %v4123_v23  ;;  %2619 = vmatpush1.bf16.msra.mxu0 %v4124_v24  ;;  %v4217_v23 = vld [vmem:[%s4667_s8 + $0x1a0] ss:$16 sps:$4 sm:$0xff]   ;;  %v4218_v24 = vld [vmem:[%s4667_s8 + $0x1a8] ss:$16 sps:$4 sm:$0xff]  }
  0x31   : > { %2075 = vmatprep.subr.bf16.mxu1 %v4547_v1  ;;  %2620 = vmatprep.subr.bf16.mxu0 %v4547_v1 }
  0x34   : > { %2076 = vmatpush1.bf16.msra.mxu1 %v4125_v25  ;;  %2621 = vmatpush1.bf16.msra.mxu0 %v4126_v26  ;;  %v4219_v25 = vld [vmem:[%s4667_s8 + $0x1c4] ss:$16 sps:$4 sm:$0xff]   ;;  %v4221_v26 = vld [vmem:[%s4667_s8 + $0x1cc] ss:$16 sps:$4 sm:$0xff]  }
  0x35   : > { %2077 = vmatprep.subr.bf16.mxu1 %v4547_v1  ;;  %2622 = vmatprep.subr.bf16.mxu0 %v4547_v1 }
  0x38   : > { %2078 = vmatpush1.bf16.msra.mxu1 %v4127_v27  ;;  %2623 = vmatpush1.bf16.msra.mxu0 %v4128_v28  ;;  %v4223_v27 = vld [vmem:[%s4667_s8 + $0x1c0] ss:$16 sps:$4 sm:$0xff]   ;;  %v4224_v28 = vld [vmem:[%s4667_s8 + $0x1c8] ss:$16 sps:$4 sm:$0xff]  }
  0x39   : > { %2079 = vmatprep.subr.bf16.mxu1 %v4547_v1  ;;  %2624 = vmatprep.subr.bf16.mxu0 %v4547_v1 }
  0x3c   : > { %2080 = vmatpush1.bf16.msra.mxu1 %v4129_v29  ;;  %2625 = vmatpush1.bf16.msra.mxu0 %v4130_v30  ;;  %v4225_v29 = vld [vmem:[%s4667_s8 + $0x1e4] ss:$16 sps:$4 sm:$0xff]   ;;  %v4227_v30 = vld [vmem:[%s4667_s8 + $0x1ec] ss:$16 sps:$4 sm:$0xff]  }
  0x3d   : > { %2081 = vmatprep.subr.bf16.mxu1 %v4547_v1  ;;  %2626 = vmatprep.subr.bf16.mxu0 %v4547_v1 }
  0x40   : > { %2082 = vmatpush1.bf16.msra.mxu1 %v4131_v31  ;;  %2627 = vmatpush1.bf16.msra.mxu0 %v4132_v32  ;;  %v4229_v31 = vld [vmem:[%s4667_s8 + $0x1e0] ss:$16 sps:$4 sm:$0xff]   ;;  %v4230_v32 = vld [vmem:[%s4667_s8 + $0x1e8] ss:$16 sps:$4 sm:$0xff]  }
  0x41   : > { %2083 = vmatprep.subr.bf16.mxu1 %v4547_v1  ;;  %2628 = vmatprep.subr.bf16.mxu0 %v4547_v1  ;;  %v4183_v1 = vld [vmem:[%s4667_s8 + $0x104] ss:$16 sps:$4 sm:$0xff]  }
  0x44   : > { %2084 = vmatpush1.bf16.msra.mxu1 %v4133_v33  ;;  %2629 = vmatpush1.bf16.msra.mxu0 %v4134_v34  ;;  %v4231_v33 = vld [vmem:[%s4667_s8 + $0x204] ss:$16 sps:$4 sm:$0xff]   ;;  %v4233_v34 = vld [vmem:[%s4667_s8 + $0x20c] ss:$16 sps:$4 sm:$0xff]  }
  0x47   : > { %2086 = vmatmul.mubr.bf16.vlgmr.msra.gmra.mrb[0].mxu1 %v4135_v35  ;;  %2631 = vmatmul.mubr.bf16.vlgmr.msra.gmra.mrb[0].mxu0 %v4138_v36  ;;  %v4235_v35 = vld [vmem:[%s4667_s8 + $0x200] ss:$16 sps:$4 sm:$0xff]   ;;  %v4236_v36 = vld [vmem:[%s4667_s8 + $0x208] ss:$16 sps:$4 sm:$0xff]  }
  0x48   : > { %2093 = vmatprep.mubr.bf16.mxu1 %v4141_v37  ;;  %2638 = vmatprep.mubr.bf16.mxu0 %v4143_v38  ;;  %v4237_v37 = vld [vmem:[%s4667_s8 + $0x224] ss:$16 sps:$4 sm:$0xff]   ;;  %v4239_v38 = vld [vmem:[%s4667_s8 + $0x22c] ss:$16 sps:$4 sm:$0xff]  }
  0x4f   : > { %2094 = vmatmul.mubr.bf16.gmra.mrb[4].mxu1 %v4145_v39  ;;  %2639 = vmatmul.mubr.bf16.gmra.mrb[4].mxu0 %v4146_v40  ;;  %v4241_v39 = vld [vmem:[%s4667_s8 + $0x220] ss:$16 sps:$4 sm:$0xff]   ;;  %v4242_v40 = vld [vmem:[%s4667_s8 + $0x228] ss:$16 sps:$4 sm:$0xff]  }
  0x50   : > { %2101 = vmatprep.mubr.bf16.mxu1 %v4147_v41  ;;  %2646 = vmatprep.mubr.bf16.mxu0 %v4149_v42  ;;  %v4243_v41 = vld [vmem:[%s4667_s8 + $0x244] ss:$16 sps:$4 sm:$0xff]   ;;  %v4245_v42 = vld [vmem:[%s4667_s8 + $0x24c] ss:$16 sps:$4 sm:$0xff]  }
  0x57   : > { %2102 = vmatmul.mubr.bf16.gmra.mrb[8].mxu1 %v4151_v43  ;;  %2647 = vmatmul.mubr.bf16.gmra.mrb[8].mxu0 %v4152_v44  ;;  %v4247_v43 = vld [vmem:[%s4667_s8 + $0x240] ss:$16 sps:$4 sm:$0xff]   ;;  %v4248_v44 = vld [vmem:[%s4667_s8 + $0x248] ss:$16 sps:$4 sm:$0xff]  }
  0x58   : > { %2109 = vmatprep.mubr.bf16.mxu1 %v4153_v45  ;;  %2654 = vmatprep.mubr.bf16.mxu0 %v4155_v46  ;;  %v4249_v45 = vld [vmem:[%s4667_s8 + $0x264] ss:$16 sps:$4 sm:$0xff]   ;;  %v4251_v46 = vld [vmem:[%s4667_s8 + $0x26c] ss:$16 sps:$4 sm:$0xff]  }
  0x5f   : > { %2110 = vmatmul.mubr.bf16.gmra.mrb[12].mxu1 %v4157_v47  ;;  %2655 = vmatmul.mubr.bf16.gmra.mrb[12].mxu0 %v4158_v48  ;;  %v4253_v47 = vld [vmem:[%s4667_s8 + $0x260] ss:$16 sps:$4 sm:$0xff]   ;;  %v4254_v48 = vld [vmem:[%s4667_s8 + $0x268] ss:$16 sps:$4 sm:$0xff]  }
  0x60   : > { %2117 = vmatprep.mubr.bf16.mxu1 %v4159_v49  ;;  %2662 = vmatprep.mubr.bf16.mxu0 %v4161_v50  ;;  %v4255_v49 = vld [vmem:[%s4667_s8 + $0x284] ss:$16 sps:$4 sm:$0xff]   ;;  %v4257_v50 = vld [vmem:[%s4667_s8 + $0x28c] ss:$16 sps:$4 sm:$0xff]  }
  0x67   : > { %2118 = vmatmul.mubr.bf16.gmra.mrb[16].mxu1 %v4163_v51  ;;  %2663 = vmatmul.mubr.bf16.gmra.mrb[16].mxu0 %v4164_v52  ;;  %v4259_v51 = vld [vmem:[%s4667_s8 + $0x280] ss:$16 sps:$4 sm:$0xff]   ;;  %v4260_v52 = vld [vmem:[%s4667_s8 + $0x288] ss:$16 sps:$4 sm:$0xff]  }
  0x68   : > { %2125 = vmatprep.mubr.bf16.mxu1 %v4165_v53  ;;  %2670 = vmatprep.mubr.bf16.mxu0 %v4167_v54  ;;  %v4261_v53 = vld [vmem:[%s4667_s8 + $0x2a4] ss:$16 sps:$4 sm:$0xff]   ;;  %v4263_v54 = vld [vmem:[%s4667_s8 + $0x2ac] ss:$16 sps:$4 sm:$0xff]  }
  0x6f   : > { %2126 = vmatmul.mubr.bf16.gmra.mrb[20].mxu1 %v4169_v55  ;;  %2671 = vmatmul.mubr.bf16.gmra.mrb[20].mxu0 %v4170_v56  ;;  %v4265_v55 = vld [vmem:[%s4667_s8 + $0x2a0] ss:$16 sps:$4 sm:$0xff]   ;;  %v4266_v56 = vld [vmem:[%s4667_s8 + $0x2a8] ss:$16 sps:$4 sm:$0xff]  }
  0x70   : > { %2133 = vmatprep.mubr.bf16.mxu1 %v4171_v57  ;;  %2678 = vmatprep.mubr.bf16.mxu0 %v4173_v58  ;;  %v4267_v57 = vld [vmem:[%s4667_s8 + $0x2c4] ss:$16 sps:$4 sm:$0xff]   ;;  %v4269_v58 = vld [vmem:[%s4667_s8 + $0x2cc] ss:$16 sps:$4 sm:$0xff]  }
  0x77   : > { %2134 = vmatmul.mubr.bf16.gmra.mrb[24].mxu1 %v4175_v59  ;;  %2679 = vmatmul.mubr.bf16.gmra.mrb[24].mxu0 %v4176_v60  ;;  %v4271_v59 = vld [vmem:[%s4667_s8 + $0x2c0] ss:$16 sps:$4 sm:$0xff]   ;;  %v4272_v60 = vld [vmem:[%s4667_s8 + $0x2c8] ss:$16 sps:$4 sm:$0xff]  }
  0x78   : > { %2141 = vmatprep.mubr.bf16.mxu1 %v4177_v61  ;;  %2686 = vmatprep.mubr.bf16.mxu0 %v4179_v62  ;;  %v4273_v61 = vld [vmem:[%s4667_s8 + $0x2e4] ss:$16 sps:$4 sm:$0xff]   ;;  %v4275_v62 = vld [vmem:[%s4667_s8 + $0x2ec] ss:$16 sps:$4 sm:$0xff]  }
  0x7f   : > { %2142 = vmatmul.mubr.bf16.gmra.mrb[28].mxu1 %v4181_v63  ;;  %2687 = vmatmul.mubr.bf16.gmra.mrb[28].mxu0 %v4182_v0  ;;  %v4277_v63 = vld [vmem:[%s4667_s8 + $0x2e0] ss:$16 sps:$4 sm:$0xff]   ;;  %v4278_v0 = vld [vmem:[%s4667_s8 + $0x2e8] ss:$16 sps:$4 sm:$0xff]  }
  0x80   : > { %2149 = vmatprep.mubr.bf16.mxu1 %v4183_v1  ;;  %2694 = vmatprep.mubr.bf16.mxu0 %v4185_v2  ;;  %v4279_v1 = vld [vmem:[%s4667_s8 + $0x304] ss:$16 sps:$4 sm:$0xff]   ;;  %v4281_v2 = vld [vmem:[%s4667_s8 + $0x30c] ss:$16 sps:$4 sm:$0xff]  }
  0x87   : > { %2150 = vmatmul.mubr.bf16.gmra.mrb[32].mxu1 %v4187_v3  ;;  %2695 = vmatmul.mubr.bf16.gmra.mrb[32].mxu0 %v4188_v4  ;;  %v4283_v3 = vld [vmem:[%s4667_s8 + $0x300] ss:$16 sps:$4 sm:$0xff]   ;;  %v4284_v4 = vld [vmem:[%s4667_s8 + $0x308] ss:$16 sps:$4 sm:$0xff]  }
  0x88   : > { %2157 = vmatprep.mubr.bf16.mxu1 %v4189_v5  ;;  %2702 = vmatprep.mubr.bf16.mxu0 %v4191_v6  ;;  %v4285_v5 = vld [vmem:[%s4667_s8 + $0x324] ss:$16 sps:$4 sm:$0xff]   ;;  %v4287_v6 = vld [vmem:[%s4667_s8 + $0x32c] ss:$16 sps:$4 sm:$0xff]  }
  0x8f   : > { %2158 = vmatmul.mubr.bf16.gmra.mrb[36].mxu1 %v4193_v7  ;;  %2703 = vmatmul.mubr.bf16.gmra.mrb[36].mxu0 %v4194_v8  ;;  %v4289_v7 = vld [vmem:[%s4667_s8 + $0x320] ss:$16 sps:$4 sm:$0xff]   ;;  %v4290_v8 = vld [vmem:[%s4667_s8 + $0x328] ss:$16 sps:$4 sm:$0xff]  }
  0x90   : > { %2165 = vmatprep.mubr.bf16.mxu1 %v4195_v9  ;;  %2710 = vmatprep.mubr.bf16.mxu0 %v4197_v10  ;;  %v4291_v9 = vld [vmem:[%s4667_s8 + $0x344] ss:$16 sps:$4 sm:$0xff]   ;;  %v4293_v10 = vld [vmem:[%s4667_s8 + $0x34c] ss:$16 sps:$4 sm:$0xff]  }
  0x97   : > { %2166 = vmatmul.mubr.bf16.gmra.mrb[40].mxu1 %v4199_v11  ;;  %2711 = vmatmul.mubr.bf16.gmra.mrb[40].mxu0 %v4200_v12  ;;  %v4295_v11 = vld [vmem:[%s4667_s8 + $0x340] ss:$16 sps:$4 sm:$0xff]   ;;  %v4296_v12 = vld [vmem:[%s4667_s8 + $0x348] ss:$16 sps:$4 sm:$0xff]  }
  0x98   : > { %2173 = vmatprep.mubr.bf16.mxu1 %v4201_v13  ;;  %2718 = vmatprep.mubr.bf16.mxu0 %v4203_v14  ;;  %v4297_v13 = vld [vmem:[%s4667_s8 + $0x364] ss:$16 sps:$4 sm:$0xff]   ;;  %v4299_v14 = vld [vmem:[%s4667_s8 + $0x36c] ss:$16 sps:$4 sm:$0xff]  }
  0x9f   : > { %2174 = vmatmul.mubr.bf16.gmra.mrb[44].mxu1 %v4205_v15  ;;  %2719 = vmatmul.mubr.bf16.gmra.mrb[44].mxu0 %v4206_v16 }
  0xa0   : > { %2181 = vmatprep.mubr.bf16.mxu1 %v4207_v17  ;;  %2726 = vmatprep.mubr.bf16.mxu0 %v4209_v18  ;;  %v4844_v17 = vld [vmem:[%s5417_s2] ss:$0 sm:$0xff] }
  0xa7   : > { %2182 = vmatmul.mubr.bf16.gmra.mrb[48].mxu1 %v4211_v19  ;;  %2727 = vmatmul.mubr.bf16.gmra.mrb[48].mxu0 %v4212_v20  ;;  %v4301_v19 = vld [vmem:[%s4667_s8 + $0x360] ss:$16 sps:$4 sm:$0xff]  }
  0xa8   : > { %2189 = vmatprep.mubr.bf16.mxu1 %v4213_v21  ;;  %2734 = vmatprep.mubr.bf16.mxu0 %v4215_v22 }
  0xaf   : > { %2190 = vmatmul.mubr.bf16.gmra.mrb[52].mxu1 %v4217_v23  ;;  %2735 = vmatmul.mubr.bf16.gmra.mrb[52].mxu0 %v4218_v24  ;;  %v4302_v23 = vld [vmem:[%s4667_s8 + $0x368] ss:$16 sps:$4 sm:$0xff]   ;;  %v4303_v24 = vld [vmem:[%s4667_s8 + $0x384] ss:$16 sps:$4 sm:$0xff]  }
  0xb0   : > { %2197 = vmatprep.mubr.bf16.mxu1 %v4219_v25  ;;  %2742 = vmatprep.mubr.bf16.mxu0 %v4221_v26  ;;  %v4852_v25 = vld [vmem:[%s5418_s3] ss:$0 sm:$0xff] }
  0xb7   : > { %2198 = vmatmul.mubr.bf16.gmra.mrb[56].mxu1 %v4223_v27  ;;  %2743 = vmatmul.mubr.bf16.gmra.mrb[56].mxu0 %v4224_v28  ;;  %v4305_v28 = vld [vmem:[%s4667_s8 + $0x38c] ss:$16 sps:$4 sm:$0xff]  }
  0xb8   : > { %2205 = vmatprep.mubr.bf16.mxu1 %v4225_v29  ;;  %2750 = vmatprep.mubr.bf16.mxu0 %v4227_v30 }
  0xbf   : > { %2206 = vmatmul.mubr.bf16.gmra.mrb[60].mxu1 %v4229_v31  ;;  %2751 = vmatmul.mubr.bf16.gmra.mrb[60].mxu0 %v4230_v32 }
  0xc0   : > { %2213 = vmatprep.mubr.bf16.mxu1 %v4231_v33  ;;  %2758 = vmatprep.mubr.bf16.mxu0 %v4233_v34 }
  0xc7   : > { %2214 = vmatmul.mubr.bf16.gmra.mrb[64].mxu1 %v4235_v35  ;;  %2759 = vmatmul.mubr.bf16.gmra.mrb[64].mxu0 %v4236_v36 }
  0xc8   : > { %2221 = vmatprep.mubr.bf16.mxu1 %v4237_v37  ;;  %2766 = vmatprep.mubr.bf16.mxu0 %v4239_v38  ;;  %v4307_v38 = vld [vmem:[%s4667_s8 + $0x380] ss:$16 sps:$4 sm:$0xff]  }
  0xcf   : > { %2222 = vmatmul.mubr.bf16.gmra.mrb[68].mxu1 %v4241_v39  ;;  %2767 = vmatmul.mubr.bf16.gmra.mrb[68].mxu0 %v4242_v40 }
  0xd0   : > { %2229 = vmatprep.mubr.bf16.mxu1 %v4243_v41  ;;  %2774 = vmatprep.mubr.bf16.mxu0 %v4245_v42  ;;  %v4308_v42 = vld [vmem:[%s4667_s8 + $0x388] ss:$16 sps:$4 sm:$0xff]  }
  0xd7   : > { %2230 = vmatmul.mubr.bf16.gmra.mrb[72].mxu1 %v4247_v43  ;;  %2775 = vmatmul.mubr.bf16.gmra.mrb[72].mxu0 %v4248_v44  ;;  %v4309_v43 = vld [vmem:[%s4667_s8 + $0x3a4] ss:$16 sps:$4 sm:$0xff]  }
  0xd8   : > { %2237 = vmatprep.mubr.bf16.mxu1 %v4249_v45  ;;  %2782 = vmatprep.mubr.bf16.mxu0 %v4251_v46  ;;  %v4311_v46 = vld [vmem:[%s4667_s8 + $0x3ac] ss:$16 sps:$4 sm:$0xff]  }
  0xdf   : > { %2238 = vmatmul.mubr.bf16.gmra.mrb[76].mxu1 %v4253_v47  ;;  %2783 = vmatmul.mubr.bf16.gmra.mrb[76].mxu0 %v4254_v48 }
  0xe0   : > { %2245 = vmatprep.mubr.bf16.mxu1 %v4255_v49  ;;  %2790 = vmatprep.mubr.bf16.mxu0 %v4257_v50 }
  0xe7   : > { %2246 = vmatmul.mubr.bf16.gmra.mrb[80].mxu1 %v4259_v51  ;;  %2791 = vmatmul.mubr.bf16.gmra.mrb[80].mxu0 %v4260_v52 }
  0xe8   : > { %2253 = vmatprep.mubr.bf16.mxu1 %v4261_v53  ;;  %2798 = vmatprep.mubr.bf16.mxu0 %v4263_v54 }
  0xef   : > { %2254 = vmatmul.mubr.bf16.gmra.mrb[84].mxu1 %v4265_v55  ;;  %2799 = vmatmul.mubr.bf16.gmra.mrb[84].mxu0 %v4266_v56  ;;  %v4313_v56 = vld [vmem:[%s4667_s8 + $0x3a0] ss:$16 sps:$4 sm:$0xff]  }
  0xf0   : > { %2261 = vmatprep.mubr.bf16.mxu1 %v4267_v57  ;;  %2806 = vmatprep.mubr.bf16.mxu0 %v4269_v58 }
  0xf7   : > { %2262 = vmatmul.mubr.bf16.gmra.mrb[88].mxu1 %v4271_v59  ;;  %2807 = vmatmul.mubr.bf16.gmra.mrb[88].mxu0 %v4272_v60  ;;  %v4314_v60 = vld [vmem:[%s4667_s8 + $0x3a8] ss:$16 sps:$4 sm:$0xff]  }
  0xf8   : > { %2269 = vmatprep.mubr.bf16.mxu1 %v4273_v61  ;;  %2814 = vmatprep.mubr.bf16.mxu0 %v4275_v62  ;;  %v4315_v61 = vld [vmem:[%s4667_s8 + $0x3c4] ss:$16 sps:$4 sm:$0xff]  }
  0xff   : > { %2270 = vmatmul.mubr.bf16.gmra.mrb[92].mxu1 %v4277_v63  ;;  %2815 = vmatmul.mubr.bf16.gmra.mrb[92].mxu0 %v4278_v0  ;;  %v4317_v0 = vld [vmem:[%s4667_s8 + $0x3cc] ss:$16 sps:$4 sm:$0xff]  }
 0x100   : > { %2277 = vmatprep.mubr.bf16.mxu1 %v4279_v1  ;;  %2822 = vmatprep.mubr.bf16.mxu0 %v4281_v2 }
 0x107   : > { %2278 = vmatmul.mubr.bf16.gmra.mrb[96].mxu1 %v4283_v3  ;;  %2823 = vmatmul.mubr.bf16.gmra.mrb[96].mxu0 %v4284_v4 }
 0x108   : > { %2285 = vmatprep.mubr.bf16.mxu1 %v4285_v5  ;;  %2830 = vmatprep.mubr.bf16.mxu0 %v4287_v6 }
 0x10f   : > { %2286 = vmatmul.mubr.bf16.gmra.mrb[100].mxu1 %v4289_v7  ;;  %2831 = vmatmul.mubr.bf16.gmra.mrb[100].mxu0 %v4290_v8 }
 0x110   : > { %2293 = vmatprep.mubr.bf16.mxu1 %v4291_v9  ;;  %2838 = vmatprep.mubr.bf16.mxu0 %v4293_v10  ;;  %v4319_v10 = vld [vmem:[%s4667_s8 + $0x3c0] ss:$16 sps:$4 sm:$0xff]  }
 0x117   : > { %2294 = vmatmul.mubr.bf16.gmra.mrb[104].mxu1 %v4295_v11  ;;  %2839 = vmatmul.mubr.bf16.gmra.mrb[104].mxu0 %v4296_v12 }
 0x118   : > { %2301 = vmatprep.mubr.bf16.mxu1 %v4297_v13  ;;  %2846 = vmatprep.mubr.bf16.mxu0 %v4299_v14  ;;  %v4320_v14 = vld [vmem:[%s4667_s8 + $0x3c8] ss:$16 sps:$4 sm:$0xff]  }
 0x11a   : > { %v2087_v15 = vpop.f32.mrb[0].mxu1  ;;  %v2632_v16 = vpop.f32.mrb[0].mxu0 }
 0x11b   : > { %v2089_v18 = vpop.f32.mrb[1].mxu1  ;;  %v2633_v20 = vadd.f32 %v2632_v16, %v2087_v15  ;;  %v2634_v21 = vpop.f32.mrb[1].mxu0  ;;  %v4321_v15 = vld [vmem:[%s4667_s8 + $0x3e4] ss:$16 sps:$4 sm:$0xff]  }
 0x11c   : > { %v2090_v22 = vpop.f32.mrb[2].mxu1  ;;  %v2635_v26 = vpop.f32.mrb[2].mxu0 }
 0x11d   : > { %v2092_v27 = vpop.f32.mrb[3].mxu1  ;;  %v3150_v29 = vmul.f32 %v4844_v17, %v2633_v20  ;;  %v2636_v30 = vadd.f32 %v2635_v26, %v2090_v22  ;;  %v2637_v31 = vpop.f32.mrb[3].mxu0 }
 0x11f   : > { %2302 = vmatmul.mubr.bf16.gmra.mrb[108].mxu1 %v4301_v19  ;;  %v3285_v32 = vadd.f32 %v4852_v25, %v3150_v29  ;;  %v3151_v33 = vmul.f32 %v4844_v17, %v2636_v30  ;;  %2847 = vmatmul.mubr.bf16.gmra.mrb[108].mxu0 %v4302_v23  ;;  %v4323_v19 = vld [vmem:[%s4667_s8 + $0x3ec] ss:$16 sps:$4 sm:$0xff]   ;;  %v4325_v30 = vld [vmem:[%s4667_s8 + $0x3e0] ss:$16 sps:$4 sm:$0xff]  }
 0x120   : > { %2309 = vmatprep.mubr.bf16.mxu1 %v4303_v24  ;;  %2854 = vmatprep.mubr.bf16.mxu0 %v4305_v28 }
 0x121   : > { %3413 = vst [vmem:[%s4859_s28] sm:$0xff] %v3285_v32  ;;  %v3286_v34 = vadd.f32 %v4852_v25, %v3151_v33 }
 0x122   : > { %v2095_v35 = vpop.f32.mrb[4].mxu1  ;;  %v2640_v36 = vpop.f32.mrb[4].mxu0 }
 0x123   : > { %v2097_v37 = vpop.f32.mrb[5].mxu1  ;;  %3414 = vst [vmem:[%s4859_s28 + $0x8] sm:$0xff] %v3286_v34  ;;  %v2641_v39 = vadd.f32 %v2640_v36, %v2095_v35  ;;  %v2642_v40 = vpop.f32.mrb[5].mxu0  ;;  %v4326_v34 = vld [vmem:[%s4667_s8 + $0x3e8] ss:$16 sps:$4 sm:$0xff]  }
 0x124   : > { %v2098_v41 = vpop.f32.mrb[6].mxu1  ;;  %v2643_v44 = vpop.f32.mrb[6].mxu0  ;;  %v4327_v35 = vld [vmem:[%s4667_s8 + $0x404] ss:$16 sps:$4 sm:$0xff]  }
 0x125   : > { %v2100_v45 = vpop.f32.mrb[7].mxu1  ;;  %v3152_v47 = vmul.f32 %v4844_v17, %v2641_v39  ;;  %v2644_v48 = vadd.f32 %v2643_v44, %v2098_v41  ;;  %v2645_v49 = vpop.f32.mrb[7].mxu0 }
 0x127   : > { %2310 = vmatmul.mubr.bf16.gmra.mrb[112].mxu1 %v4307_v38  ;;  %v3287_v50 = vadd.f32 %v4852_v25, %v3152_v47  ;;  %v3153_v51 = vmul.f32 %v4844_v17, %v2644_v48  ;;  %2855 = vmatmul.mubr.bf16.gmra.mrb[112].mxu0 %v4308_v42  ;;  %v4329_v38 = vld [vmem:[%s4667_s8 + $0x40c] ss:$16 sps:$4 sm:$0xff]   ;;  %v4331_v48 = vld [vmem:[%s4667_s8 + $0x400] ss:$16 sps:$4 sm:$0xff]  }
 0x128   : > { %2317 = vmatprep.mubr.bf16.mxu1 %v4309_v43  ;;  %2862 = vmatprep.mubr.bf16.mxu0 %v4311_v46 }
 0x129   : > { %3415 = vst [vmem:[%s4859_s28 + $0x10] sm:$0xff] %v3287_v50  ;;  %v3288_v52 = vadd.f32 %v4852_v25, %v3153_v51 }
 0x12a   : > { %v2103_v53 = vpop.f32.mrb[8].mxu1  ;;  %v2648_v54 = vpop.f32.mrb[8].mxu0 }
 0x12b   : > { %v2105_v55 = vpop.f32.mrb[9].mxu1  ;;  %3416 = vst [vmem:[%s4859_s28 + $0x18] sm:$0xff] %v3288_v52  ;;  %v2649_v57 = vadd.f32 %v2648_v54, %v2103_v53  ;;  %v2650_v58 = vpop.f32.mrb[9].mxu0  ;;  %v4332_v52 = vld [vmem:[%s4667_s8 + $0x408] ss:$16 sps:$4 sm:$0xff]  }
 0x12c   : > { %v2106_v59 = vpop.f32.mrb[10].mxu1  ;;  %v2651_v62 = vpop.f32.mrb[10].mxu0  ;;  %v4333_v53 = vld [vmem:[%s4667_s8 + $0x424] ss:$16 sps:$4 sm:$0xff]  }
 0x12d   : > { %v2108_v63 = vpop.f32.mrb[11].mxu1  ;;  %v3154_v1 = vmul.f32 %v4844_v17, %v2649_v57  ;;  %v2652_v2 = vadd.f32 %v2651_v62, %v2106_v59  ;;  %v2653_v3 = vpop.f32.mrb[11].mxu0 }
 0x12f   : > { %2318 = vmatmul.mubr.bf16.gmra.mrb[116].mxu1 %v4313_v56  ;;  %v3289_v4 = vadd.f32 %v4852_v25, %v3154_v1  ;;  %v3155_v5 = vmul.f32 %v4844_v17, %v2652_v2  ;;  %2863 = vmatmul.mubr.bf16.gmra.mrb[116].mxu0 %v4314_v60  ;;  %v4335_v56 = vld [vmem:[%s4667_s8 + $0x42c] ss:$16 sps:$4 sm:$0xff]   ;;  %v4337_v2 = vld [vmem:[%s4667_s8 + $0x420] ss:$16 sps:$4 sm:$0xff]  }
 0x130   : > { %2325 = vmatprep.mubr.bf16.mxu1 %v4315_v61  ;;  %2870 = vmatprep.mubr.bf16.mxu0 %v4317_v0 }
 0x131   : > { %3417 = vst [vmem:[%s4859_s28 + $0x20] sm:$0xff] %v3289_v4  ;;  %v3290_v6 = vadd.f32 %v4852_v25, %v3155_v5 }
 0x132   : > { %v2111_v7 = vpop.f32.mrb[12].mxu1  ;;  %v2656_v8 = vpop.f32.mrb[12].mxu0 }
 0x133   : > { %v2113_v9 = vpop.f32.mrb[13].mxu1  ;;  %3418 = vst [vmem:[%s4859_s28 + $0x28] sm:$0xff] %v3290_v6  ;;  %v2657_v11 = vadd.f32 %v2656_v8, %v2111_v7  ;;  %v2658_v12 = vpop.f32.mrb[13].mxu0  ;;  %v4338_v6 = vld [vmem:[%s4667_s8 + $0x428] ss:$16 sps:$4 sm:$0xff]  }
 0x134   : > { %v2114_v13 = vpop.f32.mrb[14].mxu1  ;;  %v2659_v16 = vpop.f32.mrb[14].mxu0  ;;  %v4339_v7 = vld [vmem:[%s4667_s8 + $0x444] ss:$16 sps:$4 sm:$0xff]  }
 0x135   : > { %v2116_v18 = vpop.f32.mrb[15].mxu1  ;;  %v3156_v20 = vmul.f32 %v4844_v17, %v2657_v11  ;;  %v2660_v21 = vadd.f32 %v2659_v16, %v2114_v13  ;;  %v2661_v22 = vpop.f32.mrb[15].mxu0 }
 0x137   : > { %2326 = vmatmul.mubr.bf16.gmra.mrb[120].mxu1 %v4319_v10  ;;  %v3291_v23 = vadd.f32 %v4852_v25, %v3156_v20  ;;  %v3157_v24 = vmul.f32 %v4844_v17, %v2660_v21  ;;  %2871 = vmatmul.mubr.bf16.gmra.mrb[120].mxu0 %v4320_v14  ;;  %v4341_v10 = vld [vmem:[%s4667_s8 + $0x44c] ss:$16 sps:$4 sm:$0xff]   ;;  %v4343_v21 = vld [vmem:[%s4667_s8 + $0x440] ss:$16 sps:$4 sm:$0xff]  }
 0x138   : > { %2333 = vmatprep.mubr.bf16.mxu1 %v4321_v15  ;;  %2878 = vmatprep.mubr.bf16.mxu0 %v4323_v19 }
 0x139   : > { %3419 = vst [vmem:[%s4859_s28 + $0x30] sm:$0xff] %v3291_v23  ;;  %v3292_v26 = vadd.f32 %v4852_v25, %v3157_v24 }
 0x13a   : > { %v2119_v27 = vpop.f32.mrb[16].mxu1  ;;  %v2664_v28 = vpop.f32.mrb[16].mxu0 }
 0x13b   : > { %v2121_v29 = vpop.f32.mrb[17].mxu1  ;;  %3420 = vst [vmem:[%s4859_s28 + $0x38] sm:$0xff] %v3292_v26  ;;  %v2665_v31 = vadd.f32 %v2664_v28, %v2119_v27  ;;  %v2666_v32 = vpop.f32.mrb[17].mxu0  ;;  %v4344_v26 = vld [vmem:[%s4667_s8 + $0x448] ss:$16 sps:$4 sm:$0xff]  }
 0x13c   : > { %v2122_v33 = vpop.f32.mrb[18].mxu1  ;;  %v2667_v36 = vpop.f32.mrb[18].mxu0  ;;  %v4345_v27 = vld [vmem:[%s4667_s8 + $0x464] ss:$16 sps:$4 sm:$0xff]  }
 0x13d   : > { %v2124_v37 = vpop.f32.mrb[19].mxu1  ;;  %v3158_v39 = vmul.f32 %v4844_v17, %v2665_v31  ;;  %v2668_v40 = vadd.f32 %v2667_v36, %v2122_v33  ;;  %v2669_v41 = vpop.f32.mrb[19].mxu0 }
 0x13f   : > { %2334 = vmatmul.mubr.bf16.gmra.mrb[124].mxu1 %v4325_v30  ;;  %v3293_v42 = vadd.f32 %v4852_v25, %v3158_v39  ;;  %v3159_v43 = vmul.f32 %v4844_v17, %v2668_v40  ;;  %2879 = vmatmul.mubr.bf16.gmra.mrb[124].mxu0 %v4326_v34  ;;  %v4347_v30 = vld [vmem:[%s4667_s8 + $0x46c] ss:$16 sps:$4 sm:$0xff]   ;;  %v4349_v40 = vld [vmem:[%s4667_s8 + $0x460] ss:$16 sps:$4 sm:$0xff]  }
 0x140   : > { %2341 = vmatprep.mubr.bf16.mxu1 %v4327_v35  ;;  %2886 = vmatprep.mubr.bf16.mxu0 %v4329_v38 }
 0x141   : > { %3421 = vst [vmem:[%s4859_s28 + $0x40] sm:$0xff] %v3293_v42  ;;  %v3294_v44 = vadd.f32 %v4852_v25, %v3159_v43 }
 0x142   : > { %v2127_v45 = vpop.f32.mrb[20].mxu1  ;;  %v2672_v46 = vpop.f32.mrb[20].mxu0 }
 0x143   : > { %v2129_v47 = vpop.f32.mrb[21].mxu1  ;;  %3422 = vst [vmem:[%s4859_s28 + $0x48] sm:$0xff] %v3294_v44  ;;  %v2673_v49 = vadd.f32 %v2672_v46, %v2127_v45  ;;  %v2674_v50 = vpop.f32.mrb[21].mxu0  ;;  %v4350_v44 = vld [vmem:[%s4667_s8 + $0x468] ss:$16 sps:$4 sm:$0xff]  }
 0x144   : > { %v2130_v51 = vpop.f32.mrb[22].mxu1  ;;  %v2675_v54 = vpop.f32.mrb[22].mxu0  ;;  %v4351_v45 = vld [vmem:[%s4667_s8 + $0x484] ss:$16 sps:$4 sm:$0xff]  }
 0x145   : > { %v2132_v55 = vpop.f32.mrb[23].mxu1  ;;  %v3160_v57 = vmul.f32 %v4844_v17, %v2673_v49  ;;  %v2676_v58 = vadd.f32 %v2675_v54, %v2130_v51  ;;  %v2677_v59 = vpop.f32.mrb[23].mxu0 }
 0x147   : > { %2342 = vmatmul.mubr.bf16.gmra.mrb[128].mxu1 %v4331_v48  ;;  %v3295_v60 = vadd.f32 %v4852_v25, %v3160_v57  ;;  %v3161_v61 = vmul.f32 %v4844_v17, %v2676_v58  ;;  %2887 = vmatmul.mubr.bf16.gmra.mrb[128].mxu0 %v4332_v52  ;;  %v4353_v48 = vld [vmem:[%s4667_s8 + $0x48c] ss:$16 sps:$4 sm:$0xff]   ;;  %v4355_v58 = vld [vmem:[%s4667_s8 + $0x480] ss:$16 sps:$4 sm:$0xff]  }
 0x148   : > { %2349 = vmatprep.mubr.bf16.mxu1 %v4333_v53  ;;  %2894 = vmatprep.mubr.bf16.mxu0 %v4335_v56 }
 0x149   : > { %3423 = vst [vmem:[%s4859_s28 + $0x50] sm:$0xff] %v3295_v60  ;;  %v3296_v62 = vadd.f32 %v4852_v25, %v3161_v61 }
 0x14a   : > { %v2135_v63 = vpop.f32.mrb[24].mxu1  ;;  %v2680_v0 = vpop.f32.mrb[24].mxu0 }
 0x14b   : > { %v2137_v1 = vpop.f32.mrb[25].mxu1  ;;  %3424 = vst [vmem:[%s4859_s28 + $0x58] sm:$0xff] %v3296_v62  ;;  %v2681_v3 = vadd.f32 %v2680_v0, %v2135_v63  ;;  %v2682_v4 = vpop.f32.mrb[25].mxu0  ;;  %v4356_v62 = vld [vmem:[%s4667_s8 + $0x488] ss:$16 sps:$4 sm:$0xff]  }
 0x14c   : > { %v2138_v5 = vpop.f32.mrb[26].mxu1  ;;  %v2683_v8 = vpop.f32.mrb[26].mxu0  ;;  %v4357_v63 = vld [vmem:[%s4667_s8 + $0x4a4] ss:$16 sps:$4 sm:$0xff]  }
 0x14d   : > { %v2140_v9 = vpop.f32.mrb[27].mxu1  ;;  %v3162_v11 = vmul.f32 %v4844_v17, %v2681_v3  ;;  %v2684_v12 = vadd.f32 %v2683_v8, %v2138_v5  ;;  %v2685_v13 = vpop.f32.mrb[27].mxu0 }
 0x14f   : > { %2350 = vmatmul.mubr.bf16.gmra.mrb[132].mxu1 %v4337_v2  ;;  %v3297_v14 = vadd.f32 %v4852_v25, %v3162_v11  ;;  %v3163_v15 = vmul.f32 %v4844_v17, %v2684_v12  ;;  %2895 = vmatmul.mubr.bf16.gmra.mrb[132].mxu0 %v4338_v6  ;;  %v4359_v2 = vld [vmem:[%s4667_s8 + $0x4ac] ss:$16 sps:$4 sm:$0xff]   ;;  %v4361_v12 = vld [vmem:[%s4667_s8 + $0x4a0] ss:$16 sps:$4 sm:$0xff]  }
 0x150   : > { %2357 = vmatprep.mubr.bf16.mxu1 %v4339_v7  ;;  %2902 = vmatprep.mubr.bf16.mxu0 %v4341_v10 }
 0x151   : > { %3425 = vst [vmem:[%s4859_s28 + $0x60] sm:$0xff] %v3297_v14  ;;  %v3298_v16 = vadd.f32 %v4852_v25, %v3163_v15 }
 0x152   : > { %v2143_v18 = vpop.f32.mrb[28].mxu1  ;;  %v2688_v19 = vpop.f32.mrb[28].mxu0 }
 0x153   : > { %v2145_v20 = vpop.f32.mrb[29].mxu1  ;;  %3426 = vst [vmem:[%s4859_s28 + $0x68] sm:$0xff] %v3298_v16  ;;  %v2689_v22 = vadd.f32 %v2688_v19, %v2143_v18  ;;  %v2690_v23 = vpop.f32.mrb[29].mxu0  ;;  %v4362_v16 = vld [vmem:[%s4667_s8 + $0x4a8] ss:$16 sps:$4 sm:$0xff]  }
 0x154   : > { %v2146_v24 = vpop.f32.mrb[30].mxu1  ;;  %v2691_v28 = vpop.f32.mrb[30].mxu0  ;;  %v4363_v18 = vld [vmem:[%s4667_s8 + $0x4c4] ss:$16 sps:$4 sm:$0xff]  }
 0x155   : > { %v2148_v29 = vpop.f32.mrb[31].mxu1  ;;  %v3164_v31 = vmul.f32 %v4844_v17, %v2689_v22  ;;  %v2692_v32 = vadd.f32 %v2691_v28, %v2146_v24  ;;  %v2693_v33 = vpop.f32.mrb[31].mxu0 }
 0x157   : > { %2358 = vmatmul.mubr.bf16.gmra.mrb[136].mxu1 %v4343_v21  ;;  %v3299_v34 = vadd.f32 %v4852_v25, %v3164_v31  ;;  %v3165_v35 = vmul.f32 %v4844_v17, %v2692_v32  ;;  %2903 = vmatmul.mubr.bf16.gmra.mrb[136].mxu0 %v4344_v26  ;;  %v4365_v21 = vld [vmem:[%s4667_s8 + $0x4cc] ss:$16 sps:$4 sm:$0xff]   ;;  %v4367_v32 = vld [vmem:[%s4667_s8 + $0x4c0] ss:$16 sps:$4 sm:$0xff]  }
 0x158   : > { %2365 = vmatprep.mubr.bf16.mxu1 %v4345_v27  ;;  %2910 = vmatprep.mubr.bf16.mxu0 %v4347_v30 }
 0x159   : > { %3427 = vst [vmem:[%s4859_s28 + $0x70] sm:$0xff] %v3299_v34  ;;  %v3300_v36 = vadd.f32 %v4852_v25, %v3165_v35 }
 0x15a   : > { %v2151_v37 = vpop.f32.mrb[32].mxu1  ;;  %v2696_v38 = vpop.f32.mrb[32].mxu0 }
 0x15b   : > { %v2153_v39 = vpop.f32.mrb[33].mxu1  ;;  %3428 = vst [vmem:[%s4859_s28 + $0x78] sm:$0xff] %v3300_v36  ;;  %v2697_v41 = vadd.f32 %v2696_v38, %v2151_v37  ;;  %v2698_v42 = vpop.f32.mrb[33].mxu0  ;;  %v4368_v36 = vld [vmem:[%s4667_s8 + $0x4c8] ss:$16 sps:$4 sm:$0xff]  }
 0x15c   : > { %v2154_v43 = vpop.f32.mrb[34].mxu1  ;;  %v2699_v46 = vpop.f32.mrb[34].mxu0  ;;  %v4369_v37 = vld [vmem:[%s4667_s8 + $0x4e4] ss:$16 sps:$4 sm:$0xff]  }
 0x15d   : > { %v2156_v47 = vpop.f32.mrb[35].mxu1  ;;  %v3166_v49 = vmul.f32 %v4844_v17, %v2697_v41  ;;  %v2700_v50 = vadd.f32 %v2699_v46, %v2154_v43  ;;  %v2701_v51 = vpop.f32.mrb[35].mxu0 }
 0x15f   : > { %2366 = vmatmul.mubr.bf16.gmra.mrb[140].mxu1 %v4349_v40  ;;  %v3301_v52 = vadd.f32 %v4852_v25, %v3166_v49  ;;  %v3167_v53 = vmul.f32 %v4844_v17, %v2700_v50  ;;  %2911 = vmatmul.mubr.bf16.gmra.mrb[140].mxu0 %v4350_v44  ;;  %v4371_v40 = vld [vmem:[%s4667_s8 + $0x4ec] ss:$16 sps:$4 sm:$0xff]   ;;  %v4373_v50 = vld [vmem:[%s4667_s8 + $0x4e0] ss:$16 sps:$4 sm:$0xff]  }
 0x160   : > { %2373 = vmatprep.mubr.bf16.mxu1 %v4351_v45  ;;  %2918 = vmatprep.mubr.bf16.mxu0 %v4353_v48 }
 0x161   : > { %3429 = vst [vmem:[%s4859_s28 + $0x80] sm:$0xff] %v3301_v52  ;;  %v3302_v54 = vadd.f32 %v4852_v25, %v3167_v53 }
 0x162   : > { %v2159_v55 = vpop.f32.mrb[36].mxu1  ;;  %v2704_v56 = vpop.f32.mrb[36].mxu0 }
 0x163   : > { %v2161_v57 = vpop.f32.mrb[37].mxu1  ;;  %3430 = vst [vmem:[%s4859_s28 + $0x88] sm:$0xff] %v3302_v54  ;;  %v2705_v59 = vadd.f32 %v2704_v56, %v2159_v55  ;;  %v2706_v60 = vpop.f32.mrb[37].mxu0  ;;  %v4374_v54 = vld [vmem:[%s4667_s8 + $0x4e8] ss:$16 sps:$4 sm:$0xff]  }
 0x164   : > { %v2162_v61 = vpop.f32.mrb[38].mxu1  ;;  %v2707_v0 = vpop.f32.mrb[38].mxu0  ;;  %v4375_v55 = vld [vmem:[%s4667_s8 + $0x504] ss:$16 sps:$4 sm:$0xff]  }
 0x165   : > { %v2164_v1 = vpop.f32.mrb[39].mxu1  ;;  %v3168_v3 = vmul.f32 %v4844_v17, %v2705_v59  ;;  %v2708_v4 = vadd.f32 %v2707_v0, %v2162_v61  ;;  %v2709_v5 = vpop.f32.mrb[39].mxu0 }
 0x167   : > { %2374 = vmatmul.mubr.bf16.gmra.mrb[144].mxu1 %v4355_v58  ;;  %v3303_v6 = vadd.f32 %v4852_v25, %v3168_v3  ;;  %v3169_v7 = vmul.f32 %v4844_v17, %v2708_v4  ;;  %2919 = vmatmul.mubr.bf16.gmra.mrb[144].mxu0 %v4356_v62  ;;  %v4377_v58 = vld [vmem:[%s4667_s8 + $0x50c] ss:$16 sps:$4 sm:$0xff]   ;;  %v4379_v4 = vld [vmem:[%s4667_s8 + $0x500] ss:$16 sps:$4 sm:$0xff]  }
 0x168   : > { %2381 = vmatprep.mubr.bf16.mxu1 %v4357_v63  ;;  %2926 = vmatprep.mubr.bf16.mxu0 %v4359_v2 }
 0x169   : > { %3431 = vst [vmem:[%s4859_s28 + $0x90] sm:$0xff] %v3303_v6  ;;  %v3304_v8 = vadd.f32 %v4852_v25, %v3169_v7 }
 0x16a   : > { %v2167_v9 = vpop.f32.mrb[40].mxu1  ;;  %v2712_v10 = vpop.f32.mrb[40].mxu0 }
 0x16b   : > { %v2169_v11 = vpop.f32.mrb[41].mxu1  ;;  %3432 = vst [vmem:[%s4859_s28 + $0x98] sm:$0xff] %v3304_v8  ;;  %v2713_v13 = vadd.f32 %v2712_v10, %v2167_v9  ;;  %v2714_v14 = vpop.f32.mrb[41].mxu0  ;;  %v4380_v8 = vld [vmem:[%s4667_s8 + $0x508] ss:$16 sps:$4 sm:$0xff]  }
 0x16c   : > { %v2170_v15 = vpop.f32.mrb[42].mxu1  ;;  %v2715_v19 = vpop.f32.mrb[42].mxu0  ;;  %v4381_v9 = vld [vmem:[%s4667_s8 + $0x524] ss:$16 sps:$4 sm:$0xff]  }
 0x16d   : > { %v2172_v20 = vpop.f32.mrb[43].mxu1  ;;  %v3170_v22 = vmul.f32 %v4844_v17, %v2713_v13  ;;  %v2716_v23 = vadd.f32 %v2715_v19, %v2170_v15  ;;  %v2717_v24 = vpop.f32.mrb[43].mxu0 }
 0x16f   : > { %2382 = vmatmul.mubr.bf16.gmra.mrb[148].mxu1 %v4361_v12  ;;  %v3305_v26 = vadd.f32 %v4852_v25, %v3170_v22  ;;  %v3171_v27 = vmul.f32 %v4844_v17, %v2716_v23  ;;  %2927 = vmatmul.mubr.bf16.gmra.mrb[148].mxu0 %v4362_v16  ;;  %v4383_v12 = vld [vmem:[%s4667_s8 + $0x52c] ss:$16 sps:$4 sm:$0xff]   ;;  %v4385_v23 = vld [vmem:[%s4667_s8 + $0x520] ss:$16 sps:$4 sm:$0xff]  }
 0x170   : > { %2389 = vmatprep.mubr.bf16.mxu1 %v4363_v18  ;;  %2934 = vmatprep.mubr.bf16.mxu0 %v4365_v21 }
 0x171   : > { %3433 = vst [vmem:[%s4859_s28 + $0xa0] sm:$0xff] %v3305_v26  ;;  %v3306_v28 = vadd.f32 %v4852_v25, %v3171_v27 }
 0x172   : > { %v2175_v29 = vpop.f32.mrb[44].mxu1  ;;  %v2720_v30 = vpop.f32.mrb[44].mxu0 }
 0x173   : > { %v2177_v31 = vpop.f32.mrb[45].mxu1  ;;  %3434 = vst [vmem:[%s4859_s28 + $0xa8] sm:$0xff] %v3306_v28  ;;  %v2721_v33 = vadd.f32 %v2720_v30, %v2175_v29  ;;  %v2722_v34 = vpop.f32.mrb[45].mxu0  ;;  %v4386_v28 = vld [vmem:[%s4667_s8 + $0x528] ss:$16 sps:$4 sm:$0xff]  }
 0x174   : > { %v2178_v35 = vpop.f32.mrb[46].mxu1  ;;  %v2723_v38 = vpop.f32.mrb[46].mxu0  ;;  %v4387_v29 = vld [vmem:[%s4667_s8 + $0x544] ss:$16 sps:$4 sm:$0xff]  }
 0x175   : > { %v2180_v39 = vpop.f32.mrb[47].mxu1  ;;  %v3172_v41 = vmul.f32 %v4844_v17, %v2721_v33  ;;  %v2724_v42 = vadd.f32 %v2723_v38, %v2178_v35  ;;  %v2725_v43 = vpop.f32.mrb[47].mxu0 }
 0x177   : > { %2390 = vmatmul.mubr.bf16.gmra.mrb[152].mxu1 %v4367_v32  ;;  %v3307_v44 = vadd.f32 %v4852_v25, %v3172_v41  ;;  %v3173_v45 = vmul.f32 %v4844_v17, %v2724_v42  ;;  %2935 = vmatmul.mubr.bf16.gmra.mrb[152].mxu0 %v4368_v36  ;;  %v4389_v32 = vld [vmem:[%s4667_s8 + $0x54c] ss:$16 sps:$4 sm:$0xff]   ;;  %v4391_v42 = vld [vmem:[%s4667_s8 + $0x540] ss:$16 sps:$4 sm:$0xff]  }
 0x178   : > { %2397 = vmatprep.mubr.bf16.mxu1 %v4369_v37  ;;  %2942 = vmatprep.mubr.bf16.mxu0 %v4371_v40 }
 0x179   : > { %3435 = vst [vmem:[%s4859_s28 + $0xb0] sm:$0xff] %v3307_v44  ;;  %v3308_v46 = vadd.f32 %v4852_v25, %v3173_v45 }
 0x17a   : > { %v2183_v47 = vpop.f32.mrb[48].mxu1  ;;  %v2728_v48 = vpop.f32.mrb[48].mxu0 }
 0x17b   : > { %v2185_v49 = vpop.f32.mrb[49].mxu1  ;;  %3436 = vst [vmem:[%s4859_s28 + $0xb8] sm:$0xff] %v3308_v46  ;;  %v2729_v51 = vadd.f32 %v2728_v48, %v2183_v47  ;;  %v2730_v52 = vpop.f32.mrb[49].mxu0  ;;  %v4392_v46 = vld [vmem:[%s4667_s8 + $0x548] ss:$16 sps:$4 sm:$0xff]  }
 0x17c   : > { %v2186_v53 = vpop.f32.mrb[50].mxu1  ;;  %v2731_v56 = vpop.f32.mrb[50].mxu0  ;;  %v4393_v47 = vld [vmem:[%s4667_s8 + $0x564] ss:$16 sps:$4 sm:$0xff]  }
 0x17d   : > { %v2188_v57 = vpop.f32.mrb[51].mxu1  ;;  %v3174_v59 = vmul.f32 %v4844_v17, %v2729_v51  ;;  %v2732_v60 = vadd.f32 %v2731_v56, %v2186_v53  ;;  %v2733_v61 = vpop.f32.mrb[51].mxu0 }
 0x17f   : > { %2398 = vmatmul.mubr.bf16.gmra.mrb[156].mxu1 %v4373_v50  ;;  %v3309_v62 = vadd.f32 %v4852_v25, %v3174_v59  ;;  %v3175_v63 = vmul.f32 %v4844_v17, %v2732_v60  ;;  %2943 = vmatmul.mubr.bf16.gmra.mrb[156].mxu0 %v4374_v54  ;;  %v4395_v50 = vld [vmem:[%s4667_s8 + $0x56c] ss:$16 sps:$4 sm:$0xff]   ;;  %v4397_v60 = vld [vmem:[%s4667_s8 + $0x560] ss:$16 sps:$4 sm:$0xff]  }
 0x180   : > { %2405 = vmatprep.mubr.bf16.mxu1 %v4375_v55  ;;  %2950 = vmatprep.mubr.bf16.mxu0 %v4377_v58 }
 0x181   : > { %3437 = vst [vmem:[%s4859_s28 + $0xc0] sm:$0xff] %v3309_v62  ;;  %v3310_v0 = vadd.f32 %v4852_v25, %v3175_v63 }
 0x182   : > { %v2191_v1 = vpop.f32.mrb[52].mxu1  ;;  %v2736_v2 = vpop.f32.mrb[52].mxu0 }
 0x183   : > { %v2193_v3 = vpop.f32.mrb[53].mxu1  ;;  %3438 = vst [vmem:[%s4859_s28 + $0xc8] sm:$0xff] %v3310_v0  ;;  %v2737_v5 = vadd.f32 %v2736_v2, %v2191_v1  ;;  %v2738_v6 = vpop.f32.mrb[53].mxu0  ;;  %v4398_v0 = vld [vmem:[%s4667_s8 + $0x568] ss:$16 sps:$4 sm:$0xff]  }
 0x184   : > { %v2194_v7 = vpop.f32.mrb[54].mxu1  ;;  %v2739_v10 = vpop.f32.mrb[54].mxu0  ;;  %v4399_v1 = vld [vmem:[%s4667_s8 + $0x584] ss:$16 sps:$4 sm:$0xff]  }
 0x185   : > { %v2196_v11 = vpop.f32.mrb[55].mxu1  ;;  %v3176_v13 = vmul.f32 %v4844_v17, %v2737_v5  ;;  %v2740_v14 = vadd.f32 %v2739_v10, %v2194_v7  ;;  %v2741_v15 = vpop.f32.mrb[55].mxu0 }
 0x187   : > { %2406 = vmatmul.mubr.bf16.gmra.mrb[160].mxu1 %v4379_v4  ;;  %v3311_v16 = vadd.f32 %v4852_v25, %v3176_v13  ;;  %v3177_v18 = vmul.f32 %v4844_v17, %v2740_v14  ;;  %2951 = vmatmul.mubr.bf16.gmra.mrb[160].mxu0 %v4380_v8  ;;  %v4401_v4 = vld [vmem:[%s4667_s8 + $0x58c] ss:$16 sps:$4 sm:$0xff]   ;;  %v4403_v14 = vld [vmem:[%s4667_s8 + $0x580] ss:$16 sps:$4 sm:$0xff]  }
 0x188   : > { %2413 = vmatprep.mubr.bf16.mxu1 %v4381_v9  ;;  %2958 = vmatprep.mubr.bf16.mxu0 %v4383_v12 }
 0x189   : > { %3439 = vst [vmem:[%s4859_s28 + $0xd0] sm:$0xff] %v3311_v16  ;;  %v3312_v19 = vadd.f32 %v4852_v25, %v3177_v18 }
 0x18a   : > { %v2199_v20 = vpop.f32.mrb[56].mxu1  ;;  %v2744_v21 = vpop.f32.mrb[56].mxu0 }
 0x18b   : > { %v2201_v22 = vpop.f32.mrb[57].mxu1  ;;  %3440 = vst [vmem:[%s4859_s28 + $0xd8] sm:$0xff] %v3312_v19  ;;  %v2745_v24 = vadd.f32 %v2744_v21, %v2199_v20  ;;  %v2746_v26 = vpop.f32.mrb[57].mxu0  ;;  %v4404_v19 = vld [vmem:[%s4667_s8 + $0x588] ss:$16 sps:$4 sm:$0xff]  }
 0x18c   : > { %v2202_v27 = vpop.f32.mrb[58].mxu1  ;;  %v2747_v30 = vpop.f32.mrb[58].mxu0  ;;  %v4405_v20 = vld [vmem:[%s4667_s8 + $0x5a4] ss:$16 sps:$4 sm:$0xff]  }
 0x18d   : > { %v2204_v31 = vpop.f32.mrb[59].mxu1  ;;  %v3178_v33 = vmul.f32 %v4844_v17, %v2745_v24  ;;  %v2748_v34 = vadd.f32 %v2747_v30, %v2202_v27  ;;  %v2749_v35 = vpop.f32.mrb[59].mxu0 }
 0x18f   : > { %2414 = vmatmul.mubr.bf16.gmra.mrb[164].mxu1 %v4385_v23  ;;  %v3313_v36 = vadd.f32 %v4852_v25, %v3178_v33  ;;  %v3179_v37 = vmul.f32 %v4844_v17, %v2748_v34  ;;  %2959 = vmatmul.mubr.bf16.gmra.mrb[164].mxu0 %v4386_v28  ;;  %v4407_v23 = vld [vmem:[%s4667_s8 + $0x5ac] ss:$16 sps:$4 sm:$0xff]   ;;  %v4409_v34 = vld [vmem:[%s4667_s8 + $0x5a0] ss:$16 sps:$4 sm:$0xff]  }
 0x190   : > { %2421 = vmatprep.mubr.bf16.mxu1 %v4387_v29  ;;  %2966 = vmatprep.mubr.bf16.mxu0 %v4389_v32 }
 0x191   : > { %3441 = vst [vmem:[%s4859_s28 + $0xe0] sm:$0xff] %v3313_v36  ;;  %v3314_v38 = vadd.f32 %v4852_v25, %v3179_v37 }
 0x192   : > { %v2207_v39 = vpop.f32.mrb[60].mxu1  ;;  %v2752_v40 = vpop.f32.mrb[60].mxu0 }
 0x193   : > { %v2209_v41 = vpop.f32.mrb[61].mxu1  ;;  %3442 = vst [vmem:[%s4859_s28 + $0xe8] sm:$0xff] %v3314_v38  ;;  %v2753_v43 = vadd.f32 %v2752_v40, %v2207_v39  ;;  %v2754_v44 = vpop.f32.mrb[61].mxu0  ;;  %v4410_v38 = vld [vmem:[%s4667_s8 + $0x5a8] ss:$16 sps:$4 sm:$0xff]  }
 0x194   : > { %v2210_v45 = vpop.f32.mrb[62].mxu1  ;;  %v2755_v48 = vpop.f32.mrb[62].mxu0  ;;  %v4411_v39 = vld [vmem:[%s4667_s8 + $0x5c4] ss:$16 sps:$4 sm:$0xff]  }
 0x195   : > { %v2212_v49 = vpop.f32.mrb[63].mxu1  ;;  %v3180_v51 = vmul.f32 %v4844_v17, %v2753_v43  ;;  %v2756_v52 = vadd.f32 %v2755_v48, %v2210_v45  ;;  %v2757_v53 = vpop.f32.mrb[63].mxu0 }
 0x197   : > { %2422 = vmatmul.mubr.bf16.gmra.mrb[168].mxu1 %v4391_v42  ;;  %v3315_v54 = vadd.f32 %v4852_v25, %v3180_v51  ;;  %v3181_v55 = vmul.f32 %v4844_v17, %v2756_v52  ;;  %2967 = vmatmul.mubr.bf16.gmra.mrb[168].mxu0 %v4392_v46  ;;  %v4413_v42 = vld [vmem:[%s4667_s8 + $0x5cc] ss:$16 sps:$4 sm:$0xff]   ;;  %v4415_v52 = vld [vmem:[%s4667_s8 + $0x5c0] ss:$16 sps:$4 sm:$0xff]  }
 0x198   : > { %2429 = vmatprep.mubr.bf16.mxu1 %v4393_v47  ;;  %2974 = vmatprep.mubr.bf16.mxu0 %v4395_v50 }
 0x199   : > { %3443 = vst [vmem:[%s4859_s28 + $0xf0] sm:$0xff] %v3315_v54  ;;  %v3316_v56 = vadd.f32 %v4852_v25, %v3181_v55 }
 0x19a   : > { %v2215_v57 = vpop.f32.mrb[64].mxu1  ;;  %v2760_v58 = vpop.f32.mrb[64].mxu0 }
 0x19b   : > { %v2217_v59 = vpop.f32.mrb[65].mxu1  ;;  %3444 = vst [vmem:[%s4859_s28 + $0xf8] sm:$0xff] %v3316_v56  ;;  %v2761_v61 = vadd.f32 %v2760_v58, %v2215_v57  ;;  %v2762_v62 = vpop.f32.mrb[65].mxu0  ;;  %v4416_v56 = vld [vmem:[%s4667_s8 + $0x5c8] ss:$16 sps:$4 sm:$0xff]  }
 0x19c   : > { %v2218_v63 = vpop.f32.mrb[66].mxu1  ;;  %v2763_v2 = vpop.f32.mrb[66].mxu0  ;;  %v4417_v57 = vld [vmem:[%s4667_s8 + $0x5e4] ss:$16 sps:$4 sm:$0xff]  }
 0x19d   : > { %v2220_v3 = vpop.f32.mrb[67].mxu1  ;;  %v3182_v5 = vmul.f32 %v4844_v17, %v2761_v61  ;;  %v2764_v6 = vadd.f32 %v2763_v2, %v2218_v63  ;;  %v2765_v7 = vpop.f32.mrb[67].mxu0 }
 0x19f   : > { %2430 = vmatmul.mubr.bf16.gmra.mrb[172].mxu1 %v4397_v60  ;;  %v3317_v8 = vadd.f32 %v4852_v25, %v3182_v5  ;;  %v3183_v9 = vmul.f32 %v4844_v17, %v2764_v6  ;;  %2975 = vmatmul.mubr.bf16.gmra.mrb[172].mxu0 %v4398_v0  ;;  %v4419_v60 = vld [vmem:[%s4667_s8 + $0x5ec] ss:$16 sps:$4 sm:$0xff]   ;;  %v4421_v6 = vld [vmem:[%s4667_s8 + $0x5e0] ss:$16 sps:$4 sm:$0xff]  }
 0x1a0   : > { %2437 = vmatprep.mubr.bf16.mxu1 %v4399_v1  ;;  %2982 = vmatprep.mubr.bf16.mxu0 %v4401_v4 }
 0x1a1   : > { %3445 = vst [vmem:[%s4859_s28 + $0x100] sm:$0xff] %v3317_v8  ;;  %v3318_v10 = vadd.f32 %v4852_v25, %v3183_v9 }
 0x1a2   : > { %v2223_v11 = vpop.f32.mrb[68].mxu1  ;;  %v2768_v12 = vpop.f32.mrb[68].mxu0 }
 0x1a3   : > { %v2225_v13 = vpop.f32.mrb[69].mxu1  ;;  %3446 = vst [vmem:[%s4859_s28 + $0x108] sm:$0xff] %v3318_v10  ;;  %v2769_v15 = vadd.f32 %v2768_v12, %v2223_v11  ;;  %v2770_v16 = vpop.f32.mrb[69].mxu0  ;;  %v4422_v10 = vld [vmem:[%s4667_s8 + $0x5e8] ss:$16 sps:$4 sm:$0xff]  }
 0x1a4   : > { %v2226_v18 = vpop.f32.mrb[70].mxu1  ;;  %v2771_v21 = vpop.f32.mrb[70].mxu0  ;;  %v4423_v11 = vld [vmem:[%s4667_s8 + $0x604] ss:$16 sps:$4 sm:$0xff]  }
 0x1a5   : > { %v2228_v22 = vpop.f32.mrb[71].mxu1  ;;  %v3184_v24 = vmul.f32 %v4844_v17, %v2769_v15  ;;  %v2772_v26 = vadd.f32 %v2771_v21, %v2226_v18  ;;  %v2773_v27 = vpop.f32.mrb[71].mxu0 }
 0x1a7   : > { %2438 = vmatmul.mubr.bf16.gmra.mrb[176].mxu1 %v4403_v14  ;;  %v3319_v28 = vadd.f32 %v4852_v25, %v3184_v24  ;;  %v3185_v29 = vmul.f32 %v4844_v17, %v2772_v26  ;;  %2983 = vmatmul.mubr.bf16.gmra.mrb[176].mxu0 %v4404_v19  ;;  %v4425_v14 = vld [vmem:[%s4667_s8 + $0x60c] ss:$16 sps:$4 sm:$0xff]   ;;  %v4427_v26 = vld [vmem:[%s4667_s8 + $0x600] ss:$16 sps:$4 sm:$0xff]  }
 0x1a8   : > { %2445 = vmatprep.mubr.bf16.mxu1 %v4405_v20  ;;  %2990 = vmatprep.mubr.bf16.mxu0 %v4407_v23 }
 0x1a9   : > { %3447 = vst [vmem:[%s4859_s28 + $0x110] sm:$0xff] %v3319_v28  ;;  %v3320_v30 = vadd.f32 %v4852_v25, %v3185_v29 }
 0x1aa   : > { %v2231_v31 = vpop.f32.mrb[72].mxu1  ;;  %v2776_v32 = vpop.f32.mrb[72].mxu0 }
 0x1ab   : > { %v2233_v33 = vpop.f32.mrb[73].mxu1  ;;  %3448 = vst [vmem:[%s4859_s28 + $0x118] sm:$0xff] %v3320_v30  ;;  %v2777_v35 = vadd.f32 %v2776_v32, %v2231_v31  ;;  %v2778_v36 = vpop.f32.mrb[73].mxu0  ;;  %v4428_v30 = vld [vmem:[%s4667_s8 + $0x608] ss:$16 sps:$4 sm:$0xff]  }
 0x1ac   : > { %v2234_v37 = vpop.f32.mrb[74].mxu1  ;;  %v2779_v40 = vpop.f32.mrb[74].mxu0  ;;  %v4429_v31 = vld [vmem:[%s4667_s8 + $0x624] ss:$16 sps:$4 sm:$0xff]   ;;  %v4431_v33 = vld [vmem:[%s4667_s8 + $0x62c] ss:$16 sps:$4 sm:$0xff]  }
 0x1ad   : > { %v2236_v41 = vpop.f32.mrb[75].mxu1  ;;  %v3186_v43 = vmul.f32 %v4844_v17, %v2777_v35  ;;  %v2780_v44 = vadd.f32 %v2779_v40, %v2234_v37  ;;  %v2781_v45 = vpop.f32.mrb[75].mxu0  ;;  %v5079_v37 = vld [vmem:[%s5418_s3] ss:$0 sm:$0xff] }
 0x1af   : > { %2446 = vmatmul.mubr.bf16.gmra.mrb[180].mxu1 %v4409_v34  ;;  %v3321_v46 = vadd.f32 %v4852_v25, %v3186_v43  ;;  %v3187_v47 = vmul.f32 %v4844_v17, %v2780_v44  ;;  %2991 = vmatmul.mubr.bf16.gmra.mrb[180].mxu0 %v4410_v38  ;;  %v5073_v34 = vld [vmem:[%s5417_s2] ss:$0 sm:$0xff] }
 0x1b0   : > { %2453 = vmatprep.mubr.bf16.mxu1 %v4411_v39  ;;  %2998 = vmatprep.mubr.bf16.mxu0 %v4413_v42  ;;  %v4433_v44 = vld [vmem:[%s4667_s8 + $0x620] ss:$16 sps:$4 sm:$0xff]  }
 0x1b1   : > { %3449 = vst [vmem:[%s4859_s28 + $0x120] sm:$0xff] %v3321_v46  ;;  %v3322_v48 = vadd.f32 %v4852_v25, %v3187_v47 }
 0x1b2   : > { %v2239_v49 = vpop.f32.mrb[76].mxu1  ;;  %v2784_v50 = vpop.f32.mrb[76].mxu0 }
 0x1b3   : > { %v2241_v51 = vpop.f32.mrb[77].mxu1  ;;  %3450 = vst [vmem:[%s4859_s28 + $0x128] sm:$0xff] %v3322_v48  ;;  %v2785_v53 = vadd.f32 %v2784_v50, %v2239_v49  ;;  %v2786_v54 = vpop.f32.mrb[77].mxu0  ;;  %v4434_v48 = vld [vmem:[%s4667_s8 + $0x628] ss:$16 sps:$4 sm:$0xff]  }
 0x1b4   : > { %v2242_v55 = vpop.f32.mrb[78].mxu1  ;;  %v2787_v58 = vpop.f32.mrb[78].mxu0  ;;  %v4435_v49 = vld [vmem:[%s4667_s8 + $0x644] ss:$16 sps:$4 sm:$0xff]  }
 0x1b5   : > { %v2244_v59 = vpop.f32.mrb[79].mxu1  ;;  %v3188_v61 = vmul.f32 %v4844_v17, %v2785_v53  ;;  %v2788_v62 = vadd.f32 %v2787_v58, %v2242_v55  ;;  %v2789_v63 = vpop.f32.mrb[79].mxu0 }
 0x1b7   : > { %2454 = vmatmul.mubr.bf16.gmra.mrb[184].mxu1 %v4415_v52  ;;  %v3323_v0 = vadd.f32 %v4852_v25, %v3188_v61  ;;  %v3189_v1 = vmul.f32 %v4844_v17, %v2788_v62  ;;  %2999 = vmatmul.mubr.bf16.gmra.mrb[184].mxu0 %v4416_v56  ;;  %v4437_v52 = vld [vmem:[%s4667_s8 + $0x64c] ss:$16 sps:$4 sm:$0xff]   ;;  %v4439_v62 = vld [vmem:[%s4667_s8 + $0x640] ss:$16 sps:$4 sm:$0xff]  }
 0x1b8   : > { %2461 = vmatprep.mubr.bf16.mxu1 %v4417_v57  ;;  %3006 = vmatprep.mubr.bf16.mxu0 %v4419_v60 }
 0x1b9   : > { %3451 = vst [vmem:[%s4859_s28 + $0x130] sm:$0xff] %v3323_v0  ;;  %v3324_v2 = vadd.f32 %v4852_v25, %v3189_v1 }
 0x1ba   : > { %v2247_v3 = vpop.f32.mrb[80].mxu1  ;;  %v2792_v4 = vpop.f32.mrb[80].mxu0 }
 0x1bb   : > { %v2249_v5 = vpop.f32.mrb[81].mxu1  ;;  %3452 = vst [vmem:[%s4859_s28 + $0x138] sm:$0xff] %v3324_v2  ;;  %v2793_v7 = vadd.f32 %v2792_v4, %v2247_v3  ;;  %v2794_v8 = vpop.f32.mrb[81].mxu0  ;;  %v4440_v2 = vld [vmem:[%s4667_s8 + $0x648] ss:$16 sps:$4 sm:$0xff]  }
 0x1bc   : > { %v2250_v9 = vpop.f32.mrb[82].mxu1  ;;  %v2795_v12 = vpop.f32.mrb[82].mxu0  ;;  %v4441_v3 = vld [vmem:[%s4667_s8 + $0x664] ss:$16 sps:$4 sm:$0xff]  }
 0x1bd   : > { %v2252_v13 = vpop.f32.mrb[83].mxu1  ;;  %v3190_v15 = vmul.f32 %v4844_v17, %v2793_v7  ;;  %v2796_v16 = vadd.f32 %v2795_v12, %v2250_v9  ;;  %v2797_v18 = vpop.f32.mrb[83].mxu0 }
 0x1bf   : > { %2462 = vmatmul.mubr.bf16.gmra.mrb[188].mxu1 %v4421_v6  ;;  %v3325_v19 = vadd.f32 %v4852_v25, %v3190_v15  ;;  %v3191_v20 = vmul.f32 %v4844_v17, %v2796_v16  ;;  %3007 = vmatmul.mubr.bf16.gmra.mrb[188].mxu0 %v4422_v10  ;;  %v4443_v6 = vld [vmem:[%s4667_s8 + $0x66c] ss:$16 sps:$4 sm:$0xff]   ;;  %v4445_v16 = vld [vmem:[%s4667_s8 + $0x660] ss:$16 sps:$4 sm:$0xff]  }
 0x1c0   : > { %2469 = vmatprep.mubr.bf16.mxu1 %v4423_v11  ;;  %3014 = vmatprep.mubr.bf16.mxu0 %v4425_v14 }
 0x1c1   : > { %3453 = vst [vmem:[%s4859_s28 + $0x140] sm:$0xff] %v3325_v19  ;;  %v3326_v21 = vadd.f32 %v4852_v25, %v3191_v20 }
 0x1c2   : > { %v2255_v22 = vpop.f32.mrb[84].mxu1  ;;  %v2800_v23 = vpop.f32.mrb[84].mxu0 }
 0x1c3   : > { %v2257_v24 = vpop.f32.mrb[85].mxu1  ;;  %3454 = vst [vmem:[%s4859_s28 + $0x148] sm:$0xff] %v3326_v21  ;;  %v2801_v27 = vadd.f32 %v2800_v23, %v2255_v22  ;;  %v2802_v28 = vpop.f32.mrb[85].mxu0  ;;  %v4446_v21 = vld [vmem:[%s4667_s8 + $0x668] ss:$16 sps:$4 sm:$0xff]  }
 0x1c4   : > { %v2258_v29 = vpop.f32.mrb[86].mxu1  ;;  %v2803_v32 = vpop.f32.mrb[86].mxu0  ;;  %v4447_v22 = vld [vmem:[%s4667_s8 + $0x684] ss:$16 sps:$4 sm:$0xff]  }
 0x1c5   : > { %v2260_v17 = vpop.f32.mrb[87].mxu1  ;;  %v3192_v25 = vmul.f32 %v5073_v34, %v2801_v27  ;;  %v2804_v35 = vadd.f32 %v2803_v32, %v2258_v29  ;;  %v2805_v36 = vpop.f32.mrb[87].mxu0 }
 0x1c7   : > { %2470 = vmatmul.mubr.bf16.gmra.mrb[192].mxu1 %v4427_v26  ;;  %v3327_v38 = vadd.f32 %v5079_v37, %v3192_v25  ;;  %v3193_v39 = vmul.f32 %v5073_v34, %v2804_v35  ;;  %3015 = vmatmul.mubr.bf16.gmra.mrb[192].mxu0 %v4428_v30  ;;  %v4449_v26 = vld [vmem:[%s4667_s8 + $0x68c] ss:$16 sps:$4 sm:$0xff]   ;;  %v4451_v35 = vld [vmem:[%s4667_s8 + $0x680] ss:$16 sps:$4 sm:$0xff]  }
 0x1c8   : > { %2477 = vmatprep.mubr.bf16.mxu1 %v4429_v31  ;;  %3022 = vmatprep.mubr.bf16.mxu0 %v4431_v33 }
 0x1c9   : > { %3455 = vst [vmem:[%s4859_s28 + $0x150] sm:$0xff] %v3327_v38  ;;  %v3328_v40 = vadd.f32 %v5079_v37, %v3193_v39 }
 0x1ca   : > { %v2263_v41 = vpop.f32.mrb[88].mxu1  ;;  %v2808_v42 = vpop.f32.mrb[88].mxu0 }
 0x1cb   : > { %v2265_v43 = vpop.f32.mrb[89].mxu1  ;;  %3456 = vst [vmem:[%s4859_s28 + $0x158] sm:$0xff] %v3328_v40  ;;  %v2809_v45 = vadd.f32 %v2808_v42, %v2263_v41  ;;  %v2810_v46 = vpop.f32.mrb[89].mxu0  ;;  %v4452_v40 = vld [vmem:[%s4667_s8 + $0x688] ss:$16 sps:$4 sm:$0xff]  }
 0x1cc   : > { %v2266_v47 = vpop.f32.mrb[90].mxu1  ;;  %v2811_v50 = vpop.f32.mrb[90].mxu0  ;;  %v4453_v41 = vld [vmem:[%s4667_s8 + $0x6a4] ss:$16 sps:$4 sm:$0xff]  }
 0x1cd   : > { %v2268_v51 = vpop.f32.mrb[91].mxu1  ;;  %v3194_v53 = vmul.f32 %v5073_v34, %v2809_v45  ;;  %v2812_v54 = vadd.f32 %v2811_v50, %v2266_v47  ;;  %v2813_v55 = vpop.f32.mrb[91].mxu0 }
 0x1cf   : > { %2478 = vmatmul.mubr.bf16.gmra.mrb[196].mxu1 %v4433_v44  ;;  %v3329_v56 = vadd.f32 %v5079_v37, %v3194_v53  ;;  %v3195_v57 = vmul.f32 %v5073_v34, %v2812_v54  ;;  %3023 = vmatmul.mubr.bf16.gmra.mrb[196].mxu0 %v4434_v48  ;;  %v4455_v44 = vld [vmem:[%s4667_s8 + $0x6ac] ss:$16 sps:$4 sm:$0xff]   ;;  %v4457_v54 = vld [vmem:[%s4667_s8 + $0x6a0] ss:$16 sps:$4 sm:$0xff]  }
 0x1d0   : > { %2485 = vmatprep.mubr.bf16.mxu1 %v4435_v49  ;;  %3030 = vmatprep.mubr.bf16.mxu0 %v4437_v52 }
 0x1d1   : > { %3457 = vst [vmem:[%s4859_s28 + $0x160] sm:$0xff] %v3329_v56  ;;  %v3330_v58 = vadd.f32 %v5079_v37, %v3195_v57 }
 0x1d2   : > { %v2271_v59 = vpop.f32.mrb[92].mxu1  ;;  %v2816_v60 = vpop.f32.mrb[92].mxu0 }
 0x1d3   : > { %v2273_v61 = vpop.f32.mrb[93].mxu1  ;;  %3458 = vst [vmem:[%s4859_s28 + $0x168] sm:$0xff] %v3330_v58  ;;  %v2817_v63 = vadd.f32 %v2816_v60, %v2271_v59  ;;  %v2818_v0 = vpop.f32.mrb[93].mxu0  ;;  %v4458_v58 = vld [vmem:[%s4667_s8 + $0x6a8] ss:$16 sps:$4 sm:$0xff]  }
 0x1d4   : > { %v2274_v1 = vpop.f32.mrb[94].mxu1  ;;  %v2819_v4 = vpop.f32.mrb[94].mxu0  ;;  %v4459_v59 = vld [vmem:[%s4667_s8 + $0x6c4] ss:$16 sps:$4 sm:$0xff]  }
 0x1d5   : > { %v2276_v5 = vpop.f32.mrb[95].mxu1  ;;  %v3196_v7 = vmul.f32 %v5073_v34, %v2817_v63  ;;  %v2820_v8 = vadd.f32 %v2819_v4, %v2274_v1  ;;  %v2821_v9 = vpop.f32.mrb[95].mxu0 }
 0x1d7   : > { %2486 = vmatmul.mubr.bf16.gmra.mrb[200].mxu1 %v4439_v62  ;;  %v3331_v10 = vadd.f32 %v5079_v37, %v3196_v7  ;;  %v3197_v11 = vmul.f32 %v5073_v34, %v2820_v8  ;;  %3031 = vmatmul.mubr.bf16.gmra.mrb[200].mxu0 %v4440_v2  ;;  %v4461_v62 = vld [vmem:[%s4667_s8 + $0x6cc] ss:$16 sps:$4 sm:$0xff]   ;;  %v4463_v8 = vld [vmem:[%s4667_s8 + $0x6c0] ss:$16 sps:$4 sm:$0xff]  }
 0x1d8   : > { %2493 = vmatprep.mubr.bf16.mxu1 %v4441_v3  ;;  %3038 = vmatprep.mubr.bf16.mxu0 %v4443_v6 }
 0x1d9   : > { %3459 = vst [vmem:[%s4859_s28 + $0x170] sm:$0xff] %v3331_v10  ;;  %v3332_v12 = vadd.f32 %v5079_v37, %v3197_v11 }
 0x1da   : > { %v2279_v13 = vpop.f32.mrb[96].mxu1  ;;  %v2824_v14 = vpop.f32.mrb[96].mxu0 }
 0x1db   : > { %v2281_v15 = vpop.f32.mrb[97].mxu1  ;;  %3460 = vst [vmem:[%s4859_s28 + $0x178] sm:$0xff] %v3332_v12  ;;  %v2825_v18 = vadd.f32 %v2824_v14, %v2279_v13  ;;  %v2826_v19 = vpop.f32.mrb[97].mxu0  ;;  %v4464_v12 = vld [vmem:[%s4667_s8 + $0x6c8] ss:$16 sps:$4 sm:$0xff]  }
 0x1dc   : > { %v2282_v20 = vpop.f32.mrb[98].mxu1  ;;  %v2827_v23 = vpop.f32.mrb[98].mxu0  ;;  %v4465_v13 = vld [vmem:[%s4667_s8 + $0x6e4] ss:$16 sps:$4 sm:$0xff]  }
 0x1dd   : > { %v2284_v24 = vpop.f32.mrb[99].mxu1  ;;  %v3198_v27 = vmul.f32 %v5073_v34, %v2825_v18  ;;  %v2828_v28 = vadd.f32 %v2827_v23, %v2282_v20  ;;  %v2829_v29 = vpop.f32.mrb[99].mxu0 }
 0x1df   : > { %2494 = vmatmul.mubr.bf16.gmra.mrb[204].mxu1 %v4445_v16  ;;  %v3333_v30 = vadd.f32 %v5079_v37, %v3198_v27  ;;  %v3199_v31 = vmul.f32 %v5073_v34, %v2828_v28  ;;  %3039 = vmatmul.mubr.bf16.gmra.mrb[204].mxu0 %v4446_v21  ;;  %v4467_v16 = vld [vmem:[%s4667_s8 + $0x6ec] ss:$16 sps:$4 sm:$0xff]   ;;  %v4469_v28 = vld [vmem:[%s4667_s8 + $0x6e0] ss:$16 sps:$4 sm:$0xff]  }
 0x1e0   : > { %2501 = vmatprep.mubr.bf16.mxu1 %v4447_v22  ;;  %3046 = vmatprep.mubr.bf16.mxu0 %v4449_v26 }
 0x1e1   : > { %3461 = vst [vmem:[%s4859_s28 + $0x180] sm:$0xff] %v3333_v30  ;;  %v3334_v32 = vadd.f32 %v5079_v37, %v3199_v31 }
 0x1e2   : > { %v2287_v17 = vpop.f32.mrb[100].mxu1  ;;  %v2832_v33 = vpop.f32.mrb[100].mxu0 }
 0x1e3   : > { %v2289_v25 = vpop.f32.mrb[101].mxu1  ;;  %3462 = vst [vmem:[%s4859_s28 + $0x188] sm:$0xff] %v3334_v32  ;;  %v2833_v36 = vadd.f32 %v2832_v33, %v2287_v17  ;;  %v2834_v38 = vpop.f32.mrb[101].mxu0  ;;  %v4470_v32 = vld [vmem:[%s4667_s8 + $0x6e8] ss:$16 sps:$4 sm:$0xff]  }
 0x1e4   : > { %v2290_v39 = vpop.f32.mrb[102].mxu1  ;;  %v2835_v42 = vpop.f32.mrb[102].mxu0  ;;  %v4471_v17 = vld [vmem:[%s4667_s8 + $0x704] ss:$16 sps:$4 sm:$0xff]  }
 0x1e5   : > { %v2292_v43 = vpop.f32.mrb[103].mxu1  ;;  %v3200_v45 = vmul.f32 %v5073_v34, %v2833_v36  ;;  %v2836_v46 = vadd.f32 %v2835_v42, %v2290_v39  ;;  %v2837_v47 = vpop.f32.mrb[103].mxu0 }
 0x1e7   : > { %2502 = vmatmul.mubr.bf16.gmra.mrb[208].mxu1 %v4451_v35  ;;  %v3335_v48 = vadd.f32 %v5079_v37, %v3200_v45  ;;  %v3201_v49 = vmul.f32 %v5073_v34, %v2836_v46  ;;  %3047 = vmatmul.mubr.bf16.gmra.mrb[208].mxu0 %v4452_v40  ;;  %v4473_v35 = vld [vmem:[%s4667_s8 + $0x70c] ss:$16 sps:$4 sm:$0xff]   ;;  %v4475_v46 = vld [vmem:[%s4667_s8 + $0x700] ss:$16 sps:$4 sm:$0xff]  }
 0x1e8   : > { %2509 = vmatprep.mubr.bf16.mxu1 %v4453_v41  ;;  %3054 = vmatprep.mubr.bf16.mxu0 %v4455_v44 }
 0x1e9   : > { %3463 = vst [vmem:[%s4859_s28 + $0x190] sm:$0xff] %v3335_v48  ;;  %v3336_v50 = vadd.f32 %v5079_v37, %v3201_v49 }
 0x1ea   : > { %v2295_v51 = vpop.f32.mrb[104].mxu1  ;;  %v2840_v52 = vpop.f32.mrb[104].mxu0 }
 0x1eb   : > { %v2297_v53 = vpop.f32.mrb[105].mxu1  ;;  %3464 = vst [vmem:[%s4859_s28 + $0x198] sm:$0xff] %v3336_v50  ;;  %v2841_v55 = vadd.f32 %v2840_v52, %v2295_v51  ;;  %v2842_v56 = vpop.f32.mrb[105].mxu0  ;;  %v4476_v50 = vld [vmem:[%s4667_s8 + $0x708] ss:$16 sps:$4 sm:$0xff]  }
 0x1ec   : > { %v2298_v57 = vpop.f32.mrb[106].mxu1  ;;  %v2843_v60 = vpop.f32.mrb[106].mxu0  ;;  %v4477_v51 = vld [vmem:[%s4667_s8 + $0x724] ss:$16 sps:$4 sm:$0xff]  }
 0x1ed   : > { %v2300_v61 = vpop.f32.mrb[107].mxu1  ;;  %v3202_v63 = vmul.f32 %v5073_v34, %v2841_v55  ;;  %v2844_v0 = vadd.f32 %v2843_v60, %v2298_v57  ;;  %v2845_v1 = vpop.f32.mrb[107].mxu0 }
 0x1ef   : > { %2510 = vmatmul.mubr.bf16.gmra.mrb[212].mxu1 %v4457_v54  ;;  %v3337_v2 = vadd.f32 %v5079_v37, %v3202_v63  ;;  %v3203_v3 = vmul.f32 %v5073_v34, %v2844_v0  ;;  %3055 = vmatmul.mubr.bf16.gmra.mrb[212].mxu0 %v4458_v58  ;;  %v4479_v54 = vld [vmem:[%s4667_s8 + $0x72c] ss:$16 sps:$4 sm:$0xff]   ;;  %v4481_v0 = vld [vmem:[%s4667_s8 + $0x720] ss:$16 sps:$4 sm:$0xff]  }
 0x1f0   : > { %2517 = vmatprep.mubr.bf16.mxu1 %v4459_v59  ;;  %3062 = vmatprep.mubr.bf16.mxu0 %v4461_v62 }
 0x1f1   : > { %3465 = vst [vmem:[%s4859_s28 + $0x1a0] sm:$0xff] %v3337_v2  ;;  %v3338_v4 = vadd.f32 %v5079_v37, %v3203_v3 }
 0x1f2   : > { %v2303_v5 = vpop.f32.mrb[108].mxu1  ;;  %v2848_v6 = vpop.f32.mrb[108].mxu0 }
 0x1f3   : > { %v2305_v7 = vpop.f32.mrb[109].mxu1  ;;  %3466 = vst [vmem:[%s4859_s28 + $0x1a8] sm:$0xff] %v3338_v4  ;;  %v2849_v9 = vadd.f32 %v2848_v6, %v2303_v5  ;;  %v2850_v10 = vpop.f32.mrb[109].mxu0  ;;  %v4482_v4 = vld [vmem:[%s4667_s8 + $0x728] ss:$16 sps:$4 sm:$0xff]  }
 0x1f4   : > { %v2306_v11 = vpop.f32.mrb[110].mxu1  ;;  %v2851_v14 = vpop.f32.mrb[110].mxu0  ;;  %v4483_v5 = vld [vmem:[%s4667_s8 + $0x744] ss:$16 sps:$4 sm:$0xff]  }
 0x1f5   : > { %v2308_v15 = vpop.f32.mrb[111].mxu1  ;;  %v3204_v18 = vmul.f32 %v5073_v34, %v2849_v9  ;;  %v2852_v19 = vadd.f32 %v2851_v14, %v2306_v11  ;;  %v2853_v20 = vpop.f32.mrb[111].mxu0 }
 0x1f7   : > { %2518 = vmatmul.mubr.bf16.gmra.mrb[216].mxu1 %v4463_v8  ;;  %v3339_v21 = vadd.f32 %v5079_v37, %v3204_v18  ;;  %v3205_v22 = vmul.f32 %v5073_v34, %v2852_v19  ;;  %3063 = vmatmul.mubr.bf16.gmra.mrb[216].mxu0 %v4464_v12  ;;  %v4485_v8 = vld [vmem:[%s4667_s8 + $0x74c] ss:$16 sps:$4 sm:$0xff]   ;;  %v4487_v19 = vld [vmem:[%s4667_s8 + $0x740] ss:$16 sps:$4 sm:$0xff]  }
 0x1f8   : > { %2525 = vmatprep.mubr.bf16.mxu1 %v4465_v13  ;;  %3070 = vmatprep.mubr.bf16.mxu0 %v4467_v16 }
 0x1f9   : > { %3467 = vst [vmem:[%s4859_s28 + $0x1b0] sm:$0xff] %v3339_v21  ;;  %v3340_v23 = vadd.f32 %v5079_v37, %v3205_v22 }
 0x1fa   : > { %v2311_v24 = vpop.f32.mrb[112].mxu1  ;;  %v2856_v26 = vpop.f32.mrb[112].mxu0 }
 0x1fb   : > { %v2313_v27 = vpop.f32.mrb[113].mxu1  ;;  %3468 = vst [vmem:[%s4859_s28 + $0x1b8] sm:$0xff] %v3340_v23  ;;  %v2857_v29 = vadd.f32 %v2856_v26, %v2311_v24  ;;  %v2858_v30 = vpop.f32.mrb[113].mxu0  ;;  %v4488_v23 = vld [vmem:[%s4667_s8 + $0x748] ss:$16 sps:$4 sm:$0xff]  }
 0x1fc   : > { %v2314_v31 = vpop.f32.mrb[114].mxu1  ;;  %v2859_v33 = vpop.f32.mrb[114].mxu0  ;;  %v4489_v24 = vld [vmem:[%s4667_s8 + $0x764] ss:$16 sps:$4 sm:$0xff]  }
 0x1fd   : > { %v2316_v25 = vpop.f32.mrb[115].mxu1  ;;  %v3206_v36 = vmul.f32 %v5073_v34, %v2857_v29  ;;  %v2860_v38 = vadd.f32 %v2859_v33, %v2314_v31  ;;  %v2861_v39 = vpop.f32.mrb[115].mxu0 }
 0x1ff   : > { %2526 = vmatmul.mubr.bf16.gmra.mrb[220].mxu1 %v4469_v28  ;;  %v3341_v40 = vadd.f32 %v5079_v37, %v3206_v36  ;;  %v3207_v41 = vmul.f32 %v5073_v34, %v2860_v38  ;;  %3071 = vmatmul.mubr.bf16.gmra.mrb[220].mxu0 %v4470_v32  ;;  %v4491_v28 = vld [vmem:[%s4667_s8 + $0x76c] ss:$16 sps:$4 sm:$0xff]   ;;  %v4493_v38 = vld [vmem:[%s4667_s8 + $0x760] ss:$16 sps:$4 sm:$0xff]  }
 0x200   : > { %2533 = vmatprep.mubr.bf16.mxu1 %v4471_v17  ;;  %3078 = vmatprep.mubr.bf16.mxu0 %v4473_v35 }
 0x201   : > { %3469 = vst [vmem:[%s4859_s28 + $0x1c0] sm:$0xff] %v3341_v40  ;;  %v3342_v42 = vadd.f32 %v5079_v37, %v3207_v41 }
 0x202   : > { %v2319_v43 = vpop.f32.mrb[116].mxu1  ;;  %v2864_v44 = vpop.f32.mrb[116].mxu0 }
 0x203   : > { %v2321_v45 = vpop.f32.mrb[117].mxu1  ;;  %3470 = vst [vmem:[%s4859_s28 + $0x1c8] sm:$0xff] %v3342_v42  ;;  %v2865_v47 = vadd.f32 %v2864_v44, %v2319_v43  ;;  %v2866_v48 = vpop.f32.mrb[117].mxu0  ;;  %v4494_v42 = vld [vmem:[%s4667_s8 + $0x768] ss:$16 sps:$4 sm:$0xff]  }
 0x204   : > { %v2322_v49 = vpop.f32.mrb[118].mxu1  ;;  %v2867_v52 = vpop.f32.mrb[118].mxu0  ;;  %v4495_v43 = vld [vmem:[%s4667_s8 + $0x784] ss:$16 sps:$4 sm:$0xff]  }
 0x205   : > { %v2324_v53 = vpop.f32.mrb[119].mxu1  ;;  %v3208_v55 = vmul.f32 %v5073_v34, %v2865_v47  ;;  %v2868_v56 = vadd.f32 %v2867_v52, %v2322_v49  ;;  %v2869_v57 = vpop.f32.mrb[119].mxu0 }
 0x207   : > { %2534 = vmatmul.mubr.bf16.gmra.mrb[224].mxu1 %v4475_v46  ;;  %v3343_v58 = vadd.f32 %v5079_v37, %v3208_v55  ;;  %v3209_v59 = vmul.f32 %v5073_v34, %v2868_v56  ;;  %3079 = vmatmul.mubr.bf16.gmra.mrb[224].mxu0 %v4476_v50  ;;  %v4497_v46 = vld [vmem:[%s4667_s8 + $0x78c] ss:$16 sps:$4 sm:$0xff]   ;;  %v4499_v56 = vld [vmem:[%s4667_s8 + $0x780] ss:$16 sps:$4 sm:$0xff]  }
 0x208   : > { %2541 = vmatprep.mubr.bf16.mxu1 %v4477_v51  ;;  %3086 = vmatprep.mubr.bf16.mxu0 %v4479_v54 }
 0x209   : > { %3471 = vst [vmem:[%s4859_s28 + $0x1d0] sm:$0xff] %v3343_v58  ;;  %v3344_v60 = vadd.f32 %v5079_v37, %v3209_v59 }
 0x20a   : > { %v2327_v61 = vpop.f32.mrb[120].mxu1  ;;  %v2872_v62 = vpop.f32.mrb[120].mxu0 }
 0x20b   : > { %v2329_v63 = vpop.f32.mrb[121].mxu1  ;;  %3472 = vst [vmem:[%s4859_s28 + $0x1d8] sm:$0xff] %v3344_v60  ;;  %v2873_v1 = vadd.f32 %v2872_v62, %v2327_v61  ;;  %v2874_v2 = vpop.f32.mrb[121].mxu0  ;;  %v4500_v60 = vld [vmem:[%s4667_s8 + $0x788] ss:$16 sps:$4 sm:$0xff]  }
 0x20c   : > { %v2330_v3 = vpop.f32.mrb[122].mxu1  ;;  %v2875_v6 = vpop.f32.mrb[122].mxu0  ;;  %v4501_v61 = vld [vmem:[%s4667_s8 + $0x7a4] ss:$16 sps:$4 sm:$0xff]  }
 0x20d   : > { %v2332_v7 = vpop.f32.mrb[123].mxu1  ;;  %v3210_v9 = vmul.f32 %v5073_v34, %v2873_v1  ;;  %v2876_v10 = vadd.f32 %v2875_v6, %v2330_v3  ;;  %v2877_v11 = vpop.f32.mrb[123].mxu0 }
 0x20f   : > { %2542 = vmatmul.mubr.bf16.gmra.mrb[228].mxu1 %v4481_v0  ;;  %v3345_v12 = vadd.f32 %v5079_v37, %v3210_v9  ;;  %v3211_v13 = vmul.f32 %v5073_v34, %v2876_v10  ;;  %3087 = vmatmul.mubr.bf16.gmra.mrb[228].mxu0 %v4482_v4  ;;  %v4503_v0 = vld [vmem:[%s4667_s8 + $0x7ac] ss:$16 sps:$4 sm:$0xff]   ;;  %v4505_v10 = vld [vmem:[%s4667_s8 + $0x7a0] ss:$16 sps:$4 sm:$0xff]  }
 0x210   : > { %2549 = vmatprep.mubr.bf16.mxu1 %v4483_v5  ;;  %3094 = vmatprep.mubr.bf16.mxu0 %v4485_v8 }
 0x211   : > { %3473 = vst [vmem:[%s4859_s28 + $0x1e0] sm:$0xff] %v3345_v12  ;;  %v3346_v14 = vadd.f32 %v5079_v37, %v3211_v13 }
 0x212   : > { %v2335_v15 = vpop.f32.mrb[124].mxu1  ;;  %v2880_v16 = vpop.f32.mrb[124].mxu0 }
 0x213   : > { %v2337_v18 = vpop.f32.mrb[125].mxu1  ;;  %3474 = vst [vmem:[%s4859_s28 + $0x1e8] sm:$0xff] %v3346_v14  ;;  %v2881_v20 = vadd.f32 %v2880_v16, %v2335_v15  ;;  %v2882_v21 = vpop.f32.mrb[125].mxu0  ;;  %v4506_v14 = vld [vmem:[%s4667_s8 + $0x7a8] ss:$16 sps:$4 sm:$0xff]  }
 0x214   : > { %v2338_v22 = vpop.f32.mrb[126].mxu1  ;;  %v2883_v26 = vpop.f32.mrb[126].mxu0  ;;  %v4507_v15 = vld [vmem:[%s4667_s8 + $0x7c4] ss:$16 sps:$4 sm:$0xff]  }
 0x215   : > { %v2340_v27 = vpop.f32.mrb[127].mxu1  ;;  %v3212_v29 = vmul.f32 %v5073_v34, %v2881_v20  ;;  %v2884_v30 = vadd.f32 %v2883_v26, %v2338_v22  ;;  %v2885_v31 = vpop.f32.mrb[127].mxu0 }
 0x217   : > { %2550 = vmatmul.mubr.bf16.gmra.mrb[232].mxu1 %v4487_v19  ;;  %v3347_v32 = vadd.f32 %v5079_v37, %v3212_v29  ;;  %v3213_v17 = vmul.f32 %v5073_v34, %v2884_v30  ;;  %3095 = vmatmul.mubr.bf16.gmra.mrb[232].mxu0 %v4488_v23  ;;  %v4509_v19 = vld [vmem:[%s4667_s8 + $0x7cc] ss:$16 sps:$4 sm:$0xff]   ;;  %v4511_v30 = vld [vmem:[%s4667_s8 + $0x7c0] ss:$16 sps:$4 sm:$0xff]  }
 0x218   : > { %2557 = vmatprep.mubr.bf16.mxu1 %v4489_v24  ;;  %3102 = vmatprep.mubr.bf16.mxu0 %v4491_v28 }
 0x219   : > { %3475 = vst [vmem:[%s4859_s28 + $0x1f0] sm:$0xff] %v3347_v32  ;;  %v3348_v33 = vadd.f32 %v5079_v37, %v3213_v17 }
 0x21a   : > { %v2343_v25 = vpop.f32.mrb[128].mxu1  ;;  %v2888_v35 = vpop.f32.mrb[128].mxu0 }
 0x21b   : > { %v2345_v36 = vpop.f32.mrb[129].mxu1  ;;  %3476 = vst [vmem:[%s4859_s28 + $0x1f8] sm:$0xff] %v3348_v33  ;;  %v2889_v39 = vadd.f32 %v2888_v35, %v2343_v25  ;;  %v2890_v40 = vpop.f32.mrb[129].mxu0  ;;  %v4512_v33 = vld [vmem:[%s4667_s8 + $0x7c8] ss:$16 sps:$4 sm:$0xff]  }
 0x21c   : > { %v2346_v41 = vpop.f32.mrb[130].mxu1  ;;  %v2891_v44 = vpop.f32.mrb[130].mxu0  ;;  %v4513_v25 = vld [vmem:[%s4667_s8 + $0x7e4] ss:$16 sps:$4 sm:$0xff]  }
 0x21d   : > { %v2348_v45 = vpop.f32.mrb[131].mxu1  ;;  %v3214_v47 = vmul.f32 %v5073_v34, %v2889_v39  ;;  %v2892_v48 = vadd.f32 %v2891_v44, %v2346_v41  ;;  %v2893_v49 = vpop.f32.mrb[131].mxu0 }
 0x21f   : > { %2558 = vmatmul.mubr.bf16.gmra.mrb[236].mxu1 %v4493_v38  ;;  %v3349_v50 = vadd.f32 %v5079_v37, %v3214_v47  ;;  %v3215_v51 = vmul.f32 %v5073_v34, %v2892_v48  ;;  %3103 = vmatmul.mubr.bf16.gmra.mrb[236].mxu0 %v4494_v42  ;;  %v4515_v38 = vld [vmem:[%s4667_s8 + $0x7ec] ss:$16 sps:$4 sm:$0xff]   ;;  %v4517_v48 = vld [vmem:[%s4667_s8 + $0x7e0] ss:$16 sps:$4 sm:$0xff]  }
 0x220   : > { %2565 = vmatprep.mubr.bf16.mxu1 %v4495_v43  ;;  %3110 = vmatprep.mubr.bf16.mxu0 %v4497_v46 }
 0x221   : > { %3477 = vst [vmem:[%s4859_s28 + $0x200] sm:$0xff] %v3349_v50  ;;  %v3350_v52 = vadd.f32 %v5079_v37, %v3215_v51 }
 0x222   : > { %v2351_v53 = vpop.f32.mrb[132].mxu1  ;;  %v2896_v54 = vpop.f32.mrb[132].mxu0 }
 0x223   : > { %v2353_v55 = vpop.f32.mrb[133].mxu1  ;;  %3478 = vst [vmem:[%s4859_s28 + $0x208] sm:$0xff] %v3350_v52  ;;  %v2897_v57 = vadd.f32 %v2896_v54, %v2351_v53  ;;  %v2898_v58 = vpop.f32.mrb[133].mxu0  ;;  %v4518_v52 = vld [vmem:[%s4667_s8 + $0x7e8] ss:$16 sps:$4 sm:$0xff]  }
 0x224   : > { %v2354_v59 = vpop.f32.mrb[134].mxu1  ;;  %v2899_v62 = vpop.f32.mrb[134].mxu0 }
 0x225   : > { %v2356_v63 = vpop.f32.mrb[135].mxu1  ;;  %v3216_v1 = vmul.f32 %v5073_v34, %v2897_v57  ;;  %v2900_v2 = vadd.f32 %v2899_v62, %v2354_v59  ;;  %v2901_v3 = vpop.f32.mrb[135].mxu0 }
 0x227   : > { %2566 = vmatmul.mubr.bf16.gmra.mrb[240].mxu1 %v4499_v56  ;;  %v3351_v4 = vadd.f32 %v5079_v37, %v3216_v1  ;;  %v3217_v5 = vmul.f32 %v5073_v34, %v2900_v2  ;;  %3111 = vmatmul.mubr.bf16.gmra.mrb[240].mxu0 %v4500_v60 }
 0x228   : > { %2573 = vmatprep.mubr.bf16.mxu1 %v4501_v61  ;;  %3118 = vmatprep.mubr.bf16.mxu0 %v4503_v0 }
 0x229   : > { %3479 = vst [vmem:[%s4859_s28 + $0x210] sm:$0xff] %v3351_v4  ;;  %v3352_v6 = vadd.f32 %v5079_v37, %v3217_v5 }
 0x22a   : > { %v2359_v7 = vpop.f32.mrb[136].mxu1  ;;  %v2904_v8 = vpop.f32.mrb[136].mxu0 }
 0x22b   : > { %v2361_v9 = vpop.f32.mrb[137].mxu1  ;;  %3480 = vst [vmem:[%s4859_s28 + $0x218] sm:$0xff] %v3352_v6  ;;  %v2905_v11 = vadd.f32 %v2904_v8, %v2359_v7  ;;  %v2906_v12 = vpop.f32.mrb[137].mxu0 }
 0x22c   : > { %v2362_v13 = vpop.f32.mrb[138].mxu1  ;;  %v2907_v16 = vpop.f32.mrb[138].mxu0 }
 0x22d   : > { %v2364_v18 = vpop.f32.mrb[139].mxu1  ;;  %v3218_v20 = vmul.f32 %v5073_v34, %v2905_v11  ;;  %v2908_v21 = vadd.f32 %v2907_v16, %v2362_v13  ;;  %v2909_v22 = vpop.f32.mrb[139].mxu0 }
 0x22f   : > { %2574 = vmatmul.mubr.bf16.gmra.mrb[244].mxu1 %v4505_v10  ;;  %v3353_v23 = vadd.f32 %v5079_v37, %v3218_v20  ;;  %v3219_v24 = vmul.f32 %v5073_v34, %v2908_v21  ;;  %3119 = vmatmul.mubr.bf16.gmra.mrb[244].mxu0 %v4506_v14 }
 0x230   : > { %2581 = vmatprep.mubr.bf16.mxu1 %v4507_v15  ;;  %3126 = vmatprep.mubr.bf16.mxu0 %v4509_v19 }
 0x231   : > { %3481 = vst [vmem:[%s4859_s28 + $0x220] sm:$0xff] %v3353_v23  ;;  %v3354_v26 = vadd.f32 %v5079_v37, %v3219_v24 }
 0x232   : > { %v2367_v27 = vpop.f32.mrb[140].mxu1  ;;  %v2912_v28 = vpop.f32.mrb[140].mxu0 }
 0x233   : > { %v2369_v29 = vpop.f32.mrb[141].mxu1  ;;  %3482 = vst [vmem:[%s4859_s28 + $0x228] sm:$0xff] %v3354_v26  ;;  %v2913_v31 = vadd.f32 %v2912_v28, %v2367_v27  ;;  %v2914_v32 = vpop.f32.mrb[141].mxu0 }
 0x234   : > { %v2370_v17 = vpop.f32.mrb[142].mxu1  ;;  %v2915_v35 = vpop.f32.mrb[142].mxu0 }
 0x235   : > { %v2372_v36 = vpop.f32.mrb[143].mxu1  ;;  %v3220_v39 = vmul.f32 %v5073_v34, %v2913_v31  ;;  %v2916_v40 = vadd.f32 %v2915_v35, %v2370_v17  ;;  %v2917_v41 = vpop.f32.mrb[143].mxu0 }
 0x237   : > { %2582 = vmatmul.mubr.bf16.gmra.mrb[248].mxu1 %v4511_v30  ;;  %v3355_v42 = vadd.f32 %v5079_v37, %v3220_v39  ;;  %v3221_v43 = vmul.f32 %v5073_v34, %v2916_v40  ;;  %3127 = vmatmul.mubr.bf16.gmra.mrb[248].mxu0 %v4512_v33 }
 0x238   : > { %2589 = vmatprep.mubr.bf16.mxu1 %v4513_v25  ;;  %3134 = vmatprep.mubr.bf16.mxu0 %v4515_v38 }
 0x239   : > { %3483 = vst [vmem:[%s4859_s28 + $0x230] sm:$0xff] %v3355_v42  ;;  %v3356_v44 = vadd.f32 %v5079_v37, %v3221_v43 }
 0x23a   : > { %v2375_v45 = vpop.f32.mrb[144].mxu1  ;;  %v2920_v46 = vpop.f32.mrb[144].mxu0 }
 0x23b   : > { %v2377_v47 = vpop.f32.mrb[145].mxu1  ;;  %3484 = vst [vmem:[%s4859_s28 + $0x238] sm:$0xff] %v3356_v44  ;;  %v2921_v49 = vadd.f32 %v2920_v46, %v2375_v45  ;;  %v2922_v50 = vpop.f32.mrb[145].mxu0 }
 0x23c   : > { %v2378_v51 = vpop.f32.mrb[146].mxu1  ;;  %v2923_v53 = vpop.f32.mrb[146].mxu0 }
 0x23d   : > { %v2380_v54 = vpop.f32.mrb[147].mxu1  ;;  %v3222_v55 = vmul.f32 %v5073_v34, %v2921_v49  ;;  %v2924_v56 = vadd.f32 %v2923_v53, %v2378_v51  ;;  %v2925_v57 = vpop.f32.mrb[147].mxu0 }
 0x23f   : > { %2590 = vmatmul.mubr.bf16.gmra.mrb[252].mxu1 %v4517_v48  ;;  %v3357_v58 = vadd.f32 %v5079_v37, %v3222_v55  ;;  %v3223_v59 = vmul.f32 %v5073_v34, %v2924_v56  ;;  %3135 = vmatmul.mubr.bf16.gmra.mrb[252].mxu0 %v4518_v52 }
 0x241   : > { %3485 = vst [vmem:[%s4859_s28 + $0x240] sm:$0xff] %v3357_v58  ;;  %v3358_v60 = vadd.f32 %v5079_v37, %v3223_v59 }
 0x242   : > { %v2383_v61 = vpop.f32.mrb[148].mxu1  ;;  %v2928_v62 = vpop.f32.mrb[148].mxu0 }
 0x243   : > { %v2385_v63 = vpop.f32.mrb[149].mxu1  ;;  %3486 = vst [vmem:[%s4859_s28 + $0x248] sm:$0xff] %v3358_v60  ;;  %v2929_v0 = vadd.f32 %v2928_v62, %v2383_v61  ;;  %v2930_v1 = vpop.f32.mrb[149].mxu0 }
 0x244   : > { %v2386_v2 = vpop.f32.mrb[150].mxu1  ;;  %v2931_v3 = vpop.f32.mrb[150].mxu0 }
 0x245   : > { %v2388_v4 = vpop.f32.mrb[151].mxu1  ;;  %v3224_v5 = vmul.f32 %v5073_v34, %v2929_v0  ;;  %v2932_v6 = vadd.f32 %v2931_v3, %v2386_v2  ;;  %v2933_v7 = vpop.f32.mrb[151].mxu0 }
 0x247   : > { %v3359_v8 = vadd.f32 %v5079_v37, %v3224_v5  ;;  %v3225_v9 = vmul.f32 %v5073_v34, %v2932_v6 }
 0x249   : > { %3487 = vst [vmem:[%s4859_s28 + $0x250] sm:$0xff] %v3359_v8  ;;  %v3360_v10 = vadd.f32 %v5079_v37, %v3225_v9 }
 0x24a   : > { %v2391_v11 = vpop.f32.mrb[152].mxu1  ;;  %v2936_v12 = vpop.f32.mrb[152].mxu0 }
 0x24b   : > { %v2393_v13 = vpop.f32.mrb[153].mxu1  ;;  %3488 = vst [vmem:[%s4859_s28 + $0x258] sm:$0xff] %v3360_v10  ;;  %v2937_v14 = vadd.f32 %v2936_v12, %v2391_v11  ;;  %v2938_v15 = vpop.f32.mrb[153].mxu0 }
 0x24c   : > { %v2394_v16 = vpop.f32.mrb[154].mxu1  ;;  %v2939_v18 = vpop.f32.mrb[154].mxu0 }
 0x24d   : > { %v2396_v19 = vpop.f32.mrb[155].mxu1  ;;  %v3226_v20 = vmul.f32 %v5073_v34, %v2937_v14  ;;  %v2940_v21 = vadd.f32 %v2939_v18, %v2394_v16  ;;  %v2941_v22 = vpop.f32.mrb[155].mxu0 }
 0x24f   : > { %v3361_v23 = vadd.f32 %v5079_v37, %v3226_v20  ;;  %v3227_v24 = vmul.f32 %v5073_v34, %v2940_v21 }
 0x251   : > { %3489 = vst [vmem:[%s4859_s28 + $0x260] sm:$0xff] %v3361_v23  ;;  %v3362_v26 = vadd.f32 %v5079_v37, %v3227_v24 }
 0x252   : > { %v2399_v27 = vpop.f32.mrb[156].mxu1  ;;  %v2944_v28 = vpop.f32.mrb[156].mxu0 }
 0x253   : > { %v2401_v29 = vpop.f32.mrb[157].mxu1  ;;  %3490 = vst [vmem:[%s4859_s28 + $0x268] sm:$0xff] %v3362_v26  ;;  %v2945_v30 = vadd.f32 %v2944_v28, %v2399_v27  ;;  %v2946_v31 = vpop.f32.mrb[157].mxu0 }
 0x254   : > { %v2402_v32 = vpop.f32.mrb[158].mxu1  ;;  %v2947_v17 = vpop.f32.mrb[158].mxu0 }
 0x255   : > { %v2404_v33 = vpop.f32.mrb[159].mxu1  ;;  %v3228_v25 = vmul.f32 %v5073_v34, %v2945_v30  ;;  %v2948_v35 = vadd.f32 %v2947_v17, %v2402_v32  ;;  %v2949_v36 = vpop.f32.mrb[159].mxu0 }
 0x257   : > { %v3363_v38 = vadd.f32 %v5079_v37, %v3228_v25  ;;  %v3229_v39 = vmul.f32 %v5073_v34, %v2948_v35 }
 0x259   : > { %3491 = vst [vmem:[%s4859_s28 + $0x270] sm:$0xff] %v3363_v38  ;;  %v3364_v40 = vadd.f32 %v5079_v37, %v3229_v39 }
 0x25a   : > { %v2407_v41 = vpop.f32.mrb[160].mxu1  ;;  %v2952_v42 = vpop.f32.mrb[160].mxu0 }
 0x25b   : > { %v2409_v43 = vpop.f32.mrb[161].mxu1  ;;  %3492 = vst [vmem:[%s4859_s28 + $0x278] sm:$0xff] %v3364_v40  ;;  %v2953_v44 = vadd.f32 %v2952_v42, %v2407_v41  ;;  %v2954_v45 = vpop.f32.mrb[161].mxu0 }
 0x25c   : > { %v2410_v46 = vpop.f32.mrb[162].mxu1  ;;  %v2955_v47 = vpop.f32.mrb[162].mxu0 }
 0x25d   : > { %v2412_v48 = vpop.f32.mrb[163].mxu1  ;;  %v3230_v49 = vmul.f32 %v5073_v34, %v2953_v44  ;;  %v2956_v50 = vadd.f32 %v2955_v47, %v2410_v46  ;;  %v2957_v51 = vpop.f32.mrb[163].mxu0 }
 0x25f   : > { %v3365_v52 = vadd.f32 %v5079_v37, %v3230_v49  ;;  %v3231_v53 = vmul.f32 %v5073_v34, %v2956_v50 }
 0x261   : > { %3493 = vst [vmem:[%s4859_s28 + $0x280] sm:$0xff] %v3365_v52  ;;  %v3366_v54 = vadd.f32 %v5079_v37, %v3231_v53 }
 0x262   : > { %v2415_v55 = vpop.f32.mrb[164].mxu1  ;;  %v2960_v56 = vpop.f32.mrb[164].mxu0 }
 0x263   : > { %v2417_v57 = vpop.f32.mrb[165].mxu1  ;;  %3494 = vst [vmem:[%s4859_s28 + $0x288] sm:$0xff] %v3366_v54  ;;  %v2961_v58 = vadd.f32 %v2960_v56, %v2415_v55  ;;  %v2962_v59 = vpop.f32.mrb[165].mxu0 }
 0x264   : > { %v2418_v60 = vpop.f32.mrb[166].mxu1  ;;  %v2963_v61 = vpop.f32.mrb[166].mxu0 }
 0x265   : > { %v2420_v62 = vpop.f32.mrb[167].mxu1  ;;  %v3232_v63 = vmul.f32 %v5073_v34, %v2961_v58  ;;  %v2964_v0 = vadd.f32 %v2963_v61, %v2418_v60  ;;  %v2965_v1 = vpop.f32.mrb[167].mxu0 }
 0x267   : > { %v3367_v2 = vadd.f32 %v5079_v37, %v3232_v63  ;;  %v3233_v3 = vmul.f32 %v5073_v34, %v2964_v0 }
 0x269   : > { %3495 = vst [vmem:[%s4859_s28 + $0x290] sm:$0xff] %v3367_v2  ;;  %v3368_v4 = vadd.f32 %v5079_v37, %v3233_v3 }
 0x26a   : > { %v2423_v5 = vpop.f32.mrb[168].mxu1  ;;  %v2968_v6 = vpop.f32.mrb[168].mxu0 }
 0x26b   : > { %v2425_v7 = vpop.f32.mrb[169].mxu1  ;;  %3496 = vst [vmem:[%s4859_s28 + $0x298] sm:$0xff] %v3368_v4  ;;  %v2969_v8 = vadd.f32 %v2968_v6, %v2423_v5  ;;  %v2970_v9 = vpop.f32.mrb[169].mxu0 }
 0x26c   : > { %v2426_v10 = vpop.f32.mrb[170].mxu1  ;;  %v2971_v11 = vpop.f32.mrb[170].mxu0  ;;  %v5291_v7 = vld [vmem:[%s5417_s2] ss:$0 sm:$0xff] }
 0x26d   : > { %v2428_v12 = vpop.f32.mrb[171].mxu1  ;;  %v3234_v13 = vmul.f32 %v5073_v34, %v2969_v8  ;;  %v2972_v14 = vadd.f32 %v2971_v11, %v2426_v10  ;;  %v2973_v15 = vpop.f32.mrb[171].mxu0  ;;  %v5297_v9 = vld [vmem:[%s5418_s3] ss:$0 sm:$0xff] }
 0x26f   : > { %v3369_v16 = vadd.f32 %v5079_v37, %v3234_v13  ;;  %v3235_v18 = vmul.f32 %v5073_v34, %v2972_v14 }
 0x271   : > { %3497 = vst [vmem:[%s4859_s28 + $0x2a0] sm:$0xff] %v3369_v16  ;;  %v3370_v19 = vadd.f32 %v5079_v37, %v3235_v18 }
 0x272   : > { %v2431_v20 = vpop.f32.mrb[172].mxu1  ;;  %v2976_v21 = vpop.f32.mrb[172].mxu0 }
 0x273   : > { %v2433_v22 = vpop.f32.mrb[173].mxu1  ;;  %3498 = vst [vmem:[%s4859_s28 + $0x2a8] sm:$0xff] %v3370_v19  ;;  %v2977_v23 = vadd.f32 %v2976_v21, %v2431_v20  ;;  %v2978_v24 = vpop.f32.mrb[173].mxu0 }
 0x274   : > { %v2434_v26 = vpop.f32.mrb[174].mxu1  ;;  %v2979_v27 = vpop.f32.mrb[174].mxu0 }
 0x275   : > { %v2436_v28 = vpop.f32.mrb[175].mxu1  ;;  %v3236_v29 = vmul.f32 %v5073_v34, %v2977_v23  ;;  %v2980_v30 = vadd.f32 %v2979_v27, %v2434_v26  ;;  %v2981_v31 = vpop.f32.mrb[175].mxu0 }
 0x277   : > { %v3371_v32 = vadd.f32 %v5079_v37, %v3236_v29  ;;  %v3237_v17 = vmul.f32 %v5073_v34, %v2980_v30 }
 0x279   : > { %3499 = vst [vmem:[%s4859_s28 + $0x2b0] sm:$0xff] %v3371_v32  ;;  %v3372_v33 = vadd.f32 %v5079_v37, %v3237_v17 }
 0x27a   : > { %v2439_v25 = vpop.f32.mrb[176].mxu1  ;;  %v2984_v35 = vpop.f32.mrb[176].mxu0 }
 0x27b   : > { %v2441_v36 = vpop.f32.mrb[177].mxu1  ;;  %3500 = vst [vmem:[%s4859_s28 + $0x2b8] sm:$0xff] %v3372_v33  ;;  %v2985_v38 = vadd.f32 %v2984_v35, %v2439_v25  ;;  %v2986_v39 = vpop.f32.mrb[177].mxu0 }
 0x27c   : > { %v2442_v40 = vpop.f32.mrb[178].mxu1  ;;  %v2987_v41 = vpop.f32.mrb[178].mxu0 }
 0x27d   : > { %v2444_v42 = vpop.f32.mrb[179].mxu1  ;;  %v3238_v43 = vmul.f32 %v5073_v34, %v2985_v38  ;;  %v2988_v44 = vadd.f32 %v2987_v41, %v2442_v40  ;;  %v2989_v45 = vpop.f32.mrb[179].mxu0 }
 0x27f   : > { %v3373_v46 = vadd.f32 %v5079_v37, %v3238_v43  ;;  %v3239_v47 = vmul.f32 %v5073_v34, %v2988_v44 }
 0x281   : > { %3501 = vst [vmem:[%s4859_s28 + $0x2c0] sm:$0xff] %v3373_v46  ;;  %v3374_v48 = vadd.f32 %v5079_v37, %v3239_v47 }
 0x282   : > { %v2447_v49 = vpop.f32.mrb[180].mxu1  ;;  %v2992_v50 = vpop.f32.mrb[180].mxu0 }
 0x283   : > { %v2449_v51 = vpop.f32.mrb[181].mxu1  ;;  %3502 = vst [vmem:[%s4859_s28 + $0x2c8] sm:$0xff] %v3374_v48  ;;  %v2993_v52 = vadd.f32 %v2992_v50, %v2447_v49  ;;  %v2994_v53 = vpop.f32.mrb[181].mxu0 }
 0x284   : > { %v2450_v54 = vpop.f32.mrb[182].mxu1  ;;  %v2995_v55 = vpop.f32.mrb[182].mxu0 }
 0x285   : > { %v2452_v56 = vpop.f32.mrb[183].mxu1  ;;  %v3240_v57 = vmul.f32 %v5073_v34, %v2993_v52  ;;  %v2996_v58 = vadd.f32 %v2995_v55, %v2450_v54  ;;  %v2997_v59 = vpop.f32.mrb[183].mxu0 }
 0x287   : > { %v3375_v60 = vadd.f32 %v5079_v37, %v3240_v57  ;;  %v3241_v61 = vmul.f32 %v5073_v34, %v2996_v58 }
 0x289   : > { %3503 = vst [vmem:[%s4859_s28 + $0x2d0] sm:$0xff] %v3375_v60  ;;  %v3376_v62 = vadd.f32 %v5079_v37, %v3241_v61 }
 0x28a   : > { %v2455_v63 = vpop.f32.mrb[184].mxu1  ;;  %v3000_v0 = vpop.f32.mrb[184].mxu0 }
 0x28b   : > { %v2457_v1 = vpop.f32.mrb[185].mxu1  ;;  %3504 = vst [vmem:[%s4859_s28 + $0x2d8] sm:$0xff] %v3376_v62  ;;  %v3001_v2 = vadd.f32 %v3000_v0, %v2455_v63  ;;  %v3002_v3 = vpop.f32.mrb[185].mxu0 }
 0x28c   : > { %v2458_v4 = vpop.f32.mrb[186].mxu1  ;;  %v3003_v5 = vpop.f32.mrb[186].mxu0 }
 0x28d   : > { %v2460_v6 = vpop.f32.mrb[187].mxu1  ;;  %v3242_v34 = vmul.f32 %v5291_v7, %v3001_v2  ;;  %v3004_v8 = vadd.f32 %v3003_v5, %v2458_v4  ;;  %v3005_v37 = vpop.f32.mrb[187].mxu0 }
 0x28f   : > { %v3377_v10 = vadd.f32 %v5297_v9, %v3242_v34  ;;  %v3243_v11 = vmul.f32 %v5291_v7, %v3004_v8 }
 0x291   : > { %3505 = vst [vmem:[%s4859_s28 + $0x2e0] sm:$0xff] %v3377_v10  ;;  %v3378_v12 = vadd.f32 %v5297_v9, %v3243_v11 }
 0x292   : > { %v2463_v13 = vpop.f32.mrb[188].mxu1  ;;  %v3008_v14 = vpop.f32.mrb[188].mxu0 }
 0x293   : > { %v2465_v15 = vpop.f32.mrb[189].mxu1  ;;  %3506 = vst [vmem:[%s4859_s28 + $0x2e8] sm:$0xff] %v3378_v12  ;;  %v3009_v16 = vadd.f32 %v3008_v14, %v2463_v13  ;;  %v3010_v18 = vpop.f32.mrb[189].mxu0 }
 0x294   : > { %v2466_v19 = vpop.f32.mrb[190].mxu1  ;;  %v3011_v20 = vpop.f32.mrb[190].mxu0 }
 0x295   : > { %v2468_v21 = vpop.f32.mrb[191].mxu1  ;;  %v3244_v22 = vmul.f32 %v5291_v7, %v3009_v16  ;;  %v3012_v23 = vadd.f32 %v3011_v20, %v2466_v19  ;;  %v3013_v24 = vpop.f32.mrb[191].mxu0 }
 0x297   : > { %v3379_v26 = vadd.f32 %v5297_v9, %v3244_v22  ;;  %v3245_v27 = vmul.f32 %v5291_v7, %v3012_v23 }
 0x299   : > { %3507 = vst [vmem:[%s4859_s28 + $0x2f0] sm:$0xff] %v3379_v26  ;;  %v3380_v28 = vadd.f32 %v5297_v9, %v3245_v27 }
 0x29a   : > { %v2471_v29 = vpop.f32.mrb[192].mxu1  ;;  %v3016_v30 = vpop.f32.mrb[192].mxu0 }
 0x29b   : > { %v2473_v31 = vpop.f32.mrb[193].mxu1  ;;  %3508 = vst [vmem:[%s4859_s28 + $0x2f8] sm:$0xff] %v3380_v28  ;;  %v3017_v32 = vadd.f32 %v3016_v30, %v2471_v29  ;;  %v3018_v17 = vpop.f32.mrb[193].mxu0 }
 0x29c   : > { %v2474_v33 = vpop.f32.mrb[194].mxu1  ;;  %v3019_v25 = vpop.f32.mrb[194].mxu0 }
 0x29d   : > { %v2476_v35 = vpop.f32.mrb[195].mxu1  ;;  %v3246_v36 = vmul.f32 %v5291_v7, %v3017_v32  ;;  %v3020_v38 = vadd.f32 %v3019_v25, %v2474_v33  ;;  %v3021_v39 = vpop.f32.mrb[195].mxu0 }
 0x29f   : > { %v3381_v40 = vadd.f32 %v5297_v9, %v3246_v36  ;;  %v3247_v41 = vmul.f32 %v5291_v7, %v3020_v38 }
 0x2a1   : > { %3509 = vst [vmem:[%s4859_s28 + $0x300] sm:$0xff] %v3381_v40  ;;  %v3382_v42 = vadd.f32 %v5297_v9, %v3247_v41 }
 0x2a2   : > { %v2479_v43 = vpop.f32.mrb[196].mxu1  ;;  %v3024_v44 = vpop.f32.mrb[196].mxu0 }
 0x2a3   : > { %v2481_v45 = vpop.f32.mrb[197].mxu1  ;;  %3510 = vst [vmem:[%s4859_s28 + $0x308] sm:$0xff] %v3382_v42  ;;  %v3025_v46 = vadd.f32 %v3024_v44, %v2479_v43  ;;  %v3026_v47 = vpop.f32.mrb[197].mxu0 }
 0x2a4   : > { %v2482_v48 = vpop.f32.mrb[198].mxu1  ;;  %v3027_v49 = vpop.f32.mrb[198].mxu0 }
 0x2a5   : > { %v2484_v50 = vpop.f32.mrb[199].mxu1  ;;  %v3248_v51 = vmul.f32 %v5291_v7, %v3025_v46  ;;  %v3028_v52 = vadd.f32 %v3027_v49, %v2482_v48  ;;  %v3029_v53 = vpop.f32.mrb[199].mxu0 }
 0x2a7   : > { %v3383_v54 = vadd.f32 %v5297_v9, %v3248_v51  ;;  %v3249_v55 = vmul.f32 %v5291_v7, %v3028_v52 }
 0x2a9   : > { %3511 = vst [vmem:[%s4859_s28 + $0x310] sm:$0xff] %v3383_v54  ;;  %v3384_v56 = vadd.f32 %v5297_v9, %v3249_v55 }
 0x2aa   : > { %v2487_v57 = vpop.f32.mrb[200].mxu1  ;;  %v3032_v58 = vpop.f32.mrb[200].mxu0 }
 0x2ab   : > { %v2489_v59 = vpop.f32.mrb[201].mxu1  ;;  %3512 = vst [vmem:[%s4859_s28 + $0x318] sm:$0xff] %v3384_v56  ;;  %v3033_v60 = vadd.f32 %v3032_v58, %v2487_v57  ;;  %v3034_v61 = vpop.f32.mrb[201].mxu0 }
 0x2ac   : > { %v2490_v62 = vpop.f32.mrb[202].mxu1  ;;  %v3035_v63 = vpop.f32.mrb[202].mxu0 }
 0x2ad   : > { %v2492_v0 = vpop.f32.mrb[203].mxu1  ;;  %v3250_v1 = vmul.f32 %v5291_v7, %v3033_v60  ;;  %v3036_v2 = vadd.f32 %v3035_v63, %v2490_v62  ;;  %v3037_v3 = vpop.f32.mrb[203].mxu0 }
 0x2af   : > { %v3385_v4 = vadd.f32 %v5297_v9, %v3250_v1  ;;  %v3251_v5 = vmul.f32 %v5291_v7, %v3036_v2 }
 0x2b1   : > { %3513 = vst [vmem:[%s4859_s28 + $0x320] sm:$0xff] %v3385_v4  ;;  %v3386_v6 = vadd.f32 %v5297_v9, %v3251_v5 }
 0x2b2   : > { %v2495_v34 = vpop.f32.mrb[204].mxu1  ;;  %v3040_v8 = vpop.f32.mrb[204].mxu0 }
 0x2b3   : > { %v2497_v37 = vpop.f32.mrb[205].mxu1  ;;  %3514 = vst [vmem:[%s4859_s28 + $0x328] sm:$0xff] %v3386_v6  ;;  %v3041_v10 = vadd.f32 %v3040_v8, %v2495_v34  ;;  %v3042_v11 = vpop.f32.mrb[205].mxu0 }
 0x2b4   : > { %v2498_v12 = vpop.f32.mrb[206].mxu1  ;;  %v3043_v13 = vpop.f32.mrb[206].mxu0 }
 0x2b5   : > { %v2500_v14 = vpop.f32.mrb[207].mxu1  ;;  %v3252_v15 = vmul.f32 %v5291_v7, %v3041_v10  ;;  %v3044_v16 = vadd.f32 %v3043_v13, %v2498_v12  ;;  %v3045_v18 = vpop.f32.mrb[207].mxu0 }
 0x2b7   : > { %v3387_v19 = vadd.f32 %v5297_v9, %v3252_v15  ;;  %v3253_v20 = vmul.f32 %v5291_v7, %v3044_v16 }
 0x2b9   : > { %3515 = vst [vmem:[%s4859_s28 + $0x330] sm:$0xff] %v3387_v19  ;;  %v3388_v21 = vadd.f32 %v5297_v9, %v3253_v20 }
 0x2ba   : > { %v2503_v22 = vpop.f32.mrb[208].mxu1  ;;  %v3048_v23 = vpop.f32.mrb[208].mxu0 }
 0x2bb   : > { %v2505_v24 = vpop.f32.mrb[209].mxu1  ;;  %3516 = vst [vmem:[%s4859_s28 + $0x338] sm:$0xff] %v3388_v21  ;;  %v3049_v26 = vadd.f32 %v3048_v23, %v2503_v22  ;;  %v3050_v27 = vpop.f32.mrb[209].mxu0 }
 0x2bc   : > { %v2506_v28 = vpop.f32.mrb[210].mxu1  ;;  %v3051_v29 = vpop.f32.mrb[210].mxu0 }
 0x2bd   : > { %v2508_v30 = vpop.f32.mrb[211].mxu1  ;;  %v3254_v31 = vmul.f32 %v5291_v7, %v3049_v26  ;;  %v3052_v32 = vadd.f32 %v3051_v29, %v2506_v28  ;;  %v3053_v17 = vpop.f32.mrb[211].mxu0 }
 0x2bf   : > { %v3389_v33 = vadd.f32 %v5297_v9, %v3254_v31  ;;  %v3255_v25 = vmul.f32 %v5291_v7, %v3052_v32 }
 0x2c1   : > { %3517 = vst [vmem:[%s4859_s28 + $0x340] sm:$0xff] %v3389_v33  ;;  %v3390_v35 = vadd.f32 %v5297_v9, %v3255_v25 }
 0x2c2   : > { %v2511_v36 = vpop.f32.mrb[212].mxu1  ;;  %v3056_v38 = vpop.f32.mrb[212].mxu0 }
 0x2c3   : > { %v2513_v39 = vpop.f32.mrb[213].mxu1  ;;  %3518 = vst [vmem:[%s4859_s28 + $0x348] sm:$0xff] %v3390_v35  ;;  %v3057_v40 = vadd.f32 %v3056_v38, %v2511_v36  ;;  %v3058_v41 = vpop.f32.mrb[213].mxu0 }
 0x2c4   : > { %v2514_v42 = vpop.f32.mrb[214].mxu1  ;;  %v3059_v43 = vpop.f32.mrb[214].mxu0 }
 0x2c5   : > { %v2516_v44 = vpop.f32.mrb[215].mxu1  ;;  %v3256_v45 = vmul.f32 %v5291_v7, %v3057_v40  ;;  %v3060_v46 = vadd.f32 %v3059_v43, %v2514_v42  ;;  %v3061_v47 = vpop.f32.mrb[215].mxu0 }
 0x2c7   : > { %v3391_v48 = vadd.f32 %v5297_v9, %v3256_v45  ;;  %v3257_v49 = vmul.f32 %v5291_v7, %v3060_v46 }
 0x2c9   : > { %3519 = vst [vmem:[%s4859_s28 + $0x350] sm:$0xff] %v3391_v48  ;;  %v3392_v50 = vadd.f32 %v5297_v9, %v3257_v49 }
 0x2ca   : > { %v2519_v51 = vpop.f32.mrb[216].mxu1  ;;  %v3064_v52 = vpop.f32.mrb[216].mxu0 }
 0x2cb   : > { %v2521_v53 = vpop.f32.mrb[217].mxu1  ;;  %3520 = vst [vmem:[%s4859_s28 + $0x358] sm:$0xff] %v3392_v50  ;;  %v3065_v54 = vadd.f32 %v3064_v52, %v2519_v51  ;;  %v3066_v55 = vpop.f32.mrb[217].mxu0 }
 0x2cc   : > { %v2522_v56 = vpop.f32.mrb[218].mxu1  ;;  %v3067_v57 = vpop.f32.mrb[218].mxu0 }
 0x2cd   : > { %v2524_v58 = vpop.f32.mrb[219].mxu1  ;;  %v3258_v59 = vmul.f32 %v5291_v7, %v3065_v54  ;;  %v3068_v60 = vadd.f32 %v3067_v57, %v2522_v56  ;;  %v3069_v61 = vpop.f32.mrb[219].mxu0 }
 0x2cf   : > { %v3393_v62 = vadd.f32 %v5297_v9, %v3258_v59  ;;  %v3259_v63 = vmul.f32 %v5291_v7, %v3068_v60 }
 0x2d1   : > { %3521 = vst [vmem:[%s4859_s28 + $0x360] sm:$0xff] %v3393_v62  ;;  %v3394_v0 = vadd.f32 %v5297_v9, %v3259_v63 }
 0x2d2   : > { %v2527_v1 = vpop.f32.mrb[220].mxu1  ;;  %v3072_v2 = vpop.f32.mrb[220].mxu0 }
 0x2d3   : > { %v2529_v3 = vpop.f32.mrb[221].mxu1  ;;  %3522 = vst [vmem:[%s4859_s28 + $0x368] sm:$0xff] %v3394_v0  ;;  %v3073_v4 = vadd.f32 %v3072_v2, %v2527_v1  ;;  %v3074_v5 = vpop.f32.mrb[221].mxu0 }
 0x2d4   : > { %v2530_v6 = vpop.f32.mrb[222].mxu1  ;;  %v3075_v34 = vpop.f32.mrb[222].mxu0 }
 0x2d5   : > { %v2532_v8 = vpop.f32.mrb[223].mxu1  ;;  %v3260_v37 = vmul.f32 %v5291_v7, %v3073_v4  ;;  %v3076_v10 = vadd.f32 %v3075_v34, %v2530_v6  ;;  %v3077_v11 = vpop.f32.mrb[223].mxu0 }
 0x2d7   : > { %v3395_v12 = vadd.f32 %v5297_v9, %v3260_v37  ;;  %v3261_v13 = vmul.f32 %v5291_v7, %v3076_v10 }
 0x2d9   : > { %3523 = vst [vmem:[%s4859_s28 + $0x370] sm:$0xff] %v3395_v12  ;;  %v3396_v14 = vadd.f32 %v5297_v9, %v3261_v13 }
 0x2da   : > { %v2535_v15 = vpop.f32.mrb[224].mxu1  ;;  %v3080_v16 = vpop.f32.mrb[224].mxu0 }
 0x2db   : > { %v2537_v18 = vpop.f32.mrb[225].mxu1  ;;  %3524 = vst [vmem:[%s4859_s28 + $0x378] sm:$0xff] %v3396_v14  ;;  %v3081_v19 = vadd.f32 %v3080_v16, %v2535_v15  ;;  %v3082_v20 = vpop.f32.mrb[225].mxu0 }
 0x2dc   : > { %v2538_v21 = vpop.f32.mrb[226].mxu1  ;;  %v3083_v22 = vpop.f32.mrb[226].mxu0 }
 0x2dd   : > { %v2540_v23 = vpop.f32.mrb[227].mxu1  ;;  %v3262_v24 = vmul.f32 %v5291_v7, %v3081_v19  ;;  %v3084_v26 = vadd.f32 %v3083_v22, %v2538_v21  ;;  %v3085_v27 = vpop.f32.mrb[227].mxu0 }
 0x2df   : > { %v3397_v28 = vadd.f32 %v5297_v9, %v3262_v24  ;;  %v3263_v29 = vmul.f32 %v5291_v7, %v3084_v26 }
 0x2e1   : > { %3525 = vst [vmem:[%s4859_s28 + $0x380] sm:$0xff] %v3397_v28  ;;  %v3398_v30 = vadd.f32 %v5297_v9, %v3263_v29 }
 0x2e2   : > { %v2543_v31 = vpop.f32.mrb[228].mxu1  ;;  %v3088_v32 = vpop.f32.mrb[228].mxu0 }
 0x2e3   : > { %v2545_v17 = vpop.f32.mrb[229].mxu1  ;;  %3526 = vst [vmem:[%s4859_s28 + $0x388] sm:$0xff] %v3398_v30  ;;  %v3089_v33 = vadd.f32 %v3088_v32, %v2543_v31  ;;  %v3090_v25 = vpop.f32.mrb[229].mxu0 }
 0x2e4   : > { %v2546_v35 = vpop.f32.mrb[230].mxu1  ;;  %v3091_v36 = vpop.f32.mrb[230].mxu0 }
 0x2e5   : > { %v2548_v38 = vpop.f32.mrb[231].mxu1  ;;  %v3264_v39 = vmul.f32 %v5291_v7, %v3089_v33  ;;  %v3092_v40 = vadd.f32 %v3091_v36, %v2546_v35  ;;  %v3093_v41 = vpop.f32.mrb[231].mxu0 }
 0x2e7   : > { %v3399_v42 = vadd.f32 %v5297_v9, %v3264_v39  ;;  %v3265_v43 = vmul.f32 %v5291_v7, %v3092_v40 }
 0x2e9   : > { %3527 = vst [vmem:[%s4859_s28 + $0x390] sm:$0xff] %v3399_v42  ;;  %v3400_v44 = vadd.f32 %v5297_v9, %v3265_v43 }
 0x2ea   : > { %v2551_v45 = vpop.f32.mrb[232].mxu1  ;;  %v3096_v46 = vpop.f32.mrb[232].mxu0 }
 0x2eb   : > { %v2553_v47 = vpop.f32.mrb[233].mxu1  ;;  %3528 = vst [vmem:[%s4859_s28 + $0x398] sm:$0xff] %v3400_v44  ;;  %v3097_v48 = vadd.f32 %v3096_v46, %v2551_v45  ;;  %v3098_v49 = vpop.f32.mrb[233].mxu0 }
 0x2ec   : > { %v2554_v50 = vpop.f32.mrb[234].mxu1  ;;  %v3099_v51 = vpop.f32.mrb[234].mxu0 }
 0x2ed   : > { %v2556_v52 = vpop.f32.mrb[235].mxu1  ;;  %v3266_v53 = vmul.f32 %v5291_v7, %v3097_v48  ;;  %v3100_v54 = vadd.f32 %v3099_v51, %v2554_v50  ;;  %v3101_v55 = vpop.f32.mrb[235].mxu0 }
 0x2ef   : > { %v3401_v56 = vadd.f32 %v5297_v9, %v3266_v53  ;;  %v3267_v57 = vmul.f32 %v5291_v7, %v3100_v54 }
 0x2f1   : > { %3529 = vst [vmem:[%s4859_s28 + $0x3a0] sm:$0xff] %v3401_v56  ;;  %v3402_v58 = vadd.f32 %v5297_v9, %v3267_v57 }
 0x2f2   : > { %v2559_v59 = vpop.f32.mrb[236].mxu1  ;;  %v3104_v60 = vpop.f32.mrb[236].mxu0 }
 0x2f3   : > { %v2561_v61 = vpop.f32.mrb[237].mxu1  ;;  %3530 = vst [vmem:[%s4859_s28 + $0x3a8] sm:$0xff] %v3402_v58  ;;  %v3105_v62 = vadd.f32 %v3104_v60, %v2559_v59  ;;  %v3106_v63 = vpop.f32.mrb[237].mxu0 }
 0x2f4   : > { %v2562_v0 = vpop.f32.mrb[238].mxu1  ;;  %v3107_v1 = vpop.f32.mrb[238].mxu0 }
 0x2f5   : > { %v2564_v2 = vpop.f32.mrb[239].mxu1  ;;  %v3268_v3 = vmul.f32 %v5291_v7, %v3105_v62  ;;  %v3108_v4 = vadd.f32 %v3107_v1, %v2562_v0  ;;  %v3109_v5 = vpop.f32.mrb[239].mxu0 }
 0x2f7   : > { %v3403_v6 = vadd.f32 %v5297_v9, %v3268_v3  ;;  %v3269_v34 = vmul.f32 %v5291_v7, %v3108_v4 }
 0x2f9   : > { %3531 = vst [vmem:[%s4859_s28 + $0x3b0] sm:$0xff] %v3403_v6  ;;  %v3404_v8 = vadd.f32 %v5297_v9, %v3269_v34 }
 0x2fa   : > { %v2567_v37 = vpop.f32.mrb[240].mxu1  ;;  %v3112_v10 = vpop.f32.mrb[240].mxu0 }
 0x2fb   : > { %v2569_v11 = vpop.f32.mrb[241].mxu1  ;;  %3532 = vst [vmem:[%s4859_s28 + $0x3b8] sm:$0xff] %v3404_v8  ;;  %v3113_v12 = vadd.f32 %v3112_v10, %v2567_v37  ;;  %v3114_v13 = vpop.f32.mrb[241].mxu0 }
 0x2fc   : > { %v2570_v14 = vpop.f32.mrb[242].mxu1  ;;  %v3115_v15 = vpop.f32.mrb[242].mxu0 }
 0x2fd   : > { %v2572_v16 = vpop.f32.mrb[243].mxu1  ;;  %v3270_v18 = vmul.f32 %v5291_v7, %v3113_v12  ;;  %v3116_v19 = vadd.f32 %v3115_v15, %v2570_v14  ;;  %v3117_v20 = vpop.f32.mrb[243].mxu0 }
 0x2ff   : > { %v3405_v21 = vadd.f32 %v5297_v9, %v3270_v18  ;;  %v3271_v22 = vmul.f32 %v5291_v7, %v3116_v19 }
 0x301   : > { %3533 = vst [vmem:[%s4859_s28 + $0x3c0] sm:$0xff] %v3405_v21  ;;  %v3406_v23 = vadd.f32 %v5297_v9, %v3271_v22 }
 0x302   : > { %v2575_v24 = vpop.f32.mrb[244].mxu1  ;;  %v3120_v26 = vpop.f32.mrb[244].mxu0 }
 0x303   : > { %v2577_v27 = vpop.f32.mrb[245].mxu1  ;;  %3534 = vst [vmem:[%s4859_s28 + $0x3c8] sm:$0xff] %v3406_v23  ;;  %v3121_v28 = vadd.f32 %v3120_v26, %v2575_v24  ;;  %v3122_v29 = vpop.f32.mrb[245].mxu0 }
 0x304   : > { %v2578_v30 = vpop.f32.mrb[246].mxu1  ;;  %v3123_v31 = vpop.f32.mrb[246].mxu0 }
 0x305   : > { %v2580_v32 = vpop.f32.mrb[247].mxu1  ;;  %v3272_v17 = vmul.f32 %v5291_v7, %v3121_v28  ;;  %v3124_v33 = vadd.f32 %v3123_v31, %v2578_v30  ;;  %v3125_v25 = vpop.f32.mrb[247].mxu0 }
 0x307   : > { %v3407_v35 = vadd.f32 %v5297_v9, %v3272_v17  ;;  %v3273_v36 = vmul.f32 %v5291_v7, %v3124_v33 }
 0x309   : > { %3535 = vst [vmem:[%s4859_s28 + $0x3d0] sm:$0xff] %v3407_v35  ;;  %v3408_v38 = vadd.f32 %v5297_v9, %v3273_v36 }
 0x30a   : > { %v2583_v39 = vpop.f32.mrb[248].mxu1  ;;  %v3128_v40 = vpop.f32.mrb[248].mxu0 }
 0x30b   : > { %v2585_v41 = vpop.f32.mrb[249].mxu1  ;;  %3536 = vst [vmem:[%s4859_s28 + $0x3d8] sm:$0xff] %v3408_v38  ;;  %v3129_v42 = vadd.f32 %v3128_v40, %v2583_v39  ;;  %v3130_v43 = vpop.f32.mrb[249].mxu0 }
 0x30c   : > { %v2586_v44 = vpop.f32.mrb[250].mxu1  ;;  %v3131_v45 = vpop.f32.mrb[250].mxu0 }
 0x30d   : > { %v2588_v46 = vpop.f32.mrb[251].mxu1  ;;  %v3274_v47 = vmul.f32 %v5291_v7, %v3129_v42  ;;  %v3132_v48 = vadd.f32 %v3131_v45, %v2586_v44  ;;  %v3133_v49 = vpop.f32.mrb[251].mxu0 }
 0x30f   : > { %v3409_v50 = vadd.f32 %v5297_v9, %v3274_v47  ;;  %v3275_v51 = vmul.f32 %v5291_v7, %v3132_v48 }
 0x311   : > { %3537 = vst [vmem:[%s4859_s28 + $0x3e0] sm:$0xff] %v3409_v50  ;;  %v3410_v52 = vadd.f32 %v5297_v9, %v3275_v51 }
 0x312   : > { %v2591_v53 = vpop.f32.mrb[252].mxu1  ;;  %v3136_v54 = vpop.f32.mrb[252].mxu0 }
 0x313   : > { %v2593_v55 = vpop.f32.mrb[253].mxu1  ;;  %3538 = vst [vmem:[%s4859_s28 + $0x3e8] sm:$0xff] %v3410_v52  ;;  %v3137_v56 = vadd.f32 %v3136_v54, %v2591_v53  ;;  %v3138_v57 = vpop.f32.mrb[253].mxu0 }
 0x314   : > { %v2594_v58 = vpop.f32.mrb[254].mxu1  ;;  %v3139_v59 = vpop.f32.mrb[254].mxu0 }
 0x315   : > { %v2596_v60 = vpop.f32.mrb[255].mxu1  ;;  %v3276_v61 = vmul.f32 %v5291_v7, %v3137_v56  ;;  %v3140_v62 = vadd.f32 %v3139_v59, %v2594_v58  ;;  %v3141_v63 = vpop.f32.mrb[255].mxu0 }
 0x317   : > { %v3411_v0 = vadd.f32 %v5297_v9, %v3276_v61  ;;  %v3277_v1 = vmul.f32 %v5291_v7, %v3140_v62 }
 0x319   : > { %3539 = vst [vmem:[%s4859_s28 + $0x3f0] sm:$0xff] %v3411_v0  ;;  %v3412_v2 = vadd.f32 %v5297_v9, %v3277_v1 }
 0x31b   : > { %3540 = vst [vmem:[%s4859_s28 + $0x3f8] sm:$0xff] %v3412_v2 }
 0x31c PF: > { %s14_s17 = sadd.s32 1, %s4545_s17   ;;  %s5420_s15 = smov %s4541_s16 }
 0x31d   : > { %p11_p5 = scmp.ge.s32.totalorder %s14_s17, 6   ;;  %s5421_s16 = smov %s5423_s18 }
 0x31f   :  { %13 = sbr.rel (!%p11_p5) target bundleno = 2 (0x2), region = 69 }

// kernel: _lambda_.11
= control target key start
LH: loop header
LB: loop body
LE: loop exit
PB: predicated region body
PF: predicated region fallthrough
CT: control target
= control target key end

     0   :  { %v1256_v0 = vmov 0   ;;  %s1884_s1 = inlined_call_operand.vmem [shape: bf16[1,256,128], index: 1, kind: input, shape index: {}]   ;;  %s1885_s0 = inlined_call_operand.vmem [shape: bf16[1,512,256], index: 0, kind: input, shape index: {}]   ;;  %s1886_s2 = inlined_call_operand.vmem [shape: f32[1,128], index: 2, kind: input, shape index: {}]   ;;  %s1887_s3 = inlined_call_operand.vmem [shape: f32[1,128], index: 3, kind: input, shape index: {}]   ;;  %s1888_s4 = inlined_call_operand.vmem [shape: f32[1,512,128], index: 4, kind: output, shape index: {}]  }
   0x1   :  { %530 = vmatprep.subr.bf16.mxu0 %v1256_v0  ;;  %1111 = vmatprep.subr.bf16.mxu1 %v1256_v0  ;;  %v1144_v1 = vld [vmem:[%s1884_s1] sm:$0xff]   ;;  %v1145_v2 = vld [vmem:[%s1884_s1 + $0x8] sm:$0xff]   ;;  %v1146_v3 = vld [vmem:[%s1884_s1 + $0x10] sm:$0xff]  }
   0x2   :  { %531 = vmatpush1.bf16.msra.mxu0 %v1144_v1  ;;  %1127 = vmatpush1.bf16.msra.mxu1 %v1144_v1  ;;  %v1147_v4 = vld [vmem:[%s1884_s1 + $0x18] sm:$0xff]   ;;  %v1148_v5 = vld [vmem:[%s1884_s1 + $0x20] sm:$0xff]   ;;  %v1149_v7 = vld [vmem:[%s1884_s1 + $0x28] sm:$0xff]  }
   0x3   :  { %532 = vmatprep.subr.bf16.mxu0 %v1256_v0  ;;  %1112 = vmatprep.subr.bf16.mxu1 %v1256_v0  ;;  %v1162_v6 = vld [vmem:[%s1885_s0 + $0x4] ss:$8 sps:$4 sm:$0xff]   ;;  %v1150_v9 = vld [vmem:[%s1884_s1 + $0x30] sm:$0xff]   ;;  %v1151_v10 = vld [vmem:[%s1884_s1 + $0x38] sm:$0xff]  }
   0x4   :  { %v1165_v8 = vld [vmem:[%s1885_s0 + $0x104] ss:$8 sps:$4 sm:$0xff]   ;;  %562 = vmatprep.mubr.bf16.mxu0 %v1162_v6  ;;  %v1154_v13 = vld [vmem:[%s1884_s1 + $0x50] sm:$0xff]   ;;  %v1155_v14 = vld [vmem:[%s1884_s1 + $0x58] sm:$0xff]  }
   0x5   :  { %690 = vmatprep.mubr.bf16.mxu1 %v1165_v8  ;;  %v1152_v11 = vld [vmem:[%s1884_s1 + $0x40] sm:$0xff]   ;;  %v1153_v12 = vld [vmem:[%s1884_s1 + $0x48] sm:$0xff]   ;;  %v1158_v17 = vld [vmem:[%s1884_s1 + $0x70] sm:$0xff]  }
   0x6   :  { %533 = vmatpush1.bf16.msra.mxu0 %v1145_v2  ;;  %1128 = vmatpush1.bf16.msra.mxu1 %v1145_v2  ;;  %v1156_v15 = vld [vmem:[%s1884_s1 + $0x60] sm:$0xff]   ;;  %v1157_v16 = vld [vmem:[%s1884_s1 + $0x68] sm:$0xff]   ;;  %v1159_v18 = vld [vmem:[%s1884_s1 + $0x78] sm:$0xff]  }
   0x7   :  { %534 = vmatprep.subr.bf16.mxu0 %v1256_v0  ;;  %1113 = vmatprep.subr.bf16.mxu1 %v1256_v0  ;;  %v1160_v19 = vld [vmem:[%s1885_s0] ss:$8 sps:$4 sm:$0xff]   ;;  %v1166_v21 = vld [vmem:[%s1885_s0 + $0x14] ss:$8 sps:$4 sm:$0xff]   ;;  %v1170_v23 = vld [vmem:[%s1885_s0 + $0x10] ss:$8 sps:$4 sm:$0xff]  }
   0x8   :  { %v1163_v20 = vld [vmem:[%s1885_s0 + $0x100] ss:$8 sps:$4 sm:$0xff]   ;;  %v1168_v22 = vld [vmem:[%s1885_s0 + $0x114] ss:$8 sps:$4 sm:$0xff]   ;;  %v1171_v24 = vld [vmem:[%s1885_s0 + $0x110] ss:$8 sps:$4 sm:$0xff]  }
   0x9   :  { %v1172_v25 = vld [vmem:[%s1885_s0 + $0x24] ss:$8 sps:$4 sm:$0xff]   ;;  %v1176_v27 = vld [vmem:[%s1885_s0 + $0x20] ss:$8 sps:$4 sm:$0xff]   ;;  %v1178_v29 = vld [vmem:[%s1885_s0 + $0x34] ss:$8 sps:$4 sm:$0xff]  }
   0xa   :  { %535 = vmatpush1.bf16.msra.mxu0 %v1146_v3  ;;  %1129 = vmatpush1.bf16.msra.mxu1 %v1146_v3  ;;  %v1174_v26 = vld [vmem:[%s1885_s0 + $0x124] ss:$8 sps:$4 sm:$0xff]   ;;  %v1177_v28 = vld [vmem:[%s1885_s0 + $0x120] ss:$8 sps:$4 sm:$0xff]   ;;  %v1180_v30 = vld [vmem:[%s1885_s0 + $0x134] ss:$8 sps:$4 sm:$0xff]  }
   0xb   :  { %536 = vmatprep.subr.bf16.mxu0 %v1256_v0  ;;  %1114 = vmatprep.subr.bf16.mxu1 %v1256_v0  ;;  %v1182_v31 = vld [vmem:[%s1885_s0 + $0x30] ss:$8 sps:$4 sm:$0xff]   ;;  %v1184_v33 = vld [vmem:[%s1885_s0 + $0x44] ss:$8 sps:$4 sm:$0xff]   ;;  %v1188_v35 = vld [vmem:[%s1885_s0 + $0x40] ss:$8 sps:$4 sm:$0xff]  }
   0xc   :  { %v1183_v32 = vld [vmem:[%s1885_s0 + $0x130] ss:$8 sps:$4 sm:$0xff]   ;;  %v1186_v34 = vld [vmem:[%s1885_s0 + $0x144] ss:$8 sps:$4 sm:$0xff]   ;;  %v1189_v36 = vld [vmem:[%s1885_s0 + $0x140] ss:$8 sps:$4 sm:$0xff]  }
   0xd   :  { %v1190_v37 = vld [vmem:[%s1885_s0 + $0x54] ss:$8 sps:$4 sm:$0xff]   ;;  %v1194_v39 = vld [vmem:[%s1885_s0 + $0x50] ss:$8 sps:$4 sm:$0xff]   ;;  %v1196_v41 = vld [vmem:[%s1885_s0 + $0x64] ss:$8 sps:$4 sm:$0xff]  }
   0xe   :  { %537 = vmatpush1.bf16.msra.mxu0 %v1147_v4  ;;  %1130 = vmatpush1.bf16.msra.mxu1 %v1147_v4  ;;  %v1192_v38 = vld [vmem:[%s1885_s0 + $0x154] ss:$8 sps:$4 sm:$0xff]   ;;  %v1195_v40 = vld [vmem:[%s1885_s0 + $0x150] ss:$8 sps:$4 sm:$0xff]   ;;  %v1198_v42 = vld [vmem:[%s1885_s0 + $0x164] ss:$8 sps:$4 sm:$0xff]  }
   0xf   :  { %538 = vmatprep.subr.bf16.mxu0 %v1256_v0  ;;  %1115 = vmatprep.subr.bf16.mxu1 %v1256_v0  ;;  %v1200_v43 = vld [vmem:[%s1885_s0 + $0x60] ss:$8 sps:$4 sm:$0xff]   ;;  %v1202_v45 = vld [vmem:[%s1885_s0 + $0x74] ss:$8 sps:$4 sm:$0xff]   ;;  %v1206_v47 = vld [vmem:[%s1885_s0 + $0x70] ss:$8 sps:$4 sm:$0xff]  }
  0x10   :  { %v1201_v44 = vld [vmem:[%s1885_s0 + $0x160] ss:$8 sps:$4 sm:$0xff]   ;;  %v1204_v46 = vld [vmem:[%s1885_s0 + $0x174] ss:$8 sps:$4 sm:$0xff]   ;;  %v1207_v48 = vld [vmem:[%s1885_s0 + $0x170] ss:$8 sps:$4 sm:$0xff]  }
  0x11   :  { %v1208_v49 = vld [vmem:[%s1885_s0 + $0x84] ss:$8 sps:$4 sm:$0xff]   ;;  %v1212_v51 = vld [vmem:[%s1885_s0 + $0x80] ss:$8 sps:$4 sm:$0xff]   ;;  %v1214_v53 = vld [vmem:[%s1885_s0 + $0x94] ss:$8 sps:$4 sm:$0xff]  }
  0x12   :  { %539 = vmatpush1.bf16.msra.mxu0 %v1148_v5  ;;  %1131 = vmatpush1.bf16.msra.mxu1 %v1148_v5  ;;  %v1210_v50 = vld [vmem:[%s1885_s0 + $0x184] ss:$8 sps:$4 sm:$0xff]   ;;  %v1213_v52 = vld [vmem:[%s1885_s0 + $0x180] ss:$8 sps:$4 sm:$0xff]   ;;  %v1216_v54 = vld [vmem:[%s1885_s0 + $0x194] ss:$8 sps:$4 sm:$0xff]  }
  0x13   :  { %540 = vmatprep.subr.bf16.mxu0 %v1256_v0  ;;  %1116 = vmatprep.subr.bf16.mxu1 %v1256_v0  ;;  %v1218_v55 = vld [vmem:[%s1885_s0 + $0x90] ss:$8 sps:$4 sm:$0xff]   ;;  %v1220_v57 = vld [vmem:[%s1885_s0 + $0xa4] ss:$8 sps:$4 sm:$0xff]   ;;  %v1224_v59 = vld [vmem:[%s1885_s0 + $0xa0] ss:$8 sps:$4 sm:$0xff]  }
  0x14   :  { %v1219_v56 = vld [vmem:[%s1885_s0 + $0x190] ss:$8 sps:$4 sm:$0xff]   ;;  %v1222_v58 = vld [vmem:[%s1885_s0 + $0x1a4] ss:$8 sps:$4 sm:$0xff]   ;;  %v1225_v60 = vld [vmem:[%s1885_s0 + $0x1a0] ss:$8 sps:$4 sm:$0xff]  }
  0x15   :  { %v1226_v61 = vld [vmem:[%s1885_s0 + $0xb4] ss:$8 sps:$4 sm:$0xff]   ;;  %v1230_v63 = vld [vmem:[%s1885_s0 + $0xb0] ss:$8 sps:$4 sm:$0xff]   ;;  %v1232_v1 = vld [vmem:[%s1885_s0 + $0xc4] ss:$8 sps:$4 sm:$0xff]  }
  0x16   :  { %541 = vmatpush1.bf16.msra.mxu0 %v1149_v7  ;;  %1132 = vmatpush1.bf16.msra.mxu1 %v1149_v7  ;;  %v1228_v62 = vld [vmem:[%s1885_s0 + $0x1b4] ss:$8 sps:$4 sm:$0xff]   ;;  %v1234_v2 = vld [vmem:[%s1885_s0 + $0x1c4] ss:$8 sps:$4 sm:$0xff]   ;;  %v1236_v3 = vld [vmem:[%s1885_s0 + $0xc0] ss:$8 sps:$4 sm:$0xff]  }
  0x17   :  { %542 = vmatprep.subr.bf16.mxu0 %v1256_v0  ;;  %1117 = vmatprep.subr.bf16.mxu1 %v1256_v0  ;;  %v1237_v4 = vld [vmem:[%s1885_s0 + $0x1c0] ss:$8 sps:$4 sm:$0xff]   ;;  %v1238_v5 = vld [vmem:[%s1885_s0 + $0xd4] ss:$8 sps:$4 sm:$0xff]   ;;  %v1242_v7 = vld [vmem:[%s1885_s0 + $0xd0] ss:$8 sps:$4 sm:$0xff]  }
  0x18   :  { %v1240_v6 = vld [vmem:[%s1885_s0 + $0x1d4] ss:$8 sps:$4 sm:$0xff]   ;;  %v1243_v8 = vld [vmem:[%s1885_s0 + $0x1d0] ss:$8 sps:$4 sm:$0xff]  }
  0x1a   :  { %543 = vmatpush1.bf16.msra.mxu0 %v1150_v9  ;;  %1133 = vmatpush1.bf16.msra.mxu1 %v1150_v9  ;;  %v1244_v9 = vld [vmem:[%s1885_s0 + $0xe4] ss:$8 sps:$4 sm:$0xff]  }
  0x1b   :  { %544 = vmatprep.subr.bf16.mxu0 %v1256_v0  ;;  %1118 = vmatprep.subr.bf16.mxu1 %v1256_v0 }
  0x1e   :  { %545 = vmatpush1.bf16.msra.mxu0 %v1151_v10  ;;  %1134 = vmatpush1.bf16.msra.mxu1 %v1151_v10  ;;  %v1246_v10 = vld [vmem:[%s1885_s0 + $0x1e4] ss:$8 sps:$4 sm:$0xff]  }
  0x1f   :  { %546 = vmatprep.subr.bf16.mxu0 %v1256_v0  ;;  %1119 = vmatprep.subr.bf16.mxu1 %v1256_v0 }
  0x22   :  { %547 = vmatpush1.bf16.msra.mxu0 %v1152_v11  ;;  %1135 = vmatpush1.bf16.msra.mxu1 %v1152_v11  ;;  %v1248_v11 = vld [vmem:[%s1885_s0 + $0xe0] ss:$8 sps:$4 sm:$0xff]  }
  0x23   :  { %548 = vmatprep.subr.bf16.mxu0 %v1256_v0  ;;  %1120 = vmatprep.subr.bf16.mxu1 %v1256_v0 }
  0x26   :  { %549 = vmatpush1.bf16.msra.mxu0 %v1153_v12  ;;  %1136 = vmatpush1.bf16.msra.mxu1 %v1153_v12  ;;  %v1249_v12 = vld [vmem:[%s1885_s0 + $0x1e0] ss:$8 sps:$4 sm:$0xff]  }
  0x27   :  { %550 = vmatprep.subr.bf16.mxu0 %v1256_v0  ;;  %1121 = vmatprep.subr.bf16.mxu1 %v1256_v0 }
  0x2a   :  { %551 = vmatpush1.bf16.msra.mxu0 %v1154_v13  ;;  %1137 = vmatpush1.bf16.msra.mxu1 %v1154_v13  ;;  %v1250_v13 = vld [vmem:[%s1885_s0 + $0xf4] ss:$8 sps:$4 sm:$0xff]  }
  0x2b   :  { %552 = vmatprep.subr.bf16.mxu0 %v1256_v0  ;;  %1122 = vmatprep.subr.bf16.mxu1 %v1256_v0 }
  0x2e   :  { %553 = vmatpush1.bf16.msra.mxu0 %v1155_v14  ;;  %1138 = vmatpush1.bf16.msra.mxu1 %v1155_v14  ;;  %v1252_v14 = vld [vmem:[%s1885_s0 + $0x1f4] ss:$8 sps:$4 sm:$0xff]  }
  0x2f   :  { %554 = vmatprep.subr.bf16.mxu0 %v1256_v0  ;;  %1123 = vmatprep.subr.bf16.mxu1 %v1256_v0 }
  0x32   :  { %555 = vmatpush1.bf16.msra.mxu0 %v1156_v15  ;;  %1139 = vmatpush1.bf16.msra.mxu1 %v1156_v15  ;;  %v1254_v15 = vld [vmem:[%s1885_s0 + $0xf0] ss:$8 sps:$4 sm:$0xff]  }
  0x33   :  { %556 = vmatprep.subr.bf16.mxu0 %v1256_v0  ;;  %1124 = vmatprep.subr.bf16.mxu1 %v1256_v0 }
  0x36   :  { %557 = vmatpush1.bf16.msra.mxu0 %v1157_v16  ;;  %1140 = vmatpush1.bf16.msra.mxu1 %v1157_v16  ;;  %v1255_v16 = vld [vmem:[%s1885_s0 + $0x1f0] ss:$8 sps:$4 sm:$0xff]  }
  0x37   :  { %558 = vmatprep.subr.bf16.mxu0 %v1256_v0  ;;  %1125 = vmatprep.subr.bf16.mxu1 %v1256_v0 }
  0x3a   :  { %559 = vmatpush1.bf16.msra.mxu0 %v1158_v17  ;;  %1141 = vmatpush1.bf16.msra.mxu1 %v1158_v17  ;;  %v1557_v17 = vld [vmem:[%s1886_s2] ss:$0 sm:$0xff] }
  0x3b   :  { %560 = vmatprep.subr.bf16.mxu0 %v1256_v0  ;;  %1126 = vmatprep.subr.bf16.mxu1 %v1256_v0  ;;  %v1231_v0 = vld [vmem:[%s1885_s0 + $0x1b0] ss:$8 sps:$4 sm:$0xff]  }
  0x3e   :  { %561 = vmatpush1.bf16.msra.mxu0 %v1159_v18  ;;  %1142 = vmatpush1.bf16.msra.mxu1 %v1159_v18 }
  0x41   :  { %563 = vmatmul.mubr.bf16.vlgmr.msra.gmra.mrb[0].mxu0 %v1160_v19  ;;  %691 = vmatmul.mubr.bf16.vlgmr.msra.gmra.mrb[0].mxu1 %v1163_v20  ;;  %v1562_v19 = vld [vmem:[%s1887_s3] ss:$0 sm:$0xff] }
  0x42   :  { %570 = vmatprep.mubr.bf16.mxu0 %v1166_v21  ;;  %698 = vmatprep.mubr.bf16.mxu1 %v1168_v22 }
  0x49   :  { %571 = vmatmul.mubr.bf16.gmra.mrb[4].mxu0 %v1170_v23  ;;  %699 = vmatmul.mubr.bf16.gmra.mrb[4].mxu1 %v1171_v24 }
  0x4a   :  { %578 = vmatprep.mubr.bf16.mxu0 %v1172_v25  ;;  %706 = vmatprep.mubr.bf16.mxu1 %v1174_v26 }
  0x51   :  { %579 = vmatmul.mubr.bf16.gmra.mrb[8].mxu0 %v1176_v27  ;;  %707 = vmatmul.mubr.bf16.gmra.mrb[8].mxu1 %v1177_v28 }
  0x52   :  { %586 = vmatprep.mubr.bf16.mxu0 %v1178_v29  ;;  %714 = vmatprep.mubr.bf16.mxu1 %v1180_v30 }
  0x59   :  { %587 = vmatmul.mubr.bf16.gmra.mrb[12].mxu0 %v1182_v31  ;;  %715 = vmatmul.mubr.bf16.gmra.mrb[12].mxu1 %v1183_v32 }
  0x5a   :  { %594 = vmatprep.mubr.bf16.mxu0 %v1184_v33  ;;  %722 = vmatprep.mubr.bf16.mxu1 %v1186_v34 }
  0x61   :  { %595 = vmatmul.mubr.bf16.gmra.mrb[16].mxu0 %v1188_v35  ;;  %723 = vmatmul.mubr.bf16.gmra.mrb[16].mxu1 %v1189_v36 }
  0x62   :  { %602 = vmatprep.mubr.bf16.mxu0 %v1190_v37  ;;  %730 = vmatprep.mubr.bf16.mxu1 %v1192_v38 }
  0x69   :  { %603 = vmatmul.mubr.bf16.gmra.mrb[20].mxu0 %v1194_v39  ;;  %731 = vmatmul.mubr.bf16.gmra.mrb[20].mxu1 %v1195_v40 }
  0x6a   :  { %610 = vmatprep.mubr.bf16.mxu0 %v1196_v41  ;;  %738 = vmatprep.mubr.bf16.mxu1 %v1198_v42 }
  0x71   :  { %611 = vmatmul.mubr.bf16.gmra.mrb[24].mxu0 %v1200_v43  ;;  %739 = vmatmul.mubr.bf16.gmra.mrb[24].mxu1 %v1201_v44 }
  0x72   :  { %618 = vmatprep.mubr.bf16.mxu0 %v1202_v45  ;;  %746 = vmatprep.mubr.bf16.mxu1 %v1204_v46 }
  0x79   :  { %619 = vmatmul.mubr.bf16.gmra.mrb[28].mxu0 %v1206_v47  ;;  %747 = vmatmul.mubr.bf16.gmra.mrb[28].mxu1 %v1207_v48 }
  0x7a   :  { %626 = vmatprep.mubr.bf16.mxu0 %v1208_v49  ;;  %754 = vmatprep.mubr.bf16.mxu1 %v1210_v50 }
  0x81   :  { %627 = vmatmul.mubr.bf16.gmra.mrb[32].mxu0 %v1212_v51  ;;  %755 = vmatmul.mubr.bf16.gmra.mrb[32].mxu1 %v1213_v52 }
  0x82   :  { %634 = vmatprep.mubr.bf16.mxu0 %v1214_v53  ;;  %762 = vmatprep.mubr.bf16.mxu1 %v1216_v54 }
  0x89   :  { %635 = vmatmul.mubr.bf16.gmra.mrb[36].mxu0 %v1218_v55  ;;  %763 = vmatmul.mubr.bf16.gmra.mrb[36].mxu1 %v1219_v56 }
  0x8a   :  { %642 = vmatprep.mubr.bf16.mxu0 %v1220_v57  ;;  %770 = vmatprep.mubr.bf16.mxu1 %v1222_v58 }
  0x91   :  { %643 = vmatmul.mubr.bf16.gmra.mrb[40].mxu0 %v1224_v59  ;;  %771 = vmatmul.mubr.bf16.gmra.mrb[40].mxu1 %v1225_v60 }
  0x92   :  { %650 = vmatprep.mubr.bf16.mxu0 %v1226_v61  ;;  %778 = vmatprep.mubr.bf16.mxu1 %v1228_v62 }
  0x99   :  { %651 = vmatmul.mubr.bf16.gmra.mrb[44].mxu0 %v1230_v63  ;;  %779 = vmatmul.mubr.bf16.gmra.mrb[44].mxu1 %v1231_v0 }
  0x9a   :  { %658 = vmatprep.mubr.bf16.mxu0 %v1232_v1  ;;  %786 = vmatprep.mubr.bf16.mxu1 %v1234_v2 }
  0xa1   :  { %659 = vmatmul.mubr.bf16.gmra.mrb[48].mxu0 %v1236_v3  ;;  %787 = vmatmul.mubr.bf16.gmra.mrb[48].mxu1 %v1237_v4 }
  0xa2   :  { %666 = vmatprep.mubr.bf16.mxu0 %v1238_v5  ;;  %794 = vmatprep.mubr.bf16.mxu1 %v1240_v6 }
  0xa9   :  { %667 = vmatmul.mubr.bf16.gmra.mrb[52].mxu0 %v1242_v7  ;;  %795 = vmatmul.mubr.bf16.gmra.mrb[52].mxu1 %v1243_v8 }
  0xaa   :  { %674 = vmatprep.mubr.bf16.mxu0 %v1244_v9  ;;  %802 = vmatprep.mubr.bf16.mxu1 %v1246_v10 }
  0xb1   :  { %675 = vmatmul.mubr.bf16.gmra.mrb[56].mxu0 %v1248_v11  ;;  %803 = vmatmul.mubr.bf16.gmra.mrb[56].mxu1 %v1249_v12 }
  0xb2   :  { %682 = vmatprep.mubr.bf16.mxu0 %v1250_v13  ;;  %810 = vmatprep.mubr.bf16.mxu1 %v1252_v14 }
  0xb9   :  { %683 = vmatmul.mubr.bf16.gmra.mrb[60].mxu0 %v1254_v15  ;;  %811 = vmatmul.mubr.bf16.gmra.mrb[60].mxu1 %v1255_v16 }
 0x114   :  { %v564_v18 = vpop.f32.mrb[0].mxu0  ;;  %v692_v20 = vpop.f32.mrb[0].mxu1 }
 0x115   :  { %v826_v21 = vmul.f32 %v1557_v17, %v564_v18  ;;  %v858_v22 = vmul.f32 %v1557_v17, %v692_v20  ;;  %v566_v23 = vpop.f32.mrb[1].mxu0  ;;  %v694_v24 = vpop.f32.mrb[1].mxu1 }
 0x116   :  { %v567_v25 = vpop.f32.mrb[2].mxu0  ;;  %v695_v26 = vpop.f32.mrb[2].mxu1 }
 0x117   :  { %v897_v27 = vadd.f32 %v1562_v19, %v826_v21  ;;  %v929_v28 = vadd.f32 %v1562_v19, %v858_v22  ;;  %v827_v29 = vmul.f32 %v1557_v17, %v567_v25  ;;  %v859_v30 = vmul.f32 %v1557_v17, %v695_v26  ;;  %v569_v31 = vpop.f32.mrb[3].mxu0  ;;  %v697_v32 = vpop.f32.mrb[3].mxu1 }
 0x119   :  { %961 = vst [vmem:[%s1888_s4] sm:$0xff] %v897_v27  ;;  %993 = vst [vmem:[%s1888_s4 + $0x100] sm:$0xff] %v929_v28  ;;  %v898_v33 = vadd.f32 %v1562_v19, %v827_v29  ;;  %v930_v34 = vadd.f32 %v1562_v19, %v859_v30 }
 0x11b   :  { %962 = vst [vmem:[%s1888_s4 + $0x8] sm:$0xff] %v898_v33  ;;  %994 = vst [vmem:[%s1888_s4 + $0x108] sm:$0xff] %v930_v34 }
 0x11c   :  { %v572_v35 = vpop.f32.mrb[4].mxu0  ;;  %v700_v36 = vpop.f32.mrb[4].mxu1 }
 0x11d   :  { %v828_v37 = vmul.f32 %v1557_v17, %v572_v35  ;;  %v860_v38 = vmul.f32 %v1557_v17, %v700_v36  ;;  %v574_v39 = vpop.f32.mrb[5].mxu0  ;;  %v702_v40 = vpop.f32.mrb[5].mxu1 }
 0x11e   :  { %v575_v41 = vpop.f32.mrb[6].mxu0  ;;  %v703_v42 = vpop.f32.mrb[6].mxu1 }
 0x11f   :  { %v899_v43 = vadd.f32 %v1562_v19, %v828_v37  ;;  %v931_v44 = vadd.f32 %v1562_v19, %v860_v38  ;;  %v829_v45 = vmul.f32 %v1557_v17, %v575_v41  ;;  %v861_v46 = vmul.f32 %v1557_v17, %v703_v42  ;;  %v577_v47 = vpop.f32.mrb[7].mxu0  ;;  %v705_v48 = vpop.f32.mrb[7].mxu1 }
 0x121   :  { %963 = vst [vmem:[%s1888_s4 + $0x10] sm:$0xff] %v899_v43  ;;  %995 = vst [vmem:[%s1888_s4 + $0x110] sm:$0xff] %v931_v44  ;;  %v900_v49 = vadd.f32 %v1562_v19, %v829_v45  ;;  %v932_v50 = vadd.f32 %v1562_v19, %v861_v46 }
 0x123   :  { %964 = vst [vmem:[%s1888_s4 + $0x18] sm:$0xff] %v900_v49  ;;  %996 = vst [vmem:[%s1888_s4 + $0x118] sm:$0xff] %v932_v50 }
 0x124   :  { %v580_v51 = vpop.f32.mrb[8].mxu0  ;;  %v708_v52 = vpop.f32.mrb[8].mxu1 }
 0x125   :  { %v830_v53 = vmul.f32 %v1557_v17, %v580_v51  ;;  %v862_v54 = vmul.f32 %v1557_v17, %v708_v52  ;;  %v582_v55 = vpop.f32.mrb[9].mxu0  ;;  %v710_v56 = vpop.f32.mrb[9].mxu1 }
 0x126   :  { %v583_v57 = vpop.f32.mrb[10].mxu0  ;;  %v711_v58 = vpop.f32.mrb[10].mxu1 }
 0x127   :  { %v901_v59 = vadd.f32 %v1562_v19, %v830_v53  ;;  %v933_v60 = vadd.f32 %v1562_v19, %v862_v54  ;;  %v831_v61 = vmul.f32 %v1557_v17, %v583_v57  ;;  %v863_v62 = vmul.f32 %v1557_v17, %v711_v58  ;;  %v585_v63 = vpop.f32.mrb[11].mxu0  ;;  %v713_v0 = vpop.f32.mrb[11].mxu1 }
 0x129   :  { %965 = vst [vmem:[%s1888_s4 + $0x20] sm:$0xff] %v901_v59  ;;  %997 = vst [vmem:[%s1888_s4 + $0x120] sm:$0xff] %v933_v60  ;;  %v902_v1 = vadd.f32 %v1562_v19, %v831_v61  ;;  %v934_v2 = vadd.f32 %v1562_v19, %v863_v62 }
 0x12b   :  { %966 = vst [vmem:[%s1888_s4 + $0x28] sm:$0xff] %v902_v1  ;;  %998 = vst [vmem:[%s1888_s4 + $0x128] sm:$0xff] %v934_v2 }
 0x12c   :  { %v588_v3 = vpop.f32.mrb[12].mxu0  ;;  %v716_v4 = vpop.f32.mrb[12].mxu1 }
 0x12d   :  { %v832_v5 = vmul.f32 %v1557_v17, %v588_v3  ;;  %v864_v6 = vmul.f32 %v1557_v17, %v716_v4  ;;  %v590_v7 = vpop.f32.mrb[13].mxu0  ;;  %v718_v8 = vpop.f32.mrb[13].mxu1 }
 0x12e   :  { %v591_v9 = vpop.f32.mrb[14].mxu0  ;;  %v719_v10 = vpop.f32.mrb[14].mxu1 }
 0x12f   :  { %v903_v11 = vadd.f32 %v1562_v19, %v832_v5  ;;  %v935_v12 = vadd.f32 %v1562_v19, %v864_v6  ;;  %v833_v13 = vmul.f32 %v1557_v17, %v591_v9  ;;  %v865_v14 = vmul.f32 %v1557_v17, %v719_v10  ;;  %v593_v15 = vpop.f32.mrb[15].mxu0  ;;  %v721_v16 = vpop.f32.mrb[15].mxu1 }
 0x131   :  { %967 = vst [vmem:[%s1888_s4 + $0x30] sm:$0xff] %v903_v11  ;;  %999 = vst [vmem:[%s1888_s4 + $0x130] sm:$0xff] %v935_v12  ;;  %v904_v18 = vadd.f32 %v1562_v19, %v833_v13  ;;  %v936_v20 = vadd.f32 %v1562_v19, %v865_v14 }
 0x133   :  { %968 = vst [vmem:[%s1888_s4 + $0x38] sm:$0xff] %v904_v18  ;;  %1000 = vst [vmem:[%s1888_s4 + $0x138] sm:$0xff] %v936_v20 }
 0x134   :  { %v596_v21 = vpop.f32.mrb[16].mxu0  ;;  %v724_v22 = vpop.f32.mrb[16].mxu1 }
 0x135   :  { %v834_v23 = vmul.f32 %v1557_v17, %v596_v21  ;;  %v866_v24 = vmul.f32 %v1557_v17, %v724_v22  ;;  %v598_v25 = vpop.f32.mrb[17].mxu0  ;;  %v726_v26 = vpop.f32.mrb[17].mxu1 }
 0x136   :  { %v599_v27 = vpop.f32.mrb[18].mxu0  ;;  %v727_v28 = vpop.f32.mrb[18].mxu1 }
 0x137   :  { %v905_v29 = vadd.f32 %v1562_v19, %v834_v23  ;;  %v937_v30 = vadd.f32 %v1562_v19, %v866_v24  ;;  %v835_v31 = vmul.f32 %v1557_v17, %v599_v27  ;;  %v867_v32 = vmul.f32 %v1557_v17, %v727_v28  ;;  %v601_v33 = vpop.f32.mrb[19].mxu0  ;;  %v729_v34 = vpop.f32.mrb[19].mxu1 }
 0x139   :  { %969 = vst [vmem:[%s1888_s4 + $0x40] sm:$0xff] %v905_v29  ;;  %1001 = vst [vmem:[%s1888_s4 + $0x140] sm:$0xff] %v937_v30  ;;  %v906_v35 = vadd.f32 %v1562_v19, %v835_v31  ;;  %v938_v36 = vadd.f32 %v1562_v19, %v867_v32 }
 0x13b   :  { %970 = vst [vmem:[%s1888_s4 + $0x48] sm:$0xff] %v906_v35  ;;  %1002 = vst [vmem:[%s1888_s4 + $0x148] sm:$0xff] %v938_v36 }
 0x13c   :  { %v604_v37 = vpop.f32.mrb[20].mxu0  ;;  %v732_v38 = vpop.f32.mrb[20].mxu1 }
 0x13d   :  { %v836_v39 = vmul.f32 %v1557_v17, %v604_v37  ;;  %v868_v40 = vmul.f32 %v1557_v17, %v732_v38  ;;  %v606_v41 = vpop.f32.mrb[21].mxu0  ;;  %v734_v42 = vpop.f32.mrb[21].mxu1 }
 0x13e   :  { %v607_v43 = vpop.f32.mrb[22].mxu0  ;;  %v735_v44 = vpop.f32.mrb[22].mxu1 }
 0x13f   :  { %v907_v45 = vadd.f32 %v1562_v19, %v836_v39  ;;  %v939_v46 = vadd.f32 %v1562_v19, %v868_v40  ;;  %v837_v47 = vmul.f32 %v1557_v17, %v607_v43  ;;  %v869_v48 = vmul.f32 %v1557_v17, %v735_v44  ;;  %v609_v49 = vpop.f32.mrb[23].mxu0  ;;  %v737_v50 = vpop.f32.mrb[23].mxu1 }
 0x141   :  { %971 = vst [vmem:[%s1888_s4 + $0x50] sm:$0xff] %v907_v45  ;;  %1003 = vst [vmem:[%s1888_s4 + $0x150] sm:$0xff] %v939_v46  ;;  %v908_v51 = vadd.f32 %v1562_v19, %v837_v47  ;;  %v940_v52 = vadd.f32 %v1562_v19, %v869_v48 }
 0x143   :  { %972 = vst [vmem:[%s1888_s4 + $0x58] sm:$0xff] %v908_v51  ;;  %1004 = vst [vmem:[%s1888_s4 + $0x158] sm:$0xff] %v940_v52 }
 0x144   :  { %v612_v53 = vpop.f32.mrb[24].mxu0  ;;  %v740_v54 = vpop.f32.mrb[24].mxu1 }
 0x145   :  { %v838_v55 = vmul.f32 %v1557_v17, %v612_v53  ;;  %v870_v56 = vmul.f32 %v1557_v17, %v740_v54  ;;  %v614_v57 = vpop.f32.mrb[25].mxu0  ;;  %v742_v58 = vpop.f32.mrb[25].mxu1 }
 0x146   :  { %v615_v59 = vpop.f32.mrb[26].mxu0  ;;  %v743_v60 = vpop.f32.mrb[26].mxu1 }
 0x147   :  { %v909_v61 = vadd.f32 %v1562_v19, %v838_v55  ;;  %v941_v62 = vadd.f32 %v1562_v19, %v870_v56  ;;  %v839_v63 = vmul.f32 %v1557_v17, %v615_v59  ;;  %v871_v0 = vmul.f32 %v1557_v17, %v743_v60  ;;  %v617_v1 = vpop.f32.mrb[27].mxu0  ;;  %v745_v2 = vpop.f32.mrb[27].mxu1 }
 0x149   :  { %973 = vst [vmem:[%s1888_s4 + $0x60] sm:$0xff] %v909_v61  ;;  %1005 = vst [vmem:[%s1888_s4 + $0x160] sm:$0xff] %v941_v62  ;;  %v910_v3 = vadd.f32 %v1562_v19, %v839_v63  ;;  %v942_v4 = vadd.f32 %v1562_v19, %v871_v0 }
 0x14b   :  { %974 = vst [vmem:[%s1888_s4 + $0x68] sm:$0xff] %v910_v3  ;;  %1006 = vst [vmem:[%s1888_s4 + $0x168] sm:$0xff] %v942_v4 }
 0x14c   :  { %v620_v5 = vpop.f32.mrb[28].mxu0  ;;  %v748_v6 = vpop.f32.mrb[28].mxu1 }
 0x14d   :  { %v840_v7 = vmul.f32 %v1557_v17, %v620_v5  ;;  %v872_v8 = vmul.f32 %v1557_v17, %v748_v6  ;;  %v622_v9 = vpop.f32.mrb[29].mxu0  ;;  %v750_v10 = vpop.f32.mrb[29].mxu1 }
 0x14e   :  { %v623_v11 = vpop.f32.mrb[30].mxu0  ;;  %v751_v12 = vpop.f32.mrb[30].mxu1 }
 0x14f   :  { %v911_v13 = vadd.f32 %v1562_v19, %v840_v7  ;;  %v943_v14 = vadd.f32 %v1562_v19, %v872_v8  ;;  %v841_v15 = vmul.f32 %v1557_v17, %v623_v11  ;;  %v873_v16 = vmul.f32 %v1557_v17, %v751_v12  ;;  %v625_v18 = vpop.f32.mrb[31].mxu0  ;;  %v753_v20 = vpop.f32.mrb[31].mxu1 }
 0x151   :  { %975 = vst [vmem:[%s1888_s4 + $0x70] sm:$0xff] %v911_v13  ;;  %1007 = vst [vmem:[%s1888_s4 + $0x170] sm:$0xff] %v943_v14  ;;  %v912_v21 = vadd.f32 %v1562_v19, %v841_v15  ;;  %v944_v22 = vadd.f32 %v1562_v19, %v873_v16 }
 0x153   :  { %976 = vst [vmem:[%s1888_s4 + $0x78] sm:$0xff] %v912_v21  ;;  %1008 = vst [vmem:[%s1888_s4 + $0x178] sm:$0xff] %v944_v22 }
 0x154   :  { %v628_v23 = vpop.f32.mrb[32].mxu0  ;;  %v756_v24 = vpop.f32.mrb[32].mxu1 }
 0x155   :  { %v842_v25 = vmul.f32 %v1557_v17, %v628_v23  ;;  %v874_v26 = vmul.f32 %v1557_v17, %v756_v24  ;;  %v630_v27 = vpop.f32.mrb[33].mxu0  ;;  %v758_v28 = vpop.f32.mrb[33].mxu1 }
 0x156   :  { %v631_v29 = vpop.f32.mrb[34].mxu0  ;;  %v759_v30 = vpop.f32.mrb[34].mxu1 }
 0x157   :  { %v913_v31 = vadd.f32 %v1562_v19, %v842_v25  ;;  %v945_v32 = vadd.f32 %v1562_v19, %v874_v26  ;;  %v843_v33 = vmul.f32 %v1557_v17, %v631_v29  ;;  %v875_v34 = vmul.f32 %v1557_v17, %v759_v30  ;;  %v633_v35 = vpop.f32.mrb[35].mxu0  ;;  %v761_v36 = vpop.f32.mrb[35].mxu1 }
 0x159   :  { %977 = vst [vmem:[%s1888_s4 + $0x80] sm:$0xff] %v913_v31  ;;  %1009 = vst [vmem:[%s1888_s4 + $0x180] sm:$0xff] %v945_v32  ;;  %v914_v37 = vadd.f32 %v1562_v19, %v843_v33  ;;  %v946_v38 = vadd.f32 %v1562_v19, %v875_v34 }
 0x15b   :  { %978 = vst [vmem:[%s1888_s4 + $0x88] sm:$0xff] %v914_v37  ;;  %1010 = vst [vmem:[%s1888_s4 + $0x188] sm:$0xff] %v946_v38 }
 0x15c   :  { %v636_v39 = vpop.f32.mrb[36].mxu0  ;;  %v764_v40 = vpop.f32.mrb[36].mxu1 }
 0x15d   :  { %v844_v41 = vmul.f32 %v1557_v17, %v636_v39  ;;  %v876_v42 = vmul.f32 %v1557_v17, %v764_v40  ;;  %v638_v43 = vpop.f32.mrb[37].mxu0  ;;  %v766_v44 = vpop.f32.mrb[37].mxu1 }
 0x15e   :  { %v639_v45 = vpop.f32.mrb[38].mxu0  ;;  %v767_v46 = vpop.f32.mrb[38].mxu1 }
 0x15f   :  { %v915_v47 = vadd.f32 %v1562_v19, %v844_v41  ;;  %v947_v48 = vadd.f32 %v1562_v19, %v876_v42  ;;  %v845_v49 = vmul.f32 %v1557_v17, %v639_v45  ;;  %v877_v50 = vmul.f32 %v1557_v17, %v767_v46  ;;  %v641_v51 = vpop.f32.mrb[39].mxu0  ;;  %v769_v52 = vpop.f32.mrb[39].mxu1 }
 0x161   :  { %979 = vst [vmem:[%s1888_s4 + $0x90] sm:$0xff] %v915_v47  ;;  %1011 = vst [vmem:[%s1888_s4 + $0x190] sm:$0xff] %v947_v48  ;;  %v916_v53 = vadd.f32 %v1562_v19, %v845_v49  ;;  %v948_v54 = vadd.f32 %v1562_v19, %v877_v50 }
 0x163   :  { %980 = vst [vmem:[%s1888_s4 + $0x98] sm:$0xff] %v916_v53  ;;  %1012 = vst [vmem:[%s1888_s4 + $0x198] sm:$0xff] %v948_v54 }
 0x164   :  { %v644_v55 = vpop.f32.mrb[40].mxu0  ;;  %v772_v56 = vpop.f32.mrb[40].mxu1 }
 0x165   :  { %v846_v57 = vmul.f32 %v1557_v17, %v644_v55  ;;  %v878_v58 = vmul.f32 %v1557_v17, %v772_v56  ;;  %v646_v59 = vpop.f32.mrb[41].mxu0  ;;  %v774_v60 = vpop.f32.mrb[41].mxu1 }
 0x166   :  { %v647_v61 = vpop.f32.mrb[42].mxu0  ;;  %v775_v62 = vpop.f32.mrb[42].mxu1 }
 0x167   :  { %v917_v63 = vadd.f32 %v1562_v19, %v846_v57  ;;  %v949_v0 = vadd.f32 %v1562_v19, %v878_v58  ;;  %v847_v1 = vmul.f32 %v1557_v17, %v647_v61  ;;  %v879_v2 = vmul.f32 %v1557_v17, %v775_v62  ;;  %v649_v3 = vpop.f32.mrb[43].mxu0  ;;  %v777_v4 = vpop.f32.mrb[43].mxu1 }
 0x169   :  { %981 = vst [vmem:[%s1888_s4 + $0xa0] sm:$0xff] %v917_v63  ;;  %1013 = vst [vmem:[%s1888_s4 + $0x1a0] sm:$0xff] %v949_v0  ;;  %v918_v5 = vadd.f32 %v1562_v19, %v847_v1  ;;  %v950_v6 = vadd.f32 %v1562_v19, %v879_v2 }
 0x16b   :  { %982 = vst [vmem:[%s1888_s4 + $0xa8] sm:$0xff] %v918_v5  ;;  %1014 = vst [vmem:[%s1888_s4 + $0x1a8] sm:$0xff] %v950_v6 }
 0x16c   :  { %v652_v7 = vpop.f32.mrb[44].mxu0  ;;  %v780_v8 = vpop.f32.mrb[44].mxu1 }
 0x16d   :  { %v848_v9 = vmul.f32 %v1557_v17, %v652_v7  ;;  %v880_v10 = vmul.f32 %v1557_v17, %v780_v8  ;;  %v654_v11 = vpop.f32.mrb[45].mxu0  ;;  %v782_v12 = vpop.f32.mrb[45].mxu1 }
 0x16e   :  { %v655_v13 = vpop.f32.mrb[46].mxu0  ;;  %v783_v14 = vpop.f32.mrb[46].mxu1 }
 0x16f   :  { %v919_v15 = vadd.f32 %v1562_v19, %v848_v9  ;;  %v951_v16 = vadd.f32 %v1562_v19, %v880_v10  ;;  %v849_v18 = vmul.f32 %v1557_v17, %v655_v13  ;;  %v881_v20 = vmul.f32 %v1557_v17, %v783_v14  ;;  %v657_v21 = vpop.f32.mrb[47].mxu0  ;;  %v785_v22 = vpop.f32.mrb[47].mxu1 }
 0x171   :  { %983 = vst [vmem:[%s1888_s4 + $0xb0] sm:$0xff] %v919_v15  ;;  %1015 = vst [vmem:[%s1888_s4 + $0x1b0] sm:$0xff] %v951_v16  ;;  %v920_v23 = vadd.f32 %v1562_v19, %v849_v18  ;;  %v952_v24 = vadd.f32 %v1562_v19, %v881_v20 }
 0x173   :  { %984 = vst [vmem:[%s1888_s4 + $0xb8] sm:$0xff] %v920_v23  ;;  %1016 = vst [vmem:[%s1888_s4 + $0x1b8] sm:$0xff] %v952_v24 }
 0x174   :  { %v660_v25 = vpop.f32.mrb[48].mxu0  ;;  %v788_v26 = vpop.f32.mrb[48].mxu1 }
 0x175   :  { %v850_v27 = vmul.f32 %v1557_v17, %v660_v25  ;;  %v882_v28 = vmul.f32 %v1557_v17, %v788_v26  ;;  %v662_v29 = vpop.f32.mrb[49].mxu0  ;;  %v790_v30 = vpop.f32.mrb[49].mxu1 }
 0x176   :  { %v663_v31 = vpop.f32.mrb[50].mxu0  ;;  %v791_v32 = vpop.f32.mrb[50].mxu1 }
 0x177   :  { %v921_v33 = vadd.f32 %v1562_v19, %v850_v27  ;;  %v953_v34 = vadd.f32 %v1562_v19, %v882_v28  ;;  %v851_v35 = vmul.f32 %v1557_v17, %v663_v31  ;;  %v883_v36 = vmul.f32 %v1557_v17, %v791_v32  ;;  %v665_v37 = vpop.f32.mrb[51].mxu0  ;;  %v793_v38 = vpop.f32.mrb[51].mxu1 }
 0x179   :  { %985 = vst [vmem:[%s1888_s4 + $0xc0] sm:$0xff] %v921_v33  ;;  %1017 = vst [vmem:[%s1888_s4 + $0x1c0] sm:$0xff] %v953_v34  ;;  %v922_v39 = vadd.f32 %v1562_v19, %v851_v35  ;;  %v954_v40 = vadd.f32 %v1562_v19, %v883_v36 }
 0x17b   :  { %986 = vst [vmem:[%s1888_s4 + $0xc8] sm:$0xff] %v922_v39  ;;  %1018 = vst [vmem:[%s1888_s4 + $0x1c8] sm:$0xff] %v954_v40 }
 0x17c   :  { %v668_v41 = vpop.f32.mrb[52].mxu0  ;;  %v796_v42 = vpop.f32.mrb[52].mxu1 }
 0x17d   :  { %v852_v43 = vmul.f32 %v1557_v17, %v668_v41  ;;  %v884_v44 = vmul.f32 %v1557_v17, %v796_v42  ;;  %v670_v45 = vpop.f32.mrb[53].mxu0  ;;  %v798_v46 = vpop.f32.mrb[53].mxu1 }
 0x17e   :  { %v671_v47 = vpop.f32.mrb[54].mxu0  ;;  %v799_v48 = vpop.f32.mrb[54].mxu1 }
 0x17f   :  { %v923_v49 = vadd.f32 %v1562_v19, %v852_v43  ;;  %v955_v50 = vadd.f32 %v1562_v19, %v884_v44  ;;  %v853_v51 = vmul.f32 %v1557_v17, %v671_v47  ;;  %v885_v52 = vmul.f32 %v1557_v17, %v799_v48  ;;  %v673_v53 = vpop.f32.mrb[55].mxu0  ;;  %v801_v54 = vpop.f32.mrb[55].mxu1 }
 0x181   :  { %987 = vst [vmem:[%s1888_s4 + $0xd0] sm:$0xff] %v923_v49  ;;  %1019 = vst [vmem:[%s1888_s4 + $0x1d0] sm:$0xff] %v955_v50  ;;  %v924_v55 = vadd.f32 %v1562_v19, %v853_v51  ;;  %v956_v56 = vadd.f32 %v1562_v19, %v885_v52 }
 0x183   :  { %988 = vst [vmem:[%s1888_s4 + $0xd8] sm:$0xff] %v924_v55  ;;  %1020 = vst [vmem:[%s1888_s4 + $0x1d8] sm:$0xff] %v956_v56 }
 0x184   :  { %v676_v57 = vpop.f32.mrb[56].mxu0  ;;  %v804_v58 = vpop.f32.mrb[56].mxu1 }
 0x185   :  { %v854_v59 = vmul.f32 %v1557_v17, %v676_v57  ;;  %v886_v60 = vmul.f32 %v1557_v17, %v804_v58  ;;  %v678_v61 = vpop.f32.mrb[57].mxu0  ;;  %v806_v62 = vpop.f32.mrb[57].mxu1 }
 0x186   :  { %v679_v63 = vpop.f32.mrb[58].mxu0  ;;  %v807_v0 = vpop.f32.mrb[58].mxu1 }
 0x187   :  { %v925_v1 = vadd.f32 %v1562_v19, %v854_v59  ;;  %v957_v2 = vadd.f32 %v1562_v19, %v886_v60  ;;  %v855_v3 = vmul.f32 %v1557_v17, %v679_v63  ;;  %v887_v4 = vmul.f32 %v1557_v17, %v807_v0  ;;  %v681_v5 = vpop.f32.mrb[59].mxu0  ;;  %v809_v6 = vpop.f32.mrb[59].mxu1 }
 0x189   :  { %989 = vst [vmem:[%s1888_s4 + $0xe0] sm:$0xff] %v925_v1  ;;  %1021 = vst [vmem:[%s1888_s4 + $0x1e0] sm:$0xff] %v957_v2  ;;  %v926_v7 = vadd.f32 %v1562_v19, %v855_v3  ;;  %v958_v8 = vadd.f32 %v1562_v19, %v887_v4 }
 0x18b   :  { %990 = vst [vmem:[%s1888_s4 + $0xe8] sm:$0xff] %v926_v7  ;;  %1022 = vst [vmem:[%s1888_s4 + $0x1e8] sm:$0xff] %v958_v8 }
 0x18c   :  { %v684_v9 = vpop.f32.mrb[60].mxu0  ;;  %v812_v10 = vpop.f32.mrb[60].mxu1 }
 0x18d   :  { %v856_v11 = vmul.f32 %v1557_v17, %v684_v9  ;;  %v888_v12 = vmul.f32 %v1557_v17, %v812_v10  ;;  %v686_v13 = vpop.f32.mrb[61].mxu0  ;;  %v814_v14 = vpop.f32.mrb[61].mxu1 }
 0x18e   :  { %v687_v15 = vpop.f32.mrb[62].mxu0  ;;  %v815_v16 = vpop.f32.mrb[62].mxu1 }
 0x18f   :  { %v927_v18 = vadd.f32 %v1562_v19, %v856_v11  ;;  %v959_v20 = vadd.f32 %v1562_v19, %v888_v12  ;;  %v857_v21 = vmul.f32 %v1557_v17, %v687_v15  ;;  %v889_v22 = vmul.f32 %v1557_v17, %v815_v16  ;;  %v689_v23 = vpop.f32.mrb[63].mxu0  ;;  %v817_v24 = vpop.f32.mrb[63].mxu1 }
 0x191   :  { %991 = vst [vmem:[%s1888_s4 + $0xf0] sm:$0xff] %v927_v18  ;;  %1023 = vst [vmem:[%s1888_s4 + $0x1f0] sm:$0xff] %v959_v20  ;;  %v928_v25 = vadd.f32 %v1562_v19, %v857_v21  ;;  %v960_v26 = vadd.f32 %v1562_v19, %v889_v22 }
 0x193   :  { %992 = vst [vmem:[%s1888_s4 + $0xf8] sm:$0xff] %v928_v25  ;;  %1024 = vst [vmem:[%s1888_s4 + $0x1f8] sm:$0xff] %v960_v26 }

// kernel: _lambda_.12
= control target key start
LH: loop header
LB: loop body
LE: loop exit
PB: predicated region body
PF: predicated region fallthrough
CT: control target
= control target key end

     0   :  { %s947_s1 = inlined_call_operand.vmem [shape: bf16[1,512,128], index: 1, kind: input, shape index: {}]   ;;  %s948_s0 = inlined_call_operand.vmem [shape: bf16[1,64,512], index: 0, kind: input, shape index: {}]   ;;  %s949_s2 = inlined_call_operand.vmem [shape: f32[1,128], index: 2, kind: input, shape index: {}]   ;;  %s950_s3 = inlined_call_operand.vmem [shape: f32[1,128], index: 3, kind: input, shape index: {}]   ;;  %s951_s4 = inlined_call_operand.vmem [shape: f32[1,64,128], index: 4, kind: output, shape index: {}]  }
   0x1   :  { %v672_v0 = vld [vmem:[%s947_s1 + $0x40] sm:$0xff]   ;;  %v676_v4 = vld [vmem:[%s947_s1 + $0x48] sm:$0xff]   ;;  %v680_v8 = vld [vmem:[%s947_s1 + $0x50] sm:$0xff]  }
   0x2   :  { %v673_v1 = vld [vmem:[%s947_s1 + $0xc0] sm:$0xff]   ;;  %592 = vmatprep.subr.bf16.mxu0 %v672_v0  ;;  %v677_v5 = vld [vmem:[%s947_s1 + $0xc8] sm:$0xff]   ;;  %v681_v9 = vld [vmem:[%s947_s1 + $0xd0] sm:$0xff]  }
   0x3   :  { %v674_v2 = vld [vmem:[%s947_s1] sm:$0xff]   ;;  %632 = vmatprep.subr.bf16.mxu1 %v673_v1  ;;  %v678_v6 = vld [vmem:[%s947_s1 + $0x8] sm:$0xff]   ;;  %v682_v10 = vld [vmem:[%s947_s1 + $0x10] sm:$0xff]  }
   0x4   :  { %v675_v3 = vld [vmem:[%s947_s1 + $0x80] sm:$0xff]   ;;  %593 = vmatpush3.bf16.msra.mxu0 %v674_v2  ;;  %v679_v7 = vld [vmem:[%s947_s1 + $0x88] sm:$0xff]   ;;  %v683_v11 = vld [vmem:[%s947_s1 + $0x90] sm:$0xff]  }
   0x5   :  { %633 = vmatpush3.bf16.msra.mxu1 %v675_v3  ;;  %594 = vmatprep.subr.bf16.mxu0 %v676_v4  ;;  %v684_v12 = vld [vmem:[%s947_s1 + $0x58] sm:$0xff]   ;;  %v688_v16 = vld [vmem:[%s947_s1 + $0x60] sm:$0xff]   ;;  %v692_v20 = vld [vmem:[%s947_s1 + $0x68] sm:$0xff]  }
   0x6   :  { %634 = vmatprep.subr.bf16.mxu1 %v677_v5  ;;  %v685_v13 = vld [vmem:[%s947_s1 + $0xd8] sm:$0xff]   ;;  %v689_v17 = vld [vmem:[%s947_s1 + $0xe0] sm:$0xff]   ;;  %v693_v21 = vld [vmem:[%s947_s1 + $0xe8] sm:$0xff]  }
   0x7   :  { %v686_v14 = vld [vmem:[%s947_s1 + $0x18] sm:$0xff]   ;;  %v690_v18 = vld [vmem:[%s947_s1 + $0x20] sm:$0xff]   ;;  %v694_v22 = vld [vmem:[%s947_s1 + $0x28] sm:$0xff]  }
   0x8   :  { %595 = vmatpush3.bf16.msra.mxu0 %v678_v6  ;;  %v687_v15 = vld [vmem:[%s947_s1 + $0x98] sm:$0xff]   ;;  %v691_v19 = vld [vmem:[%s947_s1 + $0xa0] sm:$0xff]   ;;  %v695_v23 = vld [vmem:[%s947_s1 + $0xa8] sm:$0xff]  }
   0x9   :  { %635 = vmatpush3.bf16.msra.mxu1 %v679_v7  ;;  %596 = vmatprep.subr.bf16.mxu0 %v680_v8  ;;  %v696_v24 = vld [vmem:[%s947_s1 + $0x70] sm:$0xff]   ;;  %v700_v28 = vld [vmem:[%s947_s1 + $0x78] sm:$0xff]   ;;  %v900_v57 = vld [vmem:[%s949_s2] ss:$0 sm:$0xff] }
   0xa   :  { %636 = vmatprep.subr.bf16.mxu1 %v681_v9  ;;  %v697_v25 = vld [vmem:[%s947_s1 + $0xf0] sm:$0xff]   ;;  %v701_v29 = vld [vmem:[%s947_s1 + $0xf8] sm:$0xff]   ;;  %v905_v62 = vld [vmem:[%s950_s3] ss:$0 sm:$0xff] }
   0xb   :  { %v698_v26 = vld [vmem:[%s947_s1 + $0x30] sm:$0xff]   ;;  %v702_v30 = vld [vmem:[%s947_s1 + $0x38] sm:$0xff]  }
   0xc   :  { %597 = vmatpush3.bf16.msra.mxu0 %v682_v10  ;;  %v699_v27 = vld [vmem:[%s947_s1 + $0xb0] sm:$0xff]   ;;  %v703_v31 = vld [vmem:[%s947_s1 + $0xb8] sm:$0xff]  }
   0xd   :  { %637 = vmatpush3.bf16.msra.mxu1 %v683_v11  ;;  %598 = vmatprep.subr.bf16.mxu0 %v684_v12  ;;  %v704_v32 = vld [vmem:[%s948_s0] ss:$16 sps:$4 sm:$0xff]   ;;  %v706_v33 = vld [vmem:[%s948_s0 + $0x4] ss:$16 sps:$4 sm:$0xff]   ;;  %v707_v34 = vld [vmem:[%s948_s0 + $0x8] ss:$16 sps:$4 sm:$0xff]  }
   0xe   :  { %638 = vmatprep.subr.bf16.mxu1 %v685_v13  ;;  %v709_v35 = vld [vmem:[%s948_s0 + $0xc] ss:$16 sps:$4 sm:$0xff]   ;;  %402 = vmatprep.mubr.bf16.mxu0 %v706_v33  ;;  %v710_v36 = vld [vmem:[%s948_s0 + $0x24] ss:$16 sps:$4 sm:$0xff]   ;;  %v714_v38 = vld [vmem:[%s948_s0 + $0x20] ss:$16 sps:$4 sm:$0xff]  }
   0xf   :  { %467 = vmatprep.mubr.bf16.mxu1 %v709_v35  ;;  %v712_v37 = vld [vmem:[%s948_s0 + $0x2c] ss:$16 sps:$4 sm:$0xff]   ;;  %v715_v39 = vld [vmem:[%s948_s0 + $0x28] ss:$16 sps:$4 sm:$0xff]   ;;  %v716_v40 = vld [vmem:[%s948_s0 + $0x44] ss:$16 sps:$4 sm:$0xff]  }
  0x10   :  { %599 = vmatpush3.bf16.msra.mxu0 %v686_v14  ;;  %v718_v41 = vld [vmem:[%s948_s0 + $0x4c] ss:$16 sps:$4 sm:$0xff]   ;;  %v720_v42 = vld [vmem:[%s948_s0 + $0x40] ss:$16 sps:$4 sm:$0xff]   ;;  %v721_v43 = vld [vmem:[%s948_s0 + $0x48] ss:$16 sps:$4 sm:$0xff]  }
  0x11   :  { %639 = vmatpush3.bf16.msra.mxu1 %v687_v15  ;;  %600 = vmatprep.subr.bf16.mxu0 %v688_v16  ;;  %v722_v44 = vld [vmem:[%s948_s0 + $0x64] ss:$16 sps:$4 sm:$0xff]   ;;  %v724_v45 = vld [vmem:[%s948_s0 + $0x6c] ss:$16 sps:$4 sm:$0xff]   ;;  %v726_v46 = vld [vmem:[%s948_s0 + $0x60] ss:$16 sps:$4 sm:$0xff]  }
  0x12   :  { %640 = vmatprep.subr.bf16.mxu1 %v689_v17  ;;  %v727_v47 = vld [vmem:[%s948_s0 + $0x68] ss:$16 sps:$4 sm:$0xff]  }
  0x14   :  { %601 = vmatpush3.bf16.msra.mxu0 %v690_v18 }
  0x15   :  { %641 = vmatpush3.bf16.msra.mxu1 %v691_v19  ;;  %602 = vmatprep.subr.bf16.mxu0 %v692_v20 }
  0x16   :  { %642 = vmatprep.subr.bf16.mxu1 %v693_v21 }
  0x18   :  { %603 = vmatpush3.bf16.msra.mxu0 %v694_v22 }
  0x19   :  { %643 = vmatpush3.bf16.msra.mxu1 %v695_v23  ;;  %604 = vmatprep.subr.bf16.mxu0 %v696_v24 }
  0x1a   :  { %644 = vmatprep.subr.bf16.mxu1 %v697_v25 }
  0x1c   :  { %605 = vmatpush3.bf16.msra.mxu0 %v698_v26 }
  0x1d   :  { %645 = vmatpush3.bf16.msra.mxu1 %v699_v27  ;;  %606 = vmatprep.subr.bf16.mxu0 %v700_v28 }
  0x1e   :  { %646 = vmatprep.subr.bf16.mxu1 %v701_v29 }
  0x20   :  { %607 = vmatpush3.bf16.msra.mxu0 %v702_v30 }
  0x21   :  { %647 = vmatpush3.bf16.msra.mxu1 %v703_v31 }
  0x23   :  { %403 = vmatmul.mubr.bf16.vlgmr.msra.gmra.mrb[0].mxu0 %v704_v32 }
  0x24   :  { %468 = vmatmul.mubr.bf16.vlgmr.msra.gmra.mrb[0].mxu1 %v707_v34  ;;  %410 = vmatprep.mubr.bf16.mxu0 %v710_v36 }
  0x25   :  { %475 = vmatprep.mubr.bf16.mxu1 %v712_v37 }
  0x2b   :  { %411 = vmatmul.mubr.bf16.gmra.mrb[4].mxu0 %v714_v38 }
  0x2c   :  { %476 = vmatmul.mubr.bf16.gmra.mrb[4].mxu1 %v715_v39  ;;  %418 = vmatprep.mubr.bf16.mxu0 %v716_v40 }
  0x2d   :  { %483 = vmatprep.mubr.bf16.mxu1 %v718_v41 }
  0x33   :  { %419 = vmatmul.mubr.bf16.gmra.mrb[8].mxu0 %v720_v42 }
  0x34   :  { %484 = vmatmul.mubr.bf16.gmra.mrb[8].mxu1 %v721_v43  ;;  %426 = vmatprep.mubr.bf16.mxu0 %v722_v44 }
  0x35   :  { %491 = vmatprep.mubr.bf16.mxu1 %v724_v45 }
  0x3b   :  { %427 = vmatmul.mubr.bf16.gmra.mrb[12].mxu0 %v726_v46 }
  0x3c   :  { %492 = vmatmul.mubr.bf16.gmra.mrb[12].mxu1 %v727_v47 }
  0xf6   :  { %v608_v48 = vpop.f32.mrb[0].mxu0 }
  0xf7   :  { %v648_v49 = vpop.f32.mrb[0].mxu1  ;;  %v609_v50 = vpop.f32.mrb[1].mxu0 }
  0xf8   :  { %v610_v51 = vadd.f32 %v609_v50, %v608_v48  ;;  %v649_v52 = vpop.f32.mrb[1].mxu1  ;;  %v611_v53 = vpop.f32.mrb[2].mxu0 }
  0xf9   :  { %v650_v54 = vadd.f32 %v649_v52, %v648_v49  ;;  %v651_v55 = vpop.f32.mrb[2].mxu1  ;;  %v612_v56 = vpop.f32.mrb[3].mxu0 }
  0xfa   :  { %v613_v58 = vadd.f32 %v612_v56, %v611_v53  ;;  %v652_v59 = vpop.f32.mrb[3].mxu1 }
  0xfb   :  { %v470_v60 = vadd.f32 %v650_v54, %v610_v51  ;;  %v653_v61 = vadd.f32 %v652_v59, %v651_v55 }
  0xfd   :  { %v507_v63 = vmul.f32 %v900_v57, %v470_v60  ;;  %v473_v0 = vadd.f32 %v653_v61, %v613_v58 }
  0xfe   :  { %v614_v1 = vpop.f32.mrb[4].mxu0 }
  0xff   :  { %v522_v2 = vadd.f32 %v905_v62, %v507_v63  ;;  %v508_v3 = vmul.f32 %v900_v57, %v473_v0  ;;  %v654_v4 = vpop.f32.mrb[4].mxu1  ;;  %v615_v5 = vpop.f32.mrb[5].mxu0 }
 0x100   :  { %v616_v6 = vadd.f32 %v615_v5, %v614_v1  ;;  %v655_v7 = vpop.f32.mrb[5].mxu1  ;;  %v617_v8 = vpop.f32.mrb[6].mxu0 }
 0x101   :  { %530 = vst [vmem:[%s951_s4] sm:$0xff] %v522_v2  ;;  %v523_v9 = vadd.f32 %v905_v62, %v508_v3  ;;  %v656_v10 = vadd.f32 %v655_v7, %v654_v4  ;;  %v657_v11 = vpop.f32.mrb[6].mxu1  ;;  %v618_v12 = vpop.f32.mrb[7].mxu0 }
 0x102   :  { %v619_v13 = vadd.f32 %v618_v12, %v617_v8  ;;  %v658_v14 = vpop.f32.mrb[7].mxu1 }
 0x103   :  { %531 = vst [vmem:[%s951_s4 + $0x8] sm:$0xff] %v523_v9  ;;  %v478_v15 = vadd.f32 %v656_v10, %v616_v6  ;;  %v659_v16 = vadd.f32 %v658_v14, %v657_v11 }
 0x105   :  { %v509_v17 = vmul.f32 %v900_v57, %v478_v15  ;;  %v481_v18 = vadd.f32 %v659_v16, %v619_v13 }
 0x106   :  { %v620_v19 = vpop.f32.mrb[8].mxu0 }
 0x107   :  { %v524_v20 = vadd.f32 %v905_v62, %v509_v17  ;;  %v510_v21 = vmul.f32 %v900_v57, %v481_v18  ;;  %v660_v22 = vpop.f32.mrb[8].mxu1  ;;  %v621_v23 = vpop.f32.mrb[9].mxu0 }
 0x108   :  { %v622_v24 = vadd.f32 %v621_v23, %v620_v19  ;;  %v661_v25 = vpop.f32.mrb[9].mxu1  ;;  %v623_v26 = vpop.f32.mrb[10].mxu0 }
 0x109   :  { %532 = vst [vmem:[%s951_s4 + $0x10] sm:$0xff] %v524_v20  ;;  %v525_v27 = vadd.f32 %v905_v62, %v510_v21  ;;  %v662_v28 = vadd.f32 %v661_v25, %v660_v22  ;;  %v663_v29 = vpop.f32.mrb[10].mxu1  ;;  %v624_v30 = vpop.f32.mrb[11].mxu0 }
 0x10a   :  { %v625_v31 = vadd.f32 %v624_v30, %v623_v26  ;;  %v664_v32 = vpop.f32.mrb[11].mxu1 }
 0x10b   :  { %533 = vst [vmem:[%s951_s4 + $0x18] sm:$0xff] %v525_v27  ;;  %v486_v33 = vadd.f32 %v662_v28, %v622_v24  ;;  %v665_v34 = vadd.f32 %v664_v32, %v663_v29 }
 0x10d   :  { %v511_v35 = vmul.f32 %v900_v57, %v486_v33  ;;  %v489_v36 = vadd.f32 %v665_v34, %v625_v31 }
 0x10e   :  { %v626_v37 = vpop.f32.mrb[12].mxu0 }
 0x10f   :  { %v526_v38 = vadd.f32 %v905_v62, %v511_v35  ;;  %v512_v39 = vmul.f32 %v900_v57, %v489_v36  ;;  %v666_v40 = vpop.f32.mrb[12].mxu1  ;;  %v627_v41 = vpop.f32.mrb[13].mxu0 }
 0x110   :  { %v628_v42 = vadd.f32 %v627_v41, %v626_v37  ;;  %v667_v43 = vpop.f32.mrb[13].mxu1  ;;  %v629_v44 = vpop.f32.mrb[14].mxu0 }
 0x111   :  { %534 = vst [vmem:[%s951_s4 + $0x20] sm:$0xff] %v526_v38  ;;  %v527_v45 = vadd.f32 %v905_v62, %v512_v39  ;;  %v668_v46 = vadd.f32 %v667_v43, %v666_v40  ;;  %v669_v47 = vpop.f32.mrb[14].mxu1  ;;  %v630_v48 = vpop.f32.mrb[15].mxu0 }
 0x112   :  { %v631_v49 = vadd.f32 %v630_v48, %v629_v44  ;;  %v670_v50 = vpop.f32.mrb[15].mxu1 }
 0x113   :  { %535 = vst [vmem:[%s951_s4 + $0x28] sm:$0xff] %v527_v45  ;;  %v494_v51 = vadd.f32 %v668_v46, %v628_v42  ;;  %v671_v52 = vadd.f32 %v670_v50, %v669_v47 }
 0x115   :  { %v513_v53 = vmul.f32 %v900_v57, %v494_v51  ;;  %v497_v54 = vadd.f32 %v671_v52, %v631_v49 }
 0x117   :  { %v528_v55 = vadd.f32 %v905_v62, %v513_v53  ;;  %v514_v56 = vmul.f32 %v900_v57, %v497_v54 }
 0x119   :  { %536 = vst [vmem:[%s951_s4 + $0x30] sm:$0xff] %v528_v55  ;;  %v529_v58 = vadd.f32 %v905_v62, %v514_v56 }
 0x11b   :  { %537 = vst [vmem:[%s951_s4 + $0x38] sm:$0xff] %v529_v58 }

// kernel: _lambda_.13
= control target key start
LH: loop header
LB: loop body
LE: loop exit
PB: predicated region body
PF: predicated region fallthrough
CT: control target
= control target key end

     0   :  { %s1245_s1 = inlined_call_operand.vmem [shape: bf16[1,1024,128], index: 1, kind: input, shape index: {}]   ;;  %s1246_s0 = inlined_call_operand.vmem [shape: bf16[1,16,1024], index: 0, kind: input, shape index: {}]   ;;  %s1247_s2 = inlined_call_operand.vmem [shape: f32[1,128], index: 2, kind: input, shape index: {}]   ;;  %s1248_s3 = inlined_call_operand.vmem [shape: f32[1,128], index: 3, kind: input, shape index: {}]   ;;  %s1249_s4 = inlined_call_operand.vmem [shape: f32[1,16,128], index: 4, kind: output, shape index: {}]  }
   0x1   :  { %v928_v0 = vld [vmem:[%s1245_s1 + $0x40] sm:$0xff]   ;;  %v932_v4 = vld [vmem:[%s1245_s1 + $0x48] sm:$0xff]   ;;  %v936_v8 = vld [vmem:[%s1245_s1 + $0x50] sm:$0xff]  }
   0x2   :  { %v929_v1 = vld [vmem:[%s1245_s1 + $0xc0] sm:$0xff]   ;;  %840 = vmatprep.subr.bf16.mxu0 %v928_v0  ;;  %v933_v5 = vld [vmem:[%s1245_s1 + $0xc8] sm:$0xff]   ;;  %v937_v9 = vld [vmem:[%s1245_s1 + $0xd0] sm:$0xff]  }
   0x3   :  { %v930_v2 = vld [vmem:[%s1245_s1] sm:$0xff]   ;;  %862 = vmatprep.subr.bf16.mxu1 %v929_v1  ;;  %v934_v6 = vld [vmem:[%s1245_s1 + $0x8] sm:$0xff]   ;;  %v938_v10 = vld [vmem:[%s1245_s1 + $0x10] sm:$0xff]  }
   0x4   :  { %v931_v3 = vld [vmem:[%s1245_s1 + $0x80] sm:$0xff]   ;;  %841 = vmatpush3.bf16.msra.mxu0 %v930_v2  ;;  %v935_v7 = vld [vmem:[%s1245_s1 + $0x88] sm:$0xff]   ;;  %v939_v11 = vld [vmem:[%s1245_s1 + $0x90] sm:$0xff]  }
   0x5   :  { %863 = vmatpush3.bf16.msra.mxu1 %v931_v3  ;;  %842 = vmatprep.subr.bf16.mxu0 %v932_v4  ;;  %v940_v12 = vld [vmem:[%s1245_s1 + $0x58] sm:$0xff]   ;;  %v944_v16 = vld [vmem:[%s1245_s1 + $0x60] sm:$0xff]   ;;  %v948_v20 = vld [vmem:[%s1245_s1 + $0x68] sm:$0xff]  }
   0x6   :  { %864 = vmatprep.subr.bf16.mxu1 %v933_v5  ;;  %v941_v13 = vld [vmem:[%s1245_s1 + $0xd8] sm:$0xff]   ;;  %v945_v17 = vld [vmem:[%s1245_s1 + $0xe0] sm:$0xff]   ;;  %v949_v21 = vld [vmem:[%s1245_s1 + $0xe8] sm:$0xff]  }
   0x7   :  { %v942_v14 = vld [vmem:[%s1245_s1 + $0x18] sm:$0xff]   ;;  %v946_v18 = vld [vmem:[%s1245_s1 + $0x20] sm:$0xff]   ;;  %v950_v22 = vld [vmem:[%s1245_s1 + $0x28] sm:$0xff]  }
   0x8   :  { %843 = vmatpush3.bf16.msra.mxu0 %v934_v6  ;;  %v943_v15 = vld [vmem:[%s1245_s1 + $0x98] sm:$0xff]   ;;  %v947_v19 = vld [vmem:[%s1245_s1 + $0xa0] sm:$0xff]   ;;  %v951_v23 = vld [vmem:[%s1245_s1 + $0xa8] sm:$0xff]  }
   0x9   :  { %865 = vmatpush3.bf16.msra.mxu1 %v935_v7  ;;  %844 = vmatprep.subr.bf16.mxu0 %v936_v8  ;;  %v952_v24 = vld [vmem:[%s1245_s1 + $0x70] sm:$0xff]   ;;  %v956_v28 = vld [vmem:[%s1245_s1 + $0x78] sm:$0xff]   ;;  %v18_v32 = vld [vmem:[%s1246_s0] sm:$0xff] }
   0xa   :  { %866 = vmatprep.subr.bf16.mxu1 %v937_v9  ;;  %v953_v25 = vld [vmem:[%s1245_s1 + $0xf0] sm:$0xff]   ;;  %v957_v29 = vld [vmem:[%s1245_s1 + $0xf8] sm:$0xff]   ;;  %v22_v33 = vld [vmem:[%s1246_s0 + $0x20] sm:$0xff] }
   0xb   :  { %v954_v26 = vld [vmem:[%s1245_s1 + $0x30] sm:$0xff]   ;;  %v958_v30 = vld [vmem:[%s1245_s1 + $0x38] sm:$0xff]   ;;  %v19_v34 = vld [vmem:[%s1246_s0 + $0x8] sm:$0xff]  ;;  %v766_v35 = vcombine.low %v18_v32, %v22_v33  ;;  %v767_v36 = vcombine.high %v18_v32, %v22_v33 }
   0xc   :  { %845 = vmatpush3.bf16.msra.mxu0 %v938_v10  ;;  %v955_v27 = vld [vmem:[%s1245_s1 + $0xb0] sm:$0xff]   ;;  %v959_v31 = vld [vmem:[%s1245_s1 + $0xb8] sm:$0xff]   ;;  %v23_v37 = vld [vmem:[%s1246_s0 + $0x28] sm:$0xff] }
   0xd   :  { %867 = vmatpush3.bf16.msra.mxu1 %v939_v11  ;;  %846 = vmatprep.subr.bf16.mxu0 %v940_v12  ;;  %v768_v38 = vcombine.low %v19_v34, %v23_v37  ;;  %v769_v39 = vcombine.high %v19_v34, %v23_v37  ;;  %v960_v40 = vld [vmem:[%s1245_s1 + $0x140] sm:$0xff]   ;;  %v964_v44 = vld [vmem:[%s1245_s1 + $0x148] sm:$0xff]   ;;  %v968_v48 = vld [vmem:[%s1245_s1 + $0x150] sm:$0xff]  }
   0xe   :  { %868 = vmatprep.subr.bf16.mxu1 %v941_v13  ;;  %610 = vmatprep.mubr.bf16.mxu0 %v767_v36  ;;  %v961_v41 = vld [vmem:[%s1245_s1 + $0x1c0] sm:$0xff]   ;;  %v965_v45 = vld [vmem:[%s1245_s1 + $0x1c8] sm:$0xff]   ;;  %v969_v49 = vld [vmem:[%s1245_s1 + $0x1d0] sm:$0xff]  }
   0xf   :  { %651 = vmatprep.mubr.bf16.mxu1 %v769_v39  ;;  %v962_v42 = vld [vmem:[%s1245_s1 + $0x100] sm:$0xff]   ;;  %v966_v46 = vld [vmem:[%s1245_s1 + $0x108] sm:$0xff]   ;;  %v970_v50 = vld [vmem:[%s1245_s1 + $0x110] sm:$0xff]  }
  0x10   :  { %847 = vmatpush3.bf16.msra.mxu0 %v942_v14  ;;  %v963_v43 = vld [vmem:[%s1245_s1 + $0x180] sm:$0xff]   ;;  %v967_v47 = vld [vmem:[%s1245_s1 + $0x188] sm:$0xff]   ;;  %v971_v51 = vld [vmem:[%s1245_s1 + $0x190] sm:$0xff]  }
  0x11   :  { %869 = vmatpush3.bf16.msra.mxu1 %v943_v15  ;;  %848 = vmatprep.subr.bf16.mxu0 %v944_v16  ;;  %v972_v52 = vld [vmem:[%s1245_s1 + $0x158] sm:$0xff]   ;;  %v976_v56 = vld [vmem:[%s1245_s1 + $0x160] sm:$0xff]   ;;  %v980_v60 = vld [vmem:[%s1245_s1 + $0x168] sm:$0xff]  }
  0x12   :  { %870 = vmatprep.subr.bf16.mxu1 %v945_v17  ;;  %v973_v53 = vld [vmem:[%s1245_s1 + $0x1d8] sm:$0xff]   ;;  %v977_v57 = vld [vmem:[%s1245_s1 + $0x1e0] sm:$0xff]   ;;  %v981_v61 = vld [vmem:[%s1245_s1 + $0x1e8] sm:$0xff]  }
  0x13   :  { %v974_v54 = vld [vmem:[%s1245_s1 + $0x118] sm:$0xff]   ;;  %v978_v58 = vld [vmem:[%s1245_s1 + $0x120] sm:$0xff]   ;;  %v982_v62 = vld [vmem:[%s1245_s1 + $0x128] sm:$0xff]  }
  0x14   :  { %849 = vmatpush3.bf16.msra.mxu0 %v946_v18  ;;  %v975_v55 = vld [vmem:[%s1245_s1 + $0x198] sm:$0xff]   ;;  %v979_v59 = vld [vmem:[%s1245_s1 + $0x1a0] sm:$0xff]   ;;  %v983_v63 = vld [vmem:[%s1245_s1 + $0x1a8] sm:$0xff]  }
  0x15   :  { %871 = vmatpush3.bf16.msra.mxu1 %v947_v19  ;;  %850 = vmatprep.subr.bf16.mxu0 %v948_v20  ;;  %v984_v0 = vld [vmem:[%s1245_s1 + $0x170] sm:$0xff]   ;;  %v988_v4 = vld [vmem:[%s1245_s1 + $0x178] sm:$0xff]  }
  0x16   :  { %872 = vmatprep.subr.bf16.mxu1 %v949_v21  ;;  %v985_v1 = vld [vmem:[%s1245_s1 + $0x1f0] sm:$0xff]   ;;  %v989_v5 = vld [vmem:[%s1245_s1 + $0x1f8] sm:$0xff]  }
  0x17   :  { %v986_v2 = vld [vmem:[%s1245_s1 + $0x130] sm:$0xff]   ;;  %v990_v6 = vld [vmem:[%s1245_s1 + $0x138] sm:$0xff]  }
  0x18   :  { %851 = vmatpush3.bf16.msra.mxu0 %v950_v22  ;;  %v987_v3 = vld [vmem:[%s1245_s1 + $0x1b0] sm:$0xff]   ;;  %v991_v7 = vld [vmem:[%s1245_s1 + $0x1b8] sm:$0xff]  }
  0x19   :  { %873 = vmatpush3.bf16.msra.mxu1 %v951_v23  ;;  %852 = vmatprep.subr.bf16.mxu0 %v952_v24  ;;  %v20_v8 = vld [vmem:[%s1246_s0 + $0x10] sm:$0xff]  ;;  %v21_v12 = vld [vmem:[%s1246_s0 + $0x18] sm:$0xff] }
  0x1a   :  { %874 = vmatprep.subr.bf16.mxu1 %v953_v25  ;;  %v24_v9 = vld [vmem:[%s1246_s0 + $0x30] sm:$0xff]  ;;  %v25_v13 = vld [vmem:[%s1246_s0 + $0x38] sm:$0xff] }
  0x1b   :  { %v770_v10 = vcombine.low %v20_v8, %v24_v9  ;;  %v771_v11 = vcombine.high %v20_v8, %v24_v9  ;;  %v772_v14 = vcombine.low %v21_v12, %v25_v13  ;;  %v773_v15 = vcombine.high %v21_v12, %v25_v13 }
  0x1c   :  { %853 = vmatpush3.bf16.msra.mxu0 %v954_v26 }
  0x1d   :  { %875 = vmatpush3.bf16.msra.mxu1 %v955_v27  ;;  %854 = vmatprep.subr.bf16.mxu0 %v956_v28 }
  0x1e   :  { %876 = vmatprep.subr.bf16.mxu1 %v957_v29 }
  0x20   :  { %855 = vmatpush3.bf16.msra.mxu0 %v958_v30 }
  0x21   :  { %877 = vmatpush3.bf16.msra.mxu1 %v959_v31  ;;  %884 = vmatprep.subr.bf16.mxu0 %v960_v40 }
  0x22   :  { %906 = vmatprep.subr.bf16.mxu1 %v961_v41 }
  0x23   :  { %611 = vmatmul.mubr.bf16.vlgmr.msra.gmra.mrb[0].mxu0 %v766_v35 }
  0x24   :  { %652 = vmatmul.mubr.bf16.vlgmr.msra.gmra.mrb[0].mxu1 %v768_v38  ;;  %885 = vmatpush3.bf16.msra.mxu0 %v962_v42  ;;  %v838_v42 = vld [vmem:[%s1247_s2] ss:$0 sm:$0xff] }
  0x25   :  { %907 = vmatpush3.bf16.msra.mxu1 %v963_v43  ;;  %886 = vmatprep.subr.bf16.mxu0 %v964_v44 }
  0x26   :  { %908 = vmatprep.subr.bf16.mxu1 %v965_v45  ;;  %692 = vmatprep.mubr.bf16.mxu0 %v771_v11 }
  0x27   :  { %733 = vmatprep.mubr.bf16.mxu1 %v773_v15 }
  0x28   :  { %887 = vmatpush3.bf16.msra.mxu0 %v966_v46  ;;  %v839_v46 = vld [vmem:[%s1248_s3] ss:$0 sm:$0xff] }
  0x29   :  { %909 = vmatpush3.bf16.msra.mxu1 %v967_v47  ;;  %888 = vmatprep.subr.bf16.mxu0 %v968_v48 }
  0x2a   :  { %910 = vmatprep.subr.bf16.mxu1 %v969_v49 }
  0x2c   :  { %889 = vmatpush3.bf16.msra.mxu0 %v970_v50 }
  0x2d   :  { %911 = vmatpush3.bf16.msra.mxu1 %v971_v51  ;;  %890 = vmatprep.subr.bf16.mxu0 %v972_v52 }
  0x2e   :  { %912 = vmatprep.subr.bf16.mxu1 %v973_v53 }
  0x30   :  { %891 = vmatpush3.bf16.msra.mxu0 %v974_v54 }
  0x31   :  { %913 = vmatpush3.bf16.msra.mxu1 %v975_v55  ;;  %892 = vmatprep.subr.bf16.mxu0 %v976_v56 }
  0x32   :  { %914 = vmatprep.subr.bf16.mxu1 %v977_v57 }
  0x34   :  { %893 = vmatpush3.bf16.msra.mxu0 %v978_v58 }
  0x35   :  { %915 = vmatpush3.bf16.msra.mxu1 %v979_v59  ;;  %894 = vmatprep.subr.bf16.mxu0 %v980_v60 }
  0x36   :  { %916 = vmatprep.subr.bf16.mxu1 %v981_v61 }
  0x38   :  { %895 = vmatpush3.bf16.msra.mxu0 %v982_v62 }
  0x39   :  { %917 = vmatpush3.bf16.msra.mxu1 %v983_v63  ;;  %896 = vmatprep.subr.bf16.mxu0 %v984_v0 }
  0x3a   :  { %918 = vmatprep.subr.bf16.mxu1 %v985_v1 }
  0x3c   :  { %897 = vmatpush3.bf16.msra.mxu0 %v986_v2 }
  0x3d   :  { %919 = vmatpush3.bf16.msra.mxu1 %v987_v3  ;;  %898 = vmatprep.subr.bf16.mxu0 %v988_v4 }
  0x3e   :  { %920 = vmatprep.subr.bf16.mxu1 %v989_v5 }
  0x40   :  { %899 = vmatpush3.bf16.msra.mxu0 %v990_v6 }
  0x41   :  { %921 = vmatpush3.bf16.msra.mxu1 %v991_v7 }
  0x43   :  { %693 = vmatmul.mubr.bf16.vlgmr.msra.gmra.mrb[4].mxu0 %v770_v10 }
  0x44   :  { %734 = vmatmul.mubr.bf16.vlgmr.msra.gmra.mrb[4].mxu1 %v772_v14 }
  0xf6   :  { %v856_v16 = vpop.f32.mrb[0].mxu0 }
  0xf7   :  { %v878_v17 = vpop.f32.mrb[0].mxu1  ;;  %v857_v18 = vpop.f32.mrb[1].mxu0 }
  0xf8   :  { %v858_v19 = vadd.f32 %v857_v18, %v856_v16  ;;  %v879_v20 = vpop.f32.mrb[1].mxu1  ;;  %v859_v21 = vpop.f32.mrb[2].mxu0 }
  0xf9   :  { %v880_v22 = vadd.f32 %v879_v20, %v878_v17  ;;  %v881_v23 = vpop.f32.mrb[2].mxu1  ;;  %v860_v24 = vpop.f32.mrb[3].mxu0 }
  0xfa   :  { %v861_v25 = vadd.f32 %v860_v24, %v859_v21  ;;  %v882_v26 = vpop.f32.mrb[3].mxu1 }
  0xfb   :  { %v654_v27 = vadd.f32 %v880_v22, %v858_v19  ;;  %v883_v28 = vadd.f32 %v882_v26, %v881_v23 }
  0xfd   :  { %v657_v29 = vadd.f32 %v883_v28, %v861_v25 }
 0x116   :  { %v900_v30 = vpop.f32.mrb[4].mxu0 }
 0x117   :  { %v922_v31 = vpop.f32.mrb[4].mxu1  ;;  %v901_v32 = vpop.f32.mrb[5].mxu0 }
 0x118   :  { %v902_v33 = vadd.f32 %v901_v32, %v900_v30  ;;  %v923_v34 = vpop.f32.mrb[5].mxu1  ;;  %v903_v35 = vpop.f32.mrb[6].mxu0 }
 0x119   :  { %v924_v36 = vadd.f32 %v923_v34, %v922_v31  ;;  %v925_v37 = vpop.f32.mrb[6].mxu1  ;;  %v904_v38 = vpop.f32.mrb[7].mxu0 }
 0x11a   :  { %v695_v39 = vadd.f32 %v902_v33, %v654_v27  ;;  %v905_v40 = vadd.f32 %v904_v38, %v903_v35  ;;  %v926_v41 = vpop.f32.mrb[7].mxu1 }
 0x11b   :  { %v927_v43 = vadd.f32 %v926_v41, %v925_v37 }
 0x11c   :  { %v736_v44 = vadd.f32 %v924_v36, %v695_v39  ;;  %v698_v45 = vadd.f32 %v905_v40, %v657_v29 }
 0x11e   :  { %v749_v47 = vmul.f32 %v838_v42, %v736_v44  ;;  %v739_v48 = vadd.f32 %v927_v43, %v698_v45 }
 0x120   :  { %v758_v49 = vadd.f32 %v839_v46, %v749_v47  ;;  %v750_v50 = vmul.f32 %v838_v42, %v739_v48 }
 0x122   :  { %760 = vst [vmem:[%s1249_s4] sm:$0xff] %v758_v49  ;;  %v759_v51 = vadd.f32 %v839_v46, %v750_v50 }
 0x124   :  { %761 = vst [vmem:[%s1249_s4 + $0x8] sm:$0xff] %v759_v51 }

// kernel: _lambda_.14
= control target key start
LH: loop header
LB: loop body
LE: loop exit
PB: predicated region body
PF: predicated region fallthrough
CT: control target
= control target key end

     0   :  { %s2409_s1 = inlined_call_operand.vmem [shape: bf16[1,2048,128], index: 1, kind: input, shape index: {}]   ;;  %s2410_s0 = inlined_call_operand.vmem [shape: bf16[1,16,2048], index: 0, kind: input, shape index: {}]   ;;  %s2411_s2 = inlined_call_operand.vmem [shape: f32[1,128], index: 2, kind: input, shape index: {}]   ;;  %s2412_s3 = inlined_call_operand.vmem [shape: f32[1,128], index: 3, kind: input, shape index: {}]   ;;  %s2413_s4 = inlined_call_operand.vmem [shape: f32[1,16,128], index: 4, kind: output, shape index: {}]  }
   0x1   :  { %v1812_v0 = vld [vmem:[%s2409_s1 + $0x40] sm:$0xff]   ;;  %v1816_v4 = vld [vmem:[%s2409_s1 + $0x48] sm:$0xff]   ;;  %v1820_v8 = vld [vmem:[%s2409_s1 + $0x50] sm:$0xff]  }
   0x2   :  { %v1813_v1 = vld [vmem:[%s2409_s1 + $0xc0] sm:$0xff]   ;;  %1636 = vmatprep.subr.bf16.mxu0 %v1812_v0  ;;  %v1817_v5 = vld [vmem:[%s2409_s1 + $0xc8] sm:$0xff]   ;;  %v1821_v9 = vld [vmem:[%s2409_s1 + $0xd0] sm:$0xff]  }
   0x3   :  { %v1814_v2 = vld [vmem:[%s2409_s1] sm:$0xff]   ;;  %1658 = vmatprep.subr.bf16.mxu1 %v1813_v1  ;;  %v1818_v6 = vld [vmem:[%s2409_s1 + $0x8] sm:$0xff]   ;;  %v1822_v10 = vld [vmem:[%s2409_s1 + $0x10] sm:$0xff]  }
   0x4   :  { %v1815_v3 = vld [vmem:[%s2409_s1 + $0x80] sm:$0xff]   ;;  %1637 = vmatpush3.bf16.msra.mxu0 %v1814_v2  ;;  %v1819_v7 = vld [vmem:[%s2409_s1 + $0x88] sm:$0xff]   ;;  %v1823_v11 = vld [vmem:[%s2409_s1 + $0x90] sm:$0xff]  }
   0x5   :  { %1659 = vmatpush3.bf16.msra.mxu1 %v1815_v3  ;;  %1638 = vmatprep.subr.bf16.mxu0 %v1816_v4  ;;  %v1824_v12 = vld [vmem:[%s2409_s1 + $0x58] sm:$0xff]   ;;  %v1828_v16 = vld [vmem:[%s2409_s1 + $0x60] sm:$0xff]   ;;  %v1832_v20 = vld [vmem:[%s2409_s1 + $0x68] sm:$0xff]  }
   0x6   :  { %1660 = vmatprep.subr.bf16.mxu1 %v1817_v5  ;;  %v1825_v13 = vld [vmem:[%s2409_s1 + $0xd8] sm:$0xff]   ;;  %v1829_v17 = vld [vmem:[%s2409_s1 + $0xe0] sm:$0xff]   ;;  %v1833_v21 = vld [vmem:[%s2409_s1 + $0xe8] sm:$0xff]  }
   0x7   :  { %v1826_v14 = vld [vmem:[%s2409_s1 + $0x18] sm:$0xff]   ;;  %v1830_v18 = vld [vmem:[%s2409_s1 + $0x20] sm:$0xff]   ;;  %v1834_v22 = vld [vmem:[%s2409_s1 + $0x28] sm:$0xff]  }
   0x8   :  { %1639 = vmatpush3.bf16.msra.mxu0 %v1818_v6  ;;  %v1827_v15 = vld [vmem:[%s2409_s1 + $0x98] sm:$0xff]   ;;  %v1831_v19 = vld [vmem:[%s2409_s1 + $0xa0] sm:$0xff]   ;;  %v1835_v23 = vld [vmem:[%s2409_s1 + $0xa8] sm:$0xff]  }
   0x9   :  { %1661 = vmatpush3.bf16.msra.mxu1 %v1819_v7  ;;  %1640 = vmatprep.subr.bf16.mxu0 %v1820_v8  ;;  %v1836_v24 = vld [vmem:[%s2409_s1 + $0x70] sm:$0xff]   ;;  %v1840_v28 = vld [vmem:[%s2409_s1 + $0x78] sm:$0xff]   ;;  %v18_v32 = vld [vmem:[%s2410_s0] sm:$0xff] }
   0xa   :  { %1662 = vmatprep.subr.bf16.mxu1 %v1821_v9  ;;  %v1837_v25 = vld [vmem:[%s2409_s1 + $0xf0] sm:$0xff]   ;;  %v1841_v29 = vld [vmem:[%s2409_s1 + $0xf8] sm:$0xff]   ;;  %v26_v33 = vld [vmem:[%s2410_s0 + $0x40] sm:$0xff] }
   0xb   :  { %v1838_v26 = vld [vmem:[%s2409_s1 + $0x30] sm:$0xff]   ;;  %v1842_v30 = vld [vmem:[%s2409_s1 + $0x38] sm:$0xff]   ;;  %v19_v34 = vld [vmem:[%s2410_s0 + $0x8] sm:$0xff]  ;;  %v1490_v35 = vcombine.low %v18_v32, %v26_v33  ;;  %v1491_v36 = vcombine.high %v18_v32, %v26_v33 }
   0xc   :  { %1641 = vmatpush3.bf16.msra.mxu0 %v1822_v10  ;;  %v1839_v27 = vld [vmem:[%s2409_s1 + $0xb0] sm:$0xff]   ;;  %v1843_v31 = vld [vmem:[%s2409_s1 + $0xb8] sm:$0xff]   ;;  %v27_v37 = vld [vmem:[%s2410_s0 + $0x48] sm:$0xff] }
   0xd   :  { %1663 = vmatpush3.bf16.msra.mxu1 %v1823_v11  ;;  %1642 = vmatprep.subr.bf16.mxu0 %v1824_v12  ;;  %v1492_v38 = vcombine.low %v19_v34, %v27_v37  ;;  %v1493_v39 = vcombine.high %v19_v34, %v27_v37  ;;  %v1844_v40 = vld [vmem:[%s2409_s1 + $0x140] sm:$0xff]   ;;  %v1848_v44 = vld [vmem:[%s2409_s1 + $0x148] sm:$0xff]   ;;  %v1852_v48 = vld [vmem:[%s2409_s1 + $0x150] sm:$0xff]  }
   0xe   :  { %1664 = vmatprep.subr.bf16.mxu1 %v1825_v13  ;;  %1170 = vmatprep.mubr.bf16.mxu0 %v1491_v36  ;;  %v1845_v41 = vld [vmem:[%s2409_s1 + $0x1c0] sm:$0xff]   ;;  %v1849_v45 = vld [vmem:[%s2409_s1 + $0x1c8] sm:$0xff]   ;;  %v1853_v49 = vld [vmem:[%s2409_s1 + $0x1d0] sm:$0xff]  }
   0xf   :  { %1211 = vmatprep.mubr.bf16.mxu1 %v1493_v39  ;;  %v1846_v42 = vld [vmem:[%s2409_s1 + $0x100] sm:$0xff]   ;;  %v1850_v46 = vld [vmem:[%s2409_s1 + $0x108] sm:$0xff]   ;;  %v1854_v50 = vld [vmem:[%s2409_s1 + $0x110] sm:$0xff]  }
  0x10   :  { %1643 = vmatpush3.bf16.msra.mxu0 %v1826_v14  ;;  %v1847_v43 = vld [vmem:[%s2409_s1 + $0x180] sm:$0xff]   ;;  %v1851_v47 = vld [vmem:[%s2409_s1 + $0x188] sm:$0xff]   ;;  %v1855_v51 = vld [vmem:[%s2409_s1 + $0x190] sm:$0xff]  }
  0x11   :  { %1665 = vmatpush3.bf16.msra.mxu1 %v1827_v15  ;;  %1644 = vmatprep.subr.bf16.mxu0 %v1828_v16  ;;  %v1856_v52 = vld [vmem:[%s2409_s1 + $0x158] sm:$0xff]   ;;  %v1860_v56 = vld [vmem:[%s2409_s1 + $0x160] sm:$0xff]   ;;  %v1864_v60 = vld [vmem:[%s2409_s1 + $0x168] sm:$0xff]  }
  0x12   :  { %1666 = vmatprep.subr.bf16.mxu1 %v1829_v17  ;;  %v1857_v53 = vld [vmem:[%s2409_s1 + $0x1d8] sm:$0xff]   ;;  %v1861_v57 = vld [vmem:[%s2409_s1 + $0x1e0] sm:$0xff]   ;;  %v1865_v61 = vld [vmem:[%s2409_s1 + $0x1e8] sm:$0xff]  }
  0x13   :  { %v1858_v54 = vld [vmem:[%s2409_s1 + $0x118] sm:$0xff]   ;;  %v1862_v58 = vld [vmem:[%s2409_s1 + $0x120] sm:$0xff]   ;;  %v1866_v62 = vld [vmem:[%s2409_s1 + $0x128] sm:$0xff]  }
  0x14   :  { %1645 = vmatpush3.bf16.msra.mxu0 %v1830_v18  ;;  %v1859_v55 = vld [vmem:[%s2409_s1 + $0x198] sm:$0xff]   ;;  %v1863_v59 = vld [vmem:[%s2409_s1 + $0x1a0] sm:$0xff]   ;;  %v1867_v63 = vld [vmem:[%s2409_s1 + $0x1a8] sm:$0xff]  }
  0x15   :  { %1667 = vmatpush3.bf16.msra.mxu1 %v1831_v19  ;;  %1646 = vmatprep.subr.bf16.mxu0 %v1832_v20  ;;  %v1868_v0 = vld [vmem:[%s2409_s1 + $0x170] sm:$0xff]   ;;  %v1872_v4 = vld [vmem:[%s2409_s1 + $0x178] sm:$0xff]   ;;  %v1876_v16 = vld [vmem:[%s2409_s1 + $0x240] sm:$0xff]  }
  0x16   :  { %1668 = vmatprep.subr.bf16.mxu1 %v1833_v21  ;;  %v1869_v1 = vld [vmem:[%s2409_s1 + $0x1f0] sm:$0xff]   ;;  %v1873_v5 = vld [vmem:[%s2409_s1 + $0x1f8] sm:$0xff]   ;;  %v1877_v17 = vld [vmem:[%s2409_s1 + $0x2c0] sm:$0xff]  }
  0x17   :  { %v1870_v2 = vld [vmem:[%s2409_s1 + $0x130] sm:$0xff]   ;;  %v1874_v6 = vld [vmem:[%s2409_s1 + $0x138] sm:$0xff]   ;;  %v1878_v18 = vld [vmem:[%s2409_s1 + $0x200] sm:$0xff]  }
  0x18   :  { %1647 = vmatpush3.bf16.msra.mxu0 %v1834_v22  ;;  %v1871_v3 = vld [vmem:[%s2409_s1 + $0x1b0] sm:$0xff]   ;;  %v1875_v7 = vld [vmem:[%s2409_s1 + $0x1b8] sm:$0xff]   ;;  %v1879_v19 = vld [vmem:[%s2409_s1 + $0x280] sm:$0xff]  }
  0x19   :  { %1669 = vmatpush3.bf16.msra.mxu1 %v1835_v23  ;;  %1648 = vmatprep.subr.bf16.mxu0 %v1836_v24  ;;  %v20_v8 = vld [vmem:[%s2410_s0 + $0x10] sm:$0xff]  ;;  %v21_v12 = vld [vmem:[%s2410_s0 + $0x18] sm:$0xff]  ;;  %v1880_v20 = vld [vmem:[%s2409_s1 + $0x248] sm:$0xff]  }
  0x1a   :  { %1670 = vmatprep.subr.bf16.mxu1 %v1837_v25  ;;  %v28_v9 = vld [vmem:[%s2410_s0 + $0x50] sm:$0xff]  ;;  %v29_v13 = vld [vmem:[%s2410_s0 + $0x58] sm:$0xff]  ;;  %v1881_v21 = vld [vmem:[%s2409_s1 + $0x2c8] sm:$0xff]  }
  0x1b   :  { %v1494_v10 = vcombine.low %v20_v8, %v28_v9  ;;  %v1495_v11 = vcombine.high %v20_v8, %v28_v9  ;;  %v1496_v14 = vcombine.low %v21_v12, %v29_v13  ;;  %v1497_v15 = vcombine.high %v21_v12, %v29_v13  ;;  %v1882_v22 = vld [vmem:[%s2409_s1 + $0x208] sm:$0xff]   ;;  %v1884_v24 = vld [vmem:[%s2409_s1 + $0x250] sm:$0xff]   ;;  %v1892_v32 = vld [vmem:[%s2409_s1 + $0x260] sm:$0xff]  }
  0x1c   :  { %1649 = vmatpush3.bf16.msra.mxu0 %v1838_v26  ;;  %v1883_v23 = vld [vmem:[%s2409_s1 + $0x288] sm:$0xff]   ;;  %v1885_v25 = vld [vmem:[%s2409_s1 + $0x2d0] sm:$0xff]   ;;  %v1893_v33 = vld [vmem:[%s2409_s1 + $0x2e0] sm:$0xff]  }
  0x1d   :  { %1671 = vmatpush3.bf16.msra.mxu1 %v1839_v27  ;;  %1650 = vmatprep.subr.bf16.mxu0 %v1840_v28  ;;  %v1886_v26 = vld [vmem:[%s2409_s1 + $0x210] sm:$0xff]   ;;  %v1888_v28 = vld [vmem:[%s2409_s1 + $0x258] sm:$0xff]   ;;  %v1894_v34 = vld [vmem:[%s2409_s1 + $0x220] sm:$0xff]  }
  0x1e   :  { %1672 = vmatprep.subr.bf16.mxu1 %v1841_v29  ;;  %v1887_v27 = vld [vmem:[%s2409_s1 + $0x290] sm:$0xff]   ;;  %v1889_v29 = vld [vmem:[%s2409_s1 + $0x2d8] sm:$0xff]   ;;  %v1896_v36 = vld [vmem:[%s2409_s1 + $0x268] sm:$0xff]  }
  0x1f   :  { %v1897_v37 = vld [vmem:[%s2409_s1 + $0x2e8] sm:$0xff]   ;;  %v1924_v8 = vld [vmem:[%s2409_s1 + $0x360] sm:$0xff]  }
  0x20   :  { %1651 = vmatpush3.bf16.msra.mxu0 %v1842_v30  ;;  %v1890_v30 = vld [vmem:[%s2409_s1 + $0x218] sm:$0xff]   ;;  %v1899_v39 = vld [vmem:[%s2409_s1 + $0x2a8] sm:$0xff]   ;;  %v1925_v9 = vld [vmem:[%s2409_s1 + $0x3e0] sm:$0xff]  }
  0x21   :  { %1673 = vmatpush3.bf16.msra.mxu1 %v1843_v31  ;;  %1680 = vmatprep.subr.bf16.mxu0 %v1844_v40  ;;  %v1891_v31 = vld [vmem:[%s2409_s1 + $0x298] sm:$0xff]   ;;  %v1900_v40 = vld [vmem:[%s2409_s1 + $0x270] sm:$0xff]   ;;  %v1928_v12 = vld [vmem:[%s2409_s1 + $0x368] sm:$0xff]  }
  0x22   :  { %1702 = vmatprep.subr.bf16.mxu1 %v1845_v41  ;;  %v1901_v41 = vld [vmem:[%s2409_s1 + $0x2f0] sm:$0xff]   ;;  %v1929_v13 = vld [vmem:[%s2409_s1 + $0x3e8] sm:$0xff]  }
  0x23   :  { %1171 = vmatmul.mubr.bf16.vlgmr.msra.gmra.mrb[0].mxu0 %v1490_v35  ;;  %v1895_v35 = vld [vmem:[%s2409_s1 + $0x2a0] sm:$0xff]  }
  0x24   :  { %1212 = vmatmul.mubr.bf16.vlgmr.msra.gmra.mrb[0].mxu1 %v1492_v38  ;;  %1681 = vmatpush3.bf16.msra.mxu0 %v1846_v42  ;;  %v1898_v38 = vld [vmem:[%s2409_s1 + $0x228] sm:$0xff]   ;;  %v1902_v42 = vld [vmem:[%s2409_s1 + $0x230] sm:$0xff]  }
  0x25   :  { %1703 = vmatpush3.bf16.msra.mxu1 %v1847_v43  ;;  %1682 = vmatprep.subr.bf16.mxu0 %v1848_v44  ;;  %v1903_v43 = vld [vmem:[%s2409_s1 + $0x2b0] sm:$0xff]   ;;  %v1904_v44 = vld [vmem:[%s2409_s1 + $0x278] sm:$0xff]  }
  0x26   :  { %1704 = vmatprep.subr.bf16.mxu1 %v1849_v45  ;;  %1252 = vmatprep.mubr.bf16.mxu0 %v1495_v11  ;;  %v1905_v45 = vld [vmem:[%s2409_s1 + $0x2f8] sm:$0xff]   ;;  %v1927_v11 = vld [vmem:[%s2409_s1 + $0x3a0] sm:$0xff]  }
  0x27   :  { %1293 = vmatprep.mubr.bf16.mxu1 %v1497_v15  ;;  %v1931_v15 = vld [vmem:[%s2409_s1 + $0x3a8] sm:$0xff]  }
  0x28   :  { %1683 = vmatpush3.bf16.msra.mxu0 %v1850_v46  ;;  %v1906_v46 = vld [vmem:[%s2409_s1 + $0x238] sm:$0xff]  }
  0x29   :  { %1705 = vmatpush3.bf16.msra.mxu1 %v1851_v47  ;;  %1684 = vmatprep.subr.bf16.mxu0 %v1852_v48  ;;  %v1907_v47 = vld [vmem:[%s2409_s1 + $0x2b8] sm:$0xff]   ;;  %v22_v48 = vld [vmem:[%s2410_s0 + $0x20] sm:$0xff] }
  0x2a   :  { %1706 = vmatprep.subr.bf16.mxu1 %v1853_v49  ;;  %v30_v49 = vld [vmem:[%s2410_s0 + $0x60] sm:$0xff] }
  0x2c   :  { %1685 = vmatpush3.bf16.msra.mxu0 %v1854_v50  ;;  %v23_v50 = vld [vmem:[%s2410_s0 + $0x28] sm:$0xff] }
  0x2d   :  { %1707 = vmatpush3.bf16.msra.mxu1 %v1855_v51  ;;  %1686 = vmatprep.subr.bf16.mxu0 %v1856_v52  ;;  %v31_v51 = vld [vmem:[%s2410_s0 + $0x68] sm:$0xff]  ;;  %v1498_v52 = vcombine.low %v22_v48, %v30_v49 }
  0x2e   :  { %1708 = vmatprep.subr.bf16.mxu1 %v1857_v53  ;;  %v1499_v53 = vcombine.high %v22_v48, %v30_v49 }
  0x30   :  { %1687 = vmatpush3.bf16.msra.mxu0 %v1858_v54  ;;  %v1500_v54 = vcombine.low %v23_v50, %v31_v51 }
  0x31   :  { %1709 = vmatpush3.bf16.msra.mxu1 %v1859_v55  ;;  %1688 = vmatprep.subr.bf16.mxu0 %v1860_v56  ;;  %v1501_v55 = vcombine.high %v23_v50, %v31_v51  ;;  %v1908_v56 = vld [vmem:[%s2409_s1 + $0x340] sm:$0xff]  }
  0x32   :  { %1710 = vmatprep.subr.bf16.mxu1 %v1861_v57  ;;  %v1909_v57 = vld [vmem:[%s2409_s1 + $0x3c0] sm:$0xff]  }
  0x34   :  { %1689 = vmatpush3.bf16.msra.mxu0 %v1862_v58  ;;  %v1910_v58 = vld [vmem:[%s2409_s1 + $0x300] sm:$0xff]  }
  0x35   :  { %1711 = vmatpush3.bf16.msra.mxu1 %v1863_v59  ;;  %1690 = vmatprep.subr.bf16.mxu0 %v1864_v60  ;;  %v1911_v59 = vld [vmem:[%s2409_s1 + $0x380] sm:$0xff]   ;;  %v1912_v60 = vld [vmem:[%s2409_s1 + $0x348] sm:$0xff]  }
  0x36   :  { %1712 = vmatprep.subr.bf16.mxu1 %v1865_v61  ;;  %v1913_v61 = vld [vmem:[%s2409_s1 + $0x3c8] sm:$0xff]  }
  0x38   :  { %1691 = vmatpush3.bf16.msra.mxu0 %v1866_v62  ;;  %v1914_v62 = vld [vmem:[%s2409_s1 + $0x308] sm:$0xff]  }
  0x39   :  { %1713 = vmatpush3.bf16.msra.mxu1 %v1867_v63  ;;  %1692 = vmatprep.subr.bf16.mxu0 %v1868_v0  ;;  %v1915_v63 = vld [vmem:[%s2409_s1 + $0x388] sm:$0xff]   ;;  %v1916_v0 = vld [vmem:[%s2409_s1 + $0x350] sm:$0xff]  }
  0x3a   :  { %1714 = vmatprep.subr.bf16.mxu1 %v1869_v1  ;;  %v1917_v1 = vld [vmem:[%s2409_s1 + $0x3d0] sm:$0xff]  }
  0x3c   :  { %1693 = vmatpush3.bf16.msra.mxu0 %v1870_v2  ;;  %v1918_v2 = vld [vmem:[%s2409_s1 + $0x310] sm:$0xff]  }
  0x3d   :  { %1715 = vmatpush3.bf16.msra.mxu1 %v1871_v3  ;;  %1694 = vmatprep.subr.bf16.mxu0 %v1872_v4  ;;  %v1919_v3 = vld [vmem:[%s2409_s1 + $0x390] sm:$0xff]   ;;  %v1920_v4 = vld [vmem:[%s2409_s1 + $0x358] sm:$0xff]  }
  0x3e   :  { %1716 = vmatprep.subr.bf16.mxu1 %v1873_v5  ;;  %v1921_v5 = vld [vmem:[%s2409_s1 + $0x3d8] sm:$0xff]  }
  0x40   :  { %1695 = vmatpush3.bf16.msra.mxu0 %v1874_v6  ;;  %v1922_v6 = vld [vmem:[%s2409_s1 + $0x318] sm:$0xff]  }
  0x41   :  { %1717 = vmatpush3.bf16.msra.mxu1 %v1875_v7  ;;  %1724 = vmatprep.subr.bf16.mxu0 %v1876_v16  ;;  %v1923_v7 = vld [vmem:[%s2409_s1 + $0x398] sm:$0xff]   ;;  %v1932_v16 = vld [vmem:[%s2409_s1 + $0x370] sm:$0xff]  }
  0x42   :  { %1746 = vmatprep.subr.bf16.mxu1 %v1877_v17  ;;  %v1933_v17 = vld [vmem:[%s2409_s1 + $0x3f0] sm:$0xff]  }
  0x43   :  { %1253 = vmatmul.mubr.bf16.vlgmr.msra.gmra.mrb[4].mxu0 %v1494_v10  ;;  %v1926_v10 = vld [vmem:[%s2409_s1 + $0x320] sm:$0xff]  }
  0x44   :  { %1294 = vmatmul.mubr.bf16.vlgmr.msra.gmra.mrb[4].mxu1 %v1496_v14  ;;  %1725 = vmatpush3.bf16.msra.mxu0 %v1878_v18  ;;  %v1930_v14 = vld [vmem:[%s2409_s1 + $0x328] sm:$0xff]   ;;  %v1934_v18 = vld [vmem:[%s2409_s1 + $0x330] sm:$0xff]  }
  0x45   :  { %1747 = vmatpush3.bf16.msra.mxu1 %v1879_v19  ;;  %1726 = vmatprep.subr.bf16.mxu0 %v1880_v20  ;;  %v1935_v19 = vld [vmem:[%s2409_s1 + $0x3b0] sm:$0xff]   ;;  %v1936_v20 = vld [vmem:[%s2409_s1 + $0x378] sm:$0xff]  }
  0x46   :  { %1748 = vmatprep.subr.bf16.mxu1 %v1881_v21  ;;  %1334 = vmatprep.mubr.bf16.mxu0 %v1499_v53  ;;  %v1937_v21 = vld [vmem:[%s2409_s1 + $0x3f8] sm:$0xff]  }
  0x47   :  { %1375 = vmatprep.mubr.bf16.mxu1 %v1501_v55 }
  0x48   :  { %1727 = vmatpush3.bf16.msra.mxu0 %v1882_v22  ;;  %v1938_v22 = vld [vmem:[%s2409_s1 + $0x338] sm:$0xff]  }
  0x49   :  { %1749 = vmatpush3.bf16.msra.mxu1 %v1883_v23  ;;  %1728 = vmatprep.subr.bf16.mxu0 %v1884_v24  ;;  %v1939_v23 = vld [vmem:[%s2409_s1 + $0x3b8] sm:$0xff]   ;;  %v24_v24 = vld [vmem:[%s2410_s0 + $0x30] sm:$0xff] }
  0x4a   :  { %1750 = vmatprep.subr.bf16.mxu1 %v1885_v25  ;;  %v32_v25 = vld [vmem:[%s2410_s0 + $0x70] sm:$0xff] }
  0x4c   :  { %1729 = vmatpush3.bf16.msra.mxu0 %v1886_v26  ;;  %v25_v26 = vld [vmem:[%s2410_s0 + $0x38] sm:$0xff] }
  0x4d   :  { %1751 = vmatpush3.bf16.msra.mxu1 %v1887_v27  ;;  %1730 = vmatprep.subr.bf16.mxu0 %v1888_v28  ;;  %v1502_v27 = vcombine.low %v24_v24, %v32_v25  ;;  %v1503_v28 = vcombine.high %v24_v24, %v32_v25 }
  0x4e   :  { %1752 = vmatprep.subr.bf16.mxu1 %v1889_v29  ;;  %v33_v29 = vld [vmem:[%s2410_s0 + $0x78] sm:$0xff] }
  0x50   :  { %1731 = vmatpush3.bf16.msra.mxu0 %v1890_v30  ;;  %v1504_v30 = vcombine.low %v25_v26, %v33_v29 }
  0x51   :  { %1753 = vmatpush3.bf16.msra.mxu1 %v1891_v31  ;;  %1732 = vmatprep.subr.bf16.mxu0 %v1892_v32  ;;  %v1505_v31 = vcombine.high %v25_v26, %v33_v29  ;;  %v1634_v26 = vld [vmem:[%s2411_s2] ss:$0 sm:$0xff] }
  0x52   :  { %1754 = vmatprep.subr.bf16.mxu1 %v1893_v33 }
  0x54   :  { %1733 = vmatpush3.bf16.msra.mxu0 %v1894_v34 }
  0x55   :  { %1755 = vmatpush3.bf16.msra.mxu1 %v1895_v35  ;;  %1734 = vmatprep.subr.bf16.mxu0 %v1896_v36 }
  0x56   :  { %1756 = vmatprep.subr.bf16.mxu1 %v1897_v37 }
  0x58   :  { %1735 = vmatpush3.bf16.msra.mxu0 %v1898_v38 }
  0x59   :  { %1757 = vmatpush3.bf16.msra.mxu1 %v1899_v39  ;;  %1736 = vmatprep.subr.bf16.mxu0 %v1900_v40 }
  0x5a   :  { %1758 = vmatprep.subr.bf16.mxu1 %v1901_v41 }
  0x5c   :  { %1737 = vmatpush3.bf16.msra.mxu0 %v1902_v42 }
  0x5d   :  { %1759 = vmatpush3.bf16.msra.mxu1 %v1903_v43  ;;  %1738 = vmatprep.subr.bf16.mxu0 %v1904_v44 }
  0x5e   :  { %1760 = vmatprep.subr.bf16.mxu1 %v1905_v45 }
  0x60   :  { %1739 = vmatpush3.bf16.msra.mxu0 %v1906_v46 }
  0x61   :  { %1761 = vmatpush3.bf16.msra.mxu1 %v1907_v47  ;;  %1768 = vmatprep.subr.bf16.mxu0 %v1908_v56 }
  0x62   :  { %1790 = vmatprep.subr.bf16.mxu1 %v1909_v57 }
  0x63   :  { %1335 = vmatmul.mubr.bf16.vlgmr.msra.gmra.mrb[8].mxu0 %v1498_v52 }
  0x64   :  { %1376 = vmatmul.mubr.bf16.vlgmr.msra.gmra.mrb[8].mxu1 %v1500_v54  ;;  %1769 = vmatpush3.bf16.msra.mxu0 %v1910_v58 }
  0x65   :  { %1791 = vmatpush3.bf16.msra.mxu1 %v1911_v59  ;;  %1770 = vmatprep.subr.bf16.mxu0 %v1912_v60 }
  0x66   :  { %1792 = vmatprep.subr.bf16.mxu1 %v1913_v61  ;;  %1416 = vmatprep.mubr.bf16.mxu0 %v1503_v28 }
  0x67   :  { %1457 = vmatprep.mubr.bf16.mxu1 %v1505_v31 }
  0x68   :  { %1771 = vmatpush3.bf16.msra.mxu0 %v1914_v62 }
  0x69   :  { %1793 = vmatpush3.bf16.msra.mxu1 %v1915_v63  ;;  %1772 = vmatprep.subr.bf16.mxu0 %v1916_v0 }
  0x6a   :  { %1794 = vmatprep.subr.bf16.mxu1 %v1917_v1 }
  0x6c   :  { %1773 = vmatpush3.bf16.msra.mxu0 %v1918_v2 }
  0x6d   :  { %1795 = vmatpush3.bf16.msra.mxu1 %v1919_v3  ;;  %1774 = vmatprep.subr.bf16.mxu0 %v1920_v4 }
  0x6e   :  { %1796 = vmatprep.subr.bf16.mxu1 %v1921_v5 }
  0x70   :  { %1775 = vmatpush3.bf16.msra.mxu0 %v1922_v6 }
  0x71   :  { %1797 = vmatpush3.bf16.msra.mxu1 %v1923_v7  ;;  %1776 = vmatprep.subr.bf16.mxu0 %v1924_v8 }
  0x72   :  { %1798 = vmatprep.subr.bf16.mxu1 %v1925_v9 }
  0x74   :  { %1777 = vmatpush3.bf16.msra.mxu0 %v1926_v10 }
  0x75   :  { %1799 = vmatpush3.bf16.msra.mxu1 %v1927_v11  ;;  %1778 = vmatprep.subr.bf16.mxu0 %v1928_v12 }
  0x76   :  { %1800 = vmatprep.subr.bf16.mxu1 %v1929_v13 }
  0x78   :  { %1779 = vmatpush3.bf16.msra.mxu0 %v1930_v14 }
  0x79   :  { %1801 = vmatpush3.bf16.msra.mxu1 %v1931_v15  ;;  %1780 = vmatprep.subr.bf16.mxu0 %v1932_v16 }
  0x7a   :  { %1802 = vmatprep.subr.bf16.mxu1 %v1933_v17 }
  0x7c   :  { %1781 = vmatpush3.bf16.msra.mxu0 %v1934_v18 }
  0x7d   :  { %1803 = vmatpush3.bf16.msra.mxu1 %v1935_v19  ;;  %1782 = vmatprep.subr.bf16.mxu0 %v1936_v20 }
  0x7e   :  { %1804 = vmatprep.subr.bf16.mxu1 %v1937_v21 }
  0x80   :  { %1783 = vmatpush3.bf16.msra.mxu0 %v1938_v22 }
  0x81   :  { %1805 = vmatpush3.bf16.msra.mxu1 %v1939_v23 }
  0x83   :  { %1417 = vmatmul.mubr.bf16.vlgmr.msra.gmra.mrb[12].mxu0 %v1502_v27 }
  0x84   :  { %1458 = vmatmul.mubr.bf16.vlgmr.msra.gmra.mrb[12].mxu1 %v1504_v30  ;;  %v1635_v30 = vld [vmem:[%s2412_s3] ss:$0 sm:$0xff] }
  0xf6   :  { %v1652_v32 = vpop.f32.mrb[0].mxu0 }
  0xf7   :  { %v1674_v33 = vpop.f32.mrb[0].mxu1  ;;  %v1653_v34 = vpop.f32.mrb[1].mxu0 }
  0xf8   :  { %v1654_v35 = vadd.f32 %v1653_v34, %v1652_v32  ;;  %v1675_v36 = vpop.f32.mrb[1].mxu1  ;;  %v1655_v37 = vpop.f32.mrb[2].mxu0 }
  0xf9   :  { %v1676_v38 = vadd.f32 %v1675_v36, %v1674_v33  ;;  %v1677_v39 = vpop.f32.mrb[2].mxu1  ;;  %v1656_v40 = vpop.f32.mrb[3].mxu0 }
  0xfa   :  { %v1657_v41 = vadd.f32 %v1656_v40, %v1655_v37  ;;  %v1678_v42 = vpop.f32.mrb[3].mxu1 }
  0xfb   :  { %v1214_v43 = vadd.f32 %v1676_v38, %v1654_v35  ;;  %v1679_v44 = vadd.f32 %v1678_v42, %v1677_v39 }
  0xfd   :  { %v1217_v45 = vadd.f32 %v1679_v44, %v1657_v41 }
 0x116   :  { %v1696_v46 = vpop.f32.mrb[4].mxu0 }
 0x117   :  { %v1718_v47 = vpop.f32.mrb[4].mxu1  ;;  %v1697_v48 = vpop.f32.mrb[5].mxu0 }
 0x118   :  { %v1698_v49 = vadd.f32 %v1697_v48, %v1696_v46  ;;  %v1719_v50 = vpop.f32.mrb[5].mxu1  ;;  %v1699_v51 = vpop.f32.mrb[6].mxu0 }
 0x119   :  { %v1720_v52 = vadd.f32 %v1719_v50, %v1718_v47  ;;  %v1721_v53 = vpop.f32.mrb[6].mxu1  ;;  %v1700_v54 = vpop.f32.mrb[7].mxu0 }
 0x11a   :  { %v1255_v55 = vadd.f32 %v1698_v49, %v1214_v43  ;;  %v1701_v56 = vadd.f32 %v1700_v54, %v1699_v51  ;;  %v1722_v57 = vpop.f32.mrb[7].mxu1 }
 0x11b   :  { %v1723_v58 = vadd.f32 %v1722_v57, %v1721_v53 }
 0x11c   :  { %v1296_v59 = vadd.f32 %v1720_v52, %v1255_v55  ;;  %v1258_v60 = vadd.f32 %v1701_v56, %v1217_v45 }
 0x11e   :  { %v1299_v61 = vadd.f32 %v1723_v58, %v1258_v60 }
 0x136   :  { %v1740_v62 = vpop.f32.mrb[8].mxu0 }
 0x137   :  { %v1762_v63 = vpop.f32.mrb[8].mxu1  ;;  %v1741_v0 = vpop.f32.mrb[9].mxu0 }
 0x138   :  { %v1763_v1 = vpop.f32.mrb[9].mxu1  ;;  %v1742_v2 = vadd.f32 %v1741_v0, %v1740_v62  ;;  %v1743_v4 = vpop.f32.mrb[10].mxu0 }
 0x139   :  { %v1764_v3 = vadd.f32 %v1763_v1, %v1762_v63  ;;  %v1765_v5 = vpop.f32.mrb[10].mxu1  ;;  %v1744_v6 = vpop.f32.mrb[11].mxu0 }
 0x13a   :  { %v1766_v7 = vpop.f32.mrb[11].mxu1  ;;  %v1337_v8 = vadd.f32 %v1742_v2, %v1296_v59  ;;  %v1745_v9 = vadd.f32 %v1744_v6, %v1743_v4 }
 0x13b   :  { %v1767_v10 = vadd.f32 %v1766_v7, %v1765_v5 }
 0x13c   :  { %v1378_v11 = vadd.f32 %v1764_v3, %v1337_v8  ;;  %v1340_v12 = vadd.f32 %v1745_v9, %v1299_v61 }
 0x13e   :  { %v1381_v13 = vadd.f32 %v1767_v10, %v1340_v12 }
 0x156   :  { %v1784_v14 = vpop.f32.mrb[12].mxu0 }
 0x157   :  { %v1806_v15 = vpop.f32.mrb[12].mxu1  ;;  %v1785_v16 = vpop.f32.mrb[13].mxu0 }
 0x158   :  { %v1786_v17 = vadd.f32 %v1785_v16, %v1784_v14  ;;  %v1807_v18 = vpop.f32.mrb[13].mxu1  ;;  %v1787_v19 = vpop.f32.mrb[14].mxu0 }
 0x159   :  { %v1808_v20 = vadd.f32 %v1807_v18, %v1806_v15  ;;  %v1809_v21 = vpop.f32.mrb[14].mxu1  ;;  %v1788_v22 = vpop.f32.mrb[15].mxu0 }
 0x15a   :  { %v1419_v23 = vadd.f32 %v1786_v17, %v1378_v11  ;;  %v1789_v24 = vadd.f32 %v1788_v22, %v1787_v19  ;;  %v1810_v25 = vpop.f32.mrb[15].mxu1 }
 0x15b   :  { %v1811_v27 = vadd.f32 %v1810_v25, %v1809_v21 }
 0x15c   :  { %v1460_v28 = vadd.f32 %v1808_v20, %v1419_v23  ;;  %v1422_v29 = vadd.f32 %v1789_v24, %v1381_v13 }
 0x15e   :  { %v1473_v31 = vmul.f32 %v1634_v26, %v1460_v28  ;;  %v1463_v32 = vadd.f32 %v1811_v27, %v1422_v29 }
 0x160   :  { %v1482_v33 = vadd.f32 %v1635_v30, %v1473_v31  ;;  %v1474_v34 = vmul.f32 %v1634_v26, %v1463_v32 }
 0x162   :  { %1484 = vst [vmem:[%s2413_s4] sm:$0xff] %v1482_v33  ;;  %v1483_v35 = vadd.f32 %v1635_v30, %v1474_v34 }
 0x164   :  { %1485 = vst [vmem:[%s2413_s4 + $0x8] sm:$0xff] %v1483_v35 }

// kernel: _lambda_.15
= control target key start
LH: loop header
LB: loop body
LE: loop exit
PB: predicated region body
PF: predicated region fallthrough
CT: control target
= control target key end

     0   :  { %s714_s15 = smov 0   ;;  %s716_s16 = smov 0   ;;  %s782_s0 = inlined_call_operand.vmem [shape: bf16[8,16,256], index: 0, kind: input, shape index: {}]   ;;  %s783_s1 = inlined_call_operand.vmem [shape: bf16[8,256,128], index: 1, kind: input, shape index: {}]   ;;  %s784_s2 = inlined_call_operand.vmem [shape: f32[1,128], index: 2, kind: input, shape index: {}]   ;;  %s785_s3 = inlined_call_operand.vmem [shape: f32[1,128], index: 3, kind: input, shape index: {}]   ;;  %s786_s4 = inlined_call_operand.vmem [shape: f32[8,16,128], index: 4, kind: output, shape index: {}]  }
   0x1   :  { %s718_s17 = smov 0  }
   0x2 LB: > { %s26_s18 = sadd.s32 1, %s683_s16  ;;  %p568_p0 = scmp.ge.s32.totalorder %s687_s17, 1  ;;  %s687_s17 = sphi %s718_s17, %s14_s17   ;;  %s683_s16 = sphi %s716_s16, %s788_s16   ;;  %s679_s15 = sphi %s714_s15, %s787_s15  }
   0x3   : > { %p28_p1 = scmp.ge.s32.totalorder %s26_s18, 8  ;;  %p194_p2 = scmp.lt.s32.totalorder %s687_s17, 9 }
   0x5   : > { %s790_s18 = smov (%p28_p1, %s26_s18), 0  ;;  %p195_p3 = pnand %p568_p0, %p194_p2 }
   0x6   : > { %p235_p4 = scmp.lt.s32.totalorder (!%p195_p3), %s679_s15, 7  ;;  %v593_v20 = vld [vmem:[%s784_s2] ss:$0 sm:$0xff] (!%p195_p3) }
   0x7   : > { %198 = sbr.rel (%p195_p3) target bundleno = 272 (0x110), region = 36  ;;  %v594_v23 = vld [vmem:[%s785_s3] ss:$0 sm:$0xff] (!%p195_p3) }
   0xe   : > { %s792_s15 = smov (!%p235_p4, %s679_s15), 7 }
   0xf   : > { %s598_s19 = sshll.u32 %s792_s15, 7  ;;  %s597_s23 = sshll.u32 %s792_s15, 4 }
  0x10   : > { %s738_s22 = scalar_lea.vmem %s783_s1, %s598_s19  ;;  %s243_s26 = scalar_lea.vmem %s782_s0, %s597_s23 }
  0x11   : > { %v646_v0 = vld [vmem:[%s738_s22 + $0x40] sm:$0xff]   ;;  %v648_v2 = vld [vmem:[%s738_s22 + $0x48] sm:$0xff]   ;;  %v650_v4 = vld [vmem:[%s738_s22 + $0x50] sm:$0xff]   ;;  %s258_s7 = scalar_lea.vmem %s786_s4, %s597_s23 }
  0x12   : > { %v647_v1 = vld [vmem:[%s738_s22] sm:$0xff]   ;;  %600 = vmatprep.subr.bf16.mxu0 %v646_v0  ;;  %v649_v3 = vld [vmem:[%s738_s22 + $0x8] sm:$0xff]   ;;  %v651_v5 = vld [vmem:[%s738_s22 + $0x10] sm:$0xff]  }
  0x13   : > { %601 = vmatpush3.bf16.msra.mxu0 %v647_v1  ;;  %v652_v6 = vld [vmem:[%s738_s22 + $0x58] sm:$0xff]   ;;  %v654_v8 = vld [vmem:[%s738_s22 + $0x60] sm:$0xff]   ;;  %v656_v10 = vld [vmem:[%s738_s22 + $0x68] sm:$0xff]  }
  0x14   : > { %602 = vmatprep.subr.bf16.mxu0 %v648_v2  ;;  %v653_v7 = vld [vmem:[%s738_s22 + $0x18] sm:$0xff]   ;;  %v655_v9 = vld [vmem:[%s738_s22 + $0x20] sm:$0xff]   ;;  %v657_v12 = vld [vmem:[%s738_s22 + $0x28] sm:$0xff]  }
  0x15   : > { %v664_v11 = vld [vmem:[%s243_s26 + $0x4] ss:$8 sps:$4 sm:$0xff]   ;;  %v658_v13 = vld [vmem:[%s738_s22 + $0x70] sm:$0xff]   ;;  %v660_v15 = vld [vmem:[%s738_s22 + $0x78] sm:$0xff]  }
  0x16   : > { %433 = vmatprep.mubr.bf16.mxu0 %v664_v11  ;;  %v659_v14 = vld [vmem:[%s738_s22 + $0x30] sm:$0xff]   ;;  %v661_v16 = vld [vmem:[%s738_s22 + $0x38] sm:$0xff]   ;;  %v662_v17 = vld [vmem:[%s243_s26] ss:$8 sps:$4 sm:$0xff]  }
  0x17   : > { %603 = vmatpush3.bf16.msra.mxu0 %v649_v3 }
  0x18   : > { %604 = vmatprep.subr.bf16.mxu0 %v650_v4 }
  0x1b   : > { %605 = vmatpush3.bf16.msra.mxu0 %v651_v5 }
  0x1c   : > { %606 = vmatprep.subr.bf16.mxu0 %v652_v6 }
  0x1f   : > { %607 = vmatpush3.bf16.msra.mxu0 %v653_v7 }
  0x20   : > { %608 = vmatprep.subr.bf16.mxu0 %v654_v8 }
  0x23   : > { %609 = vmatpush3.bf16.msra.mxu0 %v655_v9 }
  0x24   : > { %610 = vmatprep.subr.bf16.mxu0 %v656_v10 }
  0x27   : > { %611 = vmatpush3.bf16.msra.mxu0 %v657_v12 }
  0x28   : > { %612 = vmatprep.subr.bf16.mxu0 %v658_v13 }
  0x2b   : > { %613 = vmatpush3.bf16.msra.mxu0 %v659_v14 }
  0x2c   : > { %614 = vmatprep.subr.bf16.mxu0 %v660_v15 }
  0x2f   : > { %615 = vmatpush3.bf16.msra.mxu0 %v661_v16 }
  0x32   : > { %434 = vmatmul.mubr.bf16.vlgmr.msra.gmra.mrb[0].mxu0 %v662_v17 }
 0x105   : > { %v616_v18 = vpop.f32.mrb[0].mxu0 }
 0x106   : > { %v617_v19 = vpop.f32.mrb[1].mxu0 }
 0x107   : > { %v618_v21 = vadd.f32 %v617_v19, %v616_v18  ;;  %v619_v22 = vpop.f32.mrb[2].mxu0 }
 0x108   : > { %v620_v24 = vpop.f32.mrb[3].mxu0 }
 0x109   : > { %v449_v25 = vmul.f32 %v618_v21, %v593_v20  ;;  %v621_v26 = vadd.f32 %v620_v24, %v619_v22 }
 0x10b   : > { %v458_v27 = vadd.f32 %v594_v23, %v449_v25  ;;  %v450_v28 = vmul.f32 %v621_v26, %v593_v20 }
 0x10d   : > { %460 = vst [vmem:[%s258_s7] sm:$0xff] %v458_v27  ;;  %v459_v29 = vadd.f32 %v594_v23, %v450_v28 }
 0x10f   : > { %461 = vst [vmem:[%s258_s7 + $0x8] sm:$0xff] %v459_v29 }
 0x110 PF: > { %s14_s17 = sadd.s32 1, %s687_s17   ;;  %s787_s15 = smov %s683_s16 }
 0x111   : > { %p11_p5 = scmp.ge.s32.totalorder %s14_s17, 10   ;;  %s788_s16 = smov %s790_s18 }
 0x113   :  { %13 = sbr.rel (!%p11_p5) target bundleno = 2 (0x2), region = 69 }

// kernel: _lambda_.16
= control target key start
LH: loop header
LB: loop body
LE: loop exit
PB: predicated region body
PF: predicated region fallthrough
CT: control target
= control target key end

     0   :  { %s954_s15 = smov 0   ;;  %s956_s16 = smov 0   ;;  %s1035_s0 = inlined_call_operand.vmem [shape: bf16[8,16,512], index: 0, kind: input, shape index: {}]   ;;  %s1036_s1 = inlined_call_operand.vmem [shape: bf16[8,512,128], index: 1, kind: input, shape index: {}]   ;;  %s1037_s2 = inlined_call_operand.vmem [shape: f32[1,128], index: 2, kind: input, shape index: {}]   ;;  %s1038_s3 = inlined_call_operand.vmem [shape: f32[1,128], index: 3, kind: input, shape index: {}]   ;;  %s1039_s4 = inlined_call_operand.vmem [shape: f32[8,16,128], index: 4, kind: output, shape index: {}]  }
   0x1   :  { %s958_s17 = smov 0  }
   0x2 LB: > { %s26_s18 = sadd.s32 1, %s923_s16  ;;  %p749_p0 = scmp.ge.s32.totalorder %s927_s17, 1  ;;  %s927_s17 = sphi %s958_s17, %s14_s17   ;;  %s923_s16 = sphi %s956_s16, %s1041_s16   ;;  %s919_s15 = sphi %s954_s15, %s1040_s15  }
   0x3   : > { %p28_p1 = scmp.ge.s32.totalorder %s26_s18, 8  ;;  %p194_p2 = scmp.lt.s32.totalorder %s927_s17, 9 }
   0x5   : > { %s1043_s18 = smov (%p28_p1, %s26_s18), 0  ;;  %p195_p3 = pnand %p749_p0, %p194_p2 }
   0x6   : > { %p235_p4 = scmp.lt.s32.totalorder (!%p195_p3), %s919_s15, 7  ;;  %v792_v45 = vld [vmem:[%s1037_s2] ss:$0 sm:$0xff] (!%p195_p3) }
   0x7   : > { %198 = sbr.rel (%p195_p3) target bundleno = 276 (0x114), region = 36  ;;  %v793_v50 = vld [vmem:[%s1038_s3] ss:$0 sm:$0xff] (!%p195_p3) }
   0xe   : > { %s1045_s15 = smov (!%p235_p4, %s919_s15), 7 }
   0xf   : > { %s797_s19 = sshll.u32 %s1045_s15, 8  ;;  %s796_s23 = sshll.u32 %s1045_s15, 5 }
  0x10   : > { %s978_s22 = scalar_lea.vmem %s1036_s1, %s797_s19  ;;  %s243_s26 = scalar_lea.vmem %s1035_s0, %s796_s23 }
  0x11   : > { %v867_v0 = vld [vmem:[%s978_s22 + $0x40] sm:$0xff]   ;;  %v871_v4 = vld [vmem:[%s978_s22 + $0x48] sm:$0xff]   ;;  %v875_v8 = vld [vmem:[%s978_s22 + $0x50] sm:$0xff]   ;;  %s798_s29 = sshll.u32 %s1045_s15, 4 }
  0x12   : > { %v868_v1 = vld [vmem:[%s978_s22 + $0xc0] sm:$0xff]   ;;  %799 = vmatprep.subr.bf16.mxu0 %v867_v0  ;;  %v872_v5 = vld [vmem:[%s978_s22 + $0xc8] sm:$0xff]   ;;  %v876_v9 = vld [vmem:[%s978_s22 + $0xd0] sm:$0xff]   ;;  %s258_s8 = scalar_lea.vmem %s1039_s4, %s798_s29 }
  0x13   : > { %v869_v2 = vld [vmem:[%s978_s22] sm:$0xff]   ;;  %821 = vmatprep.subr.bf16.mxu1 %v868_v1  ;;  %v873_v6 = vld [vmem:[%s978_s22 + $0x8] sm:$0xff]   ;;  %v877_v10 = vld [vmem:[%s978_s22 + $0x10] sm:$0xff]  }
  0x14   : > { %v870_v3 = vld [vmem:[%s978_s22 + $0x80] sm:$0xff]   ;;  %800 = vmatpush3.bf16.msra.mxu0 %v869_v2  ;;  %v874_v7 = vld [vmem:[%s978_s22 + $0x88] sm:$0xff]   ;;  %v878_v11 = vld [vmem:[%s978_s22 + $0x90] sm:$0xff]  }
  0x15   : > { %822 = vmatpush3.bf16.msra.mxu1 %v870_v3  ;;  %801 = vmatprep.subr.bf16.mxu0 %v871_v4  ;;  %v879_v12 = vld [vmem:[%s978_s22 + $0x58] sm:$0xff]   ;;  %v883_v16 = vld [vmem:[%s978_s22 + $0x60] sm:$0xff]   ;;  %v887_v20 = vld [vmem:[%s978_s22 + $0x68] sm:$0xff]  }
  0x16   : > { %823 = vmatprep.subr.bf16.mxu1 %v872_v5  ;;  %v880_v13 = vld [vmem:[%s978_s22 + $0xd8] sm:$0xff]   ;;  %v884_v17 = vld [vmem:[%s978_s22 + $0xe0] sm:$0xff]   ;;  %v888_v21 = vld [vmem:[%s978_s22 + $0xe8] sm:$0xff]  }
  0x17   : > { %v881_v14 = vld [vmem:[%s978_s22 + $0x18] sm:$0xff]   ;;  %v885_v18 = vld [vmem:[%s978_s22 + $0x20] sm:$0xff]   ;;  %v889_v22 = vld [vmem:[%s978_s22 + $0x28] sm:$0xff]  }
  0x18   : > { %802 = vmatpush3.bf16.msra.mxu0 %v873_v6  ;;  %v882_v15 = vld [vmem:[%s978_s22 + $0x98] sm:$0xff]   ;;  %v886_v19 = vld [vmem:[%s978_s22 + $0xa0] sm:$0xff]   ;;  %v890_v23 = vld [vmem:[%s978_s22 + $0xa8] sm:$0xff]  }
  0x19   : > { %824 = vmatpush3.bf16.msra.mxu1 %v874_v7  ;;  %803 = vmatprep.subr.bf16.mxu0 %v875_v8  ;;  %v891_v24 = vld [vmem:[%s978_s22 + $0x70] sm:$0xff]   ;;  %v895_v28 = vld [vmem:[%s978_s22 + $0x78] sm:$0xff]  }
  0x1a   : > { %825 = vmatprep.subr.bf16.mxu1 %v876_v9  ;;  %v892_v25 = vld [vmem:[%s978_s22 + $0xf0] sm:$0xff]   ;;  %v896_v29 = vld [vmem:[%s978_s22 + $0xf8] sm:$0xff]  }
  0x1b   : > { %v893_v26 = vld [vmem:[%s978_s22 + $0x30] sm:$0xff]   ;;  %v897_v30 = vld [vmem:[%s978_s22 + $0x38] sm:$0xff]  }
  0x1c   : > { %804 = vmatpush3.bf16.msra.mxu0 %v877_v10  ;;  %v894_v27 = vld [vmem:[%s978_s22 + $0xb0] sm:$0xff]   ;;  %v898_v31 = vld [vmem:[%s978_s22 + $0xb8] sm:$0xff]  }
  0x1d   : > { %826 = vmatpush3.bf16.msra.mxu1 %v878_v11  ;;  %805 = vmatprep.subr.bf16.mxu0 %v879_v12  ;;  %v899_v32 = vld [vmem:[%s243_s26] ss:$16 sps:$4 sm:$0xff]   ;;  %v901_v33 = vld [vmem:[%s243_s26 + $0x4] ss:$16 sps:$4 sm:$0xff]   ;;  %v902_v34 = vld [vmem:[%s243_s26 + $0x8] ss:$16 sps:$4 sm:$0xff]  }
  0x1e   : > { %827 = vmatprep.subr.bf16.mxu1 %v880_v13  ;;  %v904_v35 = vld [vmem:[%s243_s26 + $0xc] ss:$16 sps:$4 sm:$0xff]   ;;  %573 = vmatprep.mubr.bf16.mxu0 %v901_v33 }
  0x1f   : > { %614 = vmatprep.mubr.bf16.mxu1 %v904_v35 }
  0x20   : > { %806 = vmatpush3.bf16.msra.mxu0 %v881_v14 }
  0x21   : > { %828 = vmatpush3.bf16.msra.mxu1 %v882_v15  ;;  %807 = vmatprep.subr.bf16.mxu0 %v883_v16 }
  0x22   : > { %829 = vmatprep.subr.bf16.mxu1 %v884_v17 }
  0x24   : > { %808 = vmatpush3.bf16.msra.mxu0 %v885_v18 }
  0x25   : > { %830 = vmatpush3.bf16.msra.mxu1 %v886_v19  ;;  %809 = vmatprep.subr.bf16.mxu0 %v887_v20 }
  0x26   : > { %831 = vmatprep.subr.bf16.mxu1 %v888_v21 }
  0x28   : > { %810 = vmatpush3.bf16.msra.mxu0 %v889_v22 }
  0x29   : > { %832 = vmatpush3.bf16.msra.mxu1 %v890_v23  ;;  %811 = vmatprep.subr.bf16.mxu0 %v891_v24 }
  0x2a   : > { %833 = vmatprep.subr.bf16.mxu1 %v892_v25 }
  0x2c   : > { %812 = vmatpush3.bf16.msra.mxu0 %v893_v26 }
  0x2d   : > { %834 = vmatpush3.bf16.msra.mxu1 %v894_v27  ;;  %813 = vmatprep.subr.bf16.mxu0 %v895_v28 }
  0x2e   : > { %835 = vmatprep.subr.bf16.mxu1 %v896_v29 }
  0x30   : > { %814 = vmatpush3.bf16.msra.mxu0 %v897_v30 }
  0x31   : > { %836 = vmatpush3.bf16.msra.mxu1 %v898_v31 }
  0x33   : > { %574 = vmatmul.mubr.bf16.vlgmr.msra.gmra.mrb[0].mxu0 %v899_v32 }
  0x34   : > { %615 = vmatmul.mubr.bf16.vlgmr.msra.gmra.mrb[0].mxu1 %v902_v34 }
 0x106   : > { %v815_v36 = vpop.f32.mrb[0].mxu0 }
 0x107   : > { %v837_v37 = vpop.f32.mrb[0].mxu1  ;;  %v816_v38 = vpop.f32.mrb[1].mxu0 }
 0x108   : > { %v817_v39 = vadd.f32 %v816_v38, %v815_v36  ;;  %v838_v40 = vpop.f32.mrb[1].mxu1  ;;  %v818_v41 = vpop.f32.mrb[2].mxu0 }
 0x109   : > { %v839_v42 = vadd.f32 %v838_v40, %v837_v37  ;;  %v840_v43 = vpop.f32.mrb[2].mxu1  ;;  %v819_v44 = vpop.f32.mrb[3].mxu0 }
 0x10a   : > { %v820_v46 = vadd.f32 %v819_v44, %v818_v41  ;;  %v841_v47 = vpop.f32.mrb[3].mxu1 }
 0x10b   : > { %v617_v48 = vadd.f32 %v839_v42, %v817_v39  ;;  %v842_v49 = vadd.f32 %v841_v47, %v840_v43 }
 0x10d   : > { %v630_v51 = vmul.f32 %v792_v45, %v617_v48  ;;  %v620_v52 = vadd.f32 %v842_v49, %v820_v46 }
 0x10f   : > { %v639_v53 = vadd.f32 %v793_v50, %v630_v51  ;;  %v631_v54 = vmul.f32 %v792_v45, %v620_v52 }
 0x111   : > { %641 = vst [vmem:[%s258_s8] sm:$0xff] %v639_v53  ;;  %v640_v55 = vadd.f32 %v793_v50, %v631_v54 }
 0x113   : > { %642 = vst [vmem:[%s258_s8 + $0x8] sm:$0xff] %v640_v55 }
 0x114 PF: > { %s14_s17 = sadd.s32 1, %s927_s17   ;;  %s1040_s15 = smov %s923_s16 }
 0x115   : > { %p11_p5 = scmp.ge.s32.totalorder %s14_s17, 10   ;;  %s1041_s16 = smov %s1043_s18 }
 0x117   :  { %13 = sbr.rel (!%p11_p5) target bundleno = 2 (0x2), region = 69 }

// kernel: _lambda_.17
= control target key start
LH: loop header
LB: loop body
LE: loop exit
PB: predicated region body
PF: predicated region fallthrough
CT: control target
= control target key end

     0   :  { %s841_s15 = smov 0   ;;  %s843_s16 = smov 0   ;;  %s929_s0 = inlined_call_operand.vmem [shape: bf16[8,64,256], index: 0, kind: input, shape index: {}]   ;;  %s930_s1 = inlined_call_operand.vmem [shape: bf16[8,256,128], index: 1, kind: input, shape index: {}]   ;;  %s931_s2 = inlined_call_operand.vmem [shape: f32[1,128], index: 2, kind: input, shape index: {}]   ;;  %s932_s3 = inlined_call_operand.vmem [shape: f32[1,128], index: 3, kind: input, shape index: {}]   ;;  %s933_s4 = inlined_call_operand.vmem [shape: f32[8,64,128], index: 4, kind: output, shape index: {}]  }
   0x1   :  { %s845_s17 = smov 0  }
   0x2 LB: > { %s26_s18 = sadd.s32 1, %s810_s16  ;;  %p646_p0 = scmp.ge.s32.totalorder %s814_s17, 1  ;;  %s814_s17 = sphi %s845_s17, %s14_s17   ;;  %s810_s16 = sphi %s843_s16, %s935_s16   ;;  %s806_s15 = sphi %s841_s15, %s934_s15  }
   0x3   : > { %p28_p1 = scmp.ge.s32.totalorder %s26_s18, 8  ;;  %p194_p2 = scmp.lt.s32.totalorder %s814_s17, 9 }
   0x5   : > { %s937_s18 = smov (%p28_p1, %s26_s18), 0  ;;  %p195_p3 = pnand %p646_p0, %p194_p2 }
   0x6   : > { %p235_p4 = scmp.lt.s32.totalorder (!%p195_p3), %s806_s15, 7  ;;  %v677_v27 = vld [vmem:[%s931_s2] ss:$0 sm:$0xff] (!%p195_p3) }
   0x7   : > { %198 = sbr.rel (%p195_p3) target bundleno = 280 (0x118), region = 36  ;;  %v678_v33 = vld [vmem:[%s932_s3] ss:$0 sm:$0xff] (!%p195_p3) }
   0xe   : > { %s939_s15 = smov (!%p235_p4, %s806_s15), 7 }
   0xf   : > { %s682_s19 = sshll.u32 %s939_s15, 7  ;;  %s681_s23 = sshll.u32 %s939_s15, 6 }
  0x10   : > { %s865_s22 = scalar_lea.vmem %s930_s1, %s682_s19  ;;  %s882_s26 = scalar_lea.vmem %s929_s0, %s681_s23 }
  0x11   : > { %v764_v0 = vld [vmem:[%s865_s22 + $0x40] sm:$0xff]   ;;  %v766_v2 = vld [vmem:[%s865_s22 + $0x48] sm:$0xff]   ;;  %v768_v4 = vld [vmem:[%s865_s22 + $0x50] sm:$0xff]   ;;  %s910_s7 = scalar_lea.vmem %s933_s4, %s681_s23 }
  0x12   : > { %v765_v1 = vld [vmem:[%s865_s22] sm:$0xff]   ;;  %684 = vmatprep.subr.bf16.mxu0 %v764_v0  ;;  %724 = vmatprep.subr.bf16.mxu1 %v764_v0  ;;  %v767_v3 = vld [vmem:[%s865_s22 + $0x8] sm:$0xff]   ;;  %v769_v5 = vld [vmem:[%s865_s22 + $0x10] sm:$0xff]  }
  0x13   : > { %685 = vmatpush3.bf16.msra.mxu0 %v765_v1  ;;  %732 = vmatpush3.bf16.msra.mxu1 %v765_v1  ;;  %v770_v6 = vld [vmem:[%s865_s22 + $0x58] sm:$0xff]   ;;  %v772_v8 = vld [vmem:[%s865_s22 + $0x60] sm:$0xff]   ;;  %v774_v10 = vld [vmem:[%s865_s22 + $0x68] sm:$0xff]  }
  0x14   : > { %686 = vmatprep.subr.bf16.mxu0 %v766_v2  ;;  %725 = vmatprep.subr.bf16.mxu1 %v766_v2  ;;  %v771_v7 = vld [vmem:[%s865_s22 + $0x18] sm:$0xff]   ;;  %v773_v9 = vld [vmem:[%s865_s22 + $0x20] sm:$0xff]   ;;  %v775_v13 = vld [vmem:[%s865_s22 + $0x28] sm:$0xff]  }
  0x15   : > { %v782_v11 = vld [vmem:[%s882_s26 + $0x4] ss:$8 sps:$4 sm:$0xff]   ;;  %v776_v14 = vld [vmem:[%s865_s22 + $0x70] sm:$0xff]   ;;  %v778_v16 = vld [vmem:[%s865_s22 + $0x78] sm:$0xff]  }
  0x16   : > { %v785_v12 = vld [vmem:[%s882_s26 + $0x24] ss:$8 sps:$4 sm:$0xff]   ;;  %469 = vmatprep.mubr.bf16.mxu0 %v782_v11  ;;  %v777_v15 = vld [vmem:[%s865_s22 + $0x30] sm:$0xff]   ;;  %v779_v17 = vld [vmem:[%s865_s22 + $0x38] sm:$0xff]  }
  0x17   : > { %687 = vmatpush3.bf16.msra.mxu0 %v767_v3  ;;  %733 = vmatpush3.bf16.msra.mxu1 %v767_v3  ;;  %v780_v18 = vld [vmem:[%s882_s26] ss:$8 sps:$4 sm:$0xff]   ;;  %v786_v20 = vld [vmem:[%s882_s26 + $0x14] ss:$8 sps:$4 sm:$0xff]   ;;  %v790_v22 = vld [vmem:[%s882_s26 + $0x10] ss:$8 sps:$4 sm:$0xff]  }
  0x18   : > { %688 = vmatprep.subr.bf16.mxu0 %v768_v4  ;;  %726 = vmatprep.subr.bf16.mxu1 %v768_v4  ;;  %v783_v19 = vld [vmem:[%s882_s26 + $0x20] ss:$8 sps:$4 sm:$0xff]   ;;  %v788_v21 = vld [vmem:[%s882_s26 + $0x34] ss:$8 sps:$4 sm:$0xff]   ;;  %v791_v23 = vld [vmem:[%s882_s26 + $0x30] ss:$8 sps:$4 sm:$0xff]  }
  0x19   : > { %485 = vmatprep.mubr.bf16.mxu1 %v785_v12 }
  0x1b   : > { %689 = vmatpush3.bf16.msra.mxu0 %v769_v5  ;;  %734 = vmatpush3.bf16.msra.mxu1 %v769_v5 }
  0x1c   : > { %690 = vmatprep.subr.bf16.mxu0 %v770_v6  ;;  %727 = vmatprep.subr.bf16.mxu1 %v770_v6 }
  0x1f   : > { %691 = vmatpush3.bf16.msra.mxu0 %v771_v7  ;;  %735 = vmatpush3.bf16.msra.mxu1 %v771_v7 }
  0x20   : > { %692 = vmatprep.subr.bf16.mxu0 %v772_v8  ;;  %728 = vmatprep.subr.bf16.mxu1 %v772_v8 }
  0x23   : > { %693 = vmatpush3.bf16.msra.mxu0 %v773_v9  ;;  %736 = vmatpush3.bf16.msra.mxu1 %v773_v9 }
  0x24   : > { %694 = vmatprep.subr.bf16.mxu0 %v774_v10  ;;  %729 = vmatprep.subr.bf16.mxu1 %v774_v10 }
  0x27   : > { %695 = vmatpush3.bf16.msra.mxu0 %v775_v13  ;;  %737 = vmatpush3.bf16.msra.mxu1 %v775_v13 }
  0x28   : > { %696 = vmatprep.subr.bf16.mxu0 %v776_v14  ;;  %730 = vmatprep.subr.bf16.mxu1 %v776_v14 }
  0x2b   : > { %697 = vmatpush3.bf16.msra.mxu0 %v777_v15  ;;  %738 = vmatpush3.bf16.msra.mxu1 %v777_v15 }
  0x2c   : > { %698 = vmatprep.subr.bf16.mxu0 %v778_v16  ;;  %731 = vmatprep.subr.bf16.mxu1 %v778_v16 }
  0x2f   : > { %699 = vmatpush3.bf16.msra.mxu0 %v779_v17  ;;  %739 = vmatpush3.bf16.msra.mxu1 %v779_v17 }
  0x32   : > { %470 = vmatmul.mubr.bf16.vlgmr.msra.gmra.mrb[0].mxu0 %v780_v18  ;;  %486 = vmatmul.mubr.bf16.vlgmr.msra.gmra.mrb[0].mxu1 %v783_v19 }
  0x33   : > { %477 = vmatprep.mubr.bf16.mxu0 %v786_v20  ;;  %493 = vmatprep.mubr.bf16.mxu1 %v788_v21 }
  0x3a   : > { %478 = vmatmul.mubr.bf16.gmra.mrb[4].mxu0 %v790_v22  ;;  %494 = vmatmul.mubr.bf16.gmra.mrb[4].mxu1 %v791_v23 }
 0x105   : > { %v700_v24 = vpop.f32.mrb[0].mxu0  ;;  %v712_v25 = vpop.f32.mrb[0].mxu1 }
 0x106   : > { %v701_v26 = vpop.f32.mrb[1].mxu0  ;;  %v713_v28 = vpop.f32.mrb[1].mxu1 }
 0x107   : > { %v702_v29 = vadd.f32 %v701_v26, %v700_v24  ;;  %v714_v30 = vadd.f32 %v713_v28, %v712_v25  ;;  %v703_v31 = vpop.f32.mrb[2].mxu0  ;;  %v715_v32 = vpop.f32.mrb[2].mxu1 }
 0x108   : > { %v704_v34 = vpop.f32.mrb[3].mxu0  ;;  %v716_v35 = vpop.f32.mrb[3].mxu1 }
 0x109   : > { %v509_v36 = vmul.f32 %v702_v29, %v677_v27  ;;  %v513_v37 = vmul.f32 %v714_v30, %v677_v27  ;;  %v705_v38 = vadd.f32 %v704_v34, %v703_v31  ;;  %v717_v39 = vadd.f32 %v716_v35, %v715_v32 }
 0x10b   : > { %v524_v40 = vadd.f32 %v678_v33, %v509_v36  ;;  %v528_v41 = vadd.f32 %v678_v33, %v513_v37  ;;  %v510_v42 = vmul.f32 %v705_v38, %v677_v27  ;;  %v514_v43 = vmul.f32 %v717_v39, %v677_v27 }
 0x10d   : > { %532 = vst [vmem:[%s910_s7] sm:$0xff] %v524_v40  ;;  %536 = vst [vmem:[%s910_s7 + $0x20] sm:$0xff] %v528_v41  ;;  %v525_v44 = vadd.f32 %v678_v33, %v510_v42  ;;  %v529_v45 = vadd.f32 %v678_v33, %v514_v43  ;;  %v706_v46 = vpop.f32.mrb[4].mxu0  ;;  %v718_v47 = vpop.f32.mrb[4].mxu1 }
 0x10e   : > { %v707_v48 = vpop.f32.mrb[5].mxu0  ;;  %v719_v49 = vpop.f32.mrb[5].mxu1 }
 0x10f   : > { %533 = vst [vmem:[%s910_s7 + $0x8] sm:$0xff] %v525_v44  ;;  %537 = vst [vmem:[%s910_s7 + $0x28] sm:$0xff] %v529_v45  ;;  %v708_v50 = vadd.f32 %v707_v48, %v706_v46  ;;  %v720_v51 = vadd.f32 %v719_v49, %v718_v47  ;;  %v709_v52 = vpop.f32.mrb[6].mxu0  ;;  %v721_v53 = vpop.f32.mrb[6].mxu1 }
 0x110   : > { %v710_v54 = vpop.f32.mrb[7].mxu0  ;;  %v722_v55 = vpop.f32.mrb[7].mxu1 }
 0x111   : > { %v511_v56 = vmul.f32 %v708_v50, %v677_v27  ;;  %v515_v57 = vmul.f32 %v720_v51, %v677_v27  ;;  %v711_v58 = vadd.f32 %v710_v54, %v709_v52  ;;  %v723_v59 = vadd.f32 %v722_v55, %v721_v53 }
 0x113   : > { %v526_v60 = vadd.f32 %v678_v33, %v511_v56  ;;  %v530_v61 = vadd.f32 %v678_v33, %v515_v57  ;;  %v512_v62 = vmul.f32 %v711_v58, %v677_v27  ;;  %v516_v63 = vmul.f32 %v723_v59, %v677_v27 }
 0x115   : > { %534 = vst [vmem:[%s910_s7 + $0x10] sm:$0xff] %v526_v60  ;;  %538 = vst [vmem:[%s910_s7 + $0x30] sm:$0xff] %v530_v61  ;;  %v527_v0 = vadd.f32 %v678_v33, %v512_v62  ;;  %v531_v1 = vadd.f32 %v678_v33, %v516_v63 }
 0x117   : > { %535 = vst [vmem:[%s910_s7 + $0x18] sm:$0xff] %v527_v0  ;;  %539 = vst [vmem:[%s910_s7 + $0x38] sm:$0xff] %v531_v1 }
 0x118 PF: > { %s14_s17 = sadd.s32 1, %s814_s17   ;;  %s934_s15 = smov %s810_s16 }
 0x119   : > { %p11_p5 = scmp.ge.s32.totalorder %s14_s17, 10   ;;  %s935_s16 = smov %s937_s18 }
 0x11b   :  { %13 = sbr.rel (!%p11_p5) target bundleno = 2 (0x2), region = 69 }

// kernel: _lambda_.18
= control target key start
LH: loop header
LB: loop body
LE: loop exit
PB: predicated region body
PF: predicated region fallthrough
CT: control target
= control target key end

     0   :  { %s1479_s15 = smov 0   ;;  %s1481_s16 = smov 0   ;;  %s1768_s0 = inlined_call_operand.vmem [shape: bf16[8,512,128], index: 0, kind: input, shape index: {}]   ;;  %s1769_s1 = inlined_call_operand.vmem [shape: bf16[8,128,128], index: 1, kind: input, shape index: {}]   ;;  %s1770_s2 = inlined_call_operand.vmem [shape: f32[1,128], index: 2, kind: input, shape index: {}]   ;;  %s1771_s3 = inlined_call_operand.vmem [shape: f32[1,128], index: 3, kind: input, shape index: {}]   ;;  %s1772_s4 = inlined_call_operand.vmem [shape: f32[8,512,128], index: 4, kind: output, shape index: {}]  }
   0x1   :  { %s1483_s17 = smov 0  }
   0x2 LB: > { %s26_s18 = sadd.s32 1, %s1448_s16  ;;  %p1176_p0 = scmp.ge.s32.totalorder %s1452_s17, 1  ;;  %s1452_s17 = sphi %s1483_s17, %s14_s17   ;;  %s1448_s16 = sphi %s1481_s16, %s1774_s16   ;;  %s1444_s15 = sphi %s1479_s15, %s1773_s15  }
   0x3   : > { %p28_p1 = scmp.ge.s32.totalorder %s26_s18, 8  ;;  %p193_p2 = scmp.lt.s32.totalorder %s1452_s17, 9 }
   0x5   : > { %s1776_s18 = smov (%p28_p1, %s26_s18), 0  ;;  %p194_p3 = pnand %p1176_p0, %p193_p2 }
   0x6   : > { %p233_p4 = scmp.lt.s32.totalorder (!%p194_p3), %s1444_s15, 7  ;;  %v1554_v40 = vld [vmem:[%s1770_s2] ss:$0 sm:$0xff] (!%p194_p3) }
   0x7   : > { %197 = sbr.rel (%p194_p3) target bundleno = 326 (0x146), region = 36  ;;  %v1560_v42 = vld [vmem:[%s1771_s3] ss:$0 sm:$0xff] (!%p194_p3) }
   0xe   : > { %s1778_s15 = smov (!%p233_p4, %s1444_s15), 7 }
   0xf   : > { %s1228_s19 = sshll.u32 %s1778_s15, 6  ;;  %s1227_s23 = sshll.u32 %s1778_s15, 8 }
  0x10   : > { %s1503_s22 = scalar_lea.vmem %s1769_s1, %s1228_s19  ;;  %s1512_s26 = scalar_lea.vmem %s1768_s0, %s1227_s23 }
  0x11   : > { %v1390_v0 = vld [vmem:[%s1503_s22] sm:$0xff]   ;;  %v1391_v1 = vld [vmem:[%s1503_s22 + $0x8] sm:$0xff]   ;;  %v1392_v2 = vld [vmem:[%s1503_s22 + $0x10] sm:$0xff]   ;;  %s1229_s29 = sshll.u32 %s1778_s15, 9 }
  0x12   : > { %1270 = vmatprep.subr.bf16.mxu0 %v1390_v0  ;;  %1350 = vmatprep.subr.bf16.mxu1 %v1390_v0  ;;  %v1393_v3 = vld [vmem:[%s1503_s22 + $0x18] sm:$0xff]   ;;  %v1398_v4 = vld [vmem:[%s1512_s26] sm:$0xff]   ;;  %v1395_v7 = vld [vmem:[%s1503_s22 + $0x28] sm:$0xff]   ;;  %s1567_s8 = scalar_lea.vmem %s1772_s4, %s1229_s29 }
  0x13   : > { %1271 = vmatpush3.bf16.msra.mxu0 %v1390_v0  ;;  %1358 = vmatpush3.bf16.msra.mxu1 %v1390_v0  ;;  %v1399_v5 = vld [vmem:[%s1512_s26 + $0x80] sm:$0xff]   ;;  %v1396_v8 = vld [vmem:[%s1503_s22 + $0x30] sm:$0xff]   ;;  %v1397_v9 = vld [vmem:[%s1503_s22 + $0x38] sm:$0xff]  }
  0x14   : > { %1272 = vmatprep.subr.bf16.mxu0 %v1391_v1  ;;  %1351 = vmatprep.subr.bf16.mxu1 %v1391_v1  ;;  %v1394_v6 = vld [vmem:[%s1503_s22 + $0x20] sm:$0xff]   ;;  %v1400_v10 = vld [vmem:[%s1512_s26 + $0x8] sm:$0xff]   ;;  %v1402_v12 = vld [vmem:[%s1512_s26 + $0x10] sm:$0xff]  }
  0x15   : > { %1286 = vmatprep.mubr.bf16.mxu0 %v1398_v4  ;;  %1318 = vmatprep.mubr.bf16.mxu1 %v1399_v5  ;;  %v1401_v11 = vld [vmem:[%s1512_s26 + $0x88] sm:$0xff]   ;;  %v1403_v13 = vld [vmem:[%s1512_s26 + $0x90] sm:$0xff]   ;;  %v1404_v14 = vld [vmem:[%s1512_s26 + $0x18] sm:$0xff]  }
  0x16   : > { %v1405_v15 = vld [vmem:[%s1512_s26 + $0x98] sm:$0xff]   ;;  %v1406_v16 = vld [vmem:[%s1512_s26 + $0x20] sm:$0xff]   ;;  %v1408_v18 = vld [vmem:[%s1512_s26 + $0x28] sm:$0xff]  }
  0x17   : > { %1273 = vmatpush3.bf16.msra.mxu0 %v1391_v1  ;;  %1359 = vmatpush3.bf16.msra.mxu1 %v1391_v1  ;;  %v1407_v17 = vld [vmem:[%s1512_s26 + $0xa0] sm:$0xff]   ;;  %v1409_v19 = vld [vmem:[%s1512_s26 + $0xa8] sm:$0xff]   ;;  %v1410_v20 = vld [vmem:[%s1512_s26 + $0x30] sm:$0xff]  }
  0x18   : > { %1274 = vmatprep.subr.bf16.mxu0 %v1392_v2  ;;  %1352 = vmatprep.subr.bf16.mxu1 %v1392_v2  ;;  %v1411_v21 = vld [vmem:[%s1512_s26 + $0xb0] sm:$0xff]   ;;  %v1412_v22 = vld [vmem:[%s1512_s26 + $0x38] sm:$0xff]   ;;  %v1414_v24 = vld [vmem:[%s1512_s26 + $0x40] sm:$0xff]  }
  0x19   : > { %v1413_v23 = vld [vmem:[%s1512_s26 + $0xb8] sm:$0xff]   ;;  %v1415_v25 = vld [vmem:[%s1512_s26 + $0xc0] sm:$0xff]   ;;  %v1416_v26 = vld [vmem:[%s1512_s26 + $0x48] sm:$0xff]  }
  0x1a   : > { %v1417_v27 = vld [vmem:[%s1512_s26 + $0xc8] sm:$0xff]   ;;  %v1418_v28 = vld [vmem:[%s1512_s26 + $0x50] sm:$0xff]   ;;  %v1420_v30 = vld [vmem:[%s1512_s26 + $0x58] sm:$0xff]  }
  0x1b   : > { %1275 = vmatpush3.bf16.msra.mxu0 %v1392_v2  ;;  %1360 = vmatpush3.bf16.msra.mxu1 %v1392_v2  ;;  %v1419_v29 = vld [vmem:[%s1512_s26 + $0xd0] sm:$0xff]   ;;  %v1421_v31 = vld [vmem:[%s1512_s26 + $0xd8] sm:$0xff]   ;;  %v1422_v32 = vld [vmem:[%s1512_s26 + $0x60] sm:$0xff]  }
  0x1c   : > { %1276 = vmatprep.subr.bf16.mxu0 %v1393_v3  ;;  %1353 = vmatprep.subr.bf16.mxu1 %v1393_v3  ;;  %v1423_v33 = vld [vmem:[%s1512_s26 + $0xe0] sm:$0xff]   ;;  %v1424_v34 = vld [vmem:[%s1512_s26 + $0x68] sm:$0xff]   ;;  %v1426_v36 = vld [vmem:[%s1512_s26 + $0x70] sm:$0xff]  }
  0x1d   : > { %v1425_v35 = vld [vmem:[%s1512_s26 + $0xe8] sm:$0xff]   ;;  %v1427_v37 = vld [vmem:[%s1512_s26 + $0xf0] sm:$0xff]   ;;  %v1428_v38 = vld [vmem:[%s1512_s26 + $0x78] sm:$0xff]  }
  0x1e   : > { %v1429_v39 = vld [vmem:[%s1512_s26 + $0xf8] sm:$0xff]  }
  0x1f   : > { %1277 = vmatpush3.bf16.msra.mxu0 %v1393_v3  ;;  %1361 = vmatpush3.bf16.msra.mxu1 %v1393_v3 }
  0x20   : > { %1278 = vmatprep.subr.bf16.mxu0 %v1394_v6  ;;  %1354 = vmatprep.subr.bf16.mxu1 %v1394_v6 }
  0x23   : > { %1279 = vmatpush3.bf16.msra.mxu0 %v1394_v6  ;;  %1362 = vmatpush3.bf16.msra.mxu1 %v1394_v6 }
  0x24   : > { %1280 = vmatprep.subr.bf16.mxu0 %v1395_v7  ;;  %1355 = vmatprep.subr.bf16.mxu1 %v1395_v7 }
  0x27   : > { %1281 = vmatpush3.bf16.msra.mxu0 %v1395_v7  ;;  %1363 = vmatpush3.bf16.msra.mxu1 %v1395_v7 }
  0x28   : > { %1282 = vmatprep.subr.bf16.mxu0 %v1396_v8  ;;  %1356 = vmatprep.subr.bf16.mxu1 %v1396_v8 }
  0x2b   : > { %1283 = vmatpush3.bf16.msra.mxu0 %v1396_v8  ;;  %1364 = vmatpush3.bf16.msra.mxu1 %v1396_v8 }
  0x2c   : > { %1284 = vmatprep.subr.bf16.mxu0 %v1397_v9  ;;  %1357 = vmatprep.subr.bf16.mxu1 %v1397_v9 }
  0x2f   : > { %1285 = vmatpush3.bf16.msra.mxu0 %v1397_v9  ;;  %1365 = vmatpush3.bf16.msra.mxu1 %v1397_v9 }
  0x32   : > { %1287 = vmatmul.mubr.bf16.vlgmr.msra.gmra.mrb[0].mxu0 %v1400_v10  ;;  %1319 = vmatmul.mubr.bf16.vlgmr.msra.gmra.mrb[0].mxu1 %v1401_v11 }
  0x33   : > { %1290 = vmatprep.mubr.bf16.mxu0 %v1402_v12  ;;  %1322 = vmatprep.mubr.bf16.mxu1 %v1403_v13 }
  0x3a   : > { %1291 = vmatmul.mubr.bf16.gmra.mrb[4].mxu0 %v1404_v14  ;;  %1323 = vmatmul.mubr.bf16.gmra.mrb[4].mxu1 %v1405_v15 }
  0x3b   : > { %1294 = vmatprep.mubr.bf16.mxu0 %v1406_v16  ;;  %1326 = vmatprep.mubr.bf16.mxu1 %v1407_v17 }
  0x42   : > { %1295 = vmatmul.mubr.bf16.gmra.mrb[8].mxu0 %v1408_v18  ;;  %1327 = vmatmul.mubr.bf16.gmra.mrb[8].mxu1 %v1409_v19 }
  0x43   : > { %1298 = vmatprep.mubr.bf16.mxu0 %v1410_v20  ;;  %1330 = vmatprep.mubr.bf16.mxu1 %v1411_v21 }
  0x4a   : > { %1299 = vmatmul.mubr.bf16.gmra.mrb[12].mxu0 %v1412_v22  ;;  %1331 = vmatmul.mubr.bf16.gmra.mrb[12].mxu1 %v1413_v23 }
  0x4b   : > { %1302 = vmatprep.mubr.bf16.mxu0 %v1414_v24  ;;  %1334 = vmatprep.mubr.bf16.mxu1 %v1415_v25 }
  0x52   : > { %1303 = vmatmul.mubr.bf16.gmra.mrb[16].mxu0 %v1416_v26  ;;  %1335 = vmatmul.mubr.bf16.gmra.mrb[16].mxu1 %v1417_v27 }
  0x53   : > { %1306 = vmatprep.mubr.bf16.mxu0 %v1418_v28  ;;  %1338 = vmatprep.mubr.bf16.mxu1 %v1419_v29 }
  0x5a   : > { %1307 = vmatmul.mubr.bf16.gmra.mrb[20].mxu0 %v1420_v30  ;;  %1339 = vmatmul.mubr.bf16.gmra.mrb[20].mxu1 %v1421_v31 }
  0x5b   : > { %1310 = vmatprep.mubr.bf16.mxu0 %v1422_v32  ;;  %1342 = vmatprep.mubr.bf16.mxu1 %v1423_v33 }
  0x62   : > { %1311 = vmatmul.mubr.bf16.gmra.mrb[24].mxu0 %v1424_v34  ;;  %1343 = vmatmul.mubr.bf16.gmra.mrb[24].mxu1 %v1425_v35 }
  0x63   : > { %1314 = vmatprep.mubr.bf16.mxu0 %v1426_v36  ;;  %1346 = vmatprep.mubr.bf16.mxu1 %v1427_v37 }
  0x6a   : > { %1315 = vmatmul.mubr.bf16.gmra.mrb[28].mxu0 %v1428_v38  ;;  %1347 = vmatmul.mubr.bf16.gmra.mrb[28].mxu1 %v1429_v39 }
 0x105   : > { %v1288_v41 = vpop.f32.mrb[0].mxu0  ;;  %v1320_v43 = vpop.f32.mrb[0].mxu1 }
 0x106   : > { %v876_v44 = vmul.f32 %v1288_v41, %v1554_v40  ;;  %v908_v45 = vmul.f32 %v1320_v43, %v1554_v40  ;;  %v612_v46 = vpop.f32.mrb[1].mxu0  ;;  %v740_v47 = vpop.f32.mrb[1].mxu1 }
 0x107   : > { %v874_v48 = vmul.f32 %v1554_v40, %v612_v46  ;;  %v906_v49 = vmul.f32 %v1554_v40, %v740_v47  ;;  %v1289_v50 = vpop.f32.mrb[2].mxu0  ;;  %v1321_v51 = vpop.f32.mrb[2].mxu1 }
 0x108   : > { %v947_v52 = vadd.f32 %v1560_v42, %v876_v44  ;;  %v979_v53 = vadd.f32 %v1560_v42, %v908_v45  ;;  %v877_v54 = vmul.f32 %v1289_v50, %v1554_v40  ;;  %v909_v55 = vmul.f32 %v1321_v51, %v1554_v40  ;;  %v615_v56 = vpop.f32.mrb[3].mxu0  ;;  %v743_v57 = vpop.f32.mrb[3].mxu1 }
 0x109   : > { %v945_v58 = vadd.f32 %v1560_v42, %v874_v48  ;;  %v977_v59 = vadd.f32 %v1560_v42, %v906_v49  ;;  %v875_v60 = vmul.f32 %v1554_v40, %v615_v56  ;;  %v907_v61 = vmul.f32 %v1554_v40, %v743_v57 }
 0x10a   : > { %1011 = vst [vmem:[%s1567_s8 + $0x10] sm:$0xff] %v947_v52  ;;  %1043 = vst [vmem:[%s1567_s8 + $0x110] sm:$0xff] %v979_v53  ;;  %v948_v62 = vadd.f32 %v1560_v42, %v877_v54  ;;  %v980_v63 = vadd.f32 %v1560_v42, %v909_v55 }
 0x10b   : > { %1009 = vst [vmem:[%s1567_s8] sm:$0xff] %v945_v58  ;;  %1041 = vst [vmem:[%s1567_s8 + $0x100] sm:$0xff] %v977_v59  ;;  %v946_v0 = vadd.f32 %v1560_v42, %v875_v60  ;;  %v978_v1 = vadd.f32 %v1560_v42, %v907_v61 }
 0x10c   : > { %1012 = vst [vmem:[%s1567_s8 + $0x18] sm:$0xff] %v948_v62  ;;  %1044 = vst [vmem:[%s1567_s8 + $0x118] sm:$0xff] %v980_v63 }
 0x10d   : > { %1010 = vst [vmem:[%s1567_s8 + $0x8] sm:$0xff] %v946_v0  ;;  %1042 = vst [vmem:[%s1567_s8 + $0x108] sm:$0xff] %v978_v1  ;;  %v1292_v2 = vpop.f32.mrb[4].mxu0  ;;  %v1324_v3 = vpop.f32.mrb[4].mxu1 }
 0x10e   : > { %v880_v4 = vmul.f32 %v1292_v2, %v1554_v40  ;;  %v912_v5 = vmul.f32 %v1324_v3, %v1554_v40  ;;  %v628_v6 = vpop.f32.mrb[5].mxu0  ;;  %v756_v7 = vpop.f32.mrb[5].mxu1 }
 0x10f   : > { %v878_v8 = vmul.f32 %v1554_v40, %v628_v6  ;;  %v910_v9 = vmul.f32 %v1554_v40, %v756_v7  ;;  %v1293_v10 = vpop.f32.mrb[6].mxu0  ;;  %v1325_v11 = vpop.f32.mrb[6].mxu1 }
 0x110   : > { %v951_v12 = vadd.f32 %v1560_v42, %v880_v4  ;;  %v983_v13 = vadd.f32 %v1560_v42, %v912_v5  ;;  %v881_v14 = vmul.f32 %v1293_v10, %v1554_v40  ;;  %v913_v15 = vmul.f32 %v1325_v11, %v1554_v40  ;;  %v631_v16 = vpop.f32.mrb[7].mxu0  ;;  %v759_v17 = vpop.f32.mrb[7].mxu1 }
 0x111   : > { %v949_v18 = vadd.f32 %v1560_v42, %v878_v8  ;;  %v981_v19 = vadd.f32 %v1560_v42, %v910_v9  ;;  %v879_v20 = vmul.f32 %v1554_v40, %v631_v16  ;;  %v911_v21 = vmul.f32 %v1554_v40, %v759_v17 }
 0x112   : > { %1015 = vst [vmem:[%s1567_s8 + $0x30] sm:$0xff] %v951_v12  ;;  %1047 = vst [vmem:[%s1567_s8 + $0x130] sm:$0xff] %v983_v13  ;;  %v952_v22 = vadd.f32 %v1560_v42, %v881_v14  ;;  %v984_v23 = vadd.f32 %v1560_v42, %v913_v15 }
 0x113   : > { %1013 = vst [vmem:[%s1567_s8 + $0x20] sm:$0xff] %v949_v18  ;;  %1045 = vst [vmem:[%s1567_s8 + $0x120] sm:$0xff] %v981_v19  ;;  %v950_v24 = vadd.f32 %v1560_v42, %v879_v20  ;;  %v982_v25 = vadd.f32 %v1560_v42, %v911_v21 }
 0x114   : > { %1016 = vst [vmem:[%s1567_s8 + $0x38] sm:$0xff] %v952_v22  ;;  %1048 = vst [vmem:[%s1567_s8 + $0x138] sm:$0xff] %v984_v23 }
 0x115   : > { %1014 = vst [vmem:[%s1567_s8 + $0x28] sm:$0xff] %v950_v24  ;;  %1046 = vst [vmem:[%s1567_s8 + $0x128] sm:$0xff] %v982_v25  ;;  %v1296_v26 = vpop.f32.mrb[8].mxu0  ;;  %v1328_v27 = vpop.f32.mrb[8].mxu1 }
 0x116   : > { %v884_v28 = vmul.f32 %v1296_v26, %v1554_v40  ;;  %v916_v29 = vmul.f32 %v1328_v27, %v1554_v40  ;;  %v644_v30 = vpop.f32.mrb[9].mxu0  ;;  %v772_v31 = vpop.f32.mrb[9].mxu1 }
 0x117   : > { %v882_v32 = vmul.f32 %v1554_v40, %v644_v30  ;;  %v914_v33 = vmul.f32 %v1554_v40, %v772_v31  ;;  %v1297_v34 = vpop.f32.mrb[10].mxu0  ;;  %v1329_v35 = vpop.f32.mrb[10].mxu1 }
 0x118   : > { %v955_v36 = vadd.f32 %v1560_v42, %v884_v28  ;;  %v987_v37 = vadd.f32 %v1560_v42, %v916_v29  ;;  %v885_v38 = vmul.f32 %v1297_v34, %v1554_v40  ;;  %v917_v39 = vmul.f32 %v1329_v35, %v1554_v40  ;;  %v647_v41 = vpop.f32.mrb[11].mxu0  ;;  %v775_v43 = vpop.f32.mrb[11].mxu1 }
 0x119   : > { %v953_v44 = vadd.f32 %v1560_v42, %v882_v32  ;;  %v985_v45 = vadd.f32 %v1560_v42, %v914_v33  ;;  %v883_v46 = vmul.f32 %v1554_v40, %v647_v41  ;;  %v915_v47 = vmul.f32 %v1554_v40, %v775_v43 }
 0x11a   : > { %1019 = vst [vmem:[%s1567_s8 + $0x50] sm:$0xff] %v955_v36  ;;  %1051 = vst [vmem:[%s1567_s8 + $0x150] sm:$0xff] %v987_v37  ;;  %v956_v48 = vadd.f32 %v1560_v42, %v885_v38  ;;  %v988_v49 = vadd.f32 %v1560_v42, %v917_v39 }
 0x11b   : > { %1017 = vst [vmem:[%s1567_s8 + $0x40] sm:$0xff] %v953_v44  ;;  %1049 = vst [vmem:[%s1567_s8 + $0x140] sm:$0xff] %v985_v45  ;;  %v954_v50 = vadd.f32 %v1560_v42, %v883_v46  ;;  %v986_v51 = vadd.f32 %v1560_v42, %v915_v47 }
 0x11c   : > { %1020 = vst [vmem:[%s1567_s8 + $0x58] sm:$0xff] %v956_v48  ;;  %1052 = vst [vmem:[%s1567_s8 + $0x158] sm:$0xff] %v988_v49 }
 0x11d   : > { %1018 = vst [vmem:[%s1567_s8 + $0x48] sm:$0xff] %v954_v50  ;;  %1050 = vst [vmem:[%s1567_s8 + $0x148] sm:$0xff] %v986_v51  ;;  %v1300_v52 = vpop.f32.mrb[12].mxu0  ;;  %v1332_v53 = vpop.f32.mrb[12].mxu1 }
 0x11e   : > { %v888_v54 = vmul.f32 %v1300_v52, %v1554_v40  ;;  %v920_v55 = vmul.f32 %v1332_v53, %v1554_v40  ;;  %v660_v56 = vpop.f32.mrb[13].mxu0  ;;  %v788_v57 = vpop.f32.mrb[13].mxu1 }
 0x11f   : > { %v886_v58 = vmul.f32 %v1554_v40, %v660_v56  ;;  %v918_v59 = vmul.f32 %v1554_v40, %v788_v57  ;;  %v1301_v60 = vpop.f32.mrb[14].mxu0  ;;  %v1333_v61 = vpop.f32.mrb[14].mxu1 }
 0x120   : > { %v959_v62 = vadd.f32 %v1560_v42, %v888_v54  ;;  %v991_v63 = vadd.f32 %v1560_v42, %v920_v55  ;;  %v889_v0 = vmul.f32 %v1301_v60, %v1554_v40  ;;  %v921_v1 = vmul.f32 %v1333_v61, %v1554_v40  ;;  %v663_v2 = vpop.f32.mrb[15].mxu0  ;;  %v791_v3 = vpop.f32.mrb[15].mxu1 }
 0x121   : > { %v957_v4 = vadd.f32 %v1560_v42, %v886_v58  ;;  %v989_v5 = vadd.f32 %v1560_v42, %v918_v59  ;;  %v887_v6 = vmul.f32 %v1554_v40, %v663_v2  ;;  %v919_v7 = vmul.f32 %v1554_v40, %v791_v3 }
 0x122   : > { %1023 = vst [vmem:[%s1567_s8 + $0x70] sm:$0xff] %v959_v62  ;;  %1055 = vst [vmem:[%s1567_s8 + $0x170] sm:$0xff] %v991_v63  ;;  %v960_v8 = vadd.f32 %v1560_v42, %v889_v0  ;;  %v992_v9 = vadd.f32 %v1560_v42, %v921_v1 }
 0x123   : > { %1021 = vst [vmem:[%s1567_s8 + $0x60] sm:$0xff] %v957_v4  ;;  %1053 = vst [vmem:[%s1567_s8 + $0x160] sm:$0xff] %v989_v5  ;;  %v958_v10 = vadd.f32 %v1560_v42, %v887_v6  ;;  %v990_v11 = vadd.f32 %v1560_v42, %v919_v7 }
 0x124   : > { %1024 = vst [vmem:[%s1567_s8 + $0x78] sm:$0xff] %v960_v8  ;;  %1056 = vst [vmem:[%s1567_s8 + $0x178] sm:$0xff] %v992_v9 }
 0x125   : > { %1022 = vst [vmem:[%s1567_s8 + $0x68] sm:$0xff] %v958_v10  ;;  %1054 = vst [vmem:[%s1567_s8 + $0x168] sm:$0xff] %v990_v11  ;;  %v1304_v12 = vpop.f32.mrb[16].mxu0  ;;  %v1336_v13 = vpop.f32.mrb[16].mxu1 }
 0x126   : > { %v892_v14 = vmul.f32 %v1304_v12, %v1554_v40  ;;  %v924_v15 = vmul.f32 %v1336_v13, %v1554_v40  ;;  %v676_v16 = vpop.f32.mrb[17].mxu0  ;;  %v804_v17 = vpop.f32.mrb[17].mxu1 }
 0x127   : > { %v890_v18 = vmul.f32 %v1554_v40, %v676_v16  ;;  %v922_v19 = vmul.f32 %v1554_v40, %v804_v17  ;;  %v1305_v20 = vpop.f32.mrb[18].mxu0  ;;  %v1337_v21 = vpop.f32.mrb[18].mxu1 }
 0x128   : > { %v963_v22 = vadd.f32 %v1560_v42, %v892_v14  ;;  %v995_v23 = vadd.f32 %v1560_v42, %v924_v15  ;;  %v893_v24 = vmul.f32 %v1305_v20, %v1554_v40  ;;  %v925_v25 = vmul.f32 %v1337_v21, %v1554_v40  ;;  %v679_v26 = vpop.f32.mrb[19].mxu0  ;;  %v807_v27 = vpop.f32.mrb[19].mxu1 }
 0x129   : > { %v961_v28 = vadd.f32 %v1560_v42, %v890_v18  ;;  %v993_v29 = vadd.f32 %v1560_v42, %v922_v19  ;;  %v891_v30 = vmul.f32 %v1554_v40, %v679_v26  ;;  %v923_v31 = vmul.f32 %v1554_v40, %v807_v27 }
 0x12a   : > { %1027 = vst [vmem:[%s1567_s8 + $0x90] sm:$0xff] %v963_v22  ;;  %1059 = vst [vmem:[%s1567_s8 + $0x190] sm:$0xff] %v995_v23  ;;  %v964_v32 = vadd.f32 %v1560_v42, %v893_v24  ;;  %v996_v33 = vadd.f32 %v1560_v42, %v925_v25 }
 0x12b   : > { %1025 = vst [vmem:[%s1567_s8 + $0x80] sm:$0xff] %v961_v28  ;;  %1057 = vst [vmem:[%s1567_s8 + $0x180] sm:$0xff] %v993_v29  ;;  %v962_v34 = vadd.f32 %v1560_v42, %v891_v30  ;;  %v994_v35 = vadd.f32 %v1560_v42, %v923_v31 }
 0x12c   : > { %1028 = vst [vmem:[%s1567_s8 + $0x98] sm:$0xff] %v964_v32  ;;  %1060 = vst [vmem:[%s1567_s8 + $0x198] sm:$0xff] %v996_v33 }
 0x12d   : > { %1026 = vst [vmem:[%s1567_s8 + $0x88] sm:$0xff] %v962_v34  ;;  %1058 = vst [vmem:[%s1567_s8 + $0x188] sm:$0xff] %v994_v35  ;;  %v1308_v36 = vpop.f32.mrb[20].mxu0  ;;  %v1340_v37 = vpop.f32.mrb[20].mxu1 }
 0x12e   : > { %v896_v38 = vmul.f32 %v1308_v36, %v1554_v40  ;;  %v928_v39 = vmul.f32 %v1340_v37, %v1554_v40  ;;  %v692_v41 = vpop.f32.mrb[21].mxu0  ;;  %v820_v43 = vpop.f32.mrb[21].mxu1 }
 0x12f   : > { %v894_v44 = vmul.f32 %v1554_v40, %v692_v41  ;;  %v926_v45 = vmul.f32 %v1554_v40, %v820_v43  ;;  %v1309_v46 = vpop.f32.mrb[22].mxu0  ;;  %v1341_v47 = vpop.f32.mrb[22].mxu1 }
 0x130   : > { %v967_v48 = vadd.f32 %v1560_v42, %v896_v38  ;;  %v999_v49 = vadd.f32 %v1560_v42, %v928_v39  ;;  %v897_v50 = vmul.f32 %v1309_v46, %v1554_v40  ;;  %v929_v51 = vmul.f32 %v1341_v47, %v1554_v40  ;;  %v695_v52 = vpop.f32.mrb[23].mxu0  ;;  %v823_v53 = vpop.f32.mrb[23].mxu1 }
 0x131   : > { %v965_v54 = vadd.f32 %v1560_v42, %v894_v44  ;;  %v997_v55 = vadd.f32 %v1560_v42, %v926_v45  ;;  %v895_v56 = vmul.f32 %v1554_v40, %v695_v52  ;;  %v927_v57 = vmul.f32 %v1554_v40, %v823_v53 }
 0x132   : > { %1031 = vst [vmem:[%s1567_s8 + $0xb0] sm:$0xff] %v967_v48  ;;  %1063 = vst [vmem:[%s1567_s8 + $0x1b0] sm:$0xff] %v999_v49  ;;  %v968_v58 = vadd.f32 %v1560_v42, %v897_v50  ;;  %v1000_v59 = vadd.f32 %v1560_v42, %v929_v51 }
 0x133   : > { %1029 = vst [vmem:[%s1567_s8 + $0xa0] sm:$0xff] %v965_v54  ;;  %1061 = vst [vmem:[%s1567_s8 + $0x1a0] sm:$0xff] %v997_v55  ;;  %v966_v60 = vadd.f32 %v1560_v42, %v895_v56  ;;  %v998_v61 = vadd.f32 %v1560_v42, %v927_v57 }
 0x134   : > { %1032 = vst [vmem:[%s1567_s8 + $0xb8] sm:$0xff] %v968_v58  ;;  %1064 = vst [vmem:[%s1567_s8 + $0x1b8] sm:$0xff] %v1000_v59 }
 0x135   : > { %1030 = vst [vmem:[%s1567_s8 + $0xa8] sm:$0xff] %v966_v60  ;;  %1062 = vst [vmem:[%s1567_s8 + $0x1a8] sm:$0xff] %v998_v61  ;;  %v1312_v62 = vpop.f32.mrb[24].mxu0  ;;  %v1344_v63 = vpop.f32.mrb[24].mxu1 }
 0x136   : > { %v900_v0 = vmul.f32 %v1312_v62, %v1554_v40  ;;  %v932_v1 = vmul.f32 %v1344_v63, %v1554_v40  ;;  %v708_v2 = vpop.f32.mrb[25].mxu0  ;;  %v836_v3 = vpop.f32.mrb[25].mxu1 }
 0x137   : > { %v898_v4 = vmul.f32 %v1554_v40, %v708_v2  ;;  %v930_v5 = vmul.f32 %v1554_v40, %v836_v3  ;;  %v1313_v6 = vpop.f32.mrb[26].mxu0  ;;  %v1345_v7 = vpop.f32.mrb[26].mxu1 }
 0x138   : > { %v971_v8 = vadd.f32 %v1560_v42, %v900_v0  ;;  %v1003_v9 = vadd.f32 %v1560_v42, %v932_v1  ;;  %v901_v10 = vmul.f32 %v1313_v6, %v1554_v40  ;;  %v933_v11 = vmul.f32 %v1345_v7, %v1554_v40  ;;  %v711_v12 = vpop.f32.mrb[27].mxu0  ;;  %v839_v13 = vpop.f32.mrb[27].mxu1 }
 0x139   : > { %v969_v14 = vadd.f32 %v1560_v42, %v898_v4  ;;  %v1001_v15 = vadd.f32 %v1560_v42, %v930_v5  ;;  %v899_v16 = vmul.f32 %v1554_v40, %v711_v12  ;;  %v931_v17 = vmul.f32 %v1554_v40, %v839_v13 }
 0x13a   : > { %1035 = vst [vmem:[%s1567_s8 + $0xd0] sm:$0xff] %v971_v8  ;;  %1067 = vst [vmem:[%s1567_s8 + $0x1d0] sm:$0xff] %v1003_v9  ;;  %v972_v18 = vadd.f32 %v1560_v42, %v901_v10  ;;  %v1004_v19 = vadd.f32 %v1560_v42, %v933_v11 }
 0x13b   : > { %1033 = vst [vmem:[%s1567_s8 + $0xc0] sm:$0xff] %v969_v14  ;;  %1065 = vst [vmem:[%s1567_s8 + $0x1c0] sm:$0xff] %v1001_v15  ;;  %v970_v20 = vadd.f32 %v1560_v42, %v899_v16  ;;  %v1002_v21 = vadd.f32 %v1560_v42, %v931_v17 }
 0x13c   : > { %1036 = vst [vmem:[%s1567_s8 + $0xd8] sm:$0xff] %v972_v18  ;;  %1068 = vst [vmem:[%s1567_s8 + $0x1d8] sm:$0xff] %v1004_v19 }
 0x13d   : > { %1034 = vst [vmem:[%s1567_s8 + $0xc8] sm:$0xff] %v970_v20  ;;  %1066 = vst [vmem:[%s1567_s8 + $0x1c8] sm:$0xff] %v1002_v21  ;;  %v1316_v22 = vpop.f32.mrb[28].mxu0  ;;  %v1348_v23 = vpop.f32.mrb[28].mxu1 }
 0x13e   : > { %v904_v24 = vmul.f32 %v1316_v22, %v1554_v40  ;;  %v936_v25 = vmul.f32 %v1348_v23, %v1554_v40  ;;  %v724_v26 = vpop.f32.mrb[29].mxu0  ;;  %v852_v27 = vpop.f32.mrb[29].mxu1 }
 0x13f   : > { %v902_v28 = vmul.f32 %v1554_v40, %v724_v26  ;;  %v934_v29 = vmul.f32 %v1554_v40, %v852_v27  ;;  %v1317_v30 = vpop.f32.mrb[30].mxu0  ;;  %v1349_v31 = vpop.f32.mrb[30].mxu1 }
 0x140   : > { %v975_v32 = vadd.f32 %v1560_v42, %v904_v24  ;;  %v1007_v33 = vadd.f32 %v1560_v42, %v936_v25  ;;  %v905_v34 = vmul.f32 %v1317_v30, %v1554_v40  ;;  %v937_v35 = vmul.f32 %v1349_v31, %v1554_v40  ;;  %v727_v36 = vpop.f32.mrb[31].mxu0  ;;  %v855_v37 = vpop.f32.mrb[31].mxu1 }
 0x141   : > { %v973_v38 = vadd.f32 %v1560_v42, %v902_v28  ;;  %v1005_v39 = vadd.f32 %v1560_v42, %v934_v29  ;;  %v903_v41 = vmul.f32 %v1554_v40, %v727_v36  ;;  %v935_v43 = vmul.f32 %v1554_v40, %v855_v37 }
 0x142   : > { %1039 = vst [vmem:[%s1567_s8 + $0xf0] sm:$0xff] %v975_v32  ;;  %1071 = vst [vmem:[%s1567_s8 + $0x1f0] sm:$0xff] %v1007_v33  ;;  %v976_v44 = vadd.f32 %v1560_v42, %v905_v34  ;;  %v1008_v45 = vadd.f32 %v1560_v42, %v937_v35 }
 0x143   : > { %1037 = vst [vmem:[%s1567_s8 + $0xe0] sm:$0xff] %v973_v38  ;;  %1069 = vst [vmem:[%s1567_s8 + $0x1e0] sm:$0xff] %v1005_v39  ;;  %v974_v46 = vadd.f32 %v1560_v42, %v903_v41  ;;  %v1006_v47 = vadd.f32 %v1560_v42, %v935_v43 }
 0x144   : > { %1040 = vst [vmem:[%s1567_s8 + $0xf8] sm:$0xff] %v976_v44  ;;  %1072 = vst [vmem:[%s1567_s8 + $0x1f8] sm:$0xff] %v1008_v45 }
 0x145   : > { %1038 = vst [vmem:[%s1567_s8 + $0xe8] sm:$0xff] %v974_v46  ;;  %1070 = vst [vmem:[%s1567_s8 + $0x1e8] sm:$0xff] %v1006_v47 }
 0x146 PF: > { %s14_s17 = sadd.s32 1, %s1452_s17   ;;  %s1773_s15 = smov %s1448_s16 }
 0x147   : > { %p11_p5 = scmp.ge.s32.totalorder %s14_s17, 10   ;;  %s1774_s16 = smov %s1776_s18 }
 0x149   :  { %13 = sbr.rel (!%p11_p5) target bundleno = 2 (0x2), region = 69 }

// kernel: _lambda_.19
= control target key start
LH: loop header
LB: loop body
LE: loop exit
PB: predicated region body
PF: predicated region fallthrough
CT: control target
= control target key end

     0   :  { %s2764_s15 = smov 0   ;;  %s2766_s16 = smov 0   ;;  %s3304_s0 = inlined_call_operand.vmem [shape: bf16[8,4096,128], index: 0, kind: input, shape index: {}]   ;;  %s3305_s1 = inlined_call_operand.vmem [shape: bf16[8,128,128], index: 1, kind: input, shape index: {}]   ;;  %s3306_s2 = inlined_call_operand.vmem [shape: f32[1,128], index: 2, kind: input, shape index: {}]   ;;  %s3307_s3 = inlined_call_operand.vmem [shape: f32[1,128], index: 3, kind: input, shape index: {}]   ;;  %s3308_s4 = inlined_call_operand.vmem [shape: f32[8,4096,128], index: 4, kind: output, shape index: {}]  }
   0x1   :  { %s2768_s17 = smov 0   ;;  %s2770_s18 = smov 0  }
   0x2   :  { %s2772_s19 = smov 0  }
   0x3 LB: > { %s23_s20 = sadd.s32 1, %s2729_s17  ;;  %s26_s21 = sadd.s32 1, %s2733_s18  ;;  %s2737_s19 = sphi %s2772_s19, %s14_s19   ;;  %s2733_s18 = sphi %s2770_s18, %s3312_s18   ;;  %s2729_s17 = sphi %s2768_s17, %s3311_s17   ;;  %s2725_s16 = sphi %s2766_s16, %s3310_s16   ;;  %s2721_s15 = sphi %s2764_s15, %s3309_s15  }
   0x4   : > { %p24_p0 = scmp.ge.s32.totalorder %s23_s20, 4  ;;  %p2011_p1 = scmp.ge.s32.totalorder %s2737_s19, 1 }
   0x5   : > { %p193_p2 = scmp.lt.s32.totalorder %s2737_s19, 33 }
   0x6   : > { %s3314_s20 = smov (%p24_p0, %s23_s20), 0  ;;  %s3316_s21 = smov (!%p24_p0, %s26_s21), %s2733_s18 }
   0x7   : > { %p194_p3 = pnand %p2011_p1, %p193_p2  ;;  %p28_p4 = scmp.ge.s32.totalorder %s3316_s21, 8 }
   0x8   : > { %s2012_s22 = sshll.u32 (!%p194_p3), %s2721_s15, 7  ;;  %p233_p5 = scmp.lt.s32.totalorder (!%p194_p3), %s2725_s16, 7 }
   0x9   : > { %s3318_s21 = smov (%p28_p4, %s3316_s21), 0  ;;  %197 = sbr.rel (%p194_p3) target bundleno = 410 (0x19a), region = 36 }
   0xa   : > { %p235_p6 = scmp.lt.s32.totalorder (!%p194_p3), %s2012_s22, 511 }
  0x10   : > { %s3320_s16 = smov (!%p233_p5, %s2725_s16), 7  ;;  %s3322_s22 = smov (!%p235_p6, %s2012_s22), 511 }
  0x11   : > { %s2013_s23 = sshll.u32 %s3320_s16, 9  ;;  %s2096_s24 = sshll.u32 %s3320_s16, 6 }
  0x12   : > { %s2797_s27 = scalar_lea.vmem %s3305_s1, %s2096_s24  ;;  %s2799_s28 = sadd.s32 %s2013_s23, %s3322_s22 }
  0x13   : > { %v2369_v0 = vld [vmem:[%s2797_s27] sm:$0xff]   ;;  %v2370_v1 = vld [vmem:[%s2797_s27 + $0x8] sm:$0xff]   ;;  %s2014_s29 = sshll.u32 %s2799_s28, 2  ;;  %v2371_v2 = vld [vmem:[%s2797_s27 + $0x10] sm:$0xff]   ;;  %s2019_s11 = sshll.u32 %s2799_s28, 3 }
  0x14   : > { %2169 = vmatprep.subr.bf16.mxu0 %v2369_v0  ;;  %2313 = vmatprep.subr.bf16.mxu1 %v2369_v0  ;;  %s2808_s6 = scalar_lea.vmem %s3304_s0, %s2014_s29  ;;  %v2372_v3 = vld [vmem:[%s2797_s27 + $0x18] sm:$0xff]   ;;  %v2373_v6 = vld [vmem:[%s2797_s27 + $0x20] sm:$0xff]   ;;  %v2374_v7 = vld [vmem:[%s2797_s27 + $0x28] sm:$0xff]   ;;  %s2919_s14 = scalar_lea.vmem %s3308_s4, %s2019_s11 }
  0x15   : > { %2170 = vmatpush3.bf16.msra.mxu0 %v2369_v0  ;;  %2321 = vmatpush3.bf16.msra.mxu1 %v2369_v0  ;;  %v2377_v4 = vld [vmem:[%s2808_s6] sm:$0xff]   ;;  %v2375_v8 = vld [vmem:[%s2797_s27 + $0x30] sm:$0xff]   ;;  %v2376_v9 = vld [vmem:[%s2797_s27 + $0x38] sm:$0xff]  }
  0x16   : > { %2171 = vmatprep.subr.bf16.mxu0 %v2370_v1  ;;  %2314 = vmatprep.subr.bf16.mxu1 %v2370_v1  ;;  %v2378_v5 = vld [vmem:[%s2808_s6 + $0x100] sm:$0xff]   ;;  %v2379_v10 = vld [vmem:[%s2808_s6 + $0x8] sm:$0xff]   ;;  %v2381_v12 = vld [vmem:[%s2808_s6 + $0x10] sm:$0xff]  }
  0x17   : > { %2185 = vmatprep.mubr.bf16.mxu0 %v2377_v4  ;;  %2249 = vmatprep.mubr.bf16.mxu1 %v2378_v5  ;;  %v2380_v11 = vld [vmem:[%s2808_s6 + $0x108] sm:$0xff]   ;;  %v2382_v13 = vld [vmem:[%s2808_s6 + $0x110] sm:$0xff]   ;;  %v2383_v14 = vld [vmem:[%s2808_s6 + $0x18] sm:$0xff]  }
  0x18   : > { %v2384_v15 = vld [vmem:[%s2808_s6 + $0x118] sm:$0xff]   ;;  %v2385_v16 = vld [vmem:[%s2808_s6 + $0x20] sm:$0xff]   ;;  %v2387_v18 = vld [vmem:[%s2808_s6 + $0x28] sm:$0xff]  }
  0x19   : > { %2172 = vmatpush3.bf16.msra.mxu0 %v2370_v1  ;;  %2322 = vmatpush3.bf16.msra.mxu1 %v2370_v1  ;;  %v2386_v17 = vld [vmem:[%s2808_s6 + $0x120] sm:$0xff]   ;;  %v2388_v19 = vld [vmem:[%s2808_s6 + $0x128] sm:$0xff]   ;;  %v2389_v20 = vld [vmem:[%s2808_s6 + $0x30] sm:$0xff]  }
  0x1a   : > { %2173 = vmatprep.subr.bf16.mxu0 %v2371_v2  ;;  %2315 = vmatprep.subr.bf16.mxu1 %v2371_v2  ;;  %v2390_v21 = vld [vmem:[%s2808_s6 + $0x130] sm:$0xff]   ;;  %v2391_v22 = vld [vmem:[%s2808_s6 + $0x38] sm:$0xff]   ;;  %v2393_v24 = vld [vmem:[%s2808_s6 + $0x40] sm:$0xff]  }
  0x1b   : > { %v2392_v23 = vld [vmem:[%s2808_s6 + $0x138] sm:$0xff]   ;;  %v2394_v25 = vld [vmem:[%s2808_s6 + $0x140] sm:$0xff]   ;;  %v2395_v26 = vld [vmem:[%s2808_s6 + $0x48] sm:$0xff]  }
  0x1c   : > { %v2396_v27 = vld [vmem:[%s2808_s6 + $0x148] sm:$0xff]   ;;  %v2397_v28 = vld [vmem:[%s2808_s6 + $0x50] sm:$0xff]   ;;  %v2399_v30 = vld [vmem:[%s2808_s6 + $0x58] sm:$0xff]  }
  0x1d   : > { %2174 = vmatpush3.bf16.msra.mxu0 %v2371_v2  ;;  %2323 = vmatpush3.bf16.msra.mxu1 %v2371_v2  ;;  %v2398_v29 = vld [vmem:[%s2808_s6 + $0x150] sm:$0xff]   ;;  %v2400_v31 = vld [vmem:[%s2808_s6 + $0x158] sm:$0xff]   ;;  %v2401_v32 = vld [vmem:[%s2808_s6 + $0x60] sm:$0xff]  }
  0x1e   : > { %2175 = vmatprep.subr.bf16.mxu0 %v2372_v3  ;;  %2316 = vmatprep.subr.bf16.mxu1 %v2372_v3  ;;  %v2402_v33 = vld [vmem:[%s2808_s6 + $0x160] sm:$0xff]   ;;  %v2403_v34 = vld [vmem:[%s2808_s6 + $0x68] sm:$0xff]   ;;  %v2405_v36 = vld [vmem:[%s2808_s6 + $0x70] sm:$0xff]  }
  0x1f   : > { %v2404_v35 = vld [vmem:[%s2808_s6 + $0x168] sm:$0xff]   ;;  %v2406_v37 = vld [vmem:[%s2808_s6 + $0x170] sm:$0xff]   ;;  %v2407_v38 = vld [vmem:[%s2808_s6 + $0x78] sm:$0xff]  }
  0x20   : > { %v2408_v39 = vld [vmem:[%s2808_s6 + $0x178] sm:$0xff]   ;;  %v2409_v40 = vld [vmem:[%s2808_s6 + $0x80] sm:$0xff]   ;;  %v2411_v42 = vld [vmem:[%s2808_s6 + $0x88] sm:$0xff]  }
  0x21   : > { %2176 = vmatpush3.bf16.msra.mxu0 %v2372_v3  ;;  %2324 = vmatpush3.bf16.msra.mxu1 %v2372_v3  ;;  %v2410_v41 = vld [vmem:[%s2808_s6 + $0x180] sm:$0xff]   ;;  %v2412_v43 = vld [vmem:[%s2808_s6 + $0x188] sm:$0xff]   ;;  %v2413_v44 = vld [vmem:[%s2808_s6 + $0x90] sm:$0xff]  }
  0x22   : > { %2177 = vmatprep.subr.bf16.mxu0 %v2373_v6  ;;  %2317 = vmatprep.subr.bf16.mxu1 %v2373_v6  ;;  %v2414_v45 = vld [vmem:[%s2808_s6 + $0x190] sm:$0xff]   ;;  %v2415_v46 = vld [vmem:[%s2808_s6 + $0x98] sm:$0xff]   ;;  %v2417_v48 = vld [vmem:[%s2808_s6 + $0xa0] sm:$0xff]  }
  0x23   : > { %v2416_v47 = vld [vmem:[%s2808_s6 + $0x198] sm:$0xff]   ;;  %v2418_v49 = vld [vmem:[%s2808_s6 + $0x1a0] sm:$0xff]   ;;  %v2419_v50 = vld [vmem:[%s2808_s6 + $0xa8] sm:$0xff]  }
  0x24   : > { %v2420_v51 = vld [vmem:[%s2808_s6 + $0x1a8] sm:$0xff]   ;;  %v2421_v52 = vld [vmem:[%s2808_s6 + $0xb0] sm:$0xff]   ;;  %v2423_v54 = vld [vmem:[%s2808_s6 + $0xb8] sm:$0xff]  }
  0x25   : > { %2178 = vmatpush3.bf16.msra.mxu0 %v2373_v6  ;;  %2325 = vmatpush3.bf16.msra.mxu1 %v2373_v6  ;;  %v2422_v53 = vld [vmem:[%s2808_s6 + $0x1b0] sm:$0xff]   ;;  %v2424_v55 = vld [vmem:[%s2808_s6 + $0x1b8] sm:$0xff]   ;;  %v2425_v56 = vld [vmem:[%s2808_s6 + $0xc0] sm:$0xff]  }
  0x26   : > { %2179 = vmatprep.subr.bf16.mxu0 %v2374_v7  ;;  %2318 = vmatprep.subr.bf16.mxu1 %v2374_v7  ;;  %v2426_v57 = vld [vmem:[%s2808_s6 + $0x1c0] sm:$0xff]   ;;  %v2427_v58 = vld [vmem:[%s2808_s6 + $0xc8] sm:$0xff]   ;;  %v2429_v60 = vld [vmem:[%s2808_s6 + $0xd0] sm:$0xff]  }
  0x27   : > { %v2428_v59 = vld [vmem:[%s2808_s6 + $0x1c8] sm:$0xff]   ;;  %v2430_v61 = vld [vmem:[%s2808_s6 + $0x1d0] sm:$0xff]   ;;  %v2431_v62 = vld [vmem:[%s2808_s6 + $0xd8] sm:$0xff]  }
  0x28   : > { %v2432_v63 = vld [vmem:[%s2808_s6 + $0x1d8] sm:$0xff]   ;;  %v2433_v0 = vld [vmem:[%s2808_s6 + $0xe0] sm:$0xff]   ;;  %v2435_v2 = vld [vmem:[%s2808_s6 + $0xe8] sm:$0xff]  }
  0x29   : > { %2180 = vmatpush3.bf16.msra.mxu0 %v2374_v7  ;;  %2326 = vmatpush3.bf16.msra.mxu1 %v2374_v7  ;;  %v2434_v1 = vld [vmem:[%s2808_s6 + $0x1e0] sm:$0xff]   ;;  %v2436_v3 = vld [vmem:[%s2808_s6 + $0x1e8] sm:$0xff]   ;;  %v2437_v4 = vld [vmem:[%s2808_s6 + $0xf0] sm:$0xff]  }
  0x2a   : > { %2181 = vmatprep.subr.bf16.mxu0 %v2375_v8  ;;  %2319 = vmatprep.subr.bf16.mxu1 %v2375_v8  ;;  %v2438_v5 = vld [vmem:[%s2808_s6 + $0x1f0] sm:$0xff]   ;;  %v2439_v6 = vld [vmem:[%s2808_s6 + $0xf8] sm:$0xff]  }
  0x2b   : > { %v2440_v7 = vld [vmem:[%s2808_s6 + $0x1f8] sm:$0xff]  }
  0x2d   : > { %2182 = vmatpush3.bf16.msra.mxu0 %v2375_v8  ;;  %2327 = vmatpush3.bf16.msra.mxu1 %v2375_v8  ;;  %v2882_v8 = vld [vmem:[%s3306_s2] ss:$0 sm:$0xff] }
  0x2e   : > { %2183 = vmatprep.subr.bf16.mxu0 %v2376_v9  ;;  %2320 = vmatprep.subr.bf16.mxu1 %v2376_v9 }
  0x31   : > { %2184 = vmatpush3.bf16.msra.mxu0 %v2376_v9  ;;  %2328 = vmatpush3.bf16.msra.mxu1 %v2376_v9 }
  0x34   : > { %2186 = vmatmul.mubr.bf16.vlgmr.msra.gmra.mrb[0].mxu0 %v2379_v10  ;;  %2250 = vmatmul.mubr.bf16.vlgmr.msra.gmra.mrb[0].mxu1 %v2380_v11  ;;  %v2887_v10 = vld [vmem:[%s3307_s3] ss:$0 sm:$0xff] }
  0x35   : > { %2189 = vmatprep.mubr.bf16.mxu0 %v2381_v12  ;;  %2253 = vmatprep.mubr.bf16.mxu1 %v2382_v13 }
  0x3c   : > { %2190 = vmatmul.mubr.bf16.gmra.mrb[4].mxu0 %v2383_v14  ;;  %2254 = vmatmul.mubr.bf16.gmra.mrb[4].mxu1 %v2384_v15 }
  0x3d   : > { %2193 = vmatprep.mubr.bf16.mxu0 %v2385_v16  ;;  %2257 = vmatprep.mubr.bf16.mxu1 %v2386_v17 }
  0x44   : > { %2194 = vmatmul.mubr.bf16.gmra.mrb[8].mxu0 %v2387_v18  ;;  %2258 = vmatmul.mubr.bf16.gmra.mrb[8].mxu1 %v2388_v19 }
  0x45   : > { %2197 = vmatprep.mubr.bf16.mxu0 %v2389_v20  ;;  %2261 = vmatprep.mubr.bf16.mxu1 %v2390_v21 }
  0x4c   : > { %2198 = vmatmul.mubr.bf16.gmra.mrb[12].mxu0 %v2391_v22  ;;  %2262 = vmatmul.mubr.bf16.gmra.mrb[12].mxu1 %v2392_v23 }
  0x4d   : > { %2201 = vmatprep.mubr.bf16.mxu0 %v2393_v24  ;;  %2265 = vmatprep.mubr.bf16.mxu1 %v2394_v25 }
  0x54   : > { %2202 = vmatmul.mubr.bf16.gmra.mrb[16].mxu0 %v2395_v26  ;;  %2266 = vmatmul.mubr.bf16.gmra.mrb[16].mxu1 %v2396_v27 }
  0x55   : > { %2205 = vmatprep.mubr.bf16.mxu0 %v2397_v28  ;;  %2269 = vmatprep.mubr.bf16.mxu1 %v2398_v29 }
  0x5c   : > { %2206 = vmatmul.mubr.bf16.gmra.mrb[20].mxu0 %v2399_v30  ;;  %2270 = vmatmul.mubr.bf16.gmra.mrb[20].mxu1 %v2400_v31 }
  0x5d   : > { %2209 = vmatprep.mubr.bf16.mxu0 %v2401_v32  ;;  %2273 = vmatprep.mubr.bf16.mxu1 %v2402_v33 }
  0x64   : > { %2210 = vmatmul.mubr.bf16.gmra.mrb[24].mxu0 %v2403_v34  ;;  %2274 = vmatmul.mubr.bf16.gmra.mrb[24].mxu1 %v2404_v35 }
  0x65   : > { %2213 = vmatprep.mubr.bf16.mxu0 %v2405_v36  ;;  %2277 = vmatprep.mubr.bf16.mxu1 %v2406_v37 }
  0x6c   : > { %2214 = vmatmul.mubr.bf16.gmra.mrb[28].mxu0 %v2407_v38  ;;  %2278 = vmatmul.mubr.bf16.gmra.mrb[28].mxu1 %v2408_v39 }
  0x6d   : > { %2217 = vmatprep.mubr.bf16.mxu0 %v2409_v40  ;;  %2281 = vmatprep.mubr.bf16.mxu1 %v2410_v41 }
  0x74   : > { %2218 = vmatmul.mubr.bf16.gmra.mrb[32].mxu0 %v2411_v42  ;;  %2282 = vmatmul.mubr.bf16.gmra.mrb[32].mxu1 %v2412_v43 }
  0x75   : > { %2221 = vmatprep.mubr.bf16.mxu0 %v2413_v44  ;;  %2285 = vmatprep.mubr.bf16.mxu1 %v2414_v45 }
  0x7c   : > { %2222 = vmatmul.mubr.bf16.gmra.mrb[36].mxu0 %v2415_v46  ;;  %2286 = vmatmul.mubr.bf16.gmra.mrb[36].mxu1 %v2416_v47 }
  0x7d   : > { %2225 = vmatprep.mubr.bf16.mxu0 %v2417_v48  ;;  %2289 = vmatprep.mubr.bf16.mxu1 %v2418_v49 }
  0x84   : > { %2226 = vmatmul.mubr.bf16.gmra.mrb[40].mxu0 %v2419_v50  ;;  %2290 = vmatmul.mubr.bf16.gmra.mrb[40].mxu1 %v2420_v51 }
  0x85   : > { %2229 = vmatprep.mubr.bf16.mxu0 %v2421_v52  ;;  %2293 = vmatprep.mubr.bf16.mxu1 %v2422_v53 }
  0x8c   : > { %2230 = vmatmul.mubr.bf16.gmra.mrb[44].mxu0 %v2423_v54  ;;  %2294 = vmatmul.mubr.bf16.gmra.mrb[44].mxu1 %v2424_v55 }
  0x8d   : > { %2233 = vmatprep.mubr.bf16.mxu0 %v2425_v56  ;;  %2297 = vmatprep.mubr.bf16.mxu1 %v2426_v57 }
  0x94   : > { %2234 = vmatmul.mubr.bf16.gmra.mrb[48].mxu0 %v2427_v58  ;;  %2298 = vmatmul.mubr.bf16.gmra.mrb[48].mxu1 %v2428_v59 }
  0x95   : > { %2237 = vmatprep.mubr.bf16.mxu0 %v2429_v60  ;;  %2301 = vmatprep.mubr.bf16.mxu1 %v2430_v61 }
  0x9c   : > { %2238 = vmatmul.mubr.bf16.gmra.mrb[52].mxu0 %v2431_v62  ;;  %2302 = vmatmul.mubr.bf16.gmra.mrb[52].mxu1 %v2432_v63 }
  0x9d   : > { %2241 = vmatprep.mubr.bf16.mxu0 %v2433_v0  ;;  %2305 = vmatprep.mubr.bf16.mxu1 %v2434_v1 }
  0xa4   : > { %2242 = vmatmul.mubr.bf16.gmra.mrb[56].mxu0 %v2435_v2  ;;  %2306 = vmatmul.mubr.bf16.gmra.mrb[56].mxu1 %v2436_v3 }
  0xa5   : > { %2245 = vmatprep.mubr.bf16.mxu0 %v2437_v4  ;;  %2309 = vmatprep.mubr.bf16.mxu1 %v2438_v5 }
  0xac   : > { %2246 = vmatmul.mubr.bf16.gmra.mrb[60].mxu0 %v2439_v6  ;;  %2310 = vmatmul.mubr.bf16.gmra.mrb[60].mxu1 %v2440_v7 }
 0x107   : > { %v2187_v9 = vpop.f32.mrb[0].mxu0  ;;  %v2251_v11 = vpop.f32.mrb[0].mxu1 }
 0x108   : > { %v1388_v12 = vmul.f32 %v2187_v9, %v2882_v8  ;;  %v1452_v13 = vmul.f32 %v2251_v11, %v2882_v8  ;;  %v868_v14 = vpop.f32.mrb[1].mxu0  ;;  %v1124_v15 = vpop.f32.mrb[1].mxu1 }
 0x109   : > { %v1386_v16 = vmul.f32 %v2882_v8, %v868_v14  ;;  %v1450_v17 = vmul.f32 %v2882_v8, %v1124_v15  ;;  %v2188_v18 = vpop.f32.mrb[2].mxu0  ;;  %v2252_v19 = vpop.f32.mrb[2].mxu1 }
 0x10a   : > { %v1523_v20 = vadd.f32 %v2887_v10, %v1388_v12  ;;  %v1587_v21 = vadd.f32 %v2887_v10, %v1452_v13  ;;  %v1389_v22 = vmul.f32 %v2188_v18, %v2882_v8  ;;  %v1453_v23 = vmul.f32 %v2252_v19, %v2882_v8  ;;  %v871_v24 = vpop.f32.mrb[3].mxu0  ;;  %v1127_v25 = vpop.f32.mrb[3].mxu1 }
 0x10b   : > { %v1521_v26 = vadd.f32 %v2887_v10, %v1386_v16  ;;  %v1585_v27 = vadd.f32 %v2887_v10, %v1450_v17  ;;  %v1387_v28 = vmul.f32 %v2882_v8, %v871_v24  ;;  %v1451_v29 = vmul.f32 %v2882_v8, %v1127_v25 }
 0x10c   : > { %2441 = vtanh.f32 %v1523_v20  ;;  %v1524_v30 = vadd.f32 %v2887_v10, %v1389_v22  ;;  %v1588_v31 = vadd.f32 %v2887_v10, %v1453_v23 }
 0x10d   : > { %2443 = vtanh.f32 %v1587_v21  ;;  %v1522_v32 = vadd.f32 %v2887_v10, %v1387_v28  ;;  %v1586_v33 = vadd.f32 %v2887_v10, %v1451_v29 }
 0x10e   : > { %2445 = vtanh.f32 %v1521_v26 }
 0x10f   : > { %2447 = vtanh.f32 %v1585_v27  ;;  %v2191_v34 = vpop.f32.mrb[4].mxu0  ;;  %v2255_v35 = vpop.f32.mrb[4].mxu1 }
 0x110   : > { %2449 = vtanh.f32 %v1524_v30  ;;  %v1392_v36 = vmul.f32 %v2191_v34, %v2882_v8  ;;  %v1456_v37 = vmul.f32 %v2255_v35, %v2882_v8  ;;  %v884_v38 = vpop.f32.mrb[5].mxu0  ;;  %v1140_v39 = vpop.f32.mrb[5].mxu1 }
 0x111   : > { %2451 = vtanh.f32 %v1588_v31  ;;  %v1390_v40 = vmul.f32 %v2882_v8, %v884_v38  ;;  %v1454_v41 = vmul.f32 %v2882_v8, %v1140_v39  ;;  %v2192_v42 = vpop.f32.mrb[6].mxu0  ;;  %v2256_v43 = vpop.f32.mrb[6].mxu1 }
 0x112   : > { %2453 = vtanh.f32 %v1522_v32  ;;  %v1527_v44 = vadd.f32 %v2887_v10, %v1392_v36  ;;  %v1591_v45 = vadd.f32 %v2887_v10, %v1456_v37  ;;  %v1393_v46 = vmul.f32 %v2192_v42, %v2882_v8  ;;  %v887_v47 = vpop.f32.mrb[7].mxu0  ;;  %v1143_v48 = vpop.f32.mrb[7].mxu1 }
 0x113   : > { %2455 = vtanh.f32 %v1586_v33  ;;  %v1525_v49 = vadd.f32 %v2887_v10, %v1390_v40  ;;  %v1589_v50 = vadd.f32 %v2887_v10, %v1454_v41  ;;  %v1457_v51 = vmul.f32 %v2256_v43, %v2882_v8 }
 0x114   : > { %2457 = vtanh.f32 %v1527_v44  ;;  %v1528_v52 = vadd.f32 %v2887_v10, %v1393_v46  ;;  %v1391_v53 = vmul.f32 %v2882_v8, %v887_v47  ;;  %v1455_v54 = vmul.f32 %v2882_v8, %v1143_v48 }
 0x115   : > { %2459 = vtanh.f32 %v1591_v45  ;;  %v1592_v55 = vadd.f32 %v2887_v10, %v1457_v51 }
 0x116   : > { %v2442_v56 = vpop.eup %2441  ;;  %2461 = vtanh.f32 %v1525_v49  ;;  %v1526_v57 = vadd.f32 %v2887_v10, %v1391_v53  ;;  %v1590_v59 = vadd.f32 %v2887_v10, %v1455_v54 }
 0x117   : > { %v2444_v58 = vpop.eup %2443  ;;  %1779 = vst [vmem:[%s2919_s14 + $0x10] sm:$0xff] %v2442_v56  ;;  %2463 = vtanh.f32 %v1589_v50  ;;  %v2195_v60 = vpop.f32.mrb[8].mxu0 }
 0x118   : > { %v2259_v61 = vpop.f32.mrb[8].mxu1  ;;  %v2446_v62 = vpop.eup %2445  ;;  %1843 = vst [vmem:[%s2919_s14 + $0x210] sm:$0xff] %v2444_v58  ;;  %2465 = vtanh.f32 %v1528_v52  ;;  %v1396_v63 = vmul.f32 %v2195_v60, %v2882_v8 }
 0x119   : > { %v1460_v0 = vmul.f32 %v2259_v61, %v2882_v8  ;;  %v900_v1 = vpop.f32.mrb[9].mxu0  ;;  %v1156_v2 = vpop.f32.mrb[9].mxu1  ;;  %1777 = vst [vmem:[%s2919_s14] sm:$0xff] %v2446_v62  ;;  %2467 = vtanh.f32 %v1592_v55 }
 0x11a   : > { %v2448_v3 = vpop.eup %2447  ;;  %v1394_v4 = vmul.f32 %v2882_v8, %v900_v1  ;;  %v1458_v5 = vmul.f32 %v2882_v8, %v1156_v2  ;;  %v2196_v6 = vpop.f32.mrb[10].mxu0  ;;  %2469 = vtanh.f32 %v1526_v57  ;;  %v1531_v11 = vadd.f32 %v2887_v10, %v1396_v63 }
 0x11b   : > { %v2260_v7 = vpop.f32.mrb[10].mxu1  ;;  %v2450_v9 = vpop.eup %2449  ;;  %1841 = vst [vmem:[%s2919_s14 + $0x200] sm:$0xff] %v2448_v3  ;;  %v1595_v12 = vadd.f32 %v2887_v10, %v1460_v0  ;;  %v1397_v13 = vmul.f32 %v2196_v6, %v2882_v8  ;;  %2471 = vtanh.f32 %v1590_v59 }
 0x11c   : > { %v903_v14 = vpop.f32.mrb[11].mxu0  ;;  %v1159_v15 = vpop.f32.mrb[11].mxu1  ;;  %1780 = vst [vmem:[%s2919_s14 + $0x18] sm:$0xff] %v2450_v9  ;;  %v1529_v17 = vadd.f32 %v2887_v10, %v1394_v4  ;;  %v1593_v18 = vadd.f32 %v2887_v10, %v1458_v5  ;;  %v1461_v19 = vmul.f32 %v2260_v7, %v2882_v8  ;;  %2473 = vtanh.f32 %v1531_v11 }
 0x11d   : > { %v2452_v16 = vpop.eup %2451  ;;  %v1532_v21 = vadd.f32 %v2887_v10, %v1397_v13  ;;  %v1395_v22 = vmul.f32 %v2882_v8, %v903_v14  ;;  %v1459_v23 = vmul.f32 %v2882_v8, %v1159_v15  ;;  %2475 = vtanh.f32 %v1595_v12 }
 0x11e   : > { %v2454_v20 = vpop.eup %2453  ;;  %1844 = vst [vmem:[%s2919_s14 + $0x218] sm:$0xff] %v2452_v16  ;;  %v1596_v25 = vadd.f32 %v2887_v10, %v1461_v19  ;;  %2477 = vtanh.f32 %v1529_v17 }
 0x11f   : > { %v2456_v24 = vpop.eup %2455  ;;  %1778 = vst [vmem:[%s2919_s14 + $0x8] sm:$0xff] %v2454_v20  ;;  %v1530_v27 = vadd.f32 %v2887_v10, %v1395_v22  ;;  %2479 = vtanh.f32 %v1593_v18  ;;  %v1594_v29 = vadd.f32 %v2887_v10, %v1459_v23  ;;  %v2199_v30 = vpop.f32.mrb[12].mxu0 }
 0x120   : > { %v2458_v26 = vpop.eup %2457  ;;  %1842 = vst [vmem:[%s2919_s14 + $0x208] sm:$0xff] %v2456_v24  ;;  %v2263_v31 = vpop.f32.mrb[12].mxu1  ;;  %2481 = vtanh.f32 %v1532_v21  ;;  %v1400_v33 = vmul.f32 %v2199_v30, %v2882_v8 }
 0x121   : > { %v2460_v28 = vpop.eup %2459  ;;  %1783 = vst [vmem:[%s2919_s14 + $0x30] sm:$0xff] %v2458_v26  ;;  %v1464_v34 = vmul.f32 %v2263_v31, %v2882_v8  ;;  %v916_v35 = vpop.f32.mrb[13].mxu0  ;;  %2483 = vtanh.f32 %v1596_v25 }
 0x122   : > { %v2462_v32 = vpop.eup %2461  ;;  %1847 = vst [vmem:[%s2919_s14 + $0x230] sm:$0xff] %v2460_v28  ;;  %v1172_v36 = vpop.f32.mrb[13].mxu1  ;;  %v1398_v38 = vmul.f32 %v2882_v8, %v916_v35  ;;  %2485 = vtanh.f32 %v1530_v27  ;;  %v1535_v43 = vadd.f32 %v2887_v10, %v1400_v33 }
 0x123   : > { %v2464_v37 = vpop.eup %2463  ;;  %1781 = vst [vmem:[%s2919_s14 + $0x20] sm:$0xff] %v2462_v32  ;;  %v1462_v39 = vmul.f32 %v2882_v8, %v1172_v36  ;;  %v2200_v40 = vpop.f32.mrb[14].mxu0  ;;  %v1599_v44 = vadd.f32 %v2887_v10, %v1464_v34  ;;  %2487 = vtanh.f32 %v1594_v29 }
 0x124   : > { %v2264_v41 = vpop.f32.mrb[14].mxu1  ;;  %v2466_v42 = vpop.eup %2465  ;;  %1845 = vst [vmem:[%s2919_s14 + $0x220] sm:$0xff] %v2464_v37  ;;  %v1401_v45 = vmul.f32 %v2200_v40, %v2882_v8  ;;  %v1533_v49 = vadd.f32 %v2887_v10, %v1398_v38  ;;  %2489 = vtanh.f32 %v1535_v43 }
 0x125   : > { %v919_v46 = vpop.f32.mrb[15].mxu0  ;;  %v1175_v47 = vpop.f32.mrb[15].mxu1  ;;  %1784 = vst [vmem:[%s2919_s14 + $0x38] sm:$0xff] %v2466_v42  ;;  %v1597_v50 = vadd.f32 %v2887_v10, %v1462_v39  ;;  %v1465_v51 = vmul.f32 %v2264_v41, %v2882_v8  ;;  %2491 = vtanh.f32 %v1599_v44 }
 0x126   : > { %v2468_v48 = vpop.eup %2467  ;;  %v1536_v53 = vadd.f32 %v2887_v10, %v1401_v45  ;;  %v1399_v54 = vmul.f32 %v2882_v8, %v919_v46  ;;  %v1463_v55 = vmul.f32 %v2882_v8, %v1175_v47  ;;  %2493 = vtanh.f32 %v1533_v49 }
 0x127   : > { %v2470_v52 = vpop.eup %2469  ;;  %1848 = vst [vmem:[%s2919_s14 + $0x238] sm:$0xff] %v2468_v48  ;;  %v1600_v57 = vadd.f32 %v2887_v10, %v1465_v51  ;;  %2495 = vtanh.f32 %v1597_v50  ;;  %v2203_v62 = vpop.f32.mrb[16].mxu0 }
 0x128   : > { %v2472_v56 = vpop.eup %2471  ;;  %1782 = vst [vmem:[%s2919_s14 + $0x28] sm:$0xff] %v2470_v52  ;;  %v1534_v59 = vadd.f32 %v2887_v10, %v1399_v54  ;;  %v1598_v61 = vadd.f32 %v2887_v10, %v1463_v55  ;;  %v2267_v63 = vpop.f32.mrb[16].mxu1  ;;  %2497 = vtanh.f32 %v1536_v53  ;;  %v1404_v1 = vmul.f32 %v2203_v62, %v2882_v8 }
 0x129   : > { %v2474_v58 = vpop.eup %2473  ;;  %1846 = vst [vmem:[%s2919_s14 + $0x228] sm:$0xff] %v2472_v56  ;;  %v1468_v2 = vmul.f32 %v2267_v63, %v2882_v8  ;;  %v932_v3 = vpop.f32.mrb[17].mxu0  ;;  %2499 = vtanh.f32 %v1600_v57 }
 0x12a   : > { %v2476_v60 = vpop.eup %2475  ;;  %1787 = vst [vmem:[%s2919_s14 + $0x50] sm:$0xff] %v2474_v58  ;;  %v1188_v4 = vpop.f32.mrb[17].mxu1  ;;  %v1402_v6 = vmul.f32 %v2882_v8, %v932_v3  ;;  %2501 = vtanh.f32 %v1534_v59  ;;  %v1539_v13 = vadd.f32 %v2887_v10, %v1404_v1 }
 0x12b   : > { %v2478_v0 = vpop.eup %2477  ;;  %1851 = vst [vmem:[%s2919_s14 + $0x250] sm:$0xff] %v2476_v60  ;;  %v1466_v7 = vmul.f32 %v2882_v8, %v1188_v4  ;;  %v2204_v9 = vpop.f32.mrb[18].mxu0  ;;  %v1603_v14 = vadd.f32 %v2887_v10, %v1468_v2  ;;  %2503 = vtanh.f32 %v1598_v61 }
 0x12c   : > { %v2480_v5 = vpop.eup %2479  ;;  %1785 = vst [vmem:[%s2919_s14 + $0x40] sm:$0xff] %v2478_v0  ;;  %v2268_v11 = vpop.f32.mrb[18].mxu1  ;;  %v1405_v15 = vmul.f32 %v2204_v9, %v2882_v8  ;;  %v1537_v19 = vadd.f32 %v2887_v10, %v1402_v6  ;;  %2505 = vtanh.f32 %v1539_v13 }
 0x12d   : > { %v2482_v12 = vpop.eup %2481  ;;  %1849 = vst [vmem:[%s2919_s14 + $0x240] sm:$0xff] %v2480_v5  ;;  %v935_v16 = vpop.f32.mrb[19].mxu0  ;;  %v1601_v20 = vadd.f32 %v2887_v10, %v1466_v7  ;;  %v1469_v21 = vmul.f32 %v2268_v11, %v2882_v8  ;;  %2507 = vtanh.f32 %v1603_v14 }
 0x12e   : > { %v1191_v17 = vpop.f32.mrb[19].mxu1  ;;  %v2484_v18 = vpop.eup %2483  ;;  %1788 = vst [vmem:[%s2919_s14 + $0x58] sm:$0xff] %v2482_v12  ;;  %v1540_v23 = vadd.f32 %v2887_v10, %v1405_v15  ;;  %v1403_v24 = vmul.f32 %v2882_v8, %v935_v16  ;;  %2509 = vtanh.f32 %v1537_v19 }
 0x12f   : > { %v2486_v22 = vpop.eup %2485  ;;  %1852 = vst [vmem:[%s2919_s14 + $0x258] sm:$0xff] %v2484_v18  ;;  %v1467_v25 = vmul.f32 %v2882_v8, %v1191_v17  ;;  %v1604_v27 = vadd.f32 %v2887_v10, %v1469_v21  ;;  %2511 = vtanh.f32 %v1601_v20  ;;  %v2207_v32 = vpop.f32.mrb[20].mxu0 }
 0x130   : > { %v2488_v26 = vpop.eup %2487  ;;  %1786 = vst [vmem:[%s2919_s14 + $0x48] sm:$0xff] %v2486_v22  ;;  %v1538_v29 = vadd.f32 %v2887_v10, %v1403_v24  ;;  %v2271_v33 = vpop.f32.mrb[20].mxu1  ;;  %2513 = vtanh.f32 %v1540_v23  ;;  %v1408_v35 = vmul.f32 %v2207_v32, %v2882_v8 }
 0x131   : > { %v2490_v28 = vpop.eup %2489  ;;  %1850 = vst [vmem:[%s2919_s14 + $0x248] sm:$0xff] %v2488_v26  ;;  %v1602_v31 = vadd.f32 %v2887_v10, %v1467_v25  ;;  %v1472_v36 = vmul.f32 %v2271_v33, %v2882_v8  ;;  %v948_v37 = vpop.f32.mrb[21].mxu0  ;;  %2515 = vtanh.f32 %v1604_v27 }
 0x132   : > { %v2492_v30 = vpop.eup %2491  ;;  %1791 = vst [vmem:[%s2919_s14 + $0x70] sm:$0xff] %v2490_v28  ;;  %v1204_v38 = vpop.f32.mrb[21].mxu1  ;;  %v1406_v40 = vmul.f32 %v2882_v8, %v948_v37  ;;  %2517 = vtanh.f32 %v1538_v29  ;;  %v1543_v45 = vadd.f32 %v2887_v10, %v1408_v35 }
 0x133   : > { %v2494_v34 = vpop.eup %2493  ;;  %1855 = vst [vmem:[%s2919_s14 + $0x270] sm:$0xff] %v2492_v30  ;;  %v1470_v41 = vmul.f32 %v2882_v8, %v1204_v38  ;;  %v2208_v42 = vpop.f32.mrb[22].mxu0  ;;  %v1607_v46 = vadd.f32 %v2887_v10, %v1472_v36  ;;  %2519 = vtanh.f32 %v1602_v31 }
 0x134   : > { %v2496_v39 = vpop.eup %2495  ;;  %1789 = vst [vmem:[%s2919_s14 + $0x60] sm:$0xff] %v2494_v34  ;;  %v2272_v43 = vpop.f32.mrb[22].mxu1  ;;  %v1409_v47 = vmul.f32 %v2208_v42, %v2882_v8  ;;  %v1541_v51 = vadd.f32 %v2887_v10, %v1406_v40  ;;  %2521 = vtanh.f32 %v1543_v45 }
 0x135   : > { %v2498_v44 = vpop.eup %2497  ;;  %1853 = vst [vmem:[%s2919_s14 + $0x260] sm:$0xff] %v2496_v39  ;;  %v951_v48 = vpop.f32.mrb[23].mxu0  ;;  %v1605_v52 = vadd.f32 %v2887_v10, %v1470_v41  ;;  %v1473_v53 = vmul.f32 %v2272_v43, %v2882_v8  ;;  %2523 = vtanh.f32 %v1607_v46 }
 0x136   : > { %v1207_v49 = vpop.f32.mrb[23].mxu1  ;;  %v2500_v50 = vpop.eup %2499  ;;  %1792 = vst [vmem:[%s2919_s14 + $0x78] sm:$0xff] %v2498_v44  ;;  %v1544_v55 = vadd.f32 %v2887_v10, %v1409_v47  ;;  %v1407_v56 = vmul.f32 %v2882_v8, %v951_v48  ;;  %2525 = vtanh.f32 %v1541_v51 }
 0x137   : > { %v2502_v54 = vpop.eup %2501  ;;  %1856 = vst [vmem:[%s2919_s14 + $0x278] sm:$0xff] %v2500_v50  ;;  %v1471_v57 = vmul.f32 %v2882_v8, %v1207_v49  ;;  %v1608_v59 = vadd.f32 %v2887_v10, %v1473_v53  ;;  %2527 = vtanh.f32 %v1605_v52  ;;  %v2211_v0 = vpop.f32.mrb[24].mxu0 }
 0x138   : > { %v2504_v58 = vpop.eup %2503  ;;  %1790 = vst [vmem:[%s2919_s14 + $0x68] sm:$0xff] %v2502_v54  ;;  %v1542_v61 = vadd.f32 %v2887_v10, %v1407_v56  ;;  %v2275_v1 = vpop.f32.mrb[24].mxu1  ;;  %2529 = vtanh.f32 %v1544_v55  ;;  %v1412_v3 = vmul.f32 %v2211_v0, %v2882_v8 }
 0x139   : > { %v2506_v60 = vpop.eup %2505  ;;  %1854 = vst [vmem:[%s2919_s14 + $0x268] sm:$0xff] %v2504_v58  ;;  %v1606_v63 = vadd.f32 %v2887_v10, %v1471_v57  ;;  %v1476_v4 = vmul.f32 %v2275_v1, %v2882_v8  ;;  %v964_v5 = vpop.f32.mrb[25].mxu0  ;;  %2531 = vtanh.f32 %v1608_v59 }
 0x13a   : > { %v2508_v62 = vpop.eup %2507  ;;  %1795 = vst [vmem:[%s2919_s14 + $0x90] sm:$0xff] %v2506_v60  ;;  %v1220_v6 = vpop.f32.mrb[25].mxu1  ;;  %v1410_v9 = vmul.f32 %v2882_v8, %v964_v5  ;;  %2533 = vtanh.f32 %v1542_v61  ;;  %v1547_v15 = vadd.f32 %v2887_v10, %v1412_v3 }
 0x13b   : > { %v2510_v2 = vpop.eup %2509  ;;  %1859 = vst [vmem:[%s2919_s14 + $0x290] sm:$0xff] %v2508_v62  ;;  %v1474_v11 = vmul.f32 %v2882_v8, %v1220_v6  ;;  %v2212_v12 = vpop.f32.mrb[26].mxu0  ;;  %v1611_v16 = vadd.f32 %v2887_v10, %v1476_v4  ;;  %2535 = vtanh.f32 %v1606_v63 }
 0x13c   : > { %v2512_v7 = vpop.eup %2511  ;;  %1793 = vst [vmem:[%s2919_s14 + $0x80] sm:$0xff] %v2510_v2  ;;  %v2276_v13 = vpop.f32.mrb[26].mxu1  ;;  %v1413_v17 = vmul.f32 %v2212_v12, %v2882_v8  ;;  %v1545_v21 = vadd.f32 %v2887_v10, %v1410_v9  ;;  %2537 = vtanh.f32 %v1547_v15 }
 0x13d   : > { %v2514_v14 = vpop.eup %2513  ;;  %1857 = vst [vmem:[%s2919_s14 + $0x280] sm:$0xff] %v2512_v7  ;;  %v967_v18 = vpop.f32.mrb[27].mxu0  ;;  %v1609_v22 = vadd.f32 %v2887_v10, %v1474_v11  ;;  %v1477_v23 = vmul.f32 %v2276_v13, %v2882_v8  ;;  %2539 = vtanh.f32 %v1611_v16 }
 0x13e   : > { %v1223_v19 = vpop.f32.mrb[27].mxu1  ;;  %v2516_v20 = vpop.eup %2515  ;;  %1796 = vst [vmem:[%s2919_s14 + $0x98] sm:$0xff] %v2514_v14  ;;  %v1548_v25 = vadd.f32 %v2887_v10, %v1413_v17  ;;  %v1411_v26 = vmul.f32 %v2882_v8, %v967_v18  ;;  %2541 = vtanh.f32 %v1545_v21 }
 0x13f   : > { %v2518_v24 = vpop.eup %2517  ;;  %1860 = vst [vmem:[%s2919_s14 + $0x298] sm:$0xff] %v2516_v20  ;;  %v1475_v27 = vmul.f32 %v2882_v8, %v1223_v19  ;;  %v1612_v29 = vadd.f32 %v2887_v10, %v1477_v23  ;;  %2543 = vtanh.f32 %v1609_v22  ;;  %v2215_v34 = vpop.f32.mrb[28].mxu0 }
 0x140   : > { %v2520_v28 = vpop.eup %2519  ;;  %1794 = vst [vmem:[%s2919_s14 + $0x88] sm:$0xff] %v2518_v24  ;;  %v1546_v31 = vadd.f32 %v2887_v10, %v1411_v26  ;;  %v2279_v35 = vpop.f32.mrb[28].mxu1  ;;  %2545 = vtanh.f32 %v1548_v25  ;;  %v1416_v37 = vmul.f32 %v2215_v34, %v2882_v8 }
 0x141   : > { %v2522_v30 = vpop.eup %2521  ;;  %1858 = vst [vmem:[%s2919_s14 + $0x288] sm:$0xff] %v2520_v28  ;;  %v1610_v33 = vadd.f32 %v2887_v10, %v1475_v27  ;;  %v1480_v38 = vmul.f32 %v2279_v35, %v2882_v8  ;;  %v980_v39 = vpop.f32.mrb[29].mxu0  ;;  %2547 = vtanh.f32 %v1612_v29 }
 0x142   : > { %v2524_v32 = vpop.eup %2523  ;;  %1799 = vst [vmem:[%s2919_s14 + $0xb0] sm:$0xff] %v2522_v30  ;;  %v1236_v40 = vpop.f32.mrb[29].mxu1  ;;  %v1414_v42 = vmul.f32 %v2882_v8, %v980_v39  ;;  %2549 = vtanh.f32 %v1546_v31  ;;  %v1551_v47 = vadd.f32 %v2887_v10, %v1416_v37 }
 0x143   : > { %v2526_v36 = vpop.eup %2525  ;;  %1863 = vst [vmem:[%s2919_s14 + $0x2b0] sm:$0xff] %v2524_v32  ;;  %v1478_v43 = vmul.f32 %v2882_v8, %v1236_v40  ;;  %v2216_v44 = vpop.f32.mrb[30].mxu0  ;;  %v1615_v48 = vadd.f32 %v2887_v10, %v1480_v38  ;;  %2551 = vtanh.f32 %v1610_v33 }
 0x144   : > { %v2528_v41 = vpop.eup %2527  ;;  %1797 = vst [vmem:[%s2919_s14 + $0xa0] sm:$0xff] %v2526_v36  ;;  %v2280_v45 = vpop.f32.mrb[30].mxu1  ;;  %v1417_v49 = vmul.f32 %v2216_v44, %v2882_v8  ;;  %v1549_v53 = vadd.f32 %v2887_v10, %v1414_v42  ;;  %2553 = vtanh.f32 %v1551_v47 }
 0x145   : > { %v2530_v46 = vpop.eup %2529  ;;  %1861 = vst [vmem:[%s2919_s14 + $0x2a0] sm:$0xff] %v2528_v41  ;;  %v983_v50 = vpop.f32.mrb[31].mxu0  ;;  %v1613_v54 = vadd.f32 %v2887_v10, %v1478_v43  ;;  %v1481_v55 = vmul.f32 %v2280_v45, %v2882_v8  ;;  %2555 = vtanh.f32 %v1615_v48 }
 0x146   : > { %v1239_v51 = vpop.f32.mrb[31].mxu1  ;;  %v2532_v52 = vpop.eup %2531  ;;  %1800 = vst [vmem:[%s2919_s14 + $0xb8] sm:$0xff] %v2530_v46  ;;  %v1552_v57 = vadd.f32 %v2887_v10, %v1417_v49  ;;  %v1415_v58 = vmul.f32 %v2882_v8, %v983_v50  ;;  %2557 = vtanh.f32 %v1549_v53 }
 0x147   : > { %v2534_v56 = vpop.eup %2533  ;;  %1864 = vst [vmem:[%s2919_s14 + $0x2b8] sm:$0xff] %v2532_v52  ;;  %v1479_v59 = vmul.f32 %v2882_v8, %v1239_v51  ;;  %v1616_v61 = vadd.f32 %v2887_v10, %v1481_v55  ;;  %2559 = vtanh.f32 %v1613_v54  ;;  %v2219_v2 = vpop.f32.mrb[32].mxu0 }
 0x148   : > { %v2536_v60 = vpop.eup %2535  ;;  %1798 = vst [vmem:[%s2919_s14 + $0xa8] sm:$0xff] %v2534_v56  ;;  %v1550_v63 = vadd.f32 %v2887_v10, %v1415_v58  ;;  %v2283_v3 = vpop.f32.mrb[32].mxu1  ;;  %2561 = vtanh.f32 %v1552_v57  ;;  %v1420_v5 = vmul.f32 %v2219_v2, %v2882_v8 }
 0x149   : > { %v2538_v62 = vpop.eup %2537  ;;  %1862 = vst [vmem:[%s2919_s14 + $0x2a8] sm:$0xff] %v2536_v60  ;;  %v1614_v1 = vadd.f32 %v2887_v10, %v1479_v59  ;;  %v1484_v6 = vmul.f32 %v2283_v3, %v2882_v8  ;;  %v996_v7 = vpop.f32.mrb[33].mxu0  ;;  %2563 = vtanh.f32 %v1616_v61 }
 0x14a   : > { %v2540_v0 = vpop.eup %2539  ;;  %1803 = vst [vmem:[%s2919_s14 + $0xd0] sm:$0xff] %v2538_v62  ;;  %v1252_v9 = vpop.f32.mrb[33].mxu1  ;;  %v1418_v12 = vmul.f32 %v2882_v8, %v996_v7  ;;  %2565 = vtanh.f32 %v1550_v63  ;;  %v1555_v17 = vadd.f32 %v2887_v10, %v1420_v5 }
 0x14b   : > { %v2542_v4 = vpop.eup %2541  ;;  %1867 = vst [vmem:[%s2919_s14 + $0x2d0] sm:$0xff] %v2540_v0  ;;  %v1482_v13 = vmul.f32 %v2882_v8, %v1252_v9  ;;  %v2220_v14 = vpop.f32.mrb[34].mxu0  ;;  %v1619_v18 = vadd.f32 %v2887_v10, %v1484_v6  ;;  %2567 = vtanh.f32 %v1614_v1 }
 0x14c   : > { %v2544_v11 = vpop.eup %2543  ;;  %1801 = vst [vmem:[%s2919_s14 + $0xc0] sm:$0xff] %v2542_v4  ;;  %v2284_v15 = vpop.f32.mrb[34].mxu1  ;;  %v1421_v19 = vmul.f32 %v2220_v14, %v2882_v8  ;;  %v1553_v23 = vadd.f32 %v2887_v10, %v1418_v12  ;;  %2569 = vtanh.f32 %v1555_v17 }
 0x14d   : > { %v2546_v16 = vpop.eup %2545  ;;  %1865 = vst [vmem:[%s2919_s14 + $0x2c0] sm:$0xff] %v2544_v11  ;;  %v999_v20 = vpop.f32.mrb[35].mxu0  ;;  %v1617_v24 = vadd.f32 %v2887_v10, %v1482_v13  ;;  %v1485_v25 = vmul.f32 %v2284_v15, %v2882_v8  ;;  %2571 = vtanh.f32 %v1619_v18 }
 0x14e   : > { %v1255_v21 = vpop.f32.mrb[35].mxu1  ;;  %v2548_v22 = vpop.eup %2547  ;;  %1804 = vst [vmem:[%s2919_s14 + $0xd8] sm:$0xff] %v2546_v16  ;;  %v1556_v27 = vadd.f32 %v2887_v10, %v1421_v19  ;;  %v1419_v28 = vmul.f32 %v2882_v8, %v999_v20  ;;  %2573 = vtanh.f32 %v1553_v23 }
 0x14f   : > { %v2550_v26 = vpop.eup %2549  ;;  %1868 = vst [vmem:[%s2919_s14 + $0x2d8] sm:$0xff] %v2548_v22  ;;  %v1483_v29 = vmul.f32 %v2882_v8, %v1255_v21  ;;  %v1620_v31 = vadd.f32 %v2887_v10, %v1485_v25  ;;  %2575 = vtanh.f32 %v1617_v24  ;;  %v2223_v36 = vpop.f32.mrb[36].mxu0 }
 0x150   : > { %v2552_v30 = vpop.eup %2551  ;;  %1802 = vst [vmem:[%s2919_s14 + $0xc8] sm:$0xff] %v2550_v26  ;;  %v1554_v33 = vadd.f32 %v2887_v10, %v1419_v28  ;;  %v2287_v37 = vpop.f32.mrb[36].mxu1  ;;  %2577 = vtanh.f32 %v1556_v27  ;;  %v1424_v39 = vmul.f32 %v2223_v36, %v2882_v8 }
 0x151   : > { %v2554_v32 = vpop.eup %2553  ;;  %1866 = vst [vmem:[%s2919_s14 + $0x2c8] sm:$0xff] %v2552_v30  ;;  %v1618_v35 = vadd.f32 %v2887_v10, %v1483_v29  ;;  %v1488_v40 = vmul.f32 %v2287_v37, %v2882_v8  ;;  %v1012_v41 = vpop.f32.mrb[37].mxu0  ;;  %2579 = vtanh.f32 %v1620_v31 }
 0x152   : > { %v2556_v34 = vpop.eup %2555  ;;  %1807 = vst [vmem:[%s2919_s14 + $0xf0] sm:$0xff] %v2554_v32  ;;  %v1268_v42 = vpop.f32.mrb[37].mxu1  ;;  %v1422_v44 = vmul.f32 %v2882_v8, %v1012_v41  ;;  %2581 = vtanh.f32 %v1554_v33  ;;  %v1559_v49 = vadd.f32 %v2887_v10, %v1424_v39 }
 0x153   : > { %v2558_v38 = vpop.eup %2557  ;;  %1871 = vst [vmem:[%s2919_s14 + $0x2f0] sm:$0xff] %v2556_v34  ;;  %v1486_v45 = vmul.f32 %v2882_v8, %v1268_v42  ;;  %v2224_v46 = vpop.f32.mrb[38].mxu0  ;;  %v1623_v50 = vadd.f32 %v2887_v10, %v1488_v40  ;;  %2583 = vtanh.f32 %v1618_v35 }
 0x154   : > { %v2560_v43 = vpop.eup %2559  ;;  %1805 = vst [vmem:[%s2919_s14 + $0xe0] sm:$0xff] %v2558_v38  ;;  %v2288_v47 = vpop.f32.mrb[38].mxu1  ;;  %v1425_v51 = vmul.f32 %v2224_v46, %v2882_v8  ;;  %v1557_v55 = vadd.f32 %v2887_v10, %v1422_v44  ;;  %2585 = vtanh.f32 %v1559_v49 }
 0x155   : > { %v2562_v48 = vpop.eup %2561  ;;  %1869 = vst [vmem:[%s2919_s14 + $0x2e0] sm:$0xff] %v2560_v43  ;;  %v1015_v52 = vpop.f32.mrb[39].mxu0  ;;  %v1621_v56 = vadd.f32 %v2887_v10, %v1486_v45  ;;  %v1489_v57 = vmul.f32 %v2288_v47, %v2882_v8  ;;  %2587 = vtanh.f32 %v1623_v50 }
 0x156   : > { %v1271_v53 = vpop.f32.mrb[39].mxu1  ;;  %v2564_v54 = vpop.eup %2563  ;;  %1808 = vst [vmem:[%s2919_s14 + $0xf8] sm:$0xff] %v2562_v48  ;;  %v1560_v59 = vadd.f32 %v2887_v10, %v1425_v51  ;;  %v1423_v60 = vmul.f32 %v2882_v8, %v1015_v52  ;;  %2589 = vtanh.f32 %v1557_v55  ;;  %v3159_v51 = vld [vmem:[%s3307_s3] ss:$0 sm:$0xff] }
 0x157   : > { %v2566_v58 = vpop.eup %2565  ;;  %1872 = vst [vmem:[%s2919_s14 + $0x2f8] sm:$0xff] %v2564_v54  ;;  %v1487_v61 = vmul.f32 %v2882_v8, %v1271_v53  ;;  %v1624_v63 = vadd.f32 %v2887_v10, %v1489_v57  ;;  %2591 = vtanh.f32 %v1621_v56  ;;  %v2227_v4 = vpop.f32.mrb[40].mxu0 }
 0x158   : > { %v2568_v62 = vpop.eup %2567  ;;  %1806 = vst [vmem:[%s2919_s14 + $0xe8] sm:$0xff] %v2566_v58  ;;  %v1558_v1 = vadd.f32 %v2887_v10, %v1423_v60  ;;  %v2291_v5 = vpop.f32.mrb[40].mxu1  ;;  %2593 = vtanh.f32 %v1560_v59  ;;  %v1428_v7 = vmul.f32 %v2227_v4, %v2882_v8 }
 0x159   : > { %v2570_v0 = vpop.eup %2569  ;;  %1870 = vst [vmem:[%s2919_s14 + $0x2e8] sm:$0xff] %v2568_v62  ;;  %v1622_v3 = vadd.f32 %v2887_v10, %v1487_v61  ;;  %v1492_v9 = vmul.f32 %v2291_v5, %v2882_v8  ;;  %v1028_v11 = vpop.f32.mrb[41].mxu0  ;;  %2595 = vtanh.f32 %v1624_v63 }
 0x15a   : > { %v2572_v2 = vpop.eup %2571  ;;  %1811 = vst [vmem:[%s2919_s14 + $0x110] sm:$0xff] %v2570_v0  ;;  %v1284_v12 = vpop.f32.mrb[41].mxu1  ;;  %v1426_v14 = vmul.f32 %v2882_v8, %v1028_v11  ;;  %2597 = vtanh.f32 %v1558_v1  ;;  %v1563_v19 = vadd.f32 %v2887_v10, %v1428_v7 }
 0x15b   : > { %v2574_v6 = vpop.eup %2573  ;;  %1875 = vst [vmem:[%s2919_s14 + $0x310] sm:$0xff] %v2572_v2  ;;  %v1490_v15 = vmul.f32 %v2882_v8, %v1284_v12  ;;  %v2228_v16 = vpop.f32.mrb[42].mxu0  ;;  %v1627_v20 = vadd.f32 %v2887_v10, %v1492_v9  ;;  %2599 = vtanh.f32 %v1622_v3 }
 0x15c   : > { %v2576_v13 = vpop.eup %2575  ;;  %1809 = vst [vmem:[%s2919_s14 + $0x100] sm:$0xff] %v2574_v6  ;;  %v2292_v17 = vpop.f32.mrb[42].mxu1  ;;  %v1429_v21 = vmul.f32 %v2228_v16, %v2882_v8  ;;  %v1561_v25 = vadd.f32 %v2887_v10, %v1426_v14  ;;  %2601 = vtanh.f32 %v1563_v19 }
 0x15d   : > { %v2578_v18 = vpop.eup %2577  ;;  %1873 = vst [vmem:[%s2919_s14 + $0x300] sm:$0xff] %v2576_v13  ;;  %v1031_v22 = vpop.f32.mrb[43].mxu0  ;;  %v1625_v26 = vadd.f32 %v2887_v10, %v1490_v15  ;;  %v1493_v27 = vmul.f32 %v2292_v17, %v2882_v8  ;;  %2603 = vtanh.f32 %v1627_v20 }
 0x15e   : > { %v1287_v23 = vpop.f32.mrb[43].mxu1  ;;  %v2580_v24 = vpop.eup %2579  ;;  %1812 = vst [vmem:[%s2919_s14 + $0x118] sm:$0xff] %v2578_v18  ;;  %v1564_v29 = vadd.f32 %v2887_v10, %v1429_v21  ;;  %v1427_v30 = vmul.f32 %v2882_v8, %v1031_v22  ;;  %2605 = vtanh.f32 %v1561_v25 }
 0x15f   : > { %v2582_v28 = vpop.eup %2581  ;;  %1876 = vst [vmem:[%s2919_s14 + $0x318] sm:$0xff] %v2580_v24  ;;  %v1491_v31 = vmul.f32 %v2882_v8, %v1287_v23  ;;  %v1628_v33 = vadd.f32 %v2887_v10, %v1493_v27  ;;  %2607 = vtanh.f32 %v1625_v26  ;;  %v2231_v38 = vpop.f32.mrb[44].mxu0 }
 0x160   : > { %v2584_v32 = vpop.eup %2583  ;;  %1810 = vst [vmem:[%s2919_s14 + $0x108] sm:$0xff] %v2582_v28  ;;  %v1562_v35 = vadd.f32 %v2887_v10, %v1427_v30  ;;  %v2295_v39 = vpop.f32.mrb[44].mxu1  ;;  %2609 = vtanh.f32 %v1564_v29  ;;  %v1432_v41 = vmul.f32 %v2231_v38, %v2882_v8 }
 0x161   : > { %v2586_v34 = vpop.eup %2585  ;;  %1874 = vst [vmem:[%s2919_s14 + $0x308] sm:$0xff] %v2584_v32  ;;  %v1626_v37 = vadd.f32 %v2887_v10, %v1491_v31  ;;  %v1496_v42 = vmul.f32 %v2295_v39, %v2882_v8  ;;  %v1044_v43 = vpop.f32.mrb[45].mxu0  ;;  %2611 = vtanh.f32 %v1628_v33  ;;  %v3152_v10 = vld [vmem:[%s3306_s2] ss:$0 sm:$0xff] }
 0x162   : > { %v2588_v36 = vpop.eup %2587  ;;  %1815 = vst [vmem:[%s2919_s14 + $0x130] sm:$0xff] %v2586_v34  ;;  %v1300_v44 = vpop.f32.mrb[45].mxu1  ;;  %v1430_v46 = vmul.f32 %v2882_v8, %v1044_v43  ;;  %2613 = vtanh.f32 %v1562_v35  ;;  %v1567_v8 = vadd.f32 %v3159_v51, %v1432_v41 }
 0x163   : > { %v2590_v40 = vpop.eup %2589  ;;  %1879 = vst [vmem:[%s2919_s14 + $0x330] sm:$0xff] %v2588_v36  ;;  %v1494_v47 = vmul.f32 %v3152_v10, %v1300_v44  ;;  %v2232_v48 = vpop.f32.mrb[46].mxu0  ;;  %v1631_v52 = vadd.f32 %v3159_v51, %v1496_v42  ;;  %2615 = vtanh.f32 %v1626_v37 }
 0x164   : > { %v2592_v45 = vpop.eup %2591  ;;  %1813 = vst [vmem:[%s2919_s14 + $0x120] sm:$0xff] %v2590_v40  ;;  %v2296_v49 = vpop.f32.mrb[46].mxu1  ;;  %v1433_v53 = vmul.f32 %v3152_v10, %v2232_v48  ;;  %v1565_v57 = vadd.f32 %v3159_v51, %v1430_v46  ;;  %2617 = vtanh.f32 %v1567_v8 }
 0x165   : > { %v2594_v50 = vpop.eup %2593  ;;  %1877 = vst [vmem:[%s2919_s14 + $0x320] sm:$0xff] %v2592_v45  ;;  %v1047_v54 = vpop.f32.mrb[47].mxu0  ;;  %v1629_v58 = vadd.f32 %v3159_v51, %v1494_v47  ;;  %v1497_v59 = vmul.f32 %v3152_v10, %v2296_v49  ;;  %2619 = vtanh.f32 %v1631_v52 }
 0x166   : > { %v1303_v55 = vpop.f32.mrb[47].mxu1  ;;  %v2596_v56 = vpop.eup %2595  ;;  %1816 = vst [vmem:[%s2919_s14 + $0x138] sm:$0xff] %v2594_v50  ;;  %v1568_v61 = vadd.f32 %v3159_v51, %v1433_v53  ;;  %v1431_v62 = vmul.f32 %v3152_v10, %v1047_v54  ;;  %2621 = vtanh.f32 %v1565_v57 }
 0x167   : > { %v2598_v60 = vpop.eup %2597  ;;  %1880 = vst [vmem:[%s2919_s14 + $0x338] sm:$0xff] %v2596_v56  ;;  %v1495_v63 = vmul.f32 %v3152_v10, %v1303_v55  ;;  %v1632_v1 = vadd.f32 %v3159_v51, %v1497_v59  ;;  %2623 = vtanh.f32 %v1629_v58  ;;  %v2235_v6 = vpop.f32.mrb[48].mxu0 }
 0x168   : > { %v2600_v0 = vpop.eup %2599  ;;  %1814 = vst [vmem:[%s2919_s14 + $0x128] sm:$0xff] %v2598_v60  ;;  %v1566_v3 = vadd.f32 %v3159_v51, %v1431_v62  ;;  %v2299_v7 = vpop.f32.mrb[48].mxu1  ;;  %2625 = vtanh.f32 %v1568_v61  ;;  %v1436_v11 = vmul.f32 %v3152_v10, %v2235_v6 }
 0x169   : > { %v2602_v2 = vpop.eup %2601  ;;  %1878 = vst [vmem:[%s2919_s14 + $0x328] sm:$0xff] %v2600_v0  ;;  %v1630_v5 = vadd.f32 %v3159_v51, %v1495_v63  ;;  %v1500_v12 = vmul.f32 %v3152_v10, %v2299_v7  ;;  %v1060_v13 = vpop.f32.mrb[49].mxu0  ;;  %2627 = vtanh.f32 %v1632_v1 }
 0x16a   : > { %v2604_v4 = vpop.eup %2603  ;;  %1819 = vst [vmem:[%s2919_s14 + $0x150] sm:$0xff] %v2602_v2  ;;  %v1316_v14 = vpop.f32.mrb[49].mxu1  ;;  %v1434_v16 = vmul.f32 %v3152_v10, %v1060_v13  ;;  %2629 = vtanh.f32 %v1566_v3  ;;  %v1571_v21 = vadd.f32 %v3159_v51, %v1436_v11 }
 0x16b   : > { %v2606_v9 = vpop.eup %2605  ;;  %1883 = vst [vmem:[%s2919_s14 + $0x350] sm:$0xff] %v2604_v4  ;;  %v1498_v17 = vmul.f32 %v3152_v10, %v1316_v14  ;;  %v2236_v18 = vpop.f32.mrb[50].mxu0  ;;  %v1635_v22 = vadd.f32 %v3159_v51, %v1500_v12  ;;  %2631 = vtanh.f32 %v1630_v5 }
 0x16c   : > { %v2608_v15 = vpop.eup %2607  ;;  %1817 = vst [vmem:[%s2919_s14 + $0x140] sm:$0xff] %v2606_v9  ;;  %v2300_v19 = vpop.f32.mrb[50].mxu1  ;;  %v1437_v23 = vmul.f32 %v3152_v10, %v2236_v18  ;;  %v1569_v27 = vadd.f32 %v3159_v51, %v1434_v16  ;;  %2633 = vtanh.f32 %v1571_v21 }
 0x16d   : > { %v2610_v20 = vpop.eup %2609  ;;  %1881 = vst [vmem:[%s2919_s14 + $0x340] sm:$0xff] %v2608_v15  ;;  %v1063_v24 = vpop.f32.mrb[51].mxu0  ;;  %v1633_v28 = vadd.f32 %v3159_v51, %v1498_v17  ;;  %v1501_v29 = vmul.f32 %v3152_v10, %v2300_v19  ;;  %2635 = vtanh.f32 %v1635_v22 }
 0x16e   : > { %v1319_v25 = vpop.f32.mrb[51].mxu1  ;;  %v2612_v26 = vpop.eup %2611  ;;  %1820 = vst [vmem:[%s2919_s14 + $0x158] sm:$0xff] %v2610_v20  ;;  %v1572_v31 = vadd.f32 %v3159_v51, %v1437_v23  ;;  %v1435_v32 = vmul.f32 %v3152_v10, %v1063_v24  ;;  %2637 = vtanh.f32 %v1569_v27 }
 0x16f   : > { %v2614_v30 = vpop.eup %2613  ;;  %1884 = vst [vmem:[%s2919_s14 + $0x358] sm:$0xff] %v2612_v26  ;;  %v1499_v33 = vmul.f32 %v3152_v10, %v1319_v25  ;;  %v1636_v35 = vadd.f32 %v3159_v51, %v1501_v29  ;;  %2639 = vtanh.f32 %v1633_v28  ;;  %v2239_v40 = vpop.f32.mrb[52].mxu0 }
 0x170   : > { %v2616_v34 = vpop.eup %2615  ;;  %1818 = vst [vmem:[%s2919_s14 + $0x148] sm:$0xff] %v2614_v30  ;;  %v1570_v37 = vadd.f32 %v3159_v51, %v1435_v32  ;;  %v2303_v41 = vpop.f32.mrb[52].mxu1  ;;  %2641 = vtanh.f32 %v1572_v31  ;;  %v1440_v43 = vmul.f32 %v3152_v10, %v2239_v40 }
 0x171   : > { %v2618_v36 = vpop.eup %2617  ;;  %1882 = vst [vmem:[%s2919_s14 + $0x348] sm:$0xff] %v2616_v34  ;;  %v1634_v39 = vadd.f32 %v3159_v51, %v1499_v33  ;;  %v1504_v44 = vmul.f32 %v3152_v10, %v2303_v41  ;;  %v1076_v45 = vpop.f32.mrb[53].mxu0  ;;  %2643 = vtanh.f32 %v1636_v35 }
 0x172   : > { %v2620_v38 = vpop.eup %2619  ;;  %1823 = vst [vmem:[%s2919_s14 + $0x170] sm:$0xff] %v2618_v36  ;;  %v1332_v46 = vpop.f32.mrb[53].mxu1  ;;  %v1438_v48 = vmul.f32 %v3152_v10, %v1076_v45  ;;  %2645 = vtanh.f32 %v1570_v37  ;;  %v1575_v53 = vadd.f32 %v3159_v51, %v1440_v43 }
 0x173   : > { %v2622_v42 = vpop.eup %2621  ;;  %1887 = vst [vmem:[%s2919_s14 + $0x370] sm:$0xff] %v2620_v38  ;;  %v1502_v49 = vmul.f32 %v3152_v10, %v1332_v46  ;;  %v2240_v50 = vpop.f32.mrb[54].mxu0  ;;  %v1639_v54 = vadd.f32 %v3159_v51, %v1504_v44  ;;  %2647 = vtanh.f32 %v1634_v39 }
 0x174   : > { %v2624_v47 = vpop.eup %2623  ;;  %1821 = vst [vmem:[%s2919_s14 + $0x160] sm:$0xff] %v2622_v42  ;;  %v2304_v8 = vpop.f32.mrb[54].mxu1  ;;  %v1441_v55 = vmul.f32 %v3152_v10, %v2240_v50  ;;  %v1573_v59 = vadd.f32 %v3159_v51, %v1438_v48  ;;  %2649 = vtanh.f32 %v1575_v53 }
 0x175   : > { %v2626_v52 = vpop.eup %2625  ;;  %1885 = vst [vmem:[%s2919_s14 + $0x360] sm:$0xff] %v2624_v47  ;;  %v1079_v56 = vpop.f32.mrb[55].mxu0  ;;  %v1637_v60 = vadd.f32 %v3159_v51, %v1502_v49  ;;  %v1505_v61 = vmul.f32 %v3152_v10, %v2304_v8  ;;  %2651 = vtanh.f32 %v1639_v54 }
 0x176   : > { %v1335_v57 = vpop.f32.mrb[55].mxu1  ;;  %v2628_v58 = vpop.eup %2627  ;;  %1824 = vst [vmem:[%s2919_s14 + $0x178] sm:$0xff] %v2626_v52  ;;  %v1576_v63 = vadd.f32 %v3159_v51, %v1441_v55  ;;  %v1439_v0 = vmul.f32 %v3152_v10, %v1079_v56  ;;  %2653 = vtanh.f32 %v1573_v59 }
 0x177   : > { %v2630_v62 = vpop.eup %2629  ;;  %1888 = vst [vmem:[%s2919_s14 + $0x378] sm:$0xff] %v2628_v58  ;;  %v1503_v1 = vmul.f32 %v3152_v10, %v1335_v57  ;;  %v1640_v3 = vadd.f32 %v3159_v51, %v1505_v61  ;;  %2655 = vtanh.f32 %v1637_v60  ;;  %v2243_v9 = vpop.f32.mrb[56].mxu0 }
 0x178   : > { %v2632_v2 = vpop.eup %2631  ;;  %1822 = vst [vmem:[%s2919_s14 + $0x168] sm:$0xff] %v2630_v62  ;;  %v1574_v5 = vadd.f32 %v3159_v51, %v1439_v0  ;;  %v2307_v11 = vpop.f32.mrb[56].mxu1  ;;  %2657 = vtanh.f32 %v1576_v63  ;;  %v1444_v13 = vmul.f32 %v3152_v10, %v2243_v9 }
 0x179   : > { %v2634_v4 = vpop.eup %2633  ;;  %1886 = vst [vmem:[%s2919_s14 + $0x368] sm:$0xff] %v2632_v2  ;;  %v1638_v7 = vadd.f32 %v3159_v51, %v1503_v1  ;;  %v1508_v14 = vmul.f32 %v3152_v10, %v2307_v11  ;;  %v1092_v15 = vpop.f32.mrb[57].mxu0  ;;  %2659 = vtanh.f32 %v1640_v3 }
 0x17a   : > { %v2636_v6 = vpop.eup %2635  ;;  %1827 = vst [vmem:[%s2919_s14 + $0x190] sm:$0xff] %v2634_v4  ;;  %v1348_v16 = vpop.f32.mrb[57].mxu1  ;;  %v1442_v18 = vmul.f32 %v3152_v10, %v1092_v15  ;;  %2661 = vtanh.f32 %v1574_v5  ;;  %v1579_v23 = vadd.f32 %v3159_v51, %v1444_v13 }
 0x17b   : > { %v2638_v12 = vpop.eup %2637  ;;  %1891 = vst [vmem:[%s2919_s14 + $0x390] sm:$0xff] %v2636_v6  ;;  %v1506_v19 = vmul.f32 %v3152_v10, %v1348_v16  ;;  %v2244_v20 = vpop.f32.mrb[58].mxu0  ;;  %v1643_v24 = vadd.f32 %v3159_v51, %v1508_v14  ;;  %2663 = vtanh.f32 %v1638_v7 }
 0x17c   : > { %v2640_v17 = vpop.eup %2639  ;;  %1825 = vst [vmem:[%s2919_s14 + $0x180] sm:$0xff] %v2638_v12  ;;  %v2308_v21 = vpop.f32.mrb[58].mxu1  ;;  %v1445_v25 = vmul.f32 %v3152_v10, %v2244_v20  ;;  %v1577_v29 = vadd.f32 %v3159_v51, %v1442_v18  ;;  %2665 = vtanh.f32 %v1579_v23 }
 0x17d   : > { %v2642_v22 = vpop.eup %2641  ;;  %1889 = vst [vmem:[%s2919_s14 + $0x380] sm:$0xff] %v2640_v17  ;;  %v1095_v26 = vpop.f32.mrb[59].mxu0  ;;  %v1641_v30 = vadd.f32 %v3159_v51, %v1506_v19  ;;  %v1509_v31 = vmul.f32 %v3152_v10, %v2308_v21  ;;  %2667 = vtanh.f32 %v1643_v24 }
 0x17e   : > { %v1351_v27 = vpop.f32.mrb[59].mxu1  ;;  %v2644_v28 = vpop.eup %2643  ;;  %1828 = vst [vmem:[%s2919_s14 + $0x198] sm:$0xff] %v2642_v22  ;;  %v1580_v33 = vadd.f32 %v3159_v51, %v1445_v25  ;;  %v1443_v34 = vmul.f32 %v3152_v10, %v1095_v26  ;;  %2669 = vtanh.f32 %v1577_v29 }
 0x17f   : > { %v2646_v32 = vpop.eup %2645  ;;  %1892 = vst [vmem:[%s2919_s14 + $0x398] sm:$0xff] %v2644_v28  ;;  %v1507_v35 = vmul.f32 %v3152_v10, %v1351_v27  ;;  %v1644_v37 = vadd.f32 %v3159_v51, %v1509_v31  ;;  %2671 = vtanh.f32 %v1641_v30  ;;  %v2247_v42 = vpop.f32.mrb[60].mxu0 }
 0x180   : > { %v2648_v36 = vpop.eup %2647  ;;  %1826 = vst [vmem:[%s2919_s14 + $0x188] sm:$0xff] %v2646_v32  ;;  %v1578_v39 = vadd.f32 %v3159_v51, %v1443_v34  ;;  %v2311_v43 = vpop.f32.mrb[60].mxu1  ;;  %2673 = vtanh.f32 %v1580_v33  ;;  %v1448_v45 = vmul.f32 %v3152_v10, %v2247_v42 }
 0x181   : > { %v2650_v38 = vpop.eup %2649  ;;  %1890 = vst [vmem:[%s2919_s14 + $0x388] sm:$0xff] %v2648_v36  ;;  %v1642_v41 = vadd.f32 %v3159_v51, %v1507_v35  ;;  %v1512_v46 = vmul.f32 %v3152_v10, %v2311_v43  ;;  %v1108_v47 = vpop.f32.mrb[61].mxu0  ;;  %2675 = vtanh.f32 %v1644_v37 }
 0x182   : > { %v2652_v40 = vpop.eup %2651  ;;  %1831 = vst [vmem:[%s2919_s14 + $0x1b0] sm:$0xff] %v2650_v38  ;;  %v1364_v48 = vpop.f32.mrb[61].mxu1  ;;  %v1446_v50 = vmul.f32 %v3152_v10, %v1108_v47  ;;  %2677 = vtanh.f32 %v1578_v39  ;;  %v1583_v55 = vadd.f32 %v3159_v51, %v1448_v45 }
 0x183   : > { %v2654_v44 = vpop.eup %2653  ;;  %1895 = vst [vmem:[%s2919_s14 + $0x3b0] sm:$0xff] %v2652_v40  ;;  %v1510_v8 = vmul.f32 %v3152_v10, %v1364_v48  ;;  %v2248_v52 = vpop.f32.mrb[62].mxu0  ;;  %v1647_v56 = vadd.f32 %v3159_v51, %v1512_v46  ;;  %2679 = vtanh.f32 %v1642_v41 }
 0x184   : > { %v2656_v49 = vpop.eup %2655  ;;  %1829 = vst [vmem:[%s2919_s14 + $0x1a0] sm:$0xff] %v2654_v44  ;;  %v2312_v53 = vpop.f32.mrb[62].mxu1  ;;  %v1449_v57 = vmul.f32 %v3152_v10, %v2248_v52  ;;  %v1581_v61 = vadd.f32 %v3159_v51, %v1446_v50  ;;  %2681 = vtanh.f32 %v1583_v55 }
 0x185   : > { %v2658_v54 = vpop.eup %2657  ;;  %1893 = vst [vmem:[%s2919_s14 + $0x3a0] sm:$0xff] %v2656_v49  ;;  %v1111_v58 = vpop.f32.mrb[63].mxu0  ;;  %v1645_v62 = vadd.f32 %v3159_v51, %v1510_v8  ;;  %v1513_v63 = vmul.f32 %v3152_v10, %v2312_v53  ;;  %2683 = vtanh.f32 %v1647_v56 }
 0x186   : > { %v1367_v59 = vpop.f32.mrb[63].mxu1  ;;  %v2660_v60 = vpop.eup %2659  ;;  %1832 = vst [vmem:[%s2919_s14 + $0x1b8] sm:$0xff] %v2658_v54  ;;  %v1584_v1 = vadd.f32 %v3159_v51, %v1449_v57  ;;  %v1447_v2 = vmul.f32 %v3152_v10, %v1111_v58  ;;  %2685 = vtanh.f32 %v1581_v61 }
 0x187   : > { %v2662_v0 = vpop.eup %2661  ;;  %1896 = vst [vmem:[%s2919_s14 + $0x3b8] sm:$0xff] %v2660_v60  ;;  %v1511_v3 = vmul.f32 %v3152_v10, %v1367_v59  ;;  %v1648_v5 = vadd.f32 %v3159_v51, %v1513_v63  ;;  %2687 = vtanh.f32 %v1645_v62 }
 0x188   : > { %v2664_v4 = vpop.eup %2663  ;;  %1830 = vst [vmem:[%s2919_s14 + $0x1a8] sm:$0xff] %v2662_v0  ;;  %v1582_v7 = vadd.f32 %v3159_v51, %v1447_v2  ;;  %2689 = vtanh.f32 %v1584_v1 }
 0x189   : > { %v2666_v6 = vpop.eup %2665  ;;  %1894 = vst [vmem:[%s2919_s14 + $0x3a8] sm:$0xff] %v2664_v4  ;;  %v1646_v11 = vadd.f32 %v3159_v51, %v1511_v3  ;;  %2691 = vtanh.f32 %v1648_v5 }
 0x18a   : > { %v2668_v9 = vpop.eup %2667  ;;  %1835 = vst [vmem:[%s2919_s14 + $0x1d0] sm:$0xff] %v2666_v6  ;;  %2693 = vtanh.f32 %v1582_v7 }
 0x18b   : > { %v2670_v10 = vpop.eup %2669  ;;  %1899 = vst [vmem:[%s2919_s14 + $0x3d0] sm:$0xff] %v2668_v9  ;;  %2695 = vtanh.f32 %v1646_v11 }
 0x18c   : > { %v2672_v12 = vpop.eup %2671  ;;  %1833 = vst [vmem:[%s2919_s14 + $0x1c0] sm:$0xff] %v2670_v10 }
 0x18d   : > { %v2674_v13 = vpop.eup %2673  ;;  %1897 = vst [vmem:[%s2919_s14 + $0x3c0] sm:$0xff] %v2672_v12 }
 0x18e   : > { %v2676_v14 = vpop.eup %2675  ;;  %1836 = vst [vmem:[%s2919_s14 + $0x1d8] sm:$0xff] %v2674_v13 }
 0x18f   : > { %v2678_v51 = vpop.eup %2677  ;;  %1900 = vst [vmem:[%s2919_s14 + $0x3d8] sm:$0xff] %v2676_v14 }
 0x190   : > { %v2680_v15 = vpop.eup %2679  ;;  %1834 = vst [vmem:[%s2919_s14 + $0x1c8] sm:$0xff] %v2678_v51 }
 0x191   : > { %v2682_v16 = vpop.eup %2681  ;;  %1898 = vst [vmem:[%s2919_s14 + $0x3c8] sm:$0xff] %v2680_v15 }
 0x192   : > { %v2684_v17 = vpop.eup %2683  ;;  %1839 = vst [vmem:[%s2919_s14 + $0x1f0] sm:$0xff] %v2682_v16 }
 0x193   : > { %v2686_v18 = vpop.eup %2685  ;;  %1903 = vst [vmem:[%s2919_s14 + $0x3f0] sm:$0xff] %v2684_v17 }
 0x194   : > { %v2688_v19 = vpop.eup %2687  ;;  %1837 = vst [vmem:[%s2919_s14 + $0x1e0] sm:$0xff] %v2686_v18 }
 0x195   : > { %v2690_v20 = vpop.eup %2689  ;;  %1901 = vst [vmem:[%s2919_s14 + $0x3e0] sm:$0xff] %v2688_v19 }
 0x196   : > { %v2692_v21 = vpop.eup %2691  ;;  %1840 = vst [vmem:[%s2919_s14 + $0x1f8] sm:$0xff] %v2690_v20 }
 0x197   : > { %v2694_v22 = vpop.eup %2693  ;;  %1904 = vst [vmem:[%s2919_s14 + $0x3f8] sm:$0xff] %v2692_v21 }
 0x198   : > { %v2696_v23 = vpop.eup %2695  ;;  %1838 = vst [vmem:[%s2919_s14 + $0x1e8] sm:$0xff] %v2694_v22 }
 0x199   : > { %1902 = vst [vmem:[%s2919_s14 + $0x3e8] sm:$0xff] %v2696_v23 }
 0x19a PF: > { %s14_s19 = sadd.s32 1, %s2737_s19   ;;  %s3309_s15 = smov %s2729_s17 }
 0x19b   : > { %p11_p7 = scmp.ge.s32.totalorder %s14_s19, 34   ;;  %s3310_s16 = smov %s2733_s18 }
 0x19c   : > { %s3311_s17 = smov %s3314_s20  ;;  %s3312_s18 = smov %s3318_s21 }
 0x19d   :  { %13 = sbr.rel (!%p11_p7) target bundleno = 3 (0x3), region = 69 }

</bundles_post_ra>
